<compile_context>
chip_gen: v7x
topology: tpu7x:2x2x1
jax: 0.10.0
libtpu: 0.0.40
codegen_flags: <defaults>
</compile_context>

<pallas_src>
import jax
import jax.numpy as jnp
from jax.experimental import pallas as pl
from jax.experimental.pallas import tpu as pltpu

LPAD = 8  # left-halo width on the W (sublane) axis -> aligned interior writes


def unet_forward(x_nchw, params, b_blk=None):
    w1, b1, w2, b2, w3, b3, w4, b4 = params
    x = jnp.transpose(x_nchw, (0, 2, 3, 1)).astype(jnp.float32)     # NHWC
    N, H, W, Cin = x.shape
    assert H % 2 == 0 and W % 2 == 0, "pooling assumes even spatial dims"
    Hh, Wh = H // 2, W // 2
    c1, c2, c3 = w1.shape[-1], w2.shape[-1], w3.shape[-1]
    n_cls = w4.shape[-1]

    if b_blk is None:
        b_blk = next(b for b in (8, 4, 2, 1) if N % b == 0)
    assert N % b_blk == 0
    Wp = W + LPAD + 1          # padded width of the full-res buffers
    m_full = b_blk * H * W     # matmul M dim, conv1/conv2
    m_half = b_blk * Hh * Wh   # matmul M dim, conv3 / output columns

    # Spatial zero-pad fused into the input: 1 row top/bottom, LPAD cols left
    # (alignment), 1 col right.  No in-kernel staging of x needed.
    x_pad = jnp.pad(x, ((0, 0), (1, 1), (LPAD, 1), (0, 0)))

    # 3x3 weights as (9, cin, cout) (tap-major, matches HWIO raster order);
    # the 1x1 head pre-transposed so the kernel can emit (n_cls, M) directly.
    w1f = w1.reshape(9, Cin, c1).astype(jnp.float32)
    w2f = w2.reshape(9, c1, c2).astype(jnp.float32)
    w3f = w3.reshape(9, c2, c3).astype(jnp.float32)
    w4t = jnp.transpose(w4).astype(jnp.float32)                      # (n_cls, c3)
    b4t = jnp.transpose(b4).astype(jnp.float32)                      # (n_cls, 1)

    def kernel(x_ref, w1_ref, b1_ref, w2_ref, b2_ref, w3_ref, b3_ref,
               w4t_ref, b4t_ref, o_ref, pad2_ref, pool_ref):
        # Scratch persists across grid steps; interiors are fully rewritten
        # every step, so the zero halos only need to be written once.
        @pl.when(pl.program_id(0) == 0)
        def _init():
            pad2_ref[...] = jnp.zeros_like(pad2_ref)
            pool_ref[...] = jnp.zeros_like(pool_ref)

        def conv3x3_relu(src_ref, w_ref, b_ref, h, w):
            # src_ref: (B, h+2, w+LPAD+1, cin), zero halo, interior at
            # [1:h+1, LPAD:LPAD+w].  9 accumulated dots, f32 accumulation.
            cin = src_ref.shape[-1]
            cout = w_ref.shape[-1]
            acc = jnp.zeros((b_blk * h * w, cout), jnp.float32)
            for t in range(9):
                dy, dx = divmod(t, 3)
                tap = src_ref[:, dy:dy + h, LPAD - 1 + dx:LPAD - 1 + dx + w, :]
                acc += jnp.dot(tap.reshape(b_blk * h * w, cin), w_ref[t],
                               preferred_element_type=jnp.float32)
            return jnp.maximum(acc + b_ref[...], 0.0)

        # ---- encoder conv1 (Cin -> c1), taps read straight from padded input
        h1 = conv3x3_relu(x_ref, w1_ref, b1_ref, H, W)               # (M, c1)
        pad2_ref[:, 1:H + 1, LPAD:LPAD + W, :] = h1.reshape(b_blk, H, W, c1)

        # ---- encoder conv2 (c1 -> c2)
        h2 = conv3x3_relu(pad2_ref, w2_ref, b2_ref, H, W)            # (M, c2)

        # ---- 2x2 max-pool, step 1: row-pair max (leading-dim ops only)
        h2v = h2.reshape(b_blk, Hh, 2, W, c2)
        rmax = jnp.maximum(h2v[:, :, 0], h2v[:, :, 1])               # (B, Hh, W, c2)
        pool_ref[:, 1:Hh + 1, LPAD:LPAD + W, :] = rmax
        # step 2 (column-pair max) is folded into conv3's tap reads below.

        # ---- decoder conv3 (c2 -> c3) on the pooled map
        acc = jnp.zeros((m_half, c3), jnp.float32)
        for t in range(9):
            dy, dx = divmod(t, 3)
            even = pool_ref[:, dy:dy + Hh, pl.ds(LPAD - 2 + 2 * dx, Wh, 2), :]
            odd = pool_ref[:, dy:dy + Hh, pl.ds(LPAD - 1 + 2 * dx, Wh, 2), :]
            tap = jnp.maximum(even, odd).reshape(m_half, c2)
            acc += jnp.dot(tap, w3_ref[t], preferred_element_type=jnp.float32)
        h3 = jnp.maximum(acc + b3_ref[...], 0.0)                     # (Mh, c3)

        # ---- decoder 1x1 conv (c3 -> n_cls) + sigmoid, emitted transposed so
        # the output store is lane-dense.
        logits_t = jnp.dot(w4t_ref[...], h3.T,
                           preferred_element_type=jnp.float32) + b4t_ref[...]
        o_ref[...] = 1.0 / (1.0 + jnp.exp(-logits_t))                # (n_cls, Mh)

    grid_spec = pltpu.PrefetchScalarGridSpec(
        num_scalar_prefetch=0,
        grid=(N // b_blk,),
        in_specs=[
            pl.BlockSpec((b_blk, H + 2, Wp, Cin), lambda n: (n, 0, 0, 0)),
            pl.BlockSpec(w1f.shape, lambda n: (0, 0, 0)),
            pl.BlockSpec(b1.shape, lambda n: (0, 0)),
            pl.BlockSpec(w2f.shape, lambda n: (0, 0, 0)),
            pl.BlockSpec(b2.shape, lambda n: (0, 0)),
            pl.BlockSpec(w3f.shape, lambda n: (0, 0, 0)),
            pl.BlockSpec(b3.shape, lambda n: (0, 0)),
            pl.BlockSpec(w4t.shape, lambda n: (0, 0)),
            pl.BlockSpec(b4t.shape, lambda n: (0, 0)),
        ],
        out_specs=pl.BlockSpec((n_cls, m_half), lambda n: (0, n)),
        scratch_shapes=[
            pltpu.VMEM((b_blk, H + 2, Wp, c1), jnp.float32),       # padded conv1 out
            pltpu.VMEM((b_blk, Hh + 2, W + LPAD + 2, c2), jnp.float32),  # padded row-max
        ],
    )

    out_flat = pl.pallas_call(
        kernel,
        out_shape=jax.ShapeDtypeStruct((n_cls, N * Hh * Wh), jnp.float32),
        grid_spec=grid_spec,
        # "arbitrary": the zero-once scratch init at program 0 must be seen by
        # every grid step (a core-parallel split could start past program 0).
        compiler_params=pltpu.CompilerParams(
            dimension_semantics=("arbitrary",)),
    )(x_pad, w1f, b1, w2f, b2, w3f, b3, w4t, b4t)

    out = out_flat.reshape(n_cls, N, Hh, Wh)
    return jnp.transpose(out, (1, 0, 2, 3))                          # NCHW


def unet_reference(x_nchw, params):
    """Pure-JAX f32 reference (same semantics as the PyTorch module)."""
    w1, b1, w2, b2, w3, b3, w4, b4 = params
    x = jnp.transpose(x_nchw, (0, 2, 3, 1)).astype(jnp.float32)

    def conv(h, w, b):
        y = jax.lax.conv_general_dilated(
            h, w, window_strides=(1, 1), padding="SAME",
            dimension_numbers=("NHWC", "HWIO", "NHWC"))
        return y + b.reshape(1, 1, 1, -1)

    h = jax.nn.relu(conv(x, w1, b1))
    h = jax.nn.relu(conv(h, w2, b2))
    h = jax.lax.reduce_window(h, -jnp.inf, jax.lax.max,
                              (1, 2, 2, 1), (1, 2, 2, 1), "VALID")
    h = jax.nn.relu(conv(h, w3, b3))
    h = conv(h, w4.reshape(1, 1, w4.shape[0], w4.shape[1]), b4)
    return jnp.transpose(jax.nn.sigmoid(h), (0, 3, 1, 2))


if __name__ == "__main__":
    n_channels, n_classes = 3, 1
    key = jax.random.PRNGKey(0)
    keys = jax.random.split(key, 9)

    def rnd(k, shape, scale=0.1):
        return scale * jax.random.normal(k, shape, jnp.float32)

    # Deterministic synthetic parameters (HWIO conv weights, (1, C) biases).
    params = (
        rnd(keys[0], (3, 3, n_channels, 16)), rnd(keys[1], (1, 16)),
        rnd(keys[2], (3, 3, 16, 32)),         rnd(keys[3], (1, 32)),
        rnd(keys[4], (3, 3, 32, 16)),         rnd(keys[5], (1, 16)),
        rnd(keys[6], (16, n_classes)),        rnd(keys[7], (1, n_classes)),
    )

    # Input in PyTorch NCHW convention; N=4, b_blk=2 exercises both batching
    # within a grid step and halo persistence across steps.
    x = jax.random.normal(keys[8], (4, n_channels, 16, 16), jnp.float32)

    out = jax.block_until_ready(unet_forward(x, params, b_blk=2))
    ref = jax.block_until_ready(unet_reference(x, params))

    assert out.shape == (4, n_classes, 8, 8), out.shape
    assert bool(jnp.allclose(out, ref, atol=2e-2, rtol=0.0)), \
        float(jnp.max(jnp.abs(out - ref)))
    print("KERNEL_OK")
</pallas_src>

<mosaic_0001>
module attributes {stable_mosaic.version = 11 : i64} {
  func.func @kernel(%arg0: i32, %arg1: memref<2x18x25x3xf32, #tpu.memory_space<vmem>>, %arg2: memref<9x3x16xf32, #tpu.memory_space<vmem>>, %arg3: memref<1x16xf32, #tpu.memory_space<vmem>>, %arg4: memref<9x16x32xf32, #tpu.memory_space<vmem>>, %arg5: memref<1x32xf32, #tpu.memory_space<vmem>>, %arg6: memref<9x32x16xf32, #tpu.memory_space<vmem>>, %arg7: memref<1x16xf32, #tpu.memory_space<vmem>>, %arg8: memref<1x16xf32, #tpu.memory_space<vmem>>, %arg9: memref<1x1xf32, #tpu.memory_space<vmem>>, %arg10: memref<1x128xf32, #tpu.memory_space<vmem>>, %arg11: memref<2x18x25x16xf32, #tpu.memory_space<vmem>>, %arg12: memref<2x10x26x32xf32, #tpu.memory_space<vmem>>) attributes {dimension_semantics = [#tpu.dimension_semantics<arbitrary>], iteration_bounds = array<i64: 2>, scalar_prefetch = 0 : i64, scratch_operands = 2 : i64, tpu.core_type = #tpu.core_type<tc>, window_params = [{transform_indices = @transform_0, window_bounds = array<i64: 2, 18, 25, 3>}, {pipeline_mode = #tpu.pipeline_mode<synchronous>, transform_indices = @transform_1, window_bounds = array<i64: 9, 3, 16>}, {pipeline_mode = #tpu.pipeline_mode<synchronous>, transform_indices = @transform_2, window_bounds = array<i64: 1, 16>}, {pipeline_mode = #tpu.pipeline_mode<synchronous>, transform_indices = @transform_3, window_bounds = array<i64: 9, 16, 32>}, {pipeline_mode = #tpu.pipeline_mode<synchronous>, transform_indices = @transform_4, window_bounds = array<i64: 1, 32>}, {pipeline_mode = #tpu.pipeline_mode<synchronous>, transform_indices = @transform_5, window_bounds = array<i64: 9, 32, 16>}, {pipeline_mode = #tpu.pipeline_mode<synchronous>, transform_indices = @transform_6, window_bounds = array<i64: 1, 16>}, {pipeline_mode = #tpu.pipeline_mode<synchronous>, transform_indices = @transform_7, window_bounds = array<i64: 1, 16>}, {pipeline_mode = #tpu.pipeline_mode<synchronous>, transform_indices = @transform_8, window_bounds = array<i64: 1, 1>}, {transform_indices = @transform_9, window_bounds = array<i64: 1, 128>}]} {
    %c0_i32 = arith.constant 0 : i32
    %0 = arith.cmpi eq, %arg0, %c0_i32 : i32
    %1 = arith.extui %0 : i1 to i32
    %c0_i32_0 = arith.constant 0 : i32
    %2 = arith.cmpi ne, %1, %c0_i32_0 : i32
    scf.if %2 {
      %cst_270 = arith.constant 0.000000e+00 : f32
      %224 = vector.broadcast %cst_270 : f32 to vector<2x18x25x16xf32>
      %c0_271 = arith.constant 0 : index
      %c0_272 = arith.constant 0 : index
      %c0_273 = arith.constant 0 : index
      %c0_274 = arith.constant 0 : index
      %225 = vector.load %arg11[%c0_271, %c0_272, %c0_273, %c0_274] : memref<2x18x25x16xf32, #tpu.memory_space<vmem>>, vector<2x18x25x16xf32>
      tpu.vector_store %arg11[%c0_271, %c0_272, %c0_273, %c0_274], %224 {strides = array<i32>} : memref<2x18x25x16xf32, #tpu.memory_space<vmem>>, vector<2x18x25x16xf32>,
      %cst_275 = arith.constant 0.000000e+00 : f32
      %226 = vector.broadcast %cst_275 : f32 to vector<2x10x26x32xf32>
      %c0_276 = arith.constant 0 : index
      %c0_277 = arith.constant 0 : index
      %c0_278 = arith.constant 0 : index
      %c0_279 = arith.constant 0 : index
      %227 = vector.load %arg12[%c0_276, %c0_277, %c0_278, %c0_279] : memref<2x10x26x32xf32, #tpu.memory_space<vmem>>, vector<2x10x26x32xf32>
      tpu.vector_store %arg12[%c0_276, %c0_277, %c0_278, %c0_279], %226 {strides = array<i32>} : memref<2x10x26x32xf32, #tpu.memory_space<vmem>>, vector<2x10x26x32xf32>,
    } else {
    }
    %cst = arith.constant 0.000000e+00 : f32
    %3 = vector.broadcast %cst : f32 to vector<512x16xf32>
    %c0 = arith.constant 0 : index
    %c0_1 = arith.constant 0 : index
    %c7 = arith.constant 7 : index
    %c0_2 = arith.constant 0 : index
    %4 = vector.load %arg1[%c0, %c0_1, %c7, %c0_2] : memref<2x18x25x3xf32, #tpu.memory_space<vmem>>, vector<2x16x16x3xf32>
    %5 = vector.shape_cast %4 : vector<2x16x16x3xf32> to vector<512x3xf32>
    %c0_3 = arith.constant 0 : index
    %c0_4 = arith.constant 0 : index
    %c0_5 = arith.constant 0 : index
    %6 = vector.load %arg2[%c0_3, %c0_4, %c0_5] : memref<9x3x16xf32, #tpu.memory_space<vmem>>, vector<1x3x16xf32>
    %7 = vector.shape_cast %6 : vector<1x3x16xf32> to vector<3x16xf32>
    %cst_6 = arith.constant dense<0.000000e+00> : vector<512x16xf32>
    %8 = tpu.matmul %5, %7, %cst_6 {dimension_numbers = #tpu.dot_dimension_numbers<[1], [0], [0], [1], [0, 0, 1, 1], [], []>} : vector<512x3xf32>, vector<3x16xf32>, vector<512x16xf32> -> vector<512x16xf32>
    %9 = arith.addf %3, %8 : vector<512x16xf32>
    %c0_7 = arith.constant 0 : index
    %c0_8 = arith.constant 0 : index
    %c8 = arith.constant 8 : index
    %c0_9 = arith.constant 0 : index
    %10 = vector.load %arg1[%c0_7, %c0_8, %c8, %c0_9] : memref<2x18x25x3xf32, #tpu.memory_space<vmem>>, vector<2x16x16x3xf32>
    %11 = vector.shape_cast %10 : vector<2x16x16x3xf32> to vector<512x3xf32>
    %c1 = arith.constant 1 : index
    %c0_10 = arith.constant 0 : index
    %c0_11 = arith.constant 0 : index
    %12 = vector.load %arg2[%c1, %c0_10, %c0_11] : memref<9x3x16xf32, #tpu.memory_space<vmem>>, vector<1x3x16xf32>
    %13 = vector.shape_cast %12 : vector<1x3x16xf32> to vector<3x16xf32>
    %cst_12 = arith.constant dense<0.000000e+00> : vector<512x16xf32>
    %14 = tpu.matmul %11, %13, %cst_12 {dimension_numbers = #tpu.dot_dimension_numbers<[1], [0], [0], [1], [0, 0, 1, 1], [], []>} : vector<512x3xf32>, vector<3x16xf32>, vector<512x16xf32> -> vector<512x16xf32>
    %15 = arith.addf %9, %14 : vector<512x16xf32>
    %c0_13 = arith.constant 0 : index
    %c0_14 = arith.constant 0 : index
    %c9 = arith.constant 9 : index
    %c0_15 = arith.constant 0 : index
    %16 = vector.load %arg1[%c0_13, %c0_14, %c9, %c0_15] : memref<2x18x25x3xf32, #tpu.memory_space<vmem>>, vector<2x16x16x3xf32>
    %17 = vector.shape_cast %16 : vector<2x16x16x3xf32> to vector<512x3xf32>
    %c2 = arith.constant 2 : index
    %c0_16 = arith.constant 0 : index
    %c0_17 = arith.constant 0 : index
    %18 = vector.load %arg2[%c2, %c0_16, %c0_17] : memref<9x3x16xf32, #tpu.memory_space<vmem>>, vector<1x3x16xf32>
    %19 = vector.shape_cast %18 : vector<1x3x16xf32> to vector<3x16xf32>
    %cst_18 = arith.constant dense<0.000000e+00> : vector<512x16xf32>
    %20 = tpu.matmul %17, %19, %cst_18 {dimension_numbers = #tpu.dot_dimension_numbers<[1], [0], [0], [1], [0, 0, 1, 1], [], []>} : vector<512x3xf32>, vector<3x16xf32>, vector<512x16xf32> -> vector<512x16xf32>
    %21 = arith.addf %15, %20 : vector<512x16xf32>
    %c0_19 = arith.constant 0 : index
    %c1_20 = arith.constant 1 : index
    %c7_21 = arith.constant 7 : index
    %c0_22 = arith.constant 0 : index
    %22 = vector.load %arg1[%c0_19, %c1_20, %c7_21, %c0_22] : memref<2x18x25x3xf32, #tpu.memory_space<vmem>>, vector<2x16x16x3xf32>
    %23 = vector.shape_cast %22 : vector<2x16x16x3xf32> to vector<512x3xf32>
    %c3 = arith.constant 3 : index
    %c0_23 = arith.constant 0 : index
    %c0_24 = arith.constant 0 : index
    %24 = vector.load %arg2[%c3, %c0_23, %c0_24] : memref<9x3x16xf32, #tpu.memory_space<vmem>>, vector<1x3x16xf32>
    %25 = vector.shape_cast %24 : vector<1x3x16xf32> to vector<3x16xf32>
    %cst_25 = arith.constant dense<0.000000e+00> : vector<512x16xf32>
    %26 = tpu.matmul %23, %25, %cst_25 {dimension_numbers = #tpu.dot_dimension_numbers<[1], [0], [0], [1], [0, 0, 1, 1], [], []>} : vector<512x3xf32>, vector<3x16xf32>, vector<512x16xf32> -> vector<512x16xf32>
    %27 = arith.addf %21, %26 : vector<512x16xf32>
    %c0_26 = arith.constant 0 : index
    %c1_27 = arith.constant 1 : index
    %c8_28 = arith.constant 8 : index
    %c0_29 = arith.constant 0 : index
    %28 = vector.load %arg1[%c0_26, %c1_27, %c8_28, %c0_29] : memref<2x18x25x3xf32, #tpu.memory_space<vmem>>, vector<2x16x16x3xf32>
    %29 = vector.shape_cast %28 : vector<2x16x16x3xf32> to vector<512x3xf32>
    %c4 = arith.constant 4 : index
    %c0_30 = arith.constant 0 : index
    %c0_31 = arith.constant 0 : index
    %30 = vector.load %arg2[%c4, %c0_30, %c0_31] : memref<9x3x16xf32, #tpu.memory_space<vmem>>, vector<1x3x16xf32>
    %31 = vector.shape_cast %30 : vector<1x3x16xf32> to vector<3x16xf32>
    %cst_32 = arith.constant dense<0.000000e+00> : vector<512x16xf32>
    %32 = tpu.matmul %29, %31, %cst_32 {dimension_numbers = #tpu.dot_dimension_numbers<[1], [0], [0], [1], [0, 0, 1, 1], [], []>} : vector<512x3xf32>, vector<3x16xf32>, vector<512x16xf32> -> vector<512x16xf32>
    %33 = arith.addf %27, %32 : vector<512x16xf32>
    %c0_33 = arith.constant 0 : index
    %c1_34 = arith.constant 1 : index
    %c9_35 = arith.constant 9 : index
    %c0_36 = arith.constant 0 : index
    %34 = vector.load %arg1[%c0_33, %c1_34, %c9_35, %c0_36] : memref<2x18x25x3xf32, #tpu.memory_space<vmem>>, vector<2x16x16x3xf32>
    %35 = vector.shape_cast %34 : vector<2x16x16x3xf32> to vector<512x3xf32>
    %c5 = arith.constant 5 : index
    %c0_37 = arith.constant 0 : index
    %c0_38 = arith.constant 0 : index
    %36 = vector.load %arg2[%c5, %c0_37, %c0_38] : memref<9x3x16xf32, #tpu.memory_space<vmem>>, vector<1x3x16xf32>
    %37 = vector.shape_cast %36 : vector<1x3x16xf32> to vector<3x16xf32>
    %cst_39 = arith.constant dense<0.000000e+00> : vector<512x16xf32>
    %38 = tpu.matmul %35, %37, %cst_39 {dimension_numbers = #tpu.dot_dimension_numbers<[1], [0], [0], [1], [0, 0, 1, 1], [], []>} : vector<512x3xf32>, vector<3x16xf32>, vector<512x16xf32> -> vector<512x16xf32>
    %39 = arith.addf %33, %38 : vector<512x16xf32>
    %c0_40 = arith.constant 0 : index
    %c2_41 = arith.constant 2 : index
    %c7_42 = arith.constant 7 : index
    %c0_43 = arith.constant 0 : index
    %40 = vector.load %arg1[%c0_40, %c2_41, %c7_42, %c0_43] : memref<2x18x25x3xf32, #tpu.memory_space<vmem>>, vector<2x16x16x3xf32>
    %41 = vector.shape_cast %40 : vector<2x16x16x3xf32> to vector<512x3xf32>
    %c6 = arith.constant 6 : index
    %c0_44 = arith.constant 0 : index
    %c0_45 = arith.constant 0 : index
    %42 = vector.load %arg2[%c6, %c0_44, %c0_45] : memref<9x3x16xf32, #tpu.memory_space<vmem>>, vector<1x3x16xf32>
    %43 = vector.shape_cast %42 : vector<1x3x16xf32> to vector<3x16xf32>
    %cst_46 = arith.constant dense<0.000000e+00> : vector<512x16xf32>
    %44 = tpu.matmul %41, %43, %cst_46 {dimension_numbers = #tpu.dot_dimension_numbers<[1], [0], [0], [1], [0, 0, 1, 1], [], []>} : vector<512x3xf32>, vector<3x16xf32>, vector<512x16xf32> -> vector<512x16xf32>
    %45 = arith.addf %39, %44 : vector<512x16xf32>
    %c0_47 = arith.constant 0 : index
    %c2_48 = arith.constant 2 : index
    %c8_49 = arith.constant 8 : index
    %c0_50 = arith.constant 0 : index
    %46 = vector.load %arg1[%c0_47, %c2_48, %c8_49, %c0_50] : memref<2x18x25x3xf32, #tpu.memory_space<vmem>>, vector<2x16x16x3xf32>
    %47 = vector.shape_cast %46 : vector<2x16x16x3xf32> to vector<512x3xf32>
    %c7_51 = arith.constant 7 : index
    %c0_52 = arith.constant 0 : index
    %c0_53 = arith.constant 0 : index
    %48 = vector.load %arg2[%c7_51, %c0_52, %c0_53] : memref<9x3x16xf32, #tpu.memory_space<vmem>>, vector<1x3x16xf32>
    %49 = vector.shape_cast %48 : vector<1x3x16xf32> to vector<3x16xf32>
    %cst_54 = arith.constant dense<0.000000e+00> : vector<512x16xf32>
    %50 = tpu.matmul %47, %49, %cst_54 {dimension_numbers = #tpu.dot_dimension_numbers<[1], [0], [0], [1], [0, 0, 1, 1], [], []>} : vector<512x3xf32>, vector<3x16xf32>, vector<512x16xf32> -> vector<512x16xf32>
    %51 = arith.addf %45, %50 : vector<512x16xf32>
    %c0_55 = arith.constant 0 : index
    %c2_56 = arith.constant 2 : index
    %c9_57 = arith.constant 9 : index
    %c0_58 = arith.constant 0 : index
    %52 = vector.load %arg1[%c0_55, %c2_56, %c9_57, %c0_58] : memref<2x18x25x3xf32, #tpu.memory_space<vmem>>, vector<2x16x16x3xf32>
    %53 = vector.shape_cast %52 : vector<2x16x16x3xf32> to vector<512x3xf32>
    %c8_59 = arith.constant 8 : index
    %c0_60 = arith.constant 0 : index
    %c0_61 = arith.constant 0 : index
    %54 = vector.load %arg2[%c8_59, %c0_60, %c0_61] : memref<9x3x16xf32, #tpu.memory_space<vmem>>, vector<1x3x16xf32>
    %55 = vector.shape_cast %54 : vector<1x3x16xf32> to vector<3x16xf32>
    %cst_62 = arith.constant dense<0.000000e+00> : vector<512x16xf32>
    %56 = tpu.matmul %53, %55, %cst_62 {dimension_numbers = #tpu.dot_dimension_numbers<[1], [0], [0], [1], [0, 0, 1, 1], [], []>} : vector<512x3xf32>, vector<3x16xf32>, vector<512x16xf32> -> vector<512x16xf32>
    %57 = arith.addf %51, %56 : vector<512x16xf32>
    %c0_63 = arith.constant 0 : index
    %c0_64 = arith.constant 0 : index
    %58 = vector.load %arg3[%c0_63, %c0_64] : memref<1x16xf32, #tpu.memory_space<vmem>>, vector<1x16xf32>
    %59 = vector.broadcast %58 : vector<1x16xf32> to vector<512x16xf32>
    %60 = arith.addf %57, %59 : vector<512x16xf32>
    %cst_65 = arith.constant 0.000000e+00 : f32
    %61 = vector.broadcast %cst_65 : f32 to vector<512x16xf32>
    %62 = arith.maximumf %60, %61 : vector<512x16xf32>
    %63 = vector.shape_cast %62 : vector<512x16xf32> to vector<2x16x16x16xf32>
    %c0_66 = arith.constant 0 : index
    %c1_67 = arith.constant 1 : index
    %c8_68 = arith.constant 8 : index
    %c0_69 = arith.constant 0 : index
    %64 = vector.load %arg11[%c0_66, %c1_67, %c8_68, %c0_69] : memref<2x18x25x16xf32, #tpu.memory_space<vmem>>, vector<2x16x16x16xf32>
    tpu.vector_store %arg11[%c0_66, %c1_67, %c8_68, %c0_69], %63 {strides = array<i32>} : memref<2x18x25x16xf32, #tpu.memory_space<vmem>>, vector<2x16x16x16xf32>,
    %cst_70 = arith.constant 0.000000e+00 : f32
    %65 = vector.broadcast %cst_70 : f32 to vector<512x32xf32>
    %c0_71 = arith.constant 0 : index
    %c0_72 = arith.constant 0 : index
    %c7_73 = arith.constant 7 : index
    %c0_74 = arith.constant 0 : index
    %66 = vector.load %arg11[%c0_71, %c0_72, %c7_73, %c0_74] : memref<2x18x25x16xf32, #tpu.memory_space<vmem>>, vector<2x16x16x16xf32>
    %67 = vector.shape_cast %66 : vector<2x16x16x16xf32> to vector<512x16xf32>
    %c0_75 = arith.constant 0 : index
    %c0_76 = arith.constant 0 : index
    %c0_77 = arith.constant 0 : index
    %68 = vector.load %arg4[%c0_75, %c0_76, %c0_77] : memref<9x16x32xf32, #tpu.memory_space<vmem>>, vector<1x16x32xf32>
    %69 = vector.shape_cast %68 : vector<1x16x32xf32> to vector<16x32xf32>
    %cst_78 = arith.constant dense<0.000000e+00> : vector<512x32xf32>
    %70 = tpu.matmul %67, %69, %cst_78 {dimension_numbers = #tpu.dot_dimension_numbers<[1], [0], [0], [1], [0, 0, 1, 1], [], []>} : vector<512x16xf32>, vector<16x32xf32>, vector<512x32xf32> -> vector<512x32xf32>
    %71 = arith.addf %65, %70 : vector<512x32xf32>
    %c0_79 = arith.constant 0 : index
    %c0_80 = arith.constant 0 : index
    %c8_81 = arith.constant 8 : index
    %c0_82 = arith.constant 0 : index
    %72 = vector.load %arg11[%c0_79, %c0_80, %c8_81, %c0_82] : memref<2x18x25x16xf32, #tpu.memory_space<vmem>>, vector<2x16x16x16xf32>
    %73 = vector.shape_cast %72 : vector<2x16x16x16xf32> to vector<512x16xf32>
    %c1_83 = arith.constant 1 : index
    %c0_84 = arith.constant 0 : index
    %c0_85 = arith.constant 0 : index
    %74 = vector.load %arg4[%c1_83, %c0_84, %c0_85] : memref<9x16x32xf32, #tpu.memory_space<vmem>>, vector<1x16x32xf32>
    %75 = vector.shape_cast %74 : vector<1x16x32xf32> to vector<16x32xf32>
    %cst_86 = arith.constant dense<0.000000e+00> : vector<512x32xf32>
    %76 = tpu.matmul %73, %75, %cst_86 {dimension_numbers = #tpu.dot_dimension_numbers<[1], [0], [0], [1], [0, 0, 1, 1], [], []>} : vector<512x16xf32>, vector<16x32xf32>, vector<512x32xf32> -> vector<512x32xf32>
    %77 = arith.addf %71, %76 : vector<512x32xf32>
    %c0_87 = arith.constant 0 : index
    %c0_88 = arith.constant 0 : index
    %c9_89 = arith.constant 9 : index
    %c0_90 = arith.constant 0 : index
    %78 = vector.load %arg11[%c0_87, %c0_88, %c9_89, %c0_90] : memref<2x18x25x16xf32, #tpu.memory_space<vmem>>, vector<2x16x16x16xf32>
    %79 = vector.shape_cast %78 : vector<2x16x16x16xf32> to vector<512x16xf32>
    %c2_91 = arith.constant 2 : index
    %c0_92 = arith.constant 0 : index
    %c0_93 = arith.constant 0 : index
    %80 = vector.load %arg4[%c2_91, %c0_92, %c0_93] : memref<9x16x32xf32, #tpu.memory_space<vmem>>, vector<1x16x32xf32>
    %81 = vector.shape_cast %80 : vector<1x16x32xf32> to vector<16x32xf32>
    %cst_94 = arith.constant dense<0.000000e+00> : vector<512x32xf32>
    %82 = tpu.matmul %79, %81, %cst_94 {dimension_numbers = #tpu.dot_dimension_numbers<[1], [0], [0], [1], [0, 0, 1, 1], [], []>} : vector<512x16xf32>, vector<16x32xf32>, vector<512x32xf32> -> vector<512x32xf32>
    %83 = arith.addf %77, %82 : vector<512x32xf32>
    %c0_95 = arith.constant 0 : index
    %c1_96 = arith.constant 1 : index
    %c7_97 = arith.constant 7 : index
    %c0_98 = arith.constant 0 : index
    %84 = vector.load %arg11[%c0_95, %c1_96, %c7_97, %c0_98] : memref<2x18x25x16xf32, #tpu.memory_space<vmem>>, vector<2x16x16x16xf32>
    %85 = vector.shape_cast %84 : vector<2x16x16x16xf32> to vector<512x16xf32>
    %c3_99 = arith.constant 3 : index
    %c0_100 = arith.constant 0 : index
    %c0_101 = arith.constant 0 : index
    %86 = vector.load %arg4[%c3_99, %c0_100, %c0_101] : memref<9x16x32xf32, #tpu.memory_space<vmem>>, vector<1x16x32xf32>
    %87 = vector.shape_cast %86 : vector<1x16x32xf32> to vector<16x32xf32>
    %cst_102 = arith.constant dense<0.000000e+00> : vector<512x32xf32>
    %88 = tpu.matmul %85, %87, %cst_102 {dimension_numbers = #tpu.dot_dimension_numbers<[1], [0], [0], [1], [0, 0, 1, 1], [], []>} : vector<512x16xf32>, vector<16x32xf32>, vector<512x32xf32> -> vector<512x32xf32>
    %89 = arith.addf %83, %88 : vector<512x32xf32>
    %c0_103 = arith.constant 0 : index
    %c1_104 = arith.constant 1 : index
    %c8_105 = arith.constant 8 : index
    %c0_106 = arith.constant 0 : index
    %90 = vector.load %arg11[%c0_103, %c1_104, %c8_105, %c0_106] : memref<2x18x25x16xf32, #tpu.memory_space<vmem>>, vector<2x16x16x16xf32>
    %91 = vector.shape_cast %90 : vector<2x16x16x16xf32> to vector<512x16xf32>
    %c4_107 = arith.constant 4 : index
    %c0_108 = arith.constant 0 : index
    %c0_109 = arith.constant 0 : index
    %92 = vector.load %arg4[%c4_107, %c0_108, %c0_109] : memref<9x16x32xf32, #tpu.memory_space<vmem>>, vector<1x16x32xf32>
    %93 = vector.shape_cast %92 : vector<1x16x32xf32> to vector<16x32xf32>
    %cst_110 = arith.constant dense<0.000000e+00> : vector<512x32xf32>
    %94 = tpu.matmul %91, %93, %cst_110 {dimension_numbers = #tpu.dot_dimension_numbers<[1], [0], [0], [1], [0, 0, 1, 1], [], []>} : vector<512x16xf32>, vector<16x32xf32>, vector<512x32xf32> -> vector<512x32xf32>
    %95 = arith.addf %89, %94 : vector<512x32xf32>
    %c0_111 = arith.constant 0 : index
    %c1_112 = arith.constant 1 : index
    %c9_113 = arith.constant 9 : index
    %c0_114 = arith.constant 0 : index
    %96 = vector.load %arg11[%c0_111, %c1_112, %c9_113, %c0_114] : memref<2x18x25x16xf32, #tpu.memory_space<vmem>>, vector<2x16x16x16xf32>
    %97 = vector.shape_cast %96 : vector<2x16x16x16xf32> to vector<512x16xf32>
    %c5_115 = arith.constant 5 : index
    %c0_116 = arith.constant 0 : index
    %c0_117 = arith.constant 0 : index
    %98 = vector.load %arg4[%c5_115, %c0_116, %c0_117] : memref<9x16x32xf32, #tpu.memory_space<vmem>>, vector<1x16x32xf32>
    %99 = vector.shape_cast %98 : vector<1x16x32xf32> to vector<16x32xf32>
    %cst_118 = arith.constant dense<0.000000e+00> : vector<512x32xf32>
    %100 = tpu.matmul %97, %99, %cst_118 {dimension_numbers = #tpu.dot_dimension_numbers<[1], [0], [0], [1], [0, 0, 1, 1], [], []>} : vector<512x16xf32>, vector<16x32xf32>, vector<512x32xf32> -> vector<512x32xf32>
    %101 = arith.addf %95, %100 : vector<512x32xf32>
    %c0_119 = arith.constant 0 : index
    %c2_120 = arith.constant 2 : index
    %c7_121 = arith.constant 7 : index
    %c0_122 = arith.constant 0 : index
    %102 = vector.load %arg11[%c0_119, %c2_120, %c7_121, %c0_122] : memref<2x18x25x16xf32, #tpu.memory_space<vmem>>, vector<2x16x16x16xf32>
    %103 = vector.shape_cast %102 : vector<2x16x16x16xf32> to vector<512x16xf32>
    %c6_123 = arith.constant 6 : index
    %c0_124 = arith.constant 0 : index
    %c0_125 = arith.constant 0 : index
    %104 = vector.load %arg4[%c6_123, %c0_124, %c0_125] : memref<9x16x32xf32, #tpu.memory_space<vmem>>, vector<1x16x32xf32>
    %105 = vector.shape_cast %104 : vector<1x16x32xf32> to vector<16x32xf32>
    %cst_126 = arith.constant dense<0.000000e+00> : vector<512x32xf32>
    %106 = tpu.matmul %103, %105, %cst_126 {dimension_numbers = #tpu.dot_dimension_numbers<[1], [0], [0], [1], [0, 0, 1, 1], [], []>} : vector<512x16xf32>, vector<16x32xf32>, vector<512x32xf32> -> vector<512x32xf32>
    %107 = arith.addf %101, %106 : vector<512x32xf32>
    %c0_127 = arith.constant 0 : index
    %c2_128 = arith.constant 2 : index
    %c8_129 = arith.constant 8 : index
    %c0_130 = arith.constant 0 : index
    %108 = vector.load %arg11[%c0_127, %c2_128, %c8_129, %c0_130] : memref<2x18x25x16xf32, #tpu.memory_space<vmem>>, vector<2x16x16x16xf32>
    %109 = vector.shape_cast %108 : vector<2x16x16x16xf32> to vector<512x16xf32>
    %c7_131 = arith.constant 7 : index
    %c0_132 = arith.constant 0 : index
    %c0_133 = arith.constant 0 : index
    %110 = vector.load %arg4[%c7_131, %c0_132, %c0_133] : memref<9x16x32xf32, #tpu.memory_space<vmem>>, vector<1x16x32xf32>
    %111 = vector.shape_cast %110 : vector<1x16x32xf32> to vector<16x32xf32>
    %cst_134 = arith.constant dense<0.000000e+00> : vector<512x32xf32>
    %112 = tpu.matmul %109, %111, %cst_134 {dimension_numbers = #tpu.dot_dimension_numbers<[1], [0], [0], [1], [0, 0, 1, 1], [], []>} : vector<512x16xf32>, vector<16x32xf32>, vector<512x32xf32> -> vector<512x32xf32>
    %113 = arith.addf %107, %112 : vector<512x32xf32>
    %c0_135 = arith.constant 0 : index
    %c2_136 = arith.constant 2 : index
    %c9_137 = arith.constant 9 : index
    %c0_138 = arith.constant 0 : index
    %114 = vector.load %arg11[%c0_135, %c2_136, %c9_137, %c0_138] : memref<2x18x25x16xf32, #tpu.memory_space<vmem>>, vector<2x16x16x16xf32>
    %115 = vector.shape_cast %114 : vector<2x16x16x16xf32> to vector<512x16xf32>
    %c8_139 = arith.constant 8 : index
    %c0_140 = arith.constant 0 : index
    %c0_141 = arith.constant 0 : index
    %116 = vector.load %arg4[%c8_139, %c0_140, %c0_141] : memref<9x16x32xf32, #tpu.memory_space<vmem>>, vector<1x16x32xf32>
    %117 = vector.shape_cast %116 : vector<1x16x32xf32> to vector<16x32xf32>
    %cst_142 = arith.constant dense<0.000000e+00> : vector<512x32xf32>
    %118 = tpu.matmul %115, %117, %cst_142 {dimension_numbers = #tpu.dot_dimension_numbers<[1], [0], [0], [1], [0, 0, 1, 1], [], []>} : vector<512x16xf32>, vector<16x32xf32>, vector<512x32xf32> -> vector<512x32xf32>
    %119 = arith.addf %113, %118 : vector<512x32xf32>
    %c0_143 = arith.constant 0 : index
    %c0_144 = arith.constant 0 : index
    %120 = vector.load %arg5[%c0_143, %c0_144] : memref<1x32xf32, #tpu.memory_space<vmem>>, vector<1x32xf32>
    %121 = vector.broadcast %120 : vector<1x32xf32> to vector<512x32xf32>
    %122 = arith.addf %119, %121 : vector<512x32xf32>
    %cst_145 = arith.constant 0.000000e+00 : f32
    %123 = vector.broadcast %cst_145 : f32 to vector<512x32xf32>
    %124 = arith.maximumf %122, %123 : vector<512x32xf32>
    %125 = vector.shape_cast %124 : vector<512x32xf32> to vector<2x8x2x16x32xf32>
    %126 = vector.extract_strided_slice %125 {offsets = [0, 0, 0, 0, 0], sizes = [2, 8, 1, 16, 32], strides = [1, 1, 1, 1, 1]} : vector<2x8x2x16x32xf32> to vector<2x8x1x16x32xf32>
    %127 = vector.shape_cast %126 : vector<2x8x1x16x32xf32> to vector<2x8x16x32xf32>
    %128 = vector.extract_strided_slice %125 {offsets = [0, 0, 1, 0, 0], sizes = [2, 8, 1, 16, 32], strides = [1, 1, 1, 1, 1]} : vector<2x8x2x16x32xf32> to vector<2x8x1x16x32xf32>
    %129 = vector.shape_cast %128 : vector<2x8x1x16x32xf32> to vector<2x8x16x32xf32>
    %130 = arith.maximumf %127, %129 : vector<2x8x16x32xf32>
    %c0_146 = arith.constant 0 : index
    %c1_147 = arith.constant 1 : index
    %c8_148 = arith.constant 8 : index
    %c0_149 = arith.constant 0 : index
    %131 = vector.load %arg12[%c0_146, %c1_147, %c8_148, %c0_149] : memref<2x10x26x32xf32, #tpu.memory_space<vmem>>, vector<2x8x16x32xf32>
    tpu.vector_store %arg12[%c0_146, %c1_147, %c8_148, %c0_149], %130 {strides = array<i32>} : memref<2x10x26x32xf32, #tpu.memory_space<vmem>>, vector<2x8x16x32xf32>,
    %cst_150 = arith.constant 0.000000e+00 : f32
    %132 = vector.broadcast %cst_150 : f32 to vector<128x16xf32>
    %c0_151 = arith.constant 0 : index
    %c0_152 = arith.constant 0 : index
    %c6_153 = arith.constant 6 : index
    %c0_154 = arith.constant 0 : index
    %133 = tpu.strided_load %arg12[%c0_151, %c0_152, %c6_153, %c0_154] {strides = array<i32: 1, 1, 2, 1>} : memref<2x10x26x32xf32, #tpu.memory_space<vmem>>, vector<2x8x8x32xf32>
    %c0_155 = arith.constant 0 : index
    %c0_156 = arith.constant 0 : index
    %c7_157 = arith.constant 7 : index
    %c0_158 = arith.constant 0 : index
    %134 = tpu.strided_load %arg12[%c0_155, %c0_156, %c7_157, %c0_158] {strides = array<i32: 1, 1, 2, 1>} : memref<2x10x26x32xf32, #tpu.memory_space<vmem>>, vector<2x8x8x32xf32>
    %135 = arith.maximumf %133, %134 : vector<2x8x8x32xf32>
    %136 = vector.shape_cast %135 : vector<2x8x8x32xf32> to vector<128x32xf32>
    %c0_159 = arith.constant 0 : index
    %c0_160 = arith.constant 0 : index
    %c0_161 = arith.constant 0 : index
    %137 = vector.load %arg6[%c0_159, %c0_160, %c0_161] : memref<9x32x16xf32, #tpu.memory_space<vmem>>, vector<1x32x16xf32>
    %138 = vector.shape_cast %137 : vector<1x32x16xf32> to vector<32x16xf32>
    %cst_162 = arith.constant dense<0.000000e+00> : vector<128x16xf32>
    %139 = tpu.matmul %136, %138, %cst_162 {dimension_numbers = #tpu.dot_dimension_numbers<[1], [0], [0], [1], [0, 0, 1, 1], [], []>} : vector<128x32xf32>, vector<32x16xf32>, vector<128x16xf32> -> vector<128x16xf32>
    %140 = arith.addf %132, %139 : vector<128x16xf32>
    %c0_163 = arith.constant 0 : index
    %c0_164 = arith.constant 0 : index
    %c8_165 = arith.constant 8 : index
    %c0_166 = arith.constant 0 : index
    %141 = tpu.strided_load %arg12[%c0_163, %c0_164, %c8_165, %c0_166] {strides = array<i32: 1, 1, 2, 1>} : memref<2x10x26x32xf32, #tpu.memory_space<vmem>>, vector<2x8x8x32xf32>
    %c0_167 = arith.constant 0 : index
    %c0_168 = arith.constant 0 : index
    %c9_169 = arith.constant 9 : index
    %c0_170 = arith.constant 0 : index
    %142 = tpu.strided_load %arg12[%c0_167, %c0_168, %c9_169, %c0_170] {strides = array<i32: 1, 1, 2, 1>} : memref<2x10x26x32xf32, #tpu.memory_space<vmem>>, vector<2x8x8x32xf32>
    %143 = arith.maximumf %141, %142 : vector<2x8x8x32xf32>
    %144 = vector.shape_cast %143 : vector<2x8x8x32xf32> to vector<128x32xf32>
    %c1_171 = arith.constant 1 : index
    %c0_172 = arith.constant 0 : index
    %c0_173 = arith.constant 0 : index
    %145 = vector.load %arg6[%c1_171, %c0_172, %c0_173] : memref<9x32x16xf32, #tpu.memory_space<vmem>>, vector<1x32x16xf32>
    %146 = vector.shape_cast %145 : vector<1x32x16xf32> to vector<32x16xf32>
    %cst_174 = arith.constant dense<0.000000e+00> : vector<128x16xf32>
    %147 = tpu.matmul %144, %146, %cst_174 {dimension_numbers = #tpu.dot_dimension_numbers<[1], [0], [0], [1], [0, 0, 1, 1], [], []>} : vector<128x32xf32>, vector<32x16xf32>, vector<128x16xf32> -> vector<128x16xf32>
    %148 = arith.addf %140, %147 : vector<128x16xf32>
    %c0_175 = arith.constant 0 : index
    %c0_176 = arith.constant 0 : index
    %c10 = arith.constant 10 : index
    %c0_177 = arith.constant 0 : index
    %149 = tpu.strided_load %arg12[%c0_175, %c0_176, %c10, %c0_177] {strides = array<i32: 1, 1, 2, 1>} : memref<2x10x26x32xf32, #tpu.memory_space<vmem>>, vector<2x8x8x32xf32>
    %c0_178 = arith.constant 0 : index
    %c0_179 = arith.constant 0 : index
    %c11 = arith.constant 11 : index
    %c0_180 = arith.constant 0 : index
    %150 = tpu.strided_load %arg12[%c0_178, %c0_179, %c11, %c0_180] {strides = array<i32: 1, 1, 2, 1>} : memref<2x10x26x32xf32, #tpu.memory_space<vmem>>, vector<2x8x8x32xf32>
    %151 = arith.maximumf %149, %150 : vector<2x8x8x32xf32>
    %152 = vector.shape_cast %151 : vector<2x8x8x32xf32> to vector<128x32xf32>
    %c2_181 = arith.constant 2 : index
    %c0_182 = arith.constant 0 : index
    %c0_183 = arith.constant 0 : index
    %153 = vector.load %arg6[%c2_181, %c0_182, %c0_183] : memref<9x32x16xf32, #tpu.memory_space<vmem>>, vector<1x32x16xf32>
    %154 = vector.shape_cast %153 : vector<1x32x16xf32> to vector<32x16xf32>
    %cst_184 = arith.constant dense<0.000000e+00> : vector<128x16xf32>
    %155 = tpu.matmul %152, %154, %cst_184 {dimension_numbers = #tpu.dot_dimension_numbers<[1], [0], [0], [1], [0, 0, 1, 1], [], []>} : vector<128x32xf32>, vector<32x16xf32>, vector<128x16xf32> -> vector<128x16xf32>
    %156 = arith.addf %148, %155 : vector<128x16xf32>
    %c0_185 = arith.constant 0 : index
    %c1_186 = arith.constant 1 : index
    %c6_187 = arith.constant 6 : index
    %c0_188 = arith.constant 0 : index
    %157 = tpu.strided_load %arg12[%c0_185, %c1_186, %c6_187, %c0_188] {strides = array<i32: 1, 1, 2, 1>} : memref<2x10x26x32xf32, #tpu.memory_space<vmem>>, vector<2x8x8x32xf32>
    %c0_189 = arith.constant 0 : index
    %c1_190 = arith.constant 1 : index
    %c7_191 = arith.constant 7 : index
    %c0_192 = arith.constant 0 : index
    %158 = tpu.strided_load %arg12[%c0_189, %c1_190, %c7_191, %c0_192] {strides = array<i32: 1, 1, 2, 1>} : memref<2x10x26x32xf32, #tpu.memory_space<vmem>>, vector<2x8x8x32xf32>
    %159 = arith.maximumf %157, %158 : vector<2x8x8x32xf32>
    %160 = vector.shape_cast %159 : vector<2x8x8x32xf32> to vector<128x32xf32>
    %c3_193 = arith.constant 3 : index
    %c0_194 = arith.constant 0 : index
    %c0_195 = arith.constant 0 : index
    %161 = vector.load %arg6[%c3_193, %c0_194, %c0_195] : memref<9x32x16xf32, #tpu.memory_space<vmem>>, vector<1x32x16xf32>
    %162 = vector.shape_cast %161 : vector<1x32x16xf32> to vector<32x16xf32>
    %cst_196 = arith.constant dense<0.000000e+00> : vector<128x16xf32>
    %163 = tpu.matmul %160, %162, %cst_196 {dimension_numbers = #tpu.dot_dimension_numbers<[1], [0], [0], [1], [0, 0, 1, 1], [], []>} : vector<128x32xf32>, vector<32x16xf32>, vector<128x16xf32> -> vector<128x16xf32>
    %164 = arith.addf %156, %163 : vector<128x16xf32>
    %c0_197 = arith.constant 0 : index
    %c1_198 = arith.constant 1 : index
    %c8_199 = arith.constant 8 : index
    %c0_200 = arith.constant 0 : index
    %165 = tpu.strided_load %arg12[%c0_197, %c1_198, %c8_199, %c0_200] {strides = array<i32: 1, 1, 2, 1>} : memref<2x10x26x32xf32, #tpu.memory_space<vmem>>, vector<2x8x8x32xf32>
    %c0_201 = arith.constant 0 : index
    %c1_202 = arith.constant 1 : index
    %c9_203 = arith.constant 9 : index
    %c0_204 = arith.constant 0 : index
    %166 = tpu.strided_load %arg12[%c0_201, %c1_202, %c9_203, %c0_204] {strides = array<i32: 1, 1, 2, 1>} : memref<2x10x26x32xf32, #tpu.memory_space<vmem>>, vector<2x8x8x32xf32>
    %167 = arith.maximumf %165, %166 : vector<2x8x8x32xf32>
    %168 = vector.shape_cast %167 : vector<2x8x8x32xf32> to vector<128x32xf32>
    %c4_205 = arith.constant 4 : index
    %c0_206 = arith.constant 0 : index
    %c0_207 = arith.constant 0 : index
    %169 = vector.load %arg6[%c4_205, %c0_206, %c0_207] : memref<9x32x16xf32, #tpu.memory_space<vmem>>, vector<1x32x16xf32>
    %170 = vector.shape_cast %169 : vector<1x32x16xf32> to vector<32x16xf32>
    %cst_208 = arith.constant dense<0.000000e+00> : vector<128x16xf32>
    %171 = tpu.matmul %168, %170, %cst_208 {dimension_numbers = #tpu.dot_dimension_numbers<[1], [0], [0], [1], [0, 0, 1, 1], [], []>} : vector<128x32xf32>, vector<32x16xf32>, vector<128x16xf32> -> vector<128x16xf32>
    %172 = arith.addf %164, %171 : vector<128x16xf32>
    %c0_209 = arith.constant 0 : index
    %c1_210 = arith.constant 1 : index
    %c10_211 = arith.constant 10 : index
    %c0_212 = arith.constant 0 : index
    %173 = tpu.strided_load %arg12[%c0_209, %c1_210, %c10_211, %c0_212] {strides = array<i32: 1, 1, 2, 1>} : memref<2x10x26x32xf32, #tpu.memory_space<vmem>>, vector<2x8x8x32xf32>
    %c0_213 = arith.constant 0 : index
    %c1_214 = arith.constant 1 : index
    %c11_215 = arith.constant 11 : index
    %c0_216 = arith.constant 0 : index
    %174 = tpu.strided_load %arg12[%c0_213, %c1_214, %c11_215, %c0_216] {strides = array<i32: 1, 1, 2, 1>} : memref<2x10x26x32xf32, #tpu.memory_space<vmem>>, vector<2x8x8x32xf32>
    %175 = arith.maximumf %173, %174 : vector<2x8x8x32xf32>
    %176 = vector.shape_cast %175 : vector<2x8x8x32xf32> to vector<128x32xf32>
    %c5_217 = arith.constant 5 : index
    %c0_218 = arith.constant 0 : index
    %c0_219 = arith.constant 0 : index
    %177 = vector.load %arg6[%c5_217, %c0_218, %c0_219] : memref<9x32x16xf32, #tpu.memory_space<vmem>>, vector<1x32x16xf32>
    %178 = vector.shape_cast %177 : vector<1x32x16xf32> to vector<32x16xf32>
    %cst_220 = arith.constant dense<0.000000e+00> : vector<128x16xf32>
    %179 = tpu.matmul %176, %178, %cst_220 {dimension_numbers = #tpu.dot_dimension_numbers<[1], [0], [0], [1], [0, 0, 1, 1], [], []>} : vector<128x32xf32>, vector<32x16xf32>, vector<128x16xf32> -> vector<128x16xf32>
    %180 = arith.addf %172, %179 : vector<128x16xf32>
    %c0_221 = arith.constant 0 : index
    %c2_222 = arith.constant 2 : index
    %c6_223 = arith.constant 6 : index
    %c0_224 = arith.constant 0 : index
    %181 = tpu.strided_load %arg12[%c0_221, %c2_222, %c6_223, %c0_224] {strides = array<i32: 1, 1, 2, 1>} : memref<2x10x26x32xf32, #tpu.memory_space<vmem>>, vector<2x8x8x32xf32>
    %c0_225 = arith.constant 0 : index
    %c2_226 = arith.constant 2 : index
    %c7_227 = arith.constant 7 : index
    %c0_228 = arith.constant 0 : index
    %182 = tpu.strided_load %arg12[%c0_225, %c2_226, %c7_227, %c0_228] {strides = array<i32: 1, 1, 2, 1>} : memref<2x10x26x32xf32, #tpu.memory_space<vmem>>, vector<2x8x8x32xf32>
    %183 = arith.maximumf %181, %182 : vector<2x8x8x32xf32>
    %184 = vector.shape_cast %183 : vector<2x8x8x32xf32> to vector<128x32xf32>
    %c6_229 = arith.constant 6 : index
    %c0_230 = arith.constant 0 : index
    %c0_231 = arith.constant 0 : index
    %185 = vector.load %arg6[%c6_229, %c0_230, %c0_231] : memref<9x32x16xf32, #tpu.memory_space<vmem>>, vector<1x32x16xf32>
    %186 = vector.shape_cast %185 : vector<1x32x16xf32> to vector<32x16xf32>
    %cst_232 = arith.constant dense<0.000000e+00> : vector<128x16xf32>
    %187 = tpu.matmul %184, %186, %cst_232 {dimension_numbers = #tpu.dot_dimension_numbers<[1], [0], [0], [1], [0, 0, 1, 1], [], []>} : vector<128x32xf32>, vector<32x16xf32>, vector<128x16xf32> -> vector<128x16xf32>
    %188 = arith.addf %180, %187 : vector<128x16xf32>
    %c0_233 = arith.constant 0 : index
    %c2_234 = arith.constant 2 : index
    %c8_235 = arith.constant 8 : index
    %c0_236 = arith.constant 0 : index
    %189 = tpu.strided_load %arg12[%c0_233, %c2_234, %c8_235, %c0_236] {strides = array<i32: 1, 1, 2, 1>} : memref<2x10x26x32xf32, #tpu.memory_space<vmem>>, vector<2x8x8x32xf32>
    %c0_237 = arith.constant 0 : index
    %c2_238 = arith.constant 2 : index
    %c9_239 = arith.constant 9 : index
    %c0_240 = arith.constant 0 : index
    %190 = tpu.strided_load %arg12[%c0_237, %c2_238, %c9_239, %c0_240] {strides = array<i32: 1, 1, 2, 1>} : memref<2x10x26x32xf32, #tpu.memory_space<vmem>>, vector<2x8x8x32xf32>
    %191 = arith.maximumf %189, %190 : vector<2x8x8x32xf32>
    %192 = vector.shape_cast %191 : vector<2x8x8x32xf32> to vector<128x32xf32>
    %c7_241 = arith.constant 7 : index
    %c0_242 = arith.constant 0 : index
    %c0_243 = arith.constant 0 : index
    %193 = vector.load %arg6[%c7_241, %c0_242, %c0_243] : memref<9x32x16xf32, #tpu.memory_space<vmem>>, vector<1x32x16xf32>
    %194 = vector.shape_cast %193 : vector<1x32x16xf32> to vector<32x16xf32>
    %cst_244 = arith.constant dense<0.000000e+00> : vector<128x16xf32>
    %195 = tpu.matmul %192, %194, %cst_244 {dimension_numbers = #tpu.dot_dimension_numbers<[1], [0], [0], [1], [0, 0, 1, 1], [], []>} : vector<128x32xf32>, vector<32x16xf32>, vector<128x16xf32> -> vector<128x16xf32>
    %196 = arith.addf %188, %195 : vector<128x16xf32>
    %c0_245 = arith.constant 0 : index
    %c2_246 = arith.constant 2 : index
    %c10_247 = arith.constant 10 : index
    %c0_248 = arith.constant 0 : index
    %197 = tpu.strided_load %arg12[%c0_245, %c2_246, %c10_247, %c0_248] {strides = array<i32: 1, 1, 2, 1>} : memref<2x10x26x32xf32, #tpu.memory_space<vmem>>, vector<2x8x8x32xf32>
    %c0_249 = arith.constant 0 : index
    %c2_250 = arith.constant 2 : index
    %c11_251 = arith.constant 11 : index
    %c0_252 = arith.constant 0 : index
    %198 = tpu.strided_load %arg12[%c0_249, %c2_250, %c11_251, %c0_252] {strides = array<i32: 1, 1, 2, 1>} : memref<2x10x26x32xf32, #tpu.memory_space<vmem>>, vector<2x8x8x32xf32>
    %199 = arith.maximumf %197, %198 : vector<2x8x8x32xf32>
    %200 = vector.shape_cast %199 : vector<2x8x8x32xf32> to vector<128x32xf32>
    %c8_253 = arith.constant 8 : index
    %c0_254 = arith.constant 0 : index
    %c0_255 = arith.constant 0 : index
    %201 = vector.load %arg6[%c8_253, %c0_254, %c0_255] : memref<9x32x16xf32, #tpu.memory_space<vmem>>, vector<1x32x16xf32>
    %202 = vector.shape_cast %201 : vector<1x32x16xf32> to vector<32x16xf32>
    %cst_256 = arith.constant dense<0.000000e+00> : vector<128x16xf32>
    %203 = tpu.matmul %200, %202, %cst_256 {dimension_numbers = #tpu.dot_dimension_numbers<[1], [0], [0], [1], [0, 0, 1, 1], [], []>} : vector<128x32xf32>, vector<32x16xf32>, vector<128x16xf32> -> vector<128x16xf32>
    %204 = arith.addf %196, %203 : vector<128x16xf32>
    %c0_257 = arith.constant 0 : index
    %c0_258 = arith.constant 0 : index
    %205 = vector.load %arg7[%c0_257, %c0_258] : memref<1x16xf32, #tpu.memory_space<vmem>>, vector<1x16xf32>
    %206 = vector.broadcast %205 : vector<1x16xf32> to vector<128x16xf32>
    %207 = arith.addf %204, %206 : vector<128x16xf32>
    %cst_259 = arith.constant 0.000000e+00 : f32
    %208 = vector.broadcast %cst_259 : f32 to vector<128x16xf32>
    %209 = arith.maximumf %207, %208 : vector<128x16xf32>
    %c0_260 = arith.constant 0 : index
    %c0_261 = arith.constant 0 : index
    %210 = vector.load %arg8[%c0_260, %c0_261] : memref<1x16xf32, #tpu.memory_space<vmem>>, vector<1x16xf32>
    %211 = tpu.transpose %209, [1, 0] : vector<128x16xf32> -> vector<16x128xf32>
    %cst_262 = arith.constant dense<0.000000e+00> : vector<1x128xf32>
    %212 = tpu.matmul %210, %211, %cst_262 {dimension_numbers = #tpu.dot_dimension_numbers<[1], [0], [0], [1], [0, 0, 1, 1], [], []>} : vector<1x16xf32>, vector<16x128xf32>, vector<1x128xf32> -> vector<1x128xf32>
    %c0_263 = arith.constant 0 : index
    %c0_264 = arith.constant 0 : index
    %213 = vector.load %arg9[%c0_263, %c0_264] : memref<1x1xf32, #tpu.memory_space<vmem>>, vector<1x1xf32>
    %214 = vector.broadcast %213 : vector<1x1xf32> to vector<1x128xf32>
    %215 = arith.addf %212, %214 : vector<1x128xf32>
    %cst_265 = arith.constant 0.000000e+00 : f32
    %216 = vector.broadcast %cst_265 : f32 to vector<1x128xf32>
    %217 = arith.subf %216, %215 : vector<1x128xf32>
    %218 = math.exp %217 : vector<1x128xf32>
    %cst_266 = arith.constant 1.000000e+00 : f32
    %219 = vector.broadcast %cst_266 : f32 to vector<1x128xf32>
    %220 = arith.addf %219, %218 : vector<1x128xf32>
    %cst_267 = arith.constant 1.000000e+00 : f32
    %221 = vector.broadcast %cst_267 : f32 to vector<1x128xf32>
    %222 = arith.divf %221, %220 : vector<1x128xf32>
    %c0_268 = arith.constant 0 : index
    %c0_269 = arith.constant 0 : index
    %223 = vector.load %arg10[%c0_268, %c0_269] : memref<1x128xf32, #tpu.memory_space<vmem>>, vector<1x128xf32>
    tpu.vector_store %arg10[%c0_268, %c0_269], %222 {strides = array<i32>} : memref<1x128xf32, #tpu.memory_space<vmem>>, vector<1x128xf32>,
    return
  }
  func.func @transform_0(%arg0: i32) -> (i32, i32, i32, i32) {
    %c0_i32 = arith.constant 0 : i32
    %c0_i32_0 = arith.constant 0 : i32
    %c0_i32_1 = arith.constant 0 : i32
    %c0_i32_2 = arith.constant 0 : i32
    return %arg0, %c0_i32, %c0_i32_0, %c0_i32_1 : i32, i32, i32, i32
  }
  func.func @transform_1(%arg0: i32) -> (i32, i32, i32) {
    %c0_i32 = arith.constant 0 : i32
    %c0_i32_0 = arith.constant 0 : i32
    %c0_i32_1 = arith.constant 0 : i32
    %c0_i32_2 = arith.constant 0 : i32
    return %c0_i32, %c0_i32_0, %c0_i32_1 : i32, i32, i32
  }
  func.func @transform_2(%arg0: i32) -> (i32, i32) {
    %c0_i32 = arith.constant 0 : i32
    %c0_i32_0 = arith.constant 0 : i32
    %c0_i32_1 = arith.constant 0 : i32
    return %c0_i32, %c0_i32_0 : i32, i32
  }
  func.func @transform_3(%arg0: i32) -> (i32, i32, i32) {
    %c0_i32 = arith.constant 0 : i32
    %c0_i32_0 = arith.constant 0 : i32
    %c0_i32_1 = arith.constant 0 : i32
    %c0_i32_2 = arith.constant 0 : i32
    return %c0_i32, %c0_i32_0, %c0_i32_1 : i32, i32, i32
  }
  func.func @transform_4(%arg0: i32) -> (i32, i32) {
    %c0_i32 = arith.constant 0 : i32
    %c0_i32_0 = arith.constant 0 : i32
    %c0_i32_1 = arith.constant 0 : i32
    return %c0_i32, %c0_i32_0 : i32, i32
  }
  func.func @transform_5(%arg0: i32) -> (i32, i32, i32) {
    %c0_i32 = arith.constant 0 : i32
    %c0_i32_0 = arith.constant 0 : i32
    %c0_i32_1 = arith.constant 0 : i32
    %c0_i32_2 = arith.constant 0 : i32
    return %c0_i32, %c0_i32_0, %c0_i32_1 : i32, i32, i32
  }
  func.func @transform_6(%arg0: i32) -> (i32, i32) {
    %c0_i32 = arith.constant 0 : i32
    %c0_i32_0 = arith.constant 0 : i32
    %c0_i32_1 = arith.constant 0 : i32
    return %c0_i32, %c0_i32_0 : i32, i32
  }
  func.func @transform_7(%arg0: i32) -> (i32, i32) {
    %c0_i32 = arith.constant 0 : i32
    %c0_i32_0 = arith.constant 0 : i32
    %c0_i32_1 = arith.constant 0 : i32
    return %c0_i32, %c0_i32_0 : i32, i32
  }
  func.func @transform_8(%arg0: i32) -> (i32, i32) {
    %c0_i32 = arith.constant 0 : i32
    %c0_i32_0 = arith.constant 0 : i32
    %c0_i32_1 = arith.constant 0 : i32
    return %c0_i32, %c0_i32_0 : i32, i32
  }
  func.func @transform_9(%arg0: i32) -> (i32, i32) {
    %c0_i32 = arith.constant 0 : i32
    %c0_i32_0 = arith.constant 0 : i32
    return %c0_i32, %arg0 : i32, i32
  }
}

</mosaic_0001>

<bundles_post_ra>
// kernel: tpu_custom_call.1
= control target key start
LH: loop header
LB: loop body
LE: loop exit
PB: predicated region body
PF: predicated region fallthrough
CT: control target
= control target key end

     0   :  { %s27737_s0 = inlined_call_operand.vmem [shape: f32[4,18,25,3], index: 0, kind: input, shape index: {}]   ;;  %s27738_s1 = inlined_call_operand.vmem [shape: f32[9,3,16], index: 1, kind: input, shape index: {}]   ;;  %s27739_s2 = inlined_call_operand.vmem [shape: f32[1,16], index: 2, kind: input, shape index: {}]   ;;  %s27740_s3 = inlined_call_operand.vmem [shape: f32[9,16,32], index: 3, kind: input, shape index: {}]   ;;  %s27741_s4 = inlined_call_operand.vmem [shape: f32[1,32], index: 4, kind: input, shape index: {}]   ;;  %s27742_s5 = inlined_call_operand.vmem [shape: f32[9,32,16], index: 5, kind: input, shape index: {}]   ;;  %s27743_s6 = inlined_call_operand.vmem [shape: f32[1,16], index: 6, kind: input, shape index: {}]   ;;  %s27744_s7 = inlined_call_operand.vmem [shape: f32[1,16], index: 7, kind: input, shape index: {}]   ;;  %s27745_s8 = inlined_call_operand.<no memory space> [shape: f32[1,1], index: 8, kind: input, shape index: {}]   ;;  %s27746_s9 = inlined_call_operand.hbm [shape: f32[1,256], index: 9, kind: output, shape index: {}]  }
   0x1   :  { %v14_v0 = vstv %s27745_s8 }
   0x2   :  { %15 = vst [vmem:[#allocation4] sm:$0x1] %v14_v0 }
   0x3   :  { %16 = vsyncpa [#allocation6], 0 }
   0x4   :  { %18 = vsyncpa [#allocation6 + $0x1], 0  ;;  %s23256_s11 = smov 0   ;;  %s23258_s12 = smov 0  }
   0x5   :  { %s23260_s13 = smov 0   ;;  %s23262_s14 = smov 0  }
   0x6 LB: > { %s23277_s8 = sadd.s32 4294967295, %s23195_s14   ;;  %s16532_s15 = sadd.s32 4294967294, %s23195_s14   ;;  %s23195_s14 = sphi %s23262_s14, %s28232_s14   ;;  %s23191_s13 = sphi %s23260_s13, %s28231_s13   ;;  %s23187_s12 = sphi %s23258_s12, %s28230_s12   ;;  %s23183_s11 = sphi %s23256_s11, %s28229_s11  }
   0x7   : > { %s23281_s16 = sadd.s32 1, %s23195_s14   ;;  %s225_s17 = sadd.s32 1, %s23191_s13 }
   0x8   : > { %s222_s18 = ssub.s32 %s23195_s14, %s23281_s16  ;;  %p235_p0 = scmp.ne.s32.totalorder %s23191_s13, %s23187_s12 }
   0x9   : > { %p223_p1 = scmp.eq.s32.totalorder %s222_s18, 0  ;;  %p236_p2 = scmp.eq.s32.totalorder %s23277_s8, 1 }
   0xa   : > { %p241_p3 = scmp.ne.s32.totalorder %s23187_s12, %s23183_s11  ;;  %p242_p4 = scmp.eq.s32.totalorder %s16532_s15, 1 }
   0xb   : > { %s23292_s19 = scalar_select %p223_p1, %s23191_s13, %s225_s17  }
   0xc   : > { %p23294_p5 = por %p236_p2, %p235_p0  ;;  %p23298_p6 = por %p242_p4, %p241_p3 }
   0xd   : > { %p16535_p7 = scmp.ge.s32.totalorder %s23195_s14, 1  ;;  %p294_p8 = scmp.lt.s32.totalorder %s23195_s14, 3 }
   0xf   : > { %p295_p9 = pnand %p16535_p7, %p294_p8 }
  0x11   : > { %298 = sbr.rel (%p295_p9) target bundleno = 3386 (0xd3a), region = 56 }
  0x18   : > { %s328_s22 = sand.u32 1, %s23187_s12   ;;  %s16536_s23 = sshll.u32 %s23277_s8, 1 }
  0x19   : > { %p331_p10 = scmp.lt.s32.totalorder %s16536_s23, 3  ;;  %s23313_s28 = scalar_lea.vmem [#allocation5], %s328_s22 }
  0x1a   : > { %p16538_p11 = scmp.ne.s32.totalorder %s23277_s8, 0 }
  0x1b   : > { %s28234_s23 = smov (!%p331_p10, %s16536_s23), 3  ;;  %vm341_vm0 = vcmask (!%p16538_p11), 130048   ;;  %vm345_vm1 = vcmask (!%p16538_p11), 122880   ;;  %vm487_vm2 = vcmask (!%p16538_p11), 261120   ;;  %v23197_v1 = vmov (!%p16538_p11), 0.0  }
  0x1c   : > { %s23082_s24 = smul.u32 576, %s28234_s23  ;;  %342 = vst.msk [vmem:[#allocation2] sm:$0xff] (!%p16538_p11), %vm341_vm0, %v23197_v1  ;;  %343 = vst.msk [vmem:[#allocation2 + $0x8] sm:$0xff] (!%p16538_p11), %vm341_vm0, %v23197_v1  ;;  %vm491_vm3 = vcmask (!%p16538_p11), 254976  }
  0x1d   : > { %340 = sbr.rel (%p16538_p11) target bundleno = 140 (0x8c), region = 60  ;;  %344 = vst.msk [vmem:[#allocation2 + $0x10] sm:$0xff] (!%p16538_p11), %vm341_vm0, %v23197_v1  ;;  %347 = vst.msk [vmem:[#allocation2 + $0x20] sm:$0xff] (!%p16538_p11), %vm341_vm0, %v23197_v1 }
  0x1e   : > { %s23309_s27 = scalar_lea.vmem %s27737_s0, %s23082_s24  ;;  %348 = vst.msk [vmem:[#allocation2 + $0x28] sm:$0xff] (!%p16538_p11), %vm341_vm0, %v23197_v1  ;;  %349 = vst.msk [vmem:[#allocation2 + $0x30] sm:$0xff] (!%p16538_p11), %vm341_vm0, %v23197_v1 }
  0x1f   : > { %351 = vst.msk [vmem:[#allocation2 + $0x40] sm:$0xff] (!%p16538_p11), %vm341_vm0, %v23197_v1  ;;  %352 = vst.msk [vmem:[#allocation2 + $0x48] sm:$0xff] (!%p16538_p11), %vm341_vm0, %v23197_v1 }
  0x20   : > { %353 = vst.msk [vmem:[#allocation2 + $0x50] sm:$0xff] (!%p16538_p11), %vm341_vm0, %v23197_v1  ;;  %355 = vst.msk [vmem:[#allocation2 + $0x60] sm:$0xff] (!%p16538_p11), %vm341_vm0, %v23197_v1 }
  0x21   : > { %356 = vst.msk [vmem:[#allocation2 + $0x68] sm:$0xff] (!%p16538_p11), %vm341_vm0, %v23197_v1  ;;  %357 = vst.msk [vmem:[#allocation2 + $0x70] sm:$0xff] (!%p16538_p11), %vm341_vm0, %v23197_v1 }
  0x22   : > { %359 = vst.msk [vmem:[#allocation2 + $0x80] sm:$0xff] (!%p16538_p11), %vm341_vm0, %v23197_v1  ;;  %360 = vst.msk [vmem:[#allocation2 + $0x88] sm:$0xff] (!%p16538_p11), %vm341_vm0, %v23197_v1 }
  0x23   : > { %361 = vst.msk [vmem:[#allocation2 + $0x90] sm:$0xff] (!%p16538_p11), %vm341_vm0, %v23197_v1  ;;  %363 = vst.msk [vmem:[#allocation2 + $0xa0] sm:$0xff] (!%p16538_p11), %vm341_vm0, %v23197_v1 }
  0x24   : > { %364 = vst.msk [vmem:[#allocation2 + $0xa8] sm:$0xff] %vm341_vm0, %v23197_v1  ;;  %365 = vst.msk [vmem:[#allocation2 + $0xb0] sm:$0xff] %vm341_vm0, %v23197_v1 }
  0x25   : > { %367 = vst.msk [vmem:[#allocation2 + $0xc0] sm:$0xff] %vm341_vm0, %v23197_v1  ;;  %368 = vst.msk [vmem:[#allocation2 + $0xc8] sm:$0xff] %vm341_vm0, %v23197_v1 }
  0x26   : > { %369 = vst.msk [vmem:[#allocation2 + $0xd0] sm:$0xff] %vm341_vm0, %v23197_v1  ;;  %371 = vst.msk [vmem:[#allocation2 + $0xe0] sm:$0xff] %vm341_vm0, %v23197_v1 }
  0x27   : > { %372 = vst.msk [vmem:[#allocation2 + $0xe8] sm:$0xff] %vm341_vm0, %v23197_v1  ;;  %373 = vst.msk [vmem:[#allocation2 + $0xf0] sm:$0xff] %vm341_vm0, %v23197_v1 }
  0x28   : > { %375 = vst.msk [vmem:[#allocation2 + $0x100] sm:$0xff] %vm341_vm0, %v23197_v1  ;;  %376 = vst.msk [vmem:[#allocation2 + $0x108] sm:$0xff] %vm341_vm0, %v23197_v1 }
  0x29   : > { %377 = vst.msk [vmem:[#allocation2 + $0x110] sm:$0xff] %vm341_vm0, %v23197_v1  ;;  %379 = vst.msk [vmem:[#allocation2 + $0x120] sm:$0xff] %vm341_vm0, %v23197_v1 }
  0x2a   : > { %380 = vst.msk [vmem:[#allocation2 + $0x128] sm:$0xff] %vm341_vm0, %v23197_v1  ;;  %381 = vst.msk [vmem:[#allocation2 + $0x130] sm:$0xff] %vm341_vm0, %v23197_v1 }
  0x2b   : > { %383 = vst.msk [vmem:[#allocation2 + $0x140] sm:$0xff] %vm341_vm0, %v23197_v1  ;;  %384 = vst.msk [vmem:[#allocation2 + $0x148] sm:$0xff] %vm341_vm0, %v23197_v1 }
  0x2c   : > { %385 = vst.msk [vmem:[#allocation2 + $0x150] sm:$0xff] %vm341_vm0, %v23197_v1  ;;  %387 = vst.msk [vmem:[#allocation2 + $0x160] sm:$0xff] %vm341_vm0, %v23197_v1 }
  0x2d   : > { %388 = vst.msk [vmem:[#allocation2 + $0x168] sm:$0xff] %vm341_vm0, %v23197_v1  ;;  %389 = vst.msk [vmem:[#allocation2 + $0x170] sm:$0xff] %vm341_vm0, %v23197_v1 }
  0x2e   : > { %391 = vst.msk [vmem:[#allocation2 + $0x180] sm:$0xff] %vm341_vm0, %v23197_v1  ;;  %392 = vst.msk [vmem:[#allocation2 + $0x188] sm:$0xff] %vm341_vm0, %v23197_v1 }
  0x2f   : > { %393 = vst.msk [vmem:[#allocation2 + $0x190] sm:$0xff] %vm341_vm0, %v23197_v1  ;;  %395 = vst.msk [vmem:[#allocation2 + $0x1a0] sm:$0xff] %vm341_vm0, %v23197_v1 }
  0x30   : > { %396 = vst.msk [vmem:[#allocation2 + $0x1a8] sm:$0xff] %vm341_vm0, %v23197_v1  ;;  %397 = vst.msk [vmem:[#allocation2 + $0x1b0] sm:$0xff] %vm341_vm0, %v23197_v1 }
  0x31   : > { %399 = vst.msk [vmem:[#allocation2 + $0x1c0] sm:$0xff] %vm341_vm0, %v23197_v1  ;;  %400 = vst.msk [vmem:[#allocation2 + $0x1c8] sm:$0xff] %vm341_vm0, %v23197_v1 }
  0x32   : > { %401 = vst.msk [vmem:[#allocation2 + $0x1d0] sm:$0xff] %vm341_vm0, %v23197_v1  ;;  %403 = vst.msk [vmem:[#allocation2 + $0x1e0] sm:$0xff] %vm341_vm0, %v23197_v1 }
  0x33   : > { %404 = vst.msk [vmem:[#allocation2 + $0x1e8] sm:$0xff] %vm341_vm0, %v23197_v1  ;;  %405 = vst.msk [vmem:[#allocation2 + $0x1f0] sm:$0xff] %vm341_vm0, %v23197_v1 }
  0x34   : > { %407 = vst.msk [vmem:[#allocation2 + $0x200] sm:$0xff] %vm341_vm0, %v23197_v1  ;;  %408 = vst.msk [vmem:[#allocation2 + $0x208] sm:$0xff] %vm341_vm0, %v23197_v1 }
  0x35   : > { %409 = vst.msk [vmem:[#allocation2 + $0x210] sm:$0xff] %vm341_vm0, %v23197_v1  ;;  %411 = vst.msk [vmem:[#allocation2 + $0x220] sm:$0xff] %vm341_vm0, %v23197_v1 }
  0x36   : > { %412 = vst.msk [vmem:[#allocation2 + $0x228] sm:$0xff] %vm341_vm0, %v23197_v1  ;;  %413 = vst.msk [vmem:[#allocation2 + $0x230] sm:$0xff] %vm341_vm0, %v23197_v1 }
  0x37   : > { %415 = vst.msk [vmem:[#allocation2 + $0x240] sm:$0xff] %vm341_vm0, %v23197_v1  ;;  %416 = vst.msk [vmem:[#allocation2 + $0x248] sm:$0xff] %vm341_vm0, %v23197_v1 }
  0x38   : > { %417 = vst.msk [vmem:[#allocation2 + $0x250] sm:$0xff] %vm341_vm0, %v23197_v1  ;;  %419 = vst.msk [vmem:[#allocation2 + $0x260] sm:$0xff] %vm341_vm0, %v23197_v1 }
  0x39   : > { %420 = vst.msk [vmem:[#allocation2 + $0x268] sm:$0xff] %vm341_vm0, %v23197_v1  ;;  %421 = vst.msk [vmem:[#allocation2 + $0x270] sm:$0xff] %vm341_vm0, %v23197_v1 }
  0x3a   : > { %423 = vst.msk [vmem:[#allocation2 + $0x280] sm:$0xff] %vm341_vm0, %v23197_v1  ;;  %424 = vst.msk [vmem:[#allocation2 + $0x288] sm:$0xff] %vm341_vm0, %v23197_v1 }
  0x3b   : > { %425 = vst.msk [vmem:[#allocation2 + $0x290] sm:$0xff] %vm341_vm0, %v23197_v1  ;;  %427 = vst.msk [vmem:[#allocation2 + $0x2a0] sm:$0xff] %vm341_vm0, %v23197_v1 }
  0x3c   : > { %428 = vst.msk [vmem:[#allocation2 + $0x2a8] sm:$0xff] %vm341_vm0, %v23197_v1  ;;  %429 = vst.msk [vmem:[#allocation2 + $0x2b0] sm:$0xff] %vm341_vm0, %v23197_v1 }
  0x3d   : > { %431 = vst.msk [vmem:[#allocation2 + $0x2c0] sm:$0xff] %vm341_vm0, %v23197_v1  ;;  %432 = vst.msk [vmem:[#allocation2 + $0x2c8] sm:$0xff] %vm341_vm0, %v23197_v1 }
  0x3e   : > { %433 = vst.msk [vmem:[#allocation2 + $0x2d0] sm:$0xff] %vm341_vm0, %v23197_v1  ;;  %435 = vst.msk [vmem:[#allocation2 + $0x2e0] sm:$0xff] %vm341_vm0, %v23197_v1 }
  0x3f   : > { %436 = vst.msk [vmem:[#allocation2 + $0x2e8] sm:$0xff] %vm341_vm0, %v23197_v1  ;;  %437 = vst.msk [vmem:[#allocation2 + $0x2f0] sm:$0xff] %vm341_vm0, %v23197_v1 }
  0x40   : > { %439 = vst.msk [vmem:[#allocation2 + $0x300] sm:$0xff] %vm341_vm0, %v23197_v1  ;;  %440 = vst.msk [vmem:[#allocation2 + $0x308] sm:$0xff] %vm341_vm0, %v23197_v1 }
  0x41   : > { %441 = vst.msk [vmem:[#allocation2 + $0x310] sm:$0xff] %vm341_vm0, %v23197_v1  ;;  %443 = vst.msk [vmem:[#allocation2 + $0x320] sm:$0xff] %vm341_vm0, %v23197_v1 }
  0x42   : > { %444 = vst.msk [vmem:[#allocation2 + $0x328] sm:$0xff] %vm341_vm0, %v23197_v1  ;;  %445 = vst.msk [vmem:[#allocation2 + $0x330] sm:$0xff] %vm341_vm0, %v23197_v1 }
  0x43   : > { %447 = vst.msk [vmem:[#allocation2 + $0x340] sm:$0xff] %vm341_vm0, %v23197_v1  ;;  %448 = vst.msk [vmem:[#allocation2 + $0x348] sm:$0xff] %vm341_vm0, %v23197_v1 }
  0x44   : > { %449 = vst.msk [vmem:[#allocation2 + $0x350] sm:$0xff] %vm341_vm0, %v23197_v1  ;;  %451 = vst.msk [vmem:[#allocation2 + $0x360] sm:$0xff] %vm341_vm0, %v23197_v1 }
  0x45   : > { %452 = vst.msk [vmem:[#allocation2 + $0x368] sm:$0xff] %vm341_vm0, %v23197_v1  ;;  %453 = vst.msk [vmem:[#allocation2 + $0x370] sm:$0xff] %vm341_vm0, %v23197_v1 }
  0x46   : > { %455 = vst.msk [vmem:[#allocation2 + $0x380] sm:$0xff] %vm341_vm0, %v23197_v1  ;;  %456 = vst.msk [vmem:[#allocation2 + $0x388] sm:$0xff] %vm341_vm0, %v23197_v1 }
  0x47   : > { %457 = vst.msk [vmem:[#allocation2 + $0x390] sm:$0xff] %vm341_vm0, %v23197_v1  ;;  %459 = vst.msk [vmem:[#allocation2 + $0x3a0] sm:$0xff] %vm341_vm0, %v23197_v1 }
  0x48   : > { %460 = vst.msk [vmem:[#allocation2 + $0x3a8] sm:$0xff] %vm341_vm0, %v23197_v1  ;;  %461 = vst.msk [vmem:[#allocation2 + $0x3b0] sm:$0xff] %vm341_vm0, %v23197_v1 }
  0x49   : > { %463 = vst.msk [vmem:[#allocation2 + $0x3c0] sm:$0xff] %vm341_vm0, %v23197_v1  ;;  %464 = vst.msk [vmem:[#allocation2 + $0x3c8] sm:$0xff] %vm341_vm0, %v23197_v1 }
  0x4a   : > { %465 = vst.msk [vmem:[#allocation2 + $0x3d0] sm:$0xff] %vm341_vm0, %v23197_v1  ;;  %467 = vst.msk [vmem:[#allocation2 + $0x3e0] sm:$0xff] %vm341_vm0, %v23197_v1 }
  0x4b   : > { %468 = vst.msk [vmem:[#allocation2 + $0x3e8] sm:$0xff] %vm341_vm0, %v23197_v1  ;;  %469 = vst.msk [vmem:[#allocation2 + $0x3f0] sm:$0xff] %vm341_vm0, %v23197_v1 }
  0x4c   : > { %471 = vst.msk [vmem:[#allocation2 + $0x400] sm:$0xff] %vm341_vm0, %v23197_v1  ;;  %472 = vst.msk [vmem:[#allocation2 + $0x408] sm:$0xff] %vm341_vm0, %v23197_v1 }
  0x4d   : > { %473 = vst.msk [vmem:[#allocation2 + $0x410] sm:$0xff] %vm341_vm0, %v23197_v1  ;;  %475 = vst.msk [vmem:[#allocation2 + $0x420] sm:$0xff] %vm341_vm0, %v23197_v1 }
  0x4e   : > { %476 = vst.msk [vmem:[#allocation2 + $0x428] sm:$0xff] %vm341_vm0, %v23197_v1  ;;  %477 = vst.msk [vmem:[#allocation2 + $0x430] sm:$0xff] %vm341_vm0, %v23197_v1 }
  0x4f   : > { %479 = vst.msk [vmem:[#allocation2 + $0x440] sm:$0xff] %vm341_vm0, %v23197_v1  ;;  %480 = vst.msk [vmem:[#allocation2 + $0x448] sm:$0xff] %vm341_vm0, %v23197_v1 }
  0x50   : > { %481 = vst.msk [vmem:[#allocation2 + $0x450] sm:$0xff] %vm341_vm0, %v23197_v1  ;;  %483 = vst.msk [vmem:[#allocation2 + $0x460] sm:$0xff] %vm341_vm0, %v23197_v1 }
  0x51   : > { %484 = vst.msk [vmem:[#allocation2 + $0x468] sm:$0xff] %vm341_vm0, %v23197_v1  ;;  %485 = vst.msk [vmem:[#allocation2 + $0x470] sm:$0xff] %vm341_vm0, %v23197_v1 }
  0x52   : > { %346 = vst.msk [vmem:[#allocation2 + $0x18] sm:$0x1] %vm345_vm1, %v23197_v1  ;;  %350 = vst.msk [vmem:[#allocation2 + $0x38] sm:$0x1] %vm345_vm1, %v23197_v1 }
  0x53   : > { %354 = vst.msk [vmem:[#allocation2 + $0x58] sm:$0x1] %vm345_vm1, %v23197_v1  ;;  %358 = vst.msk [vmem:[#allocation2 + $0x78] sm:$0x1] %vm345_vm1, %v23197_v1 }
  0x54   : > { %362 = vst.msk [vmem:[#allocation2 + $0x98] sm:$0x1] %vm345_vm1, %v23197_v1  ;;  %366 = vst.msk [vmem:[#allocation2 + $0xb8] sm:$0x1] %vm345_vm1, %v23197_v1 }
  0x55   : > { %370 = vst.msk [vmem:[#allocation2 + $0xd8] sm:$0x1] %vm345_vm1, %v23197_v1  ;;  %374 = vst.msk [vmem:[#allocation2 + $0xf8] sm:$0x1] %vm345_vm1, %v23197_v1 }
  0x56   : > { %378 = vst.msk [vmem:[#allocation2 + $0x118] sm:$0x1] %vm345_vm1, %v23197_v1  ;;  %382 = vst.msk [vmem:[#allocation2 + $0x138] sm:$0x1] %vm345_vm1, %v23197_v1 }
  0x57   : > { %386 = vst.msk [vmem:[#allocation2 + $0x158] sm:$0x1] %vm345_vm1, %v23197_v1  ;;  %390 = vst.msk [vmem:[#allocation2 + $0x178] sm:$0x1] %vm345_vm1, %v23197_v1 }
  0x58   : > { %394 = vst.msk [vmem:[#allocation2 + $0x198] sm:$0x1] %vm345_vm1, %v23197_v1  ;;  %398 = vst.msk [vmem:[#allocation2 + $0x1b8] sm:$0x1] %vm345_vm1, %v23197_v1 }
  0x59   : > { %402 = vst.msk [vmem:[#allocation2 + $0x1d8] sm:$0x1] %vm345_vm1, %v23197_v1  ;;  %406 = vst.msk [vmem:[#allocation2 + $0x1f8] sm:$0x1] %vm345_vm1, %v23197_v1 }
  0x5a   : > { %410 = vst.msk [vmem:[#allocation2 + $0x218] sm:$0x1] %vm345_vm1, %v23197_v1  ;;  %414 = vst.msk [vmem:[#allocation2 + $0x238] sm:$0x1] %vm345_vm1, %v23197_v1 }
  0x5b   : > { %418 = vst.msk [vmem:[#allocation2 + $0x258] sm:$0x1] %vm345_vm1, %v23197_v1  ;;  %422 = vst.msk [vmem:[#allocation2 + $0x278] sm:$0x1] %vm345_vm1, %v23197_v1 }
  0x5c   : > { %426 = vst.msk [vmem:[#allocation2 + $0x298] sm:$0x1] %vm345_vm1, %v23197_v1  ;;  %430 = vst.msk [vmem:[#allocation2 + $0x2b8] sm:$0x1] %vm345_vm1, %v23197_v1 }
  0x5d   : > { %434 = vst.msk [vmem:[#allocation2 + $0x2d8] sm:$0x1] %vm345_vm1, %v23197_v1  ;;  %438 = vst.msk [vmem:[#allocation2 + $0x2f8] sm:$0x1] %vm345_vm1, %v23197_v1 }
  0x5e   : > { %442 = vst.msk [vmem:[#allocation2 + $0x318] sm:$0x1] %vm345_vm1, %v23197_v1  ;;  %446 = vst.msk [vmem:[#allocation2 + $0x338] sm:$0x1] %vm345_vm1, %v23197_v1 }
  0x5f   : > { %450 = vst.msk [vmem:[#allocation2 + $0x358] sm:$0x1] %vm345_vm1, %v23197_v1  ;;  %454 = vst.msk [vmem:[#allocation2 + $0x378] sm:$0x1] %vm345_vm1, %v23197_v1 }
  0x60   : > { %458 = vst.msk [vmem:[#allocation2 + $0x398] sm:$0x1] %vm345_vm1, %v23197_v1  ;;  %462 = vst.msk [vmem:[#allocation2 + $0x3b8] sm:$0x1] %vm345_vm1, %v23197_v1 }
  0x61   : > { %466 = vst.msk [vmem:[#allocation2 + $0x3d8] sm:$0x1] %vm345_vm1, %v23197_v1  ;;  %470 = vst.msk [vmem:[#allocation2 + $0x3f8] sm:$0x1] %vm345_vm1, %v23197_v1 }
  0x62   : > { %474 = vst.msk [vmem:[#allocation2 + $0x418] sm:$0x1] %vm345_vm1, %v23197_v1  ;;  %478 = vst.msk [vmem:[#allocation2 + $0x438] sm:$0x1] %vm345_vm1, %v23197_v1 }
  0x63   : > { %482 = vst.msk [vmem:[#allocation2 + $0x458] sm:$0x1] %vm345_vm1, %v23197_v1  ;;  %486 = vst.msk [vmem:[#allocation2 + $0x478] sm:$0x1] %vm345_vm1, %v23197_v1 }
  0x64   : > { %488 = vst.msk [vmem:[#allocation3] sm:$0xff] %vm487_vm2, %v23197_v1  ;;  %489 = vst.msk [vmem:[#allocation3 + $0x8] sm:$0xff] %vm487_vm2, %v23197_v1 }
  0x65   : > { %490 = vst.msk [vmem:[#allocation3 + $0x10] sm:$0xff] %vm487_vm2, %v23197_v1  ;;  %493 = vst.msk [vmem:[#allocation3 + $0x20] sm:$0xff] %vm487_vm2, %v23197_v1 }
  0x66   : > { %494 = vst.msk [vmem:[#allocation3 + $0x28] sm:$0xff] %vm487_vm2, %v23197_v1  ;;  %495 = vst.msk [vmem:[#allocation3 + $0x30] sm:$0xff] %vm487_vm2, %v23197_v1 }
  0x67   : > { %497 = vst.msk [vmem:[#allocation3 + $0x40] sm:$0xff] %vm487_vm2, %v23197_v1  ;;  %498 = vst.msk [vmem:[#allocation3 + $0x48] sm:$0xff] %vm487_vm2, %v23197_v1 }
  0x68   : > { %499 = vst.msk [vmem:[#allocation3 + $0x50] sm:$0xff] %vm487_vm2, %v23197_v1  ;;  %501 = vst.msk [vmem:[#allocation3 + $0x60] sm:$0xff] %vm487_vm2, %v23197_v1 }
  0x69   : > { %502 = vst.msk [vmem:[#allocation3 + $0x68] sm:$0xff] %vm487_vm2, %v23197_v1  ;;  %503 = vst.msk [vmem:[#allocation3 + $0x70] sm:$0xff] %vm487_vm2, %v23197_v1 }
  0x6a   : > { %505 = vst.msk [vmem:[#allocation3 + $0x80] sm:$0xff] %vm487_vm2, %v23197_v1  ;;  %506 = vst.msk [vmem:[#allocation3 + $0x88] sm:$0xff] %vm487_vm2, %v23197_v1 }
  0x6b   : > { %507 = vst.msk [vmem:[#allocation3 + $0x90] sm:$0xff] %vm487_vm2, %v23197_v1  ;;  %509 = vst.msk [vmem:[#allocation3 + $0xa0] sm:$0xff] %vm487_vm2, %v23197_v1 }
  0x6c   : > { %510 = vst.msk [vmem:[#allocation3 + $0xa8] sm:$0xff] %vm487_vm2, %v23197_v1  ;;  %511 = vst.msk [vmem:[#allocation3 + $0xb0] sm:$0xff] %vm487_vm2, %v23197_v1 }
  0x6d   : > { %513 = vst.msk [vmem:[#allocation3 + $0xc0] sm:$0xff] %vm487_vm2, %v23197_v1  ;;  %514 = vst.msk [vmem:[#allocation3 + $0xc8] sm:$0xff] %vm487_vm2, %v23197_v1 }
  0x6e   : > { %515 = vst.msk [vmem:[#allocation3 + $0xd0] sm:$0xff] %vm487_vm2, %v23197_v1  ;;  %517 = vst.msk [vmem:[#allocation3 + $0xe0] sm:$0xff] %vm487_vm2, %v23197_v1 }
  0x6f   : > { %518 = vst.msk [vmem:[#allocation3 + $0xe8] sm:$0xff] %vm487_vm2, %v23197_v1  ;;  %519 = vst.msk [vmem:[#allocation3 + $0xf0] sm:$0xff] %vm487_vm2, %v23197_v1 }
  0x70   : > { %521 = vst.msk [vmem:[#allocation3 + $0x100] sm:$0xff] %vm487_vm2, %v23197_v1  ;;  %522 = vst.msk [vmem:[#allocation3 + $0x108] sm:$0xff] %vm487_vm2, %v23197_v1 }
  0x71   : > { %523 = vst.msk [vmem:[#allocation3 + $0x110] sm:$0xff] %vm487_vm2, %v23197_v1  ;;  %525 = vst.msk [vmem:[#allocation3 + $0x120] sm:$0xff] %vm487_vm2, %v23197_v1 }
  0x72   : > { %526 = vst.msk [vmem:[#allocation3 + $0x128] sm:$0xff] %vm487_vm2, %v23197_v1  ;;  %527 = vst.msk [vmem:[#allocation3 + $0x130] sm:$0xff] %vm487_vm2, %v23197_v1 }
  0x73   : > { %529 = vst.msk [vmem:[#allocation3 + $0x140] sm:$0xff] %vm487_vm2, %v23197_v1  ;;  %530 = vst.msk [vmem:[#allocation3 + $0x148] sm:$0xff] %vm487_vm2, %v23197_v1 }
  0x74   : > { %531 = vst.msk [vmem:[#allocation3 + $0x150] sm:$0xff] %vm487_vm2, %v23197_v1  ;;  %533 = vst.msk [vmem:[#allocation3 + $0x160] sm:$0xff] %vm487_vm2, %v23197_v1 }
  0x75   : > { %534 = vst.msk [vmem:[#allocation3 + $0x168] sm:$0xff] %vm487_vm2, %v23197_v1  ;;  %535 = vst.msk [vmem:[#allocation3 + $0x170] sm:$0xff] %vm487_vm2, %v23197_v1 }
  0x76   : > { %537 = vst.msk [vmem:[#allocation3 + $0x180] sm:$0xff] %vm487_vm2, %v23197_v1  ;;  %538 = vst.msk [vmem:[#allocation3 + $0x188] sm:$0xff] %vm487_vm2, %v23197_v1 }
  0x77   : > { %539 = vst.msk [vmem:[#allocation3 + $0x190] sm:$0xff] %vm487_vm2, %v23197_v1  ;;  %541 = vst.msk [vmem:[#allocation3 + $0x1a0] sm:$0xff] %vm487_vm2, %v23197_v1 }
  0x78   : > { %542 = vst.msk [vmem:[#allocation3 + $0x1a8] sm:$0xff] %vm487_vm2, %v23197_v1  ;;  %543 = vst.msk [vmem:[#allocation3 + $0x1b0] sm:$0xff] %vm487_vm2, %v23197_v1 }
  0x79   : > { %545 = vst.msk [vmem:[#allocation3 + $0x1c0] sm:$0xff] %vm487_vm2, %v23197_v1  ;;  %546 = vst.msk [vmem:[#allocation3 + $0x1c8] sm:$0xff] %vm487_vm2, %v23197_v1 }
  0x7a   : > { %547 = vst.msk [vmem:[#allocation3 + $0x1d0] sm:$0xff] %vm487_vm2, %v23197_v1  ;;  %549 = vst.msk [vmem:[#allocation3 + $0x1e0] sm:$0xff] %vm487_vm2, %v23197_v1 }
  0x7b   : > { %550 = vst.msk [vmem:[#allocation3 + $0x1e8] sm:$0xff] %vm487_vm2, %v23197_v1  ;;  %551 = vst.msk [vmem:[#allocation3 + $0x1f0] sm:$0xff] %vm487_vm2, %v23197_v1 }
  0x7c   : > { %553 = vst.msk [vmem:[#allocation3 + $0x200] sm:$0xff] %vm487_vm2, %v23197_v1  ;;  %554 = vst.msk [vmem:[#allocation3 + $0x208] sm:$0xff] %vm487_vm2, %v23197_v1 }
  0x7d   : > { %555 = vst.msk [vmem:[#allocation3 + $0x210] sm:$0xff] %vm487_vm2, %v23197_v1  ;;  %557 = vst.msk [vmem:[#allocation3 + $0x220] sm:$0xff] %vm487_vm2, %v23197_v1 }
  0x7e   : > { %558 = vst.msk [vmem:[#allocation3 + $0x228] sm:$0xff] %vm487_vm2, %v23197_v1  ;;  %559 = vst.msk [vmem:[#allocation3 + $0x230] sm:$0xff] %vm487_vm2, %v23197_v1 }
  0x7f   : > { %561 = vst.msk [vmem:[#allocation3 + $0x240] sm:$0xff] %vm487_vm2, %v23197_v1  ;;  %562 = vst.msk [vmem:[#allocation3 + $0x248] sm:$0xff] %vm487_vm2, %v23197_v1 }
  0x80   : > { %563 = vst.msk [vmem:[#allocation3 + $0x250] sm:$0xff] %vm487_vm2, %v23197_v1  ;;  %565 = vst.msk [vmem:[#allocation3 + $0x260] sm:$0xff] %vm487_vm2, %v23197_v1 }
  0x81   : > { %566 = vst.msk [vmem:[#allocation3 + $0x268] sm:$0xff] %vm487_vm2, %v23197_v1  ;;  %567 = vst.msk [vmem:[#allocation3 + $0x270] sm:$0xff] %vm487_vm2, %v23197_v1 }
  0x82   : > { %492 = vst.msk [vmem:[#allocation3 + $0x18] sm:$0x3] %vm491_vm3, %v23197_v1  ;;  %496 = vst.msk [vmem:[#allocation3 + $0x38] sm:$0x3] %vm491_vm3, %v23197_v1 }
  0x83   : > { %500 = vst.msk [vmem:[#allocation3 + $0x58] sm:$0x3] %vm491_vm3, %v23197_v1  ;;  %504 = vst.msk [vmem:[#allocation3 + $0x78] sm:$0x3] %vm491_vm3, %v23197_v1 }
  0x84   : > { %508 = vst.msk [vmem:[#allocation3 + $0x98] sm:$0x3] %vm491_vm3, %v23197_v1  ;;  %512 = vst.msk [vmem:[#allocation3 + $0xb8] sm:$0x3] %vm491_vm3, %v23197_v1 }
  0x85   : > { %516 = vst.msk [vmem:[#allocation3 + $0xd8] sm:$0x3] %vm491_vm3, %v23197_v1  ;;  %520 = vst.msk [vmem:[#allocation3 + $0xf8] sm:$0x3] %vm491_vm3, %v23197_v1 }
  0x86   : > { %524 = vst.msk [vmem:[#allocation3 + $0x118] sm:$0x3] %vm491_vm3, %v23197_v1  ;;  %528 = vst.msk [vmem:[#allocation3 + $0x138] sm:$0x3] %vm491_vm3, %v23197_v1 }
  0x87   : > { %532 = vst.msk [vmem:[#allocation3 + $0x158] sm:$0x3] %vm491_vm3, %v23197_v1  ;;  %536 = vst.msk [vmem:[#allocation3 + $0x178] sm:$0x3] %vm491_vm3, %v23197_v1 }
  0x88   : > { %540 = vst.msk [vmem:[#allocation3 + $0x198] sm:$0x3] %vm491_vm3, %v23197_v1  ;;  %544 = vst.msk [vmem:[#allocation3 + $0x1b8] sm:$0x3] %vm491_vm3, %v23197_v1 }
  0x89   : > { %548 = vst.msk [vmem:[#allocation3 + $0x1d8] sm:$0x3] %vm491_vm3, %v23197_v1  ;;  %552 = vst.msk [vmem:[#allocation3 + $0x1f8] sm:$0x3] %vm491_vm3, %v23197_v1 }
  0x8a   : > { %556 = vst.msk [vmem:[#allocation3 + $0x218] sm:$0x3] %vm491_vm3, %v23197_v1  ;;  %560 = vst.msk [vmem:[#allocation3 + $0x238] sm:$0x3] %vm491_vm3, %v23197_v1 }
  0x8b   : > { %564 = vst.msk [vmem:[#allocation3 + $0x258] sm:$0x3] %vm491_vm3, %v23197_v1  ;;  %568 = vst.msk [vmem:[#allocation3 + $0x278] sm:$0x3] %vm491_vm3, %v23197_v1 }
  0x8c PF: > { %v633_v2 = vld [vmem:[%s27738_s1] sm:$0x7]  ;;  %vm893_vm4 = vcmask 1042432   ;;  %v569_v3 = vld [vmem:[%s23309_s27 + $0x7] sm:$0xff]  ;;  %vm700_vm5 = vcmask 23552   ;;  %v570_v4 = vld [vmem:[%s23309_s27 + $0xf] sm:$0xff] }
  0x8d   : > { %19781 = vmatprep.subr.msk.mxu0 %vm893_vm4, %v633_v2  ;;  %19783 = vmatprep.mubr.msk.f32.mxu0 %vm700_vm5, %v569_v3  ;;  %v23772_v5 = vld [vmem:[%s23309_s27 + $0x27] sm:$0xff]  ;;  %v23779_v6 = vld [vmem:[%s23309_s27 + $0x2f] sm:$0xff]  ;;  %vm6970_vm6 = vcmask 130048   ;;  %vm13447_vm7 = vcmask 261120   ;;  %vm23199_vm8 = vmmov 0   ;;  %s18304_s18 = sshll.u32 %s23277_s8, 4 }
  0x8e   : > { %19782 = vmatpush3.msk.msra.mxu0 %vm893_vm4, %v633_v2  ;;  %v23782_v7 = vld [vmem:[%s23309_s27 + $0x47] sm:$0xff]  ;;  %v23789_v8 = vld [vmem:[%s23309_s27 + $0x4f] sm:$0xff]  ;;  %vm27656_vm9 = vmpackc.low %vm6970_vm6, %vm6970_vm6  ;;  %s16285_s23 = sshll.u32 %s23313_s28, 4  ;;  %s27692_s26 = scalar_lea.hbm %s27746_s9, %s18304_s18  ;;  %s27694_s23 = int_to_ptr.vmem [resolvable:$true] %s16285_s23 }
  0x8f   : > { %19784 = vmatmul.mubr.msk.f32.vlgmr.msra.gmra.mrb[0].mxu0 %vm700_vm5, %v570_v4  ;;  %v23792_v9 = vld [vmem:[%s23309_s27 + $0x67] sm:$0xff]  ;;  %v23802_v11 = vld [vmem:[%s23309_s27 + $0x6f] sm:$0xff]  ;;  %s16273_s29 = scalar_lea.sflag [#allocation6], %s328_s22  ;;  %s23133_s30 = scalar_lea.vmem %s27694_s23, 16 }
  0x90   : > { %19786 = vmatprep.mubr.msk.f32.mxu0 %vm700_vm5, %v23772_v5  ;;  %v16670_v10 = vld [vmem:[%s27738_s1 + $0x8] sm:$0x7]  ;;  %v23814_v13 = vld [vmem:[%s23309_s27 + $0x8f] sm:$0xff]  ;;  %v23914_v33 = vld [vmem:[%s27738_s1 + $0xc] sm:$0x7]  ;;  %p23134_p12 = scmp.ne.s32.totalorder %s27694_s23, %s23133_s30  ;;  %s23202_s8 = smov [#allocation5]  }
  0x91   : > { %19879 = vmatprep.subr.msk.mxu0 %vm893_vm4, %v16670_v10  ;;  %v23806_v12 = vld [vmem:[%s23309_s27 + $0x87] sm:$0xff]  ;;  %v23824_v15 = vld [vmem:[%s23309_s27 + $0xaf] sm:$0xff]  ;;  %s23137_s10 = sshll.u32 %s23202_s8, 4  ;;  %s23138_s10 = int_to_ptr.vmem [resolvable:$false] %s23137_s10 }
  0x92   : > { %19880 = vmatpush3.msk.msra.mxu0 %vm893_vm4, %v16670_v10  ;;  %v23817_v14 = vld [vmem:[%s23309_s27 + $0xa7] sm:$0xff]  ;;  %v23834_v17 = vld [vmem:[%s23309_s27 + $0xcf] sm:$0xff]  ;;  %p23135_p13 = pnand %p23134_p12, %p23294_p5  ;;  %s23139_s15 = scalar_lea.vmem %s23138_s10, 32 }
  0x93   : > { %19787 = vmatmul.mubr.msk.f32.gmra.mrb[2].mxu0 %vm700_vm5, %v23779_v6  ;;  %v23827_v16 = vld [vmem:[%s23309_s27 + $0xc7] sm:$0xff]  ;;  %v23844_v19 = vld [vmem:[%s23309_s27 + $0xef] sm:$0xff]  ;;  %19977 = vmatprep.subr.msk.mxu0 %vm893_vm4, %v23914_v33  ;;  %p23140_p1 = scmp.lt.s32.totalorder %s27694_s23, %s23138_s10  ;;  %p23141_p2 = scmp.lt.s32.totalorder %s23139_s15, %s23133_s30 }
  0x94   : > { %19789 = vmatprep.mubr.msk.f32.mxu0 %vm700_vm5, %v23782_v7  ;;  %v23837_v18 = vld [vmem:[%s23309_s27 + $0xe7] sm:$0xff]  ;;  %v23854_v21 = vld [vmem:[%s23309_s27 + $0x10f] sm:$0xff]  ;;  %p23136_p0 = pneg %p23135_p13 }
  0x95   : > { %v23847_v20 = vld [vmem:[%s23309_s27 + $0x107] sm:$0xff]  ;;  %v23864_v23 = vld [vmem:[%s23309_s27 + $0x12f] sm:$0xff]  ;;  %p23142_p3 = por %p23141_p2, %p23140_p1 }
  0x96   : > { %v23857_v22 = vld [vmem:[%s23309_s27 + $0x127] sm:$0xff]  ;;  %v23874_v25 = vld [vmem:[%s23309_s27 + $0x14f] sm:$0xff] }
  0x97   : > { %19790 = vmatmul.mubr.msk.f32.gmra.mrb[4].mxu0 %vm700_vm5, %v23789_v8  ;;  %v23867_v24 = vld [vmem:[%s23309_s27 + $0x147] sm:$0xff]  ;;  %v23884_v27 = vld [vmem:[%s23309_s27 + $0x16f] sm:$0xff]  ;;  %p23143_p4 = pnand %p23142_p3, %p23136_p0 }
  0x98   : > { %19792 = vmatprep.mubr.msk.f32.mxu0 %vm700_vm5, %v23792_v9  ;;  %v23877_v26 = vld [vmem:[%s23309_s27 + $0x167] sm:$0xff]  ;;  %v23894_v29 = vld [vmem:[%s23309_s27 + $0x18f] sm:$0xff] }
  0x99   : > { %v23887_v28 = vld [vmem:[%s23309_s27 + $0x187] sm:$0xff]  ;;  %v23904_v31 = vld [vmem:[%s23309_s27 + $0x1af] sm:$0xff] }
  0x9a   : > { %v23897_v30 = vld [vmem:[%s23309_s27 + $0x1a7] sm:$0xff]  ;;  %v23919_v34 = vld [vmem:[%s23309_s27 + $0x1cf] sm:$0xff] }
  0x9b   : > { %19793 = vmatmul.mubr.msk.f32.gmra.mrb[6].mxu0 %vm700_vm5, %v23802_v11  ;;  %v23907_v32 = vld [vmem:[%s23309_s27 + $0x1c7] sm:$0xff]  ;;  %v23931_v36 = vld [vmem:[%s23309_s27 + $0x1ef] sm:$0xff] }
  0x9c   : > { %19795 = vmatprep.mubr.msk.f32.mxu0 %vm700_vm5, %v23806_v12  ;;  %v23924_v35 = vld [vmem:[%s23309_s27 + $0x1e7] sm:$0xff]  ;;  %v602_v38 = vld [vmem:[%s23309_s27 + $0x24f] sm:$0xff] }
  0x9d   : > { %v601_v37 = vld [vmem:[%s23309_s27 + $0x247] sm:$0xff]  ;;  %v23945_v40 = vld [vmem:[%s23309_s27 + $0x26f] sm:$0xff] }
  0x9e   : > { %v23939_v39 = vld [vmem:[%s23309_s27 + $0x267] sm:$0xff]  ;;  %v23955_v42 = vld [vmem:[%s23309_s27 + $0x28f] sm:$0xff] }
  0x9f   : > { %19796 = vmatmul.mubr.msk.f32.gmra.mrb[8].mxu0 %vm700_vm5, %v23814_v13  ;;  %v23948_v41 = vld [vmem:[%s23309_s27 + $0x287] sm:$0xff]  ;;  %v23965_v44 = vld [vmem:[%s23309_s27 + $0x2af] sm:$0xff] }
  0xa0   : > { %19798 = vmatprep.mubr.msk.f32.mxu0 %vm700_vm5, %v23817_v14  ;;  %v23958_v43 = vld [vmem:[%s23309_s27 + $0x2a7] sm:$0xff]  ;;  %v23975_v46 = vld [vmem:[%s23309_s27 + $0x2cf] sm:$0xff] }
  0xa1   : > { %v23968_v45 = vld [vmem:[%s23309_s27 + $0x2c7] sm:$0xff]  ;;  %v23985_v48 = vld [vmem:[%s23309_s27 + $0x2ef] sm:$0xff] }
  0xa2   : > { %v23978_v47 = vld [vmem:[%s23309_s27 + $0x2e7] sm:$0xff]  ;;  %v23995_v50 = vld [vmem:[%s23309_s27 + $0x30f] sm:$0xff] }
  0xa3   : > { %19799 = vmatmul.mubr.msk.f32.gmra.mrb[10].mxu0 %vm700_vm5, %v23824_v15  ;;  %v23988_v49 = vld [vmem:[%s23309_s27 + $0x307] sm:$0xff]  ;;  %v24005_v52 = vld [vmem:[%s23309_s27 + $0x32f] sm:$0xff] }
  0xa4   : > { %19801 = vmatprep.mubr.msk.f32.mxu0 %vm700_vm5, %v23827_v16  ;;  %v23998_v51 = vld [vmem:[%s23309_s27 + $0x327] sm:$0xff]  ;;  %v24015_v54 = vld [vmem:[%s23309_s27 + $0x34f] sm:$0xff] }
  0xa5   : > { %v24008_v53 = vld [vmem:[%s23309_s27 + $0x347] sm:$0xff]  ;;  %v24025_v56 = vld [vmem:[%s23309_s27 + $0x36f] sm:$0xff] }
  0xa6   : > { %v24018_v55 = vld [vmem:[%s23309_s27 + $0x367] sm:$0xff]  ;;  %v24035_v58 = vld [vmem:[%s23309_s27 + $0x38f] sm:$0xff] }
  0xa7   : > { %19802 = vmatmul.mubr.msk.f32.gmra.mrb[12].mxu0 %vm700_vm5, %v23834_v17  ;;  %v24028_v57 = vld [vmem:[%s23309_s27 + $0x387] sm:$0xff]  ;;  %v24045_v60 = vld [vmem:[%s23309_s27 + $0x3af] sm:$0xff] }
  0xa8   : > { %19804 = vmatprep.mubr.msk.f32.mxu0 %vm700_vm5, %v23837_v18  ;;  %v24038_v59 = vld [vmem:[%s23309_s27 + $0x3a7] sm:$0xff]  ;;  %v24055_v62 = vld [vmem:[%s23309_s27 + $0x3cf] sm:$0xff] }
  0xa9   : > { %v24048_v61 = vld [vmem:[%s23309_s27 + $0x3c7] sm:$0xff]  ;;  %v1863_v0 = vld [vmem:[%s23309_s27 + $0x11] sm:$0xff] }
  0xaa   : > { %v1862_v63 = vld [vmem:[%s23309_s27 + $0x9] sm:$0xff]  ;;  %v24069_v2 = vld [vmem:[%s23309_s27 + $0x31] sm:$0xff] }
  0xab   : > { %19805 = vmatmul.mubr.msk.f32.gmra.mrb[14].mxu0 %vm700_vm5, %v23844_v19  ;;  %v24063_v1 = vld [vmem:[%s23309_s27 + $0x29] sm:$0xff]  ;;  %v24081_v4 = vld [vmem:[%s23309_s27 + $0x51] sm:$0xff] }
  0xac   : > { %19807 = vmatprep.mubr.msk.f32.mxu0 %vm700_vm5, %v23847_v20  ;;  %v24074_v3 = vld [vmem:[%s23309_s27 + $0x49] sm:$0xff]  ;;  %27899 = vst [vmem:[#allocation8_spill] sm:$0xff] %v24081_v4 }
  0xad   : > { %v24084_v10 = vld [vmem:[%s23309_s27 + $0x69] sm:$0xff] }
  0xae   : > { %27900 = vst [vmem:[#allocation9_spill] sm:$0xff] %v24084_v10 }
  0xaf   : > { %19808 = vmatmul.mubr.msk.f32.gmra.mrb[16].mxu0 %vm700_vm5, %v23854_v21 }
  0xb0   : > { %19810 = vmatprep.mubr.msk.f32.mxu0 %vm700_vm5, %v23857_v22 }
  0xb3   : > { %19811 = vmatmul.mubr.msk.f32.gmra.mrb[18].mxu0 %vm700_vm5, %v23864_v23 }
  0xb4   : > { %19813 = vmatprep.mubr.msk.f32.mxu0 %vm700_vm5, %v23867_v24 }
  0xb7   : > { %19814 = vmatmul.mubr.msk.f32.gmra.mrb[20].mxu0 %vm700_vm5, %v23874_v25 }
  0xb8   : > { %19816 = vmatprep.mubr.msk.f32.mxu0 %vm700_vm5, %v23877_v26 }
  0xbb   : > { %19817 = vmatmul.mubr.msk.f32.gmra.mrb[22].mxu0 %vm700_vm5, %v23884_v27 }
  0xbc   : > { %19819 = vmatprep.mubr.msk.f32.mxu0 %vm700_vm5, %v23887_v28 }
  0xbf   : > { %19820 = vmatmul.mubr.msk.f32.gmra.mrb[24].mxu0 %vm700_vm5, %v23894_v29 }
  0xc0   : > { %19822 = vmatprep.mubr.msk.f32.mxu0 %vm700_vm5, %v23897_v30 }
  0xc3   : > { %19823 = vmatmul.mubr.msk.f32.gmra.mrb[26].mxu0 %vm700_vm5, %v23904_v31 }
  0xc4   : > { %19825 = vmatprep.mubr.msk.f32.mxu0 %vm700_vm5, %v23907_v32 }
  0xc7   : > { %19826 = vmatmul.mubr.msk.f32.gmra.mrb[28].mxu0 %vm700_vm5, %v23919_v34 }
  0xc8   : > { %19828 = vmatprep.mubr.msk.f32.mxu0 %vm700_vm5, %v23924_v35 }
  0xcb   : > { %19829 = vmatmul.mubr.msk.f32.gmra.mrb[30].mxu0 %vm700_vm5, %v23931_v36 }
  0xcc   : > { %19831 = vmatprep.mubr.msk.f32.mxu0 %vm700_vm5, %v601_v37  ;;  %v24094_v37 = vld [vmem:[%s23309_s27 + $0x89] sm:$0xff] }
  0xcd   : > { %27902 = vst [vmem:[#allocation11_spill] sm:$0xff] %v24094_v37 }
  0xcf   : > { %19832 = vmatmul.mubr.msk.f32.gmra.mrb[32].mxu0 %vm700_vm5, %v602_v38  ;;  %v24101_v38 = vld [vmem:[%s23309_s27 + $0x91] sm:$0xff] }
  0xd0   : > { %19834 = vmatprep.mubr.msk.f32.mxu0 %vm700_vm5, %v23939_v39  ;;  %27903 = vst [vmem:[#allocation12_spill] sm:$0xff] %v24101_v38 }
  0xd3   : > { %19835 = vmatmul.mubr.msk.f32.gmra.mrb[34].mxu0 %vm700_vm5, %v23945_v40 }
  0xd4   : > { %19837 = vmatprep.mubr.msk.f32.mxu0 %vm700_vm5, %v23948_v41 }
  0xd7   : > { %19838 = vmatmul.mubr.msk.f32.gmra.mrb[36].mxu0 %vm700_vm5, %v23955_v42 }
  0xd8   : > { %19840 = vmatprep.mubr.msk.f32.mxu0 %vm700_vm5, %v23958_v43 }
  0xdb   : > { %19841 = vmatmul.mubr.msk.f32.gmra.mrb[38].mxu0 %vm700_vm5, %v23965_v44 }
  0xdc   : > { %19843 = vmatprep.mubr.msk.f32.mxu0 %vm700_vm5, %v23968_v45 }
  0xdf   : > { %19844 = vmatmul.mubr.msk.f32.gmra.mrb[40].mxu0 %vm700_vm5, %v23975_v46 }
  0xe0   : > { %19846 = vmatprep.mubr.msk.f32.mxu0 %vm700_vm5, %v23978_v47 }
  0xe3   : > { %19847 = vmatmul.mubr.msk.f32.gmra.mrb[42].mxu0 %vm700_vm5, %v23985_v48 }
  0xe4   : > { %19849 = vmatprep.mubr.msk.f32.mxu0 %vm700_vm5, %v23988_v49 }
  0xe7   : > { %19850 = vmatmul.mubr.msk.f32.gmra.mrb[44].mxu0 %vm700_vm5, %v23995_v50 }
  0xe8   : > { %19852 = vmatprep.mubr.msk.f32.mxu0 %vm700_vm5, %v23998_v51 }
  0xeb   : > { %19853 = vmatmul.mubr.msk.f32.gmra.mrb[46].mxu0 %vm700_vm5, %v24005_v52 }
  0xec   : > { %19855 = vmatprep.mubr.msk.f32.mxu0 %vm700_vm5, %v24008_v53 }
  0xef   : > { %19856 = vmatmul.mubr.msk.f32.gmra.mrb[48].mxu0 %vm700_vm5, %v24015_v54 }
  0xf0   : > { %19858 = vmatprep.mubr.msk.f32.mxu0 %vm700_vm5, %v24018_v55 }
  0xf3   : > { %19859 = vmatmul.mubr.msk.f32.gmra.mrb[50].mxu0 %vm700_vm5, %v24025_v56 }
  0xf4   : > { %19861 = vmatprep.mubr.msk.f32.mxu0 %vm700_vm5, %v24028_v57 }
  0xf7   : > { %19862 = vmatmul.mubr.msk.f32.gmra.mrb[52].mxu0 %vm700_vm5, %v24035_v58 }
  0xf8   : > { %19864 = vmatprep.mubr.msk.f32.mxu0 %vm700_vm5, %v24038_v59 }
  0xfb   : > { %19865 = vmatmul.mubr.msk.f32.gmra.mrb[54].mxu0 %vm700_vm5, %v24045_v60 }
  0xfc   : > { %19867 = vmatprep.mubr.msk.f32.mxu0 %vm700_vm5, %v24048_v61 }
  0xff   : > { %19868 = vmatmul.mubr.msk.f32.gmra.mrb[56].mxu0 %vm700_vm5, %v24055_v62 }
 0x100   : > { %19881 = vmatprep.mubr.msk.f32.mxu0 %vm700_vm5, %v1862_v63  ;;  %v24104_v63 = vld [vmem:[%s23309_s27 + $0xa9] sm:$0xff] }
 0x101   : > { %27904 = vst [vmem:[#allocation13_spill] sm:$0xff] %v24104_v63 }
 0x103   : > { %19882 = vmatmul.mubr.msk.f32.vlgmr.msra.gmra.mrb[0].mxu0 %vm700_vm5, %v1863_v0  ;;  %v24111_v0 = vld [vmem:[%s23309_s27 + $0xb1] sm:$0xff] }
 0x104   : > { %19884 = vmatprep.mubr.msk.f32.mxu0 %vm700_vm5, %v24063_v1  ;;  %19978 = vmatpush3.msk.msra.mxu0 %vm893_vm4, %v23914_v33  ;;  %v24091_v33 = vld [vmem:[%s23309_s27 + $0x71] sm:$0xff]  ;;  %27905 = vst [vmem:[#allocation14_spill] sm:$0xff] %v24111_v0 }
 0x105   : > { %27901 = vst [vmem:[#allocation10_spill] sm:$0xff] %v24091_v33 }
 0x107   : > { %19885 = vmatmul.mubr.msk.f32.gmra.mrb[2].mxu0 %vm700_vm5, %v24069_v2 }
 0x108   : > { %19887 = vmatprep.mubr.msk.f32.mxu0 %vm700_vm5, %v24074_v3 }
 0x10b   : > { %19888 = vmatmul.mubr.msk.f32.gmra.mrb[4].mxu0 %vm700_vm5, %v24081_v4  ;;  %v24255_v4 = vld [vmem:[%s23309_s27 + $0x2c9] sm:$0xff] }
 0x10c   : > { %19890 = vmatprep.mubr.msk.f32.mxu0 %vm700_vm5, %v24084_v10  ;;  %v24114_v10 = vld [vmem:[%s23309_s27 + $0xc9] sm:$0xff]  ;;  %27932 = vst [vmem:[#allocation41_spill] sm:$0xff] %v24255_v4 }
 0x10d   : > { %27906 = vst [vmem:[#allocation15_spill] sm:$0xff] %v24114_v10 }
 0x10f   : > { %19891 = vmatmul.mubr.msk.f32.gmra.mrb[6].mxu0 %vm700_vm5, %v24091_v33  ;;  %v24124_v33 = vld [vmem:[%s23309_s27 + $0xe9] sm:$0xff] }
 0x110   : > { %19893 = vmatprep.mubr.msk.f32.mxu0 %vm700_vm5, %v24094_v37  ;;  %v24121_v37 = vld [vmem:[%s23309_s27 + $0xd1] sm:$0xff]  ;;  %27908 = vst [vmem:[#allocation17_spill] sm:$0xff] %v24124_v33 }
 0x111   : > { %27907 = vst [vmem:[#allocation16_spill] sm:$0xff] %v24121_v37 }
 0x113   : > { %19894 = vmatmul.mubr.msk.f32.gmra.mrb[8].mxu0 %vm700_vm5, %v24101_v38  ;;  %v24134_v38 = vld [vmem:[%s23309_s27 + $0x109] sm:$0xff] }
 0x114   : > { %19896 = vmatprep.mubr.msk.f32.mxu0 %vm700_vm5, %v24104_v63  ;;  %v24131_v63 = vld [vmem:[%s23309_s27 + $0xf1] sm:$0xff]  ;;  %27910 = vst [vmem:[#allocation19_spill] sm:$0xff] %v24134_v38 }
 0x115   : > { %27909 = vst [vmem:[#allocation18_spill] sm:$0xff] %v24131_v63 }
 0x117   : > { %19897 = vmatmul.mubr.msk.f32.gmra.mrb[10].mxu0 %vm700_vm5, %v24111_v0  ;;  %v24144_v0 = vld [vmem:[%s23309_s27 + $0x129] sm:$0xff] }
 0x118   : > { %19899 = vmatprep.mubr.msk.f32.mxu0 %vm700_vm5, %v24114_v10  ;;  %v24141_v10 = vld [vmem:[%s23309_s27 + $0x111] sm:$0xff]  ;;  %27912 = vst [vmem:[#allocation21_spill] sm:$0xff] %v24144_v0 }
 0x119   : > { %27911 = vst [vmem:[#allocation20_spill] sm:$0xff] %v24141_v10 }
 0x11b   : > { %19900 = vmatmul.mubr.msk.f32.gmra.mrb[12].mxu0 %vm700_vm5, %v24121_v37  ;;  %v24154_v37 = vld [vmem:[%s23309_s27 + $0x149] sm:$0xff] }
 0x11c   : > { %19902 = vmatprep.mubr.msk.f32.mxu0 %vm700_vm5, %v24124_v33  ;;  %v24151_v33 = vld [vmem:[%s23309_s27 + $0x131] sm:$0xff]  ;;  %27914 = vst [vmem:[#allocation23_spill] sm:$0xff] %v24154_v37 }
 0x11d   : > { %27913 = vst [vmem:[#allocation22_spill] sm:$0xff] %v24151_v33 }
 0x11f   : > { %19903 = vmatmul.mubr.msk.f32.gmra.mrb[14].mxu0 %vm700_vm5, %v24131_v63  ;;  %v24164_v63 = vld [vmem:[%s23309_s27 + $0x169] sm:$0xff] }
 0x120   : > { %19905 = vmatprep.mubr.msk.f32.mxu0 %vm700_vm5, %v24134_v38  ;;  %v24161_v38 = vld [vmem:[%s23309_s27 + $0x151] sm:$0xff]  ;;  %27916 = vst [vmem:[#allocation25_spill] sm:$0xff] %v24164_v63 }
 0x121   : > { %27915 = vst [vmem:[#allocation24_spill] sm:$0xff] %v24161_v38 }
 0x123   : > { %19906 = vmatmul.mubr.msk.f32.gmra.mrb[16].mxu0 %vm700_vm5, %v24141_v10  ;;  %v24174_v10 = vld [vmem:[%s23309_s27 + $0x189] sm:$0xff] }
 0x124   : > { %19908 = vmatprep.mubr.msk.f32.mxu0 %vm700_vm5, %v24144_v0  ;;  %v24171_v0 = vld [vmem:[%s23309_s27 + $0x171] sm:$0xff]  ;;  %27918 = vst [vmem:[#allocation27_spill] sm:$0xff] %v24174_v10 }
 0x125   : > { %27917 = vst [vmem:[#allocation26_spill] sm:$0xff] %v24171_v0 }
 0x127   : > { %19909 = vmatmul.mubr.msk.f32.gmra.mrb[18].mxu0 %vm700_vm5, %v24151_v33  ;;  %v24184_v33 = vld [vmem:[%s23309_s27 + $0x1a9] sm:$0xff] }
 0x128   : > { %19911 = vmatprep.mubr.msk.f32.mxu0 %vm700_vm5, %v24154_v37  ;;  %v24181_v37 = vld [vmem:[%s23309_s27 + $0x191] sm:$0xff]  ;;  %27920 = vst [vmem:[#allocation29_spill] sm:$0xff] %v24184_v33 }
 0x129   : > { %27919 = vst [vmem:[#allocation28_spill] sm:$0xff] %v24181_v37 }
 0x12b   : > { %19912 = vmatmul.mubr.msk.f32.gmra.mrb[20].mxu0 %vm700_vm5, %v24161_v38  ;;  %v24194_v38 = vld [vmem:[%s23309_s27 + $0x1c9] sm:$0xff] }
 0x12c   : > { %19914 = vmatprep.mubr.msk.f32.mxu0 %vm700_vm5, %v24164_v63  ;;  %v24191_v63 = vld [vmem:[%s23309_s27 + $0x1b1] sm:$0xff]  ;;  %27922 = vst [vmem:[#allocation31_spill] sm:$0xff] %v24194_v38 }
 0x12d   : > { %27921 = vst [vmem:[#allocation30_spill] sm:$0xff] %v24191_v63 }
 0x12f   : > { %19915 = vmatmul.mubr.msk.f32.gmra.mrb[22].mxu0 %vm700_vm5, %v24171_v0  ;;  %v24204_v0 = vld [vmem:[%s23309_s27 + $0x1e9] sm:$0xff] }
 0x130   : > { %19917 = vmatprep.mubr.msk.f32.mxu0 %vm700_vm5, %v24174_v10  ;;  %v24201_v10 = vld [vmem:[%s23309_s27 + $0x1d1] sm:$0xff]  ;;  %27924 = vst [vmem:[#allocation33_spill] sm:$0xff] %v24204_v0 }
 0x131   : > { %27923 = vst [vmem:[#allocation32_spill] sm:$0xff] %v24201_v10 }
 0x133   : > { %19918 = vmatmul.mubr.msk.f32.gmra.mrb[24].mxu0 %vm700_vm5, %v24181_v37  ;;  %v1894_v37 = vld [vmem:[%s23309_s27 + $0x249] sm:$0xff] }
 0x134   : > { %19920 = vmatprep.mubr.msk.f32.mxu0 %vm700_vm5, %v24184_v33  ;;  %v24211_v33 = vld [vmem:[%s23309_s27 + $0x1f1] sm:$0xff] }
 0x135   : > { %27925 = vst [vmem:[#allocation34_spill] sm:$0xff] %v24211_v33 }
 0x137   : > { %19921 = vmatmul.mubr.msk.f32.gmra.mrb[26].mxu0 %vm700_vm5, %v24191_v63  ;;  %v24219_v63 = vld [vmem:[%s23309_s27 + $0x269] sm:$0xff] }
 0x138   : > { %19923 = vmatprep.mubr.msk.f32.mxu0 %vm700_vm5, %v24194_v38  ;;  %v1895_v38 = vld [vmem:[%s23309_s27 + $0x251] sm:$0xff]  ;;  %27926 = vst [vmem:[#allocation35_spill] sm:$0xff] %v24219_v63 }
 0x13b   : > { %19924 = vmatmul.mubr.msk.f32.gmra.mrb[28].mxu0 %vm700_vm5, %v24201_v10  ;;  %v24245_v10 = vld [vmem:[%s23309_s27 + $0x2a9] sm:$0xff] }
 0x13c   : > { %19926 = vmatprep.mubr.msk.f32.mxu0 %vm700_vm5, %v24204_v0  ;;  %v24225_v0 = vld [vmem:[%s27738_s1 + $0x10] sm:$0x7]  ;;  %27930 = vst [vmem:[#allocation39_spill] sm:$0xff] %v24245_v10 }
 0x13d   : > { %20075 = vmatprep.subr.msk.mxu0 %vm893_vm4, %v24225_v0 }
 0x13f   : > { %19927 = vmatmul.mubr.msk.f32.gmra.mrb[30].mxu0 %vm700_vm5, %v24211_v33  ;;  %v24230_v33 = vld [vmem:[%s23309_s27 + $0x271] sm:$0xff] }
 0x140   : > { %19929 = vmatprep.mubr.msk.f32.mxu0 %vm700_vm5, %v1894_v37  ;;  %27927 = vst [vmem:[#allocation36_spill] sm:$0xff] %v24230_v33  ;;  %v24235_v37 = vld [vmem:[%s23309_s27 + $0x289] sm:$0xff] }
 0x141   : > { %27928 = vst [vmem:[#allocation37_spill] sm:$0xff] %v24235_v37 }
 0x143   : > { %19930 = vmatmul.mubr.msk.f32.gmra.mrb[32].mxu0 %vm700_vm5, %v1895_v38  ;;  %v24242_v38 = vld [vmem:[%s23309_s27 + $0x291] sm:$0xff] }
 0x144   : > { %19932 = vmatprep.mubr.msk.f32.mxu0 %vm700_vm5, %v24219_v63  ;;  %27929 = vst [vmem:[#allocation38_spill] sm:$0xff] %v24242_v38  ;;  %v24252_v63 = vld [vmem:[%s23309_s27 + $0x2b1] sm:$0xff] }
 0x145   : > { %27931 = vst [vmem:[#allocation40_spill] sm:$0xff] %v24252_v63 }
 0x147   : > { %19933 = vmatmul.mubr.msk.f32.gmra.mrb[34].mxu0 %vm700_vm5, %v24230_v33  ;;  %v24265_v33 = vld [vmem:[%s23309_s27 + $0x2e9] sm:$0xff] }
 0x148   : > { %19935 = vmatprep.mubr.msk.f32.mxu0 %vm700_vm5, %v24235_v37  ;;  %v24262_v37 = vld [vmem:[%s23309_s27 + $0x2d1] sm:$0xff]  ;;  %27934 = vst [vmem:[#allocation43_spill] sm:$0xff] %v24265_v33 }
 0x149   : > { %27933 = vst [vmem:[#allocation42_spill] sm:$0xff] %v24262_v37 }
 0x14b   : > { %19936 = vmatmul.mubr.msk.f32.gmra.mrb[36].mxu0 %vm700_vm5, %v24242_v38  ;;  %v24275_v38 = vld [vmem:[%s23309_s27 + $0x309] sm:$0xff] }
 0x14c   : > { %19938 = vmatprep.mubr.msk.f32.mxu0 %vm700_vm5, %v24245_v10  ;;  %v24272_v10 = vld [vmem:[%s23309_s27 + $0x2f1] sm:$0xff]  ;;  %27936 = vst [vmem:[#allocation45_spill] sm:$0xff] %v24275_v38 }
 0x14d   : > { %27935 = vst [vmem:[#allocation44_spill] sm:$0xff] %v24272_v10 }
 0x14f   : > { %19939 = vmatmul.mubr.msk.f32.gmra.mrb[38].mxu0 %vm700_vm5, %v24252_v63  ;;  %v24285_v63 = vld [vmem:[%s23309_s27 + $0x329] sm:$0xff] }
 0x150   : > { %19941 = vmatprep.mubr.msk.f32.mxu0 %vm700_vm5, %v24255_v4  ;;  %v24282_v4 = vld [vmem:[%s23309_s27 + $0x311] sm:$0xff]  ;;  %27938 = vst [vmem:[#allocation47_spill] sm:$0xff] %v24285_v63 }
 0x151   : > { %27937 = vst [vmem:[#allocation46_spill] sm:$0xff] %v24282_v4 }
 0x153   : > { %19942 = vmatmul.mubr.msk.f32.gmra.mrb[40].mxu0 %vm700_vm5, %v24262_v37  ;;  %v24295_v37 = vld [vmem:[%s23309_s27 + $0x349] sm:$0xff] }
 0x154   : > { %19944 = vmatprep.mubr.msk.f32.mxu0 %vm700_vm5, %v24265_v33  ;;  %v24292_v33 = vld [vmem:[%s23309_s27 + $0x331] sm:$0xff]  ;;  %27940 = vst [vmem:[#allocation49_spill] sm:$0xff] %v24295_v37 }
 0x155   : > { %27939 = vst [vmem:[#allocation48_spill] sm:$0xff] %v24292_v33 }
 0x157   : > { %19945 = vmatmul.mubr.msk.f32.gmra.mrb[42].mxu0 %vm700_vm5, %v24272_v10  ;;  %v24305_v10 = vld [vmem:[%s23309_s27 + $0x369] sm:$0xff] }
 0x158   : > { %19947 = vmatprep.mubr.msk.f32.mxu0 %vm700_vm5, %v24275_v38  ;;  %v24302_v38 = vld [vmem:[%s23309_s27 + $0x351] sm:$0xff]  ;;  %27942 = vst [vmem:[#allocation51_spill] sm:$0xff] %v24305_v10 }
 0x159   : > { %27941 = vst [vmem:[#allocation50_spill] sm:$0xff] %v24302_v38 }
 0x15b   : > { %19948 = vmatmul.mubr.msk.f32.gmra.mrb[44].mxu0 %vm700_vm5, %v24282_v4  ;;  %v24315_v4 = vld [vmem:[%s23309_s27 + $0x389] sm:$0xff] }
 0x15c   : > { %19950 = vmatprep.mubr.msk.f32.mxu0 %vm700_vm5, %v24285_v63  ;;  %v24312_v63 = vld [vmem:[%s23309_s27 + $0x371] sm:$0xff]  ;;  %27944 = vst [vmem:[#allocation53_spill] sm:$0xff] %v24315_v4 }
 0x15d   : > { %27943 = vst [vmem:[#allocation52_spill] sm:$0xff] %v24312_v63 }
 0x15f   : > { %19951 = vmatmul.mubr.msk.f32.gmra.mrb[46].mxu0 %vm700_vm5, %v24292_v33  ;;  %v24325_v33 = vld [vmem:[%s23309_s27 + $0x3a9] sm:$0xff] }
 0x160   : > { %19953 = vmatprep.mubr.msk.f32.mxu0 %vm700_vm5, %v24295_v37  ;;  %v24322_v37 = vld [vmem:[%s23309_s27 + $0x391] sm:$0xff]  ;;  %27946 = vst [vmem:[#allocation55_spill] sm:$0xff] %v24325_v33 }
 0x161   : > { %27945 = vst [vmem:[#allocation54_spill] sm:$0xff] %v24322_v37 }
 0x163   : > { %19954 = vmatmul.mubr.msk.f32.gmra.mrb[48].mxu0 %vm700_vm5, %v24302_v38  ;;  %v24335_v38 = vld [vmem:[%s23309_s27 + $0x3c9] sm:$0xff] }
 0x164   : > { %19956 = vmatprep.mubr.msk.f32.mxu0 %vm700_vm5, %v24305_v10  ;;  %v24332_v10 = vld [vmem:[%s23309_s27 + $0x3b1] sm:$0xff]  ;;  %27948 = vst [vmem:[#allocation57_spill] sm:$0xff] %v24335_v38 }
 0x165   : > { %27947 = vst [vmem:[#allocation56_spill] sm:$0xff] %v24332_v10 }
 0x167   : > { %19957 = vmatmul.mubr.msk.f32.gmra.mrb[50].mxu0 %vm700_vm5, %v24312_v63  ;;  %v24345_v63 = vld [vmem:[%s23309_s27 + $0x3e9] sm:$0xff] }
 0x168   : > { %19959 = vmatprep.mubr.msk.f32.mxu0 %vm700_vm5, %v24315_v4  ;;  %v24342_v4 = vld [vmem:[%s23309_s27 + $0x3d1] sm:$0xff]  ;;  %27949 = vst [vmem:[#allocation58_spill] sm:$0xff] %v24345_v63 }
 0x16b   : > { %19960 = vmatmul.mubr.msk.f32.gmra.mrb[52].mxu0 %vm700_vm5, %v24322_v37  ;;  %v24355_v37 = vld [vmem:[%s23309_s27 + $0x409] sm:$0xff] }
 0x16c   : > { %19962 = vmatprep.mubr.msk.f32.mxu0 %vm700_vm5, %v24325_v33  ;;  %v24352_v33 = vld [vmem:[%s23309_s27 + $0x3f1] sm:$0xff] }
 0x16f   : > { %19963 = vmatmul.mubr.msk.f32.gmra.mrb[54].mxu0 %vm700_vm5, %v24332_v10  ;;  %v24365_v10 = vld [vmem:[%s23309_s27 + $0x429] sm:$0xff] }
 0x170   : > { %19965 = vmatprep.mubr.msk.f32.mxu0 %vm700_vm5, %v24335_v38  ;;  %v24362_v38 = vld [vmem:[%s23309_s27 + $0x411] sm:$0xff] }
 0x173   : > { %19966 = vmatmul.mubr.msk.f32.gmra.mrb[56].mxu0 %vm700_vm5, %v24342_v4 }
 0x174   : > { %19968 = vmatprep.mubr.msk.f32.mxu0 %vm700_vm5, %v24345_v63  ;;  %v24372_v63 = vld [vmem:[%s23309_s27 + $0x431] sm:$0xff] }
 0x177   : > { %19969 = vmatmul.mubr.msk.f32.gmra.mrb[58].mxu0 %vm700_vm5, %v24352_v33 }
 0x178   : > { %19971 = vmatprep.mubr.msk.f32.mxu0 %vm700_vm5, %v24355_v37 }
 0x17b   : > { %19972 = vmatmul.mubr.msk.f32.gmra.mrb[60].mxu0 %vm700_vm5, %v24362_v38 }
 0x17c   : > { %19974 = vmatprep.mubr.msk.f32.mxu0 %vm700_vm5, %v24365_v10 }
 0x17f   : > { %19975 = vmatmul.mubr.msk.f32.gmra.mrb[62].mxu0 %vm700_vm5, %v24372_v63 }
 0x180   : > { %19979 = vmatprep.mubr.msk.f32.mxu0 %vm700_vm5, %v23772_v5  ;;  %v24437_v5 = vld [vmem:[%s23309_s27 + $0x207] sm:$0xff] }
 0x183   : > { %19980 = vmatmul.mubr.msk.f32.vlgmr.msra.gmra.mrb[0].mxu0 %vm700_vm5, %v23779_v6  ;;  %v24444_v6 = vld [vmem:[%s23309_s27 + $0x20f] sm:$0xff] }
 0x184   : > { %19982 = vmatprep.mubr.msk.f32.mxu0 %vm700_vm5, %v23782_v7  ;;  %20076 = vmatpush3.msk.msra.mxu0 %vm893_vm4, %v24225_v0  ;;  %v17060_v7 = vld [vmem:[%s27738_s1 + $0x14] sm:$0x7]  ;;  %v24751_v0 = vld [vmem:[%s23309_s27 + $0x308] sm:$0xff] }
 0x185   : > { %20173 = vmatprep.subr.msk.mxu0 %vm893_vm4, %v17060_v7  ;;  %27952 = vst [vmem:[#allocation61_spill] sm:$0xff] %v24751_v0 }
 0x187   : > { %19983 = vmatmul.mubr.msk.f32.gmra.mrb[2].mxu0 %vm700_vm5, %v23789_v8  ;;  %v24499_v8 = vld [vmem:[%s23309_s27 + $0x3e7] sm:$0xff] }
 0x188   : > { %19985 = vmatprep.mubr.msk.f32.mxu0 %vm700_vm5, %v23792_v9  ;;  %v24506_v9 = vld [vmem:[%s23309_s27 + $0x3ef] sm:$0xff] }
 0x18b   : > { %19986 = vmatmul.mubr.msk.f32.gmra.mrb[4].mxu0 %vm700_vm5, %v23802_v11  ;;  %v24509_v11 = vld [vmem:[%s23309_s27 + $0x407] sm:$0xff] }
 0x18c   : > { %19988 = vmatprep.mubr.msk.f32.mxu0 %vm700_vm5, %v23806_v12  ;;  %v24516_v12 = vld [vmem:[%s23309_s27 + $0x40f] sm:$0xff] }
 0x18f   : > { %19989 = vmatmul.mubr.msk.f32.gmra.mrb[6].mxu0 %vm700_vm5, %v23814_v13  ;;  %v24519_v13 = vld [vmem:[%s23309_s27 + $0x427] sm:$0xff] }
 0x190   : > { %19991 = vmatprep.mubr.msk.f32.mxu0 %vm700_vm5, %v23817_v14  ;;  %v24526_v14 = vld [vmem:[%s23309_s27 + $0x42f] sm:$0xff] }
 0x193   : > { %19992 = vmatmul.mubr.msk.f32.gmra.mrb[8].mxu0 %vm700_vm5, %v23824_v15  ;;  %v24529_v15 = vld [vmem:[%s23309_s27 + $0x447] sm:$0xff] }
 0x194   : > { %19994 = vmatprep.mubr.msk.f32.mxu0 %vm700_vm5, %v23827_v16  ;;  %v24536_v16 = vld [vmem:[%s23309_s27 + $0x44f] sm:$0xff] }
 0x197   : > { %19995 = vmatmul.mubr.msk.f32.gmra.mrb[10].mxu0 %vm700_vm5, %v23834_v17  ;;  %v24539_v17 = vld [vmem:[%s23309_s27 + $0x28] sm:$0xff] }
 0x198   : > { %19997 = vmatprep.mubr.msk.f32.mxu0 %vm700_vm5, %v23837_v18  ;;  %v24546_v18 = vld [vmem:[%s23309_s27 + $0x30] sm:$0xff] }
 0x19b   : > { %19998 = vmatmul.mubr.msk.f32.gmra.mrb[12].mxu0 %vm700_vm5, %v23844_v19  ;;  %v24549_v19 = vld [vmem:[%s23309_s27 + $0x48] sm:$0xff] }
 0x19c   : > { %20000 = vmatprep.mubr.msk.f32.mxu0 %vm700_vm5, %v23847_v20  ;;  %v24556_v20 = vld [vmem:[%s23309_s27 + $0x50] sm:$0xff] }
 0x19f   : > { %20001 = vmatmul.mubr.msk.f32.gmra.mrb[14].mxu0 %vm700_vm5, %v23854_v21  ;;  %v24560_v21 = vld [vmem:[%s23309_s27 + $0x68] sm:$0xff] }
 0x1a0   : > { %20003 = vmatprep.mubr.msk.f32.mxu0 %vm700_vm5, %v23857_v22  ;;  %v24567_v22 = vld [vmem:[%s23309_s27 + $0x70] sm:$0xff] }
 0x1a3   : > { %20004 = vmatmul.mubr.msk.f32.gmra.mrb[16].mxu0 %vm700_vm5, %v23864_v23  ;;  %v24570_v23 = vld [vmem:[%s23309_s27 + $0x88] sm:$0xff] }
 0x1a4   : > { %20006 = vmatprep.mubr.msk.f32.mxu0 %vm700_vm5, %v23867_v24  ;;  %v24577_v24 = vld [vmem:[%s23309_s27 + $0x90] sm:$0xff] }
 0x1a7   : > { %20007 = vmatmul.mubr.msk.f32.gmra.mrb[18].mxu0 %vm700_vm5, %v23874_v25  ;;  %v24580_v25 = vld [vmem:[%s23309_s27 + $0xa8] sm:$0xff] }
 0x1a8   : > { %20009 = vmatprep.mubr.msk.f32.mxu0 %vm700_vm5, %v23877_v26  ;;  %v24587_v26 = vld [vmem:[%s23309_s27 + $0xb0] sm:$0xff] }
 0x1ab   : > { %20010 = vmatmul.mubr.msk.f32.gmra.mrb[20].mxu0 %vm700_vm5, %v23884_v27  ;;  %v24590_v27 = vld [vmem:[%s23309_s27 + $0xc8] sm:$0xff] }
 0x1ac   : > { %20012 = vmatprep.mubr.msk.f32.mxu0 %vm700_vm5, %v23887_v28  ;;  %v24597_v28 = vld [vmem:[%s23309_s27 + $0xd0] sm:$0xff] }
 0x1af   : > { %20013 = vmatmul.mubr.msk.f32.gmra.mrb[22].mxu0 %vm700_vm5, %v23894_v29  ;;  %v24600_v29 = vld [vmem:[%s23309_s27 + $0xe8] sm:$0xff] }
 0x1b0   : > { %20015 = vmatprep.mubr.msk.f32.mxu0 %vm700_vm5, %v23897_v30  ;;  %v24607_v30 = vld [vmem:[%s23309_s27 + $0xf0] sm:$0xff] }
 0x1b3   : > { %20016 = vmatmul.mubr.msk.f32.gmra.mrb[24].mxu0 %vm700_vm5, %v23904_v31  ;;  %v24610_v31 = vld [vmem:[%s23309_s27 + $0x108] sm:$0xff] }
 0x1b4   : > { %20018 = vmatprep.mubr.msk.f32.mxu0 %vm700_vm5, %v23907_v32  ;;  %v24617_v32 = vld [vmem:[%s23309_s27 + $0x110] sm:$0xff] }
 0x1b7   : > { %20019 = vmatmul.mubr.msk.f32.gmra.mrb[26].mxu0 %vm700_vm5, %v23919_v34  ;;  %v24620_v34 = vld [vmem:[%s23309_s27 + $0x128] sm:$0xff] }
 0x1b8   : > { %20021 = vmatprep.mubr.msk.f32.mxu0 %vm700_vm5, %v23924_v35  ;;  %v24627_v35 = vld [vmem:[%s23309_s27 + $0x130] sm:$0xff] }
 0x1bb   : > { %20022 = vmatmul.mubr.msk.f32.gmra.mrb[28].mxu0 %vm700_vm5, %v23931_v36  ;;  %v24630_v36 = vld [vmem:[%s23309_s27 + $0x148] sm:$0xff] }
 0x1bc   : > { %20024 = vmatprep.mubr.msk.f32.mxu0 %vm700_vm5, %v24437_v5 }
 0x1bf   : > { %20025 = vmatmul.mubr.msk.f32.gmra.mrb[30].mxu0 %vm700_vm5, %v24444_v6 }
 0x1c0   : > { %20027 = vmatprep.mubr.msk.f32.mxu0 %vm700_vm5, %v23939_v39  ;;  %v24637_v39 = vld [vmem:[%s23309_s27 + $0x150] sm:$0xff] }
 0x1c3   : > { %20028 = vmatmul.mubr.msk.f32.gmra.mrb[32].mxu0 %vm700_vm5, %v23945_v40  ;;  %v24640_v40 = vld [vmem:[%s23309_s27 + $0x168] sm:$0xff] }
 0x1c4   : > { %20030 = vmatprep.mubr.msk.f32.mxu0 %vm700_vm5, %v23948_v41  ;;  %v24647_v41 = vld [vmem:[%s23309_s27 + $0x170] sm:$0xff] }
 0x1c7   : > { %20031 = vmatmul.mubr.msk.f32.gmra.mrb[34].mxu0 %vm700_vm5, %v23955_v42  ;;  %v24650_v42 = vld [vmem:[%s23309_s27 + $0x188] sm:$0xff] }
 0x1c8   : > { %20033 = vmatprep.mubr.msk.f32.mxu0 %vm700_vm5, %v23958_v43  ;;  %v24657_v43 = vld [vmem:[%s23309_s27 + $0x190] sm:$0xff] }
 0x1cb   : > { %20034 = vmatmul.mubr.msk.f32.gmra.mrb[36].mxu0 %vm700_vm5, %v23965_v44  ;;  %v24660_v44 = vld [vmem:[%s23309_s27 + $0x1a8] sm:$0xff] }
 0x1cc   : > { %20036 = vmatprep.mubr.msk.f32.mxu0 %vm700_vm5, %v23968_v45  ;;  %v24667_v45 = vld [vmem:[%s23309_s27 + $0x1b0] sm:$0xff] }
 0x1cf   : > { %20037 = vmatmul.mubr.msk.f32.gmra.mrb[38].mxu0 %vm700_vm5, %v23975_v46  ;;  %v24670_v46 = vld [vmem:[%s23309_s27 + $0x1c8] sm:$0xff] }
 0x1d0   : > { %20039 = vmatprep.mubr.msk.f32.mxu0 %vm700_vm5, %v23978_v47  ;;  %v24677_v47 = vld [vmem:[%s23309_s27 + $0x1d0] sm:$0xff] }
 0x1d3   : > { %20040 = vmatmul.mubr.msk.f32.gmra.mrb[40].mxu0 %vm700_vm5, %v23985_v48  ;;  %v24680_v48 = vld [vmem:[%s23309_s27 + $0x1e8] sm:$0xff] }
 0x1d4   : > { %20042 = vmatprep.mubr.msk.f32.mxu0 %vm700_vm5, %v23988_v49  ;;  %v24687_v49 = vld [vmem:[%s23309_s27 + $0x1f0] sm:$0xff] }
 0x1d7   : > { %20043 = vmatmul.mubr.msk.f32.gmra.mrb[42].mxu0 %vm700_vm5, %v23995_v50  ;;  %v24690_v50 = vld [vmem:[%s23309_s27 + $0x208] sm:$0xff] }
 0x1d8   : > { %20045 = vmatprep.mubr.msk.f32.mxu0 %vm700_vm5, %v23998_v51  ;;  %v24697_v51 = vld [vmem:[%s23309_s27 + $0x210] sm:$0xff] }
 0x1db   : > { %20046 = vmatmul.mubr.msk.f32.gmra.mrb[44].mxu0 %vm700_vm5, %v24005_v52  ;;  %v16898_v52 = vld [vmem:[%s23309_s27 + $0x268] sm:$0xff] }
 0x1dc   : > { %20048 = vmatprep.mubr.msk.f32.mxu0 %vm700_vm5, %v24008_v53  ;;  %v16899_v53 = vld [vmem:[%s23309_s27 + $0x270] sm:$0xff] }
 0x1df   : > { %20049 = vmatmul.mubr.msk.f32.gmra.mrb[46].mxu0 %vm700_vm5, %v24015_v54  ;;  %v24705_v54 = vld [vmem:[%s23309_s27 + $0x288] sm:$0xff] }
 0x1e0   : > { %20051 = vmatprep.mubr.msk.f32.mxu0 %vm700_vm5, %v24018_v55  ;;  %v24711_v55 = vld [vmem:[%s27738_s1 + $0x18] sm:$0x7] }
 0x1e3   : > { %20052 = vmatmul.mubr.msk.f32.gmra.mrb[48].mxu0 %vm700_vm5, %v24025_v56  ;;  %v24716_v56 = vld [vmem:[%s23309_s27 + $0x290] sm:$0xff] }
 0x1e4   : > { %20054 = vmatprep.mubr.msk.f32.mxu0 %vm700_vm5, %v24028_v57  ;;  %v24721_v57 = vld [vmem:[%s23309_s27 + $0x2a8] sm:$0xff] }
 0x1e7   : > { %20055 = vmatmul.mubr.msk.f32.gmra.mrb[50].mxu0 %vm700_vm5, %v24035_v58  ;;  %v24728_v58 = vld [vmem:[%s23309_s27 + $0x2b0] sm:$0xff] }
 0x1e8   : > { %20057 = vmatprep.mubr.msk.f32.mxu0 %vm700_vm5, %v24038_v59  ;;  %v24731_v59 = vld [vmem:[%s23309_s27 + $0x2c8] sm:$0xff] }
 0x1eb   : > { %20058 = vmatmul.mubr.msk.f32.gmra.mrb[52].mxu0 %vm700_vm5, %v24045_v60  ;;  %v24738_v60 = vld [vmem:[%s23309_s27 + $0x2d0] sm:$0xff] }
 0x1ec   : > { %20060 = vmatprep.mubr.msk.f32.mxu0 %vm700_vm5, %v24048_v61  ;;  %v24741_v61 = vld [vmem:[%s23309_s27 + $0x2e8] sm:$0xff] }
 0x1ed   : > { %27950 = vst [vmem:[#allocation59_spill] sm:$0xff] %v24741_v61 }
 0x1ef   : > { %20061 = vmatmul.mubr.msk.f32.gmra.mrb[54].mxu0 %vm700_vm5, %v24055_v62  ;;  %v24748_v62 = vld [vmem:[%s23309_s27 + $0x2f0] sm:$0xff] }
 0x1f0   : > { %20063 = vmatprep.mubr.msk.f32.mxu0 %vm700_vm5, %v24499_v8  ;;  %27951 = vst [vmem:[#allocation60_spill] sm:$0xff] %v24748_v62 }
 0x1f3   : > { %20064 = vmatmul.mubr.msk.f32.gmra.mrb[56].mxu0 %vm700_vm5, %v24506_v9 }
 0x1f4   : > { %20066 = vmatprep.mubr.msk.f32.mxu0 %vm700_vm5, %v24509_v11 }
 0x1f7   : > { %20067 = vmatmul.mubr.msk.f32.gmra.mrb[58].mxu0 %vm700_vm5, %v24516_v12 }
 0x1f8   : > { %20069 = vmatprep.mubr.msk.f32.mxu0 %vm700_vm5, %v24519_v13 }
 0x1fb   : > { %20070 = vmatmul.mubr.msk.f32.gmra.mrb[60].mxu0 %vm700_vm5, %v24526_v14 }
 0x1fc   : > { %20072 = vmatprep.mubr.msk.f32.mxu0 %vm700_vm5, %v24529_v15 }
 0x1ff   : > { %20073 = vmatmul.mubr.msk.f32.gmra.mrb[62].mxu0 %vm700_vm5, %v24536_v16 }
 0x200   : > { %20077 = vmatprep.mubr.msk.f32.mxu0 %vm700_vm5, %v24539_v17 }
 0x203   : > { %20078 = vmatmul.mubr.msk.f32.vlgmr.msra.gmra.mrb[0].mxu0 %vm700_vm5, %v24546_v18 }
 0x204   : > { %20080 = vmatprep.mubr.msk.f32.mxu0 %vm700_vm5, %v24549_v19  ;;  %20174 = vmatpush3.msk.msra.mxu0 %vm893_vm4, %v17060_v7  ;;  %v24758_v7 = vld [vmem:[%s23309_s27 + $0x310] sm:$0xff] }
 0x205   : > { %20271 = vmatprep.subr.msk.mxu0 %vm893_vm4, %v24711_v55  ;;  %27953 = vst [vmem:[#allocation62_spill] sm:$0xff] %v24758_v7 }
 0x207   : > { %20081 = vmatmul.mubr.msk.f32.gmra.mrb[2].mxu0 %vm700_vm5, %v24556_v20 }
 0x208   : > { %20083 = vmatprep.mubr.msk.f32.mxu0 %vm700_vm5, %v24560_v21 }
 0x20b   : > { %20084 = vmatmul.mubr.msk.f32.gmra.mrb[4].mxu0 %vm700_vm5, %v24567_v22 }
 0x20c   : > { %20086 = vmatprep.mubr.msk.f32.mxu0 %vm700_vm5, %v24570_v23 }
 0x20f   : > { %20087 = vmatmul.mubr.msk.f32.gmra.mrb[6].mxu0 %vm700_vm5, %v24577_v24 }
 0x210   : > { %20089 = vmatprep.mubr.msk.f32.mxu0 %vm700_vm5, %v24580_v25 }
 0x213   : > { %20090 = vmatmul.mubr.msk.f32.gmra.mrb[8].mxu0 %vm700_vm5, %v24587_v26 }
 0x214   : > { %20092 = vmatprep.mubr.msk.f32.mxu0 %vm700_vm5, %v24590_v27 }
 0x217   : > { %20093 = vmatmul.mubr.msk.f32.gmra.mrb[10].mxu0 %vm700_vm5, %v24597_v28 }
 0x218   : > { %20095 = vmatprep.mubr.msk.f32.mxu0 %vm700_vm5, %v24600_v29 }
 0x21b   : > { %20096 = vmatmul.mubr.msk.f32.gmra.mrb[12].mxu0 %vm700_vm5, %v24607_v30 }
 0x21c   : > { %20098 = vmatprep.mubr.msk.f32.mxu0 %vm700_vm5, %v24610_v31 }
 0x21f   : > { %20099 = vmatmul.mubr.msk.f32.gmra.mrb[14].mxu0 %vm700_vm5, %v24617_v32 }
 0x220   : > { %20101 = vmatprep.mubr.msk.f32.mxu0 %vm700_vm5, %v24620_v34 }
 0x223   : > { %20102 = vmatmul.mubr.msk.f32.gmra.mrb[16].mxu0 %vm700_vm5, %v24627_v35 }
 0x224   : > { %20104 = vmatprep.mubr.msk.f32.mxu0 %vm700_vm5, %v24630_v36 }
 0x227   : > { %20105 = vmatmul.mubr.msk.f32.gmra.mrb[18].mxu0 %vm700_vm5, %v24637_v39 }
 0x228   : > { %20107 = vmatprep.mubr.msk.f32.mxu0 %vm700_vm5, %v24640_v40 }
 0x22b   : > { %20108 = vmatmul.mubr.msk.f32.gmra.mrb[20].mxu0 %vm700_vm5, %v24647_v41 }
 0x22c   : > { %20110 = vmatprep.mubr.msk.f32.mxu0 %vm700_vm5, %v24650_v42 }
 0x22f   : > { %20111 = vmatmul.mubr.msk.f32.gmra.mrb[22].mxu0 %vm700_vm5, %v24657_v43 }
 0x230   : > { %20113 = vmatprep.mubr.msk.f32.mxu0 %vm700_vm5, %v24660_v44 }
 0x233   : > { %20114 = vmatmul.mubr.msk.f32.gmra.mrb[24].mxu0 %vm700_vm5, %v24667_v45 }
 0x234   : > { %20116 = vmatprep.mubr.msk.f32.mxu0 %vm700_vm5, %v24670_v46 }
 0x237   : > { %20117 = vmatmul.mubr.msk.f32.gmra.mrb[26].mxu0 %vm700_vm5, %v24677_v47 }
 0x238   : > { %20119 = vmatprep.mubr.msk.f32.mxu0 %vm700_vm5, %v24680_v48 }
 0x23b   : > { %20120 = vmatmul.mubr.msk.f32.gmra.mrb[28].mxu0 %vm700_vm5, %v24687_v49 }
 0x23c   : > { %20122 = vmatprep.mubr.msk.f32.mxu0 %vm700_vm5, %v24690_v50 }
 0x23f   : > { %20123 = vmatmul.mubr.msk.f32.gmra.mrb[30].mxu0 %vm700_vm5, %v24697_v51 }
 0x240   : > { %20125 = vmatprep.mubr.msk.f32.mxu0 %vm700_vm5, %v16898_v52  ;;  %v24761_v52 = vld [vmem:[%s23309_s27 + $0x328] sm:$0xff] }
 0x241   : > { %27954 = vst [vmem:[#allocation63_spill] sm:$0xff] %v24761_v52 }
 0x243   : > { %20126 = vmatmul.mubr.msk.f32.gmra.mrb[32].mxu0 %vm700_vm5, %v16899_v53  ;;  %v24768_v53 = vld [vmem:[%s23309_s27 + $0x330] sm:$0xff] }
 0x244   : > { %20128 = vmatprep.mubr.msk.f32.mxu0 %vm700_vm5, %v24705_v54  ;;  %27955 = vst [vmem:[#allocation64_spill] sm:$0xff] %v24768_v53 }
 0x247   : > { %20129 = vmatmul.mubr.msk.f32.gmra.mrb[34].mxu0 %vm700_vm5, %v24716_v56 }
 0x248   : > { %20131 = vmatprep.mubr.msk.f32.mxu0 %vm700_vm5, %v24721_v57 }
 0x24b   : > { %20132 = vmatmul.mubr.msk.f32.gmra.mrb[36].mxu0 %vm700_vm5, %v24728_v58 }
 0x24c   : > { %20134 = vmatprep.mubr.msk.f32.mxu0 %vm700_vm5, %v24731_v59 }
 0x24f   : > { %20135 = vmatmul.mubr.msk.f32.gmra.mrb[38].mxu0 %vm700_vm5, %v24738_v60 }
 0x250   : > { %20137 = vmatprep.mubr.msk.f32.mxu0 %vm700_vm5, %v24741_v61  ;;  %v24771_v61 = vld [vmem:[%s23309_s27 + $0x348] sm:$0xff] }
 0x251   : > { %27956 = vst [vmem:[#allocation65_spill] sm:$0xff] %v24771_v61 }
 0x253   : > { %20138 = vmatmul.mubr.msk.f32.gmra.mrb[40].mxu0 %vm700_vm5, %v24748_v62  ;;  %v24781_v62 = vld [vmem:[%s23309_s27 + $0x368] sm:$0xff] }
 0x254   : > { %20140 = vmatprep.mubr.msk.f32.mxu0 %vm700_vm5, %v24751_v0  ;;  %v24778_v0 = vld [vmem:[%s23309_s27 + $0x350] sm:$0xff]  ;;  %27958 = vst [vmem:[#allocation67_spill] sm:$0xff] %v24781_v62 }
 0x255   : > { %27957 = vst [vmem:[#allocation66_spill] sm:$0xff] %v24778_v0 }
 0x257   : > { %20141 = vmatmul.mubr.msk.f32.gmra.mrb[42].mxu0 %vm700_vm5, %v24758_v7  ;;  %v24791_v7 = vld [vmem:[%s23309_s27 + $0x388] sm:$0xff] }
 0x258   : > { %20143 = vmatprep.mubr.msk.f32.mxu0 %vm700_vm5, %v24761_v52  ;;  %v24788_v52 = vld [vmem:[%s23309_s27 + $0x370] sm:$0xff]  ;;  %27960 = vst [vmem:[#allocation69_spill] sm:$0xff] %v24791_v7 }
 0x259   : > { %27959 = vst [vmem:[#allocation68_spill] sm:$0xff] %v24788_v52 }
 0x25b   : > { %20144 = vmatmul.mubr.msk.f32.gmra.mrb[44].mxu0 %vm700_vm5, %v24768_v53  ;;  %v24801_v53 = vld [vmem:[%s23309_s27 + $0x3a8] sm:$0xff] }
 0x25c   : > { %20146 = vmatprep.mubr.msk.f32.mxu0 %vm700_vm5, %v24771_v61  ;;  %v24798_v61 = vld [vmem:[%s23309_s27 + $0x390] sm:$0xff]  ;;  %27962 = vst [vmem:[#allocation71_spill] sm:$0xff] %v24801_v53 }
 0x25d   : > { %27961 = vst [vmem:[#allocation70_spill] sm:$0xff] %v24798_v61 }
 0x25f   : > { %20147 = vmatmul.mubr.msk.f32.gmra.mrb[46].mxu0 %vm700_vm5, %v24778_v0  ;;  %v24811_v0 = vld [vmem:[%s23309_s27 + $0x3c8] sm:$0xff] }
 0x260   : > { %20149 = vmatprep.mubr.msk.f32.mxu0 %vm700_vm5, %v24781_v62  ;;  %v24808_v62 = vld [vmem:[%s23309_s27 + $0x3b0] sm:$0xff]  ;;  %27964 = vst [vmem:[#allocation73_spill] sm:$0xff] %v24811_v0 }
 0x261   : > { %27963 = vst [vmem:[#allocation72_spill] sm:$0xff] %v24808_v62 }
 0x263   : > { %20150 = vmatmul.mubr.msk.f32.gmra.mrb[48].mxu0 %vm700_vm5, %v24788_v52  ;;  %v24821_v52 = vld [vmem:[%s23309_s27 + $0x3e8] sm:$0xff] }
 0x264   : > { %20152 = vmatprep.mubr.msk.f32.mxu0 %vm700_vm5, %v24791_v7  ;;  %v24818_v7 = vld [vmem:[%s23309_s27 + $0x3d0] sm:$0xff]  ;;  %27966 = vst [vmem:[#allocation75_spill] sm:$0xff] %v24821_v52 }
 0x265   : > { %27965 = vst [vmem:[#allocation74_spill] sm:$0xff] %v24818_v7 }
 0x267   : > { %20153 = vmatmul.mubr.msk.f32.gmra.mrb[50].mxu0 %vm700_vm5, %v24798_v61  ;;  %v24831_v61 = vld [vmem:[%s23309_s27 + $0x408] sm:$0xff] }
 0x268   : > { %20155 = vmatprep.mubr.msk.f32.mxu0 %vm700_vm5, %v24801_v53  ;;  %v24828_v53 = vld [vmem:[%s23309_s27 + $0x3f0] sm:$0xff]  ;;  %27967 = vst [vmem:[#allocation76_spill] sm:$0xff] %v24831_v61 }
 0x26b   : > { %20156 = vmatmul.mubr.msk.f32.gmra.mrb[52].mxu0 %vm700_vm5, %v24808_v62  ;;  %v24841_v62 = vld [vmem:[%s23309_s27 + $0x428] sm:$0xff] }
 0x26c   : > { %20158 = vmatprep.mubr.msk.f32.mxu0 %vm700_vm5, %v24811_v0  ;;  %v24838_v0 = vld [vmem:[%s23309_s27 + $0x410] sm:$0xff]  ;;  %27969 = vst [vmem:[#allocation78_spill] sm:$0xff] %v24841_v62 }
 0x26d   : > { %27968 = vst [vmem:[#allocation77_spill] sm:$0xff] %v24838_v0 }
 0x26f   : > { %20159 = vmatmul.mubr.msk.f32.gmra.mrb[54].mxu0 %vm700_vm5, %v24818_v7  ;;  %v24851_v7 = vld [vmem:[%s23309_s27 + $0x448] sm:$0xff] }
 0x270   : > { %20161 = vmatprep.mubr.msk.f32.mxu0 %vm700_vm5, %v24821_v52  ;;  %v24848_v52 = vld [vmem:[%s23309_s27 + $0x430] sm:$0xff]  ;;  %27971 = vst [vmem:[#allocation80_spill] sm:$0xff] %v24851_v7 }
 0x271   : > { %27970 = vst [vmem:[#allocation79_spill] sm:$0xff] %v24848_v52 }
 0x273   : > { %20162 = vmatmul.mubr.msk.f32.gmra.mrb[56].mxu0 %vm700_vm5, %v24828_v53 }
 0x274   : > { %20164 = vmatprep.mubr.msk.f32.mxu0 %vm700_vm5, %v24831_v61  ;;  %v24858_v61 = vld [vmem:[%s23309_s27 + $0x450] sm:$0xff] }
 0x275   : > { %27972 = vst [vmem:[#allocation81_spill] sm:$0xff] %v24858_v61 }
 0x277   : > { %20165 = vmatmul.mubr.msk.f32.gmra.mrb[58].mxu0 %vm700_vm5, %v24838_v0  ;;  %v28012_v0 = vld [vmem:[#allocation45_spill] sm:$0xff] }
 0x278   : > { %20167 = vmatprep.mubr.msk.f32.mxu0 %vm700_vm5, %v24841_v62  ;;  %v27975_v62 = vld [vmem:[#allocation10_spill] sm:$0xff] }
 0x27b   : > { %20168 = vmatmul.mubr.msk.f32.gmra.mrb[60].mxu0 %vm700_vm5, %v24848_v52  ;;  %v27973_v52 = vld [vmem:[#allocation8_spill] sm:$0xff] }
 0x27c   : > { %20170 = vmatprep.mubr.msk.f32.mxu0 %vm700_vm5, %v24851_v7  ;;  %v27974_v7 = vld [vmem:[#allocation9_spill] sm:$0xff] }
 0x27f   : > { %20171 = vmatmul.mubr.msk.f32.gmra.mrb[62].mxu0 %vm700_vm5, %v24858_v61  ;;  %v27976_v61 = vld [vmem:[#allocation11_spill] sm:$0xff] }
 0x280   : > { %20175 = vmatprep.mubr.msk.f32.mxu0 %vm700_vm5, %v24063_v1  ;;  %v27977_v1 = vld [vmem:[#allocation12_spill] sm:$0xff] }
 0x283   : > { %20176 = vmatmul.mubr.msk.f32.vlgmr.msra.gmra.mrb[0].mxu0 %vm700_vm5, %v24069_v2  ;;  %v27978_v2 = vld [vmem:[#allocation13_spill] sm:$0xff] }
 0x284   : > { %20178 = vmatprep.mubr.msk.f32.mxu0 %vm700_vm5, %v24074_v3  ;;  %20272 = vmatpush3.msk.msra.mxu0 %vm893_vm4, %v24711_v55  ;;  %v27979_v3 = vld [vmem:[#allocation14_spill] sm:$0xff]  ;;  %v27980_v55 = vld [vmem:[#allocation15_spill] sm:$0xff] }
 0x287   : > { %20179 = vmatmul.mubr.msk.f32.gmra.mrb[2].mxu0 %vm700_vm5, %v27973_v52  ;;  %v27981_v52 = vld [vmem:[#allocation16_spill] sm:$0xff] }
 0x288   : > { %20181 = vmatprep.mubr.msk.f32.mxu0 %vm700_vm5, %v27974_v7  ;;  %v27982_v7 = vld [vmem:[#allocation17_spill] sm:$0xff] }
 0x28b   : > { %20182 = vmatmul.mubr.msk.f32.gmra.mrb[4].mxu0 %vm700_vm5, %v27975_v62  ;;  %v27983_v62 = vld [vmem:[#allocation18_spill] sm:$0xff] }
 0x28c   : > { %20184 = vmatprep.mubr.msk.f32.mxu0 %vm700_vm5, %v27976_v61  ;;  %v27984_v61 = vld [vmem:[#allocation19_spill] sm:$0xff] }
 0x28f   : > { %20185 = vmatmul.mubr.msk.f32.gmra.mrb[6].mxu0 %vm700_vm5, %v27977_v1  ;;  %v27985_v1 = vld [vmem:[#allocation20_spill] sm:$0xff] }
 0x290   : > { %20187 = vmatprep.mubr.msk.f32.mxu0 %vm700_vm5, %v27978_v2  ;;  %v27986_v2 = vld [vmem:[#allocation21_spill] sm:$0xff] }
 0x293   : > { %20188 = vmatmul.mubr.msk.f32.gmra.mrb[8].mxu0 %vm700_vm5, %v27979_v3  ;;  %v27987_v3 = vld [vmem:[#allocation22_spill] sm:$0xff] }
 0x294   : > { %20190 = vmatprep.mubr.msk.f32.mxu0 %vm700_vm5, %v27980_v55  ;;  %v27988_v55 = vld [vmem:[#allocation23_spill] sm:$0xff] }
 0x297   : > { %20191 = vmatmul.mubr.msk.f32.gmra.mrb[10].mxu0 %vm700_vm5, %v27981_v52  ;;  %v27989_v52 = vld [vmem:[#allocation24_spill] sm:$0xff] }
 0x298   : > { %20193 = vmatprep.mubr.msk.f32.mxu0 %vm700_vm5, %v27982_v7  ;;  %v27990_v7 = vld [vmem:[#allocation25_spill] sm:$0xff] }
 0x29b   : > { %20194 = vmatmul.mubr.msk.f32.gmra.mrb[12].mxu0 %vm700_vm5, %v27983_v62  ;;  %v27991_v62 = vld [vmem:[#allocation26_spill] sm:$0xff] }
 0x29c   : > { %20196 = vmatprep.mubr.msk.f32.mxu0 %vm700_vm5, %v27984_v61  ;;  %v27992_v61 = vld [vmem:[#allocation27_spill] sm:$0xff] }
 0x29f   : > { %20197 = vmatmul.mubr.msk.f32.gmra.mrb[14].mxu0 %vm700_vm5, %v27985_v1  ;;  %v27993_v1 = vld [vmem:[#allocation28_spill] sm:$0xff] }
 0x2a0   : > { %20199 = vmatprep.mubr.msk.f32.mxu0 %vm700_vm5, %v27986_v2  ;;  %v27994_v2 = vld [vmem:[#allocation29_spill] sm:$0xff] }
 0x2a3   : > { %20200 = vmatmul.mubr.msk.f32.gmra.mrb[16].mxu0 %vm700_vm5, %v27987_v3  ;;  %v27995_v3 = vld [vmem:[#allocation30_spill] sm:$0xff] }
 0x2a4   : > { %20202 = vmatprep.mubr.msk.f32.mxu0 %vm700_vm5, %v27988_v55  ;;  %v27996_v55 = vld [vmem:[#allocation31_spill] sm:$0xff] }
 0x2a7   : > { %20203 = vmatmul.mubr.msk.f32.gmra.mrb[18].mxu0 %vm700_vm5, %v27989_v52  ;;  %v27997_v52 = vld [vmem:[#allocation32_spill] sm:$0xff] }
 0x2a8   : > { %20205 = vmatprep.mubr.msk.f32.mxu0 %vm700_vm5, %v27990_v7  ;;  %v27998_v7 = vld [vmem:[#allocation33_spill] sm:$0xff] }
 0x2ab   : > { %20206 = vmatmul.mubr.msk.f32.gmra.mrb[20].mxu0 %vm700_vm5, %v27991_v62  ;;  %v24923_v62 = vld [vmem:[%s23309_s27 + $0x209] sm:$0xff] }
 0x2ac   : > { %20208 = vmatprep.mubr.msk.f32.mxu0 %vm700_vm5, %v27992_v61  ;;  %27999 = vst [vmem:[#allocation8_spill] sm:$0xff] %v24923_v62  ;;  %v28000_v61 = vld [vmem:[#allocation34_spill] sm:$0xff] }
 0x2af   : > { %20209 = vmatmul.mubr.msk.f32.gmra.mrb[22].mxu0 %vm700_vm5, %v27993_v1  ;;  %v24930_v1 = vld [vmem:[%s23309_s27 + $0x211] sm:$0xff] }
 0x2b0   : > { %20211 = vmatprep.mubr.msk.f32.mxu0 %vm700_vm5, %v27994_v2  ;;  %28001 = vst [vmem:[#allocation9_spill] sm:$0xff] %v24930_v1  ;;  %v28002_v2 = vld [vmem:[#allocation35_spill] sm:$0xff] }
 0x2b3   : > { %20212 = vmatmul.mubr.msk.f32.gmra.mrb[24].mxu0 %vm700_vm5, %v27995_v3  ;;  %v28003_v3 = vld [vmem:[#allocation36_spill] sm:$0xff] }
 0x2b4   : > { %20214 = vmatprep.mubr.msk.f32.mxu0 %vm700_vm5, %v27996_v55  ;;  %v17320_v55 = vld [vmem:[%s27738_s1 + $0x1c] sm:$0x7] }
 0x2b5   : > { %20369 = vmatprep.subr.msk.mxu0 %vm893_vm4, %v17320_v55 }
 0x2b7   : > { %20215 = vmatmul.mubr.msk.f32.gmra.mrb[26].mxu0 %vm700_vm5, %v27997_v52  ;;  %v28004_v52 = vld [vmem:[#allocation37_spill] sm:$0xff] }
 0x2b8   : > { %20217 = vmatprep.mubr.msk.f32.mxu0 %vm700_vm5, %v27998_v7  ;;  %v28005_v7 = vld [vmem:[#allocation38_spill] sm:$0xff] }
 0x2bb   : > { %20218 = vmatmul.mubr.msk.f32.gmra.mrb[28].mxu0 %vm700_vm5, %v28000_v61  ;;  %v28006_v61 = vld [vmem:[#allocation39_spill] sm:$0xff] }
 0x2bc   : > { %20220 = vmatprep.mubr.msk.f32.mxu0 %vm700_vm5, %v24923_v62  ;;  %v28010_v62 = vld [vmem:[#allocation43_spill] sm:$0xff] }
 0x2bf   : > { %20221 = vmatmul.mubr.msk.f32.gmra.mrb[30].mxu0 %vm700_vm5, %v24930_v1  ;;  %v28007_v1 = vld [vmem:[#allocation40_spill] sm:$0xff] }
 0x2c0   : > { %20223 = vmatprep.mubr.msk.f32.mxu0 %vm700_vm5, %v28002_v2  ;;  %v28008_v2 = vld [vmem:[#allocation41_spill] sm:$0xff] }
 0x2c3   : > { %20224 = vmatmul.mubr.msk.f32.gmra.mrb[32].mxu0 %vm700_vm5, %v28003_v3  ;;  %v28009_v3 = vld [vmem:[#allocation42_spill] sm:$0xff] }
 0x2c4   : > { %20226 = vmatprep.mubr.msk.f32.mxu0 %vm700_vm5, %v28004_v52  ;;  %v28011_v52 = vld [vmem:[#allocation44_spill] sm:$0xff] }
 0x2c7   : > { %20227 = vmatmul.mubr.msk.f32.gmra.mrb[34].mxu0 %vm700_vm5, %v28005_v7  ;;  %v28013_v7 = vld [vmem:[#allocation46_spill] sm:$0xff] }
 0x2c8   : > { %20229 = vmatprep.mubr.msk.f32.mxu0 %vm700_vm5, %v28006_v61  ;;  %v28014_v61 = vld [vmem:[#allocation47_spill] sm:$0xff] }
 0x2cb   : > { %20230 = vmatmul.mubr.msk.f32.gmra.mrb[36].mxu0 %vm700_vm5, %v28007_v1  ;;  %v28015_v1 = vld [vmem:[#allocation48_spill] sm:$0xff] }
 0x2cc   : > { %20232 = vmatprep.mubr.msk.f32.mxu0 %vm700_vm5, %v28008_v2  ;;  %v28016_v2 = vld [vmem:[#allocation49_spill] sm:$0xff] }
 0x2cf   : > { %20233 = vmatmul.mubr.msk.f32.gmra.mrb[38].mxu0 %vm700_vm5, %v28009_v3  ;;  %v28018_v3 = vld [vmem:[#allocation51_spill] sm:$0xff] }
 0x2d0   : > { %20235 = vmatprep.mubr.msk.f32.mxu0 %vm700_vm5, %v28010_v62  ;;  %v28017_v62 = vld [vmem:[#allocation50_spill] sm:$0xff] }
 0x2d3   : > { %20236 = vmatmul.mubr.msk.f32.gmra.mrb[40].mxu0 %vm700_vm5, %v28011_v52  ;;  %v28020_v52 = vld [vmem:[#allocation53_spill] sm:$0xff] }
 0x2d4   : > { %20238 = vmatprep.mubr.msk.f32.mxu0 %vm700_vm5, %v28012_v0  ;;  %v28019_v0 = vld [vmem:[#allocation52_spill] sm:$0xff] }
 0x2d7   : > { %20239 = vmatmul.mubr.msk.f32.gmra.mrb[42].mxu0 %vm700_vm5, %v28013_v7  ;;  %v28021_v7 = vld [vmem:[#allocation54_spill] sm:$0xff] }
 0x2d8   : > { %20241 = vmatprep.mubr.msk.f32.mxu0 %vm700_vm5, %v28014_v61  ;;  %v28022_v61 = vld [vmem:[#allocation55_spill] sm:$0xff] }
 0x2db   : > { %20242 = vmatmul.mubr.msk.f32.gmra.mrb[44].mxu0 %vm700_vm5, %v28015_v1  ;;  %v28023_v1 = vld [vmem:[#allocation56_spill] sm:$0xff] }
 0x2dc   : > { %20244 = vmatprep.mubr.msk.f32.mxu0 %vm700_vm5, %v28016_v2  ;;  %v28024_v2 = vld [vmem:[#allocation57_spill] sm:$0xff] }
 0x2df   : > { %20245 = vmatmul.mubr.msk.f32.gmra.mrb[46].mxu0 %vm700_vm5, %v28017_v62  ;;  %v28025_v62 = vld [vmem:[#allocation58_spill] sm:$0xff] }
 0x2e0   : > { %20247 = vmatprep.mubr.msk.f32.mxu0 %vm700_vm5, %v28018_v3  ;;  %v17058_v3 = vld [vmem:[%s23309_s27 + $0x449] sm:$0xff] }
 0x2e3   : > { %20248 = vmatmul.mubr.msk.f32.gmra.mrb[48].mxu0 %vm700_vm5, %v28019_v0  ;;  %v17131_v0 = vld [vmem:[%s23309_s27 + $0x8f] sm:$0xff] }
 0x2e4   : > { %20250 = vmatprep.mubr.msk.f32.mxu0 %vm700_vm5, %v28020_v52  ;;  %v17132_v52 = vld [vmem:[%s23309_s27 + $0xa7] sm:$0xff] }
 0x2e7   : > { %20251 = vmatmul.mubr.msk.f32.gmra.mrb[50].mxu0 %vm700_vm5, %v28021_v7  ;;  %v17133_v7 = vld [vmem:[%s23309_s27 + $0xaf] sm:$0xff] }
 0x2e8   : > { %20253 = vmatprep.mubr.msk.f32.mxu0 %vm700_vm5, %v28022_v61  ;;  %v17134_v61 = vld [vmem:[%s23309_s27 + $0xc7] sm:$0xff] }
 0x2eb   : > { %20254 = vmatmul.mubr.msk.f32.gmra.mrb[52].mxu0 %vm700_vm5, %v28023_v1  ;;  %v17136_v1 = vld [vmem:[%s23309_s27 + $0xe7] sm:$0xff] }
 0x2ec   : > { %20256 = vmatprep.mubr.msk.f32.mxu0 %vm700_vm5, %v28024_v2  ;;  %v17137_v2 = vld [vmem:[%s23309_s27 + $0xef] sm:$0xff] }
 0x2ef   : > { %20257 = vmatmul.mubr.msk.f32.gmra.mrb[54].mxu0 %vm700_vm5, %v24342_v4  ;;  %v17059_v4 = vld [vmem:[%s23309_s27 + $0x451] sm:$0xff] }
 0x2f0   : > { %20259 = vmatprep.mubr.msk.f32.mxu0 %vm700_vm5, %v28025_v62  ;;  %v17138_v62 = vld [vmem:[%s23309_s27 + $0x107] sm:$0xff] }
 0x2f3   : > { %20260 = vmatmul.mubr.msk.f32.gmra.mrb[56].mxu0 %vm700_vm5, %v24352_v33  ;;  %v17126_v33 = vld [vmem:[%s23309_s27 + $0x47] sm:$0xff] }
 0x2f4   : > { %20262 = vmatprep.mubr.msk.f32.mxu0 %vm700_vm5, %v24355_v37  ;;  %v17127_v37 = vld [vmem:[%s23309_s27 + $0x4f] sm:$0xff] }
 0x2f7   : > { %20263 = vmatmul.mubr.msk.f32.gmra.mrb[58].mxu0 %vm700_vm5, %v24362_v38  ;;  %v17128_v38 = vld [vmem:[%s23309_s27 + $0x67] sm:$0xff] }
 0x2f8   : > { %20265 = vmatprep.mubr.msk.f32.mxu0 %vm700_vm5, %v24365_v10  ;;  %v17129_v10 = vld [vmem:[%s23309_s27 + $0x6f] sm:$0xff] }
 0x2fb   : > { %20266 = vmatmul.mubr.msk.f32.gmra.mrb[60].mxu0 %vm700_vm5, %v24372_v63  ;;  %v17130_v63 = vld [vmem:[%s23309_s27 + $0x87] sm:$0xff] }
 0x2fc   : > { %20268 = vmatprep.mubr.msk.f32.mxu0 %vm700_vm5, %v17058_v3  ;;  %v17139_v3 = vld [vmem:[%s23309_s27 + $0x10f] sm:$0xff] }
 0x2ff   : > { %20269 = vmatmul.mubr.msk.f32.gmra.mrb[62].mxu0 %vm700_vm5, %v17059_v4  ;;  %v17140_v4 = vld [vmem:[%s23309_s27 + $0x127] sm:$0xff] }
 0x300   : > { %20273 = vmatprep.mubr.msk.f32.mxu0 %vm700_vm5, %v17126_v33  ;;  %v17141_v33 = vld [vmem:[%s23309_s27 + $0x12f] sm:$0xff] }
 0x303   : > { %20274 = vmatmul.mubr.msk.f32.vlgmr.msra.gmra.mrb[0].mxu0 %vm700_vm5, %v17127_v37  ;;  %v17142_v37 = vld [vmem:[%s23309_s27 + $0x147] sm:$0xff] }
 0x304   : > { %20276 = vmatprep.mubr.msk.f32.mxu0 %vm700_vm5, %v17128_v38  ;;  %20370 = vmatpush3.msk.msra.mxu0 %vm893_vm4, %v17320_v55  ;;  %v17135_v55 = vld [vmem:[%s23309_s27 + $0xcf] sm:$0xff] }
 0x305   : > { %v17143_v38 = vld [vmem:[%s23309_s27 + $0x14f] sm:$0xff] }
 0x307   : > { %20277 = vmatmul.mubr.msk.f32.gmra.mrb[2].mxu0 %vm700_vm5, %v17129_v10  ;;  %v17144_v10 = vld [vmem:[%s23309_s27 + $0x167] sm:$0xff] }
 0x308   : > { %20279 = vmatprep.mubr.msk.f32.mxu0 %vm700_vm5, %v17130_v63  ;;  %v17145_v63 = vld [vmem:[%s23309_s27 + $0x16f] sm:$0xff] }
 0x30b   : > { %20280 = vmatmul.mubr.msk.f32.gmra.mrb[4].mxu0 %vm700_vm5, %v17131_v0  ;;  %v17146_v0 = vld [vmem:[%s23309_s27 + $0x187] sm:$0xff] }
 0x30c   : > { %20282 = vmatprep.mubr.msk.f32.mxu0 %vm700_vm5, %v17132_v52  ;;  %v17147_v52 = vld [vmem:[%s23309_s27 + $0x18f] sm:$0xff] }
 0x30f   : > { %20283 = vmatmul.mubr.msk.f32.gmra.mrb[6].mxu0 %vm700_vm5, %v17133_v7  ;;  %v17148_v7 = vld [vmem:[%s23309_s27 + $0x1a7] sm:$0xff] }
 0x310   : > { %20285 = vmatprep.mubr.msk.f32.mxu0 %vm700_vm5, %v17134_v61  ;;  %v17149_v61 = vld [vmem:[%s23309_s27 + $0x1af] sm:$0xff] }
 0x313   : > { %20286 = vmatmul.mubr.msk.f32.gmra.mrb[8].mxu0 %vm700_vm5, %v17135_v55  ;;  %v17150_v55 = vld [vmem:[%s23309_s27 + $0x1c7] sm:$0xff] }
 0x314   : > { %20288 = vmatprep.mubr.msk.f32.mxu0 %vm700_vm5, %v17136_v1  ;;  %v17151_v1 = vld [vmem:[%s23309_s27 + $0x1cf] sm:$0xff] }
 0x317   : > { %20289 = vmatmul.mubr.msk.f32.gmra.mrb[10].mxu0 %vm700_vm5, %v17137_v2  ;;  %v17152_v2 = vld [vmem:[%s23309_s27 + $0x1e7] sm:$0xff] }
 0x318   : > { %20291 = vmatprep.mubr.msk.f32.mxu0 %vm700_vm5, %v17138_v62  ;;  %v17153_v62 = vld [vmem:[%s23309_s27 + $0x1ef] sm:$0xff] }
 0x31b   : > { %20292 = vmatmul.mubr.msk.f32.gmra.mrb[12].mxu0 %vm700_vm5, %v17139_v3  ;;  %v17156_v3 = vld [vmem:[%s23309_s27 + $0x227] sm:$0xff] }
 0x31c   : > { %20294 = vmatprep.mubr.msk.f32.mxu0 %vm700_vm5, %v17140_v4  ;;  %v17157_v4 = vld [vmem:[%s23309_s27 + $0x22f] sm:$0xff] }
 0x31f   : > { %20295 = vmatmul.mubr.msk.f32.gmra.mrb[14].mxu0 %vm700_vm5, %v17141_v33  ;;  %v17158_v33 = vld [vmem:[%s23309_s27 + $0x287] sm:$0xff] }
 0x320   : > { %20297 = vmatprep.mubr.msk.f32.mxu0 %vm700_vm5, %v17142_v37  ;;  %v17159_v37 = vld [vmem:[%s23309_s27 + $0x28f] sm:$0xff] }
 0x323   : > { %20298 = vmatmul.mubr.msk.f32.gmra.mrb[16].mxu0 %vm700_vm5, %v17143_v38  ;;  %v17160_v38 = vld [vmem:[%s23309_s27 + $0x2a7] sm:$0xff] }
 0x324   : > { %20300 = vmatprep.mubr.msk.f32.mxu0 %vm700_vm5, %v17144_v10  ;;  %v17162_v10 = vld [vmem:[%s23309_s27 + $0x2c7] sm:$0xff] }
 0x327   : > { %20301 = vmatmul.mubr.msk.f32.gmra.mrb[18].mxu0 %vm700_vm5, %v17145_v63  ;;  %v17163_v63 = vld [vmem:[%s23309_s27 + $0x2cf] sm:$0xff] }
 0x328   : > { %20303 = vmatprep.mubr.msk.f32.mxu0 %vm700_vm5, %v17146_v0  ;;  %v17164_v0 = vld [vmem:[%s23309_s27 + $0x2e7] sm:$0xff] }
 0x32b   : > { %20304 = vmatmul.mubr.msk.f32.gmra.mrb[20].mxu0 %vm700_vm5, %v17147_v52  ;;  %v17165_v52 = vld [vmem:[%s23309_s27 + $0x2ef] sm:$0xff] }
 0x32c   : > { %20306 = vmatprep.mubr.msk.f32.mxu0 %vm700_vm5, %v17148_v7  ;;  %v17166_v7 = vld [vmem:[%s23309_s27 + $0x307] sm:$0xff] }
 0x32f   : > { %20307 = vmatmul.mubr.msk.f32.gmra.mrb[22].mxu0 %vm700_vm5, %v17149_v61  ;;  %v17167_v61 = vld [vmem:[%s23309_s27 + $0x30f] sm:$0xff] }
 0x330   : > { %20309 = vmatprep.mubr.msk.f32.mxu0 %vm700_vm5, %v17150_v55  ;;  %v17168_v55 = vld [vmem:[%s23309_s27 + $0x327] sm:$0xff] }
 0x333   : > { %20310 = vmatmul.mubr.msk.f32.gmra.mrb[24].mxu0 %vm700_vm5, %v17151_v1  ;;  %v17169_v1 = vld [vmem:[%s23309_s27 + $0x32f] sm:$0xff] }
 0x334   : > { %20312 = vmatprep.mubr.msk.f32.mxu0 %vm700_vm5, %v17152_v2  ;;  %v17170_v2 = vld [vmem:[%s23309_s27 + $0x347] sm:$0xff] }
 0x337   : > { %20313 = vmatmul.mubr.msk.f32.gmra.mrb[26].mxu0 %vm700_vm5, %v17153_v62  ;;  %v17171_v62 = vld [vmem:[%s23309_s27 + $0x34f] sm:$0xff] }
 0x338   : > { %20315 = vmatprep.mubr.msk.f32.mxu0 %vm700_vm5, %v24437_v5  ;;  %v25075_v5 = vld [vmem:[%s27738_s1 + $0x20] sm:$0x7] }
 0x339   : > { %20467 = vmatprep.subr.msk.mxu0 %vm893_vm4, %v25075_v5 }
 0x33b   : > { %20316 = vmatmul.mubr.msk.f32.gmra.mrb[28].mxu0 %vm700_vm5, %v24444_v6  ;;  %v17161_v6 = vld [vmem:[%s23309_s27 + $0x2af] sm:$0xff] }
 0x33c   : > { %20318 = vmatprep.mubr.msk.f32.mxu0 %vm700_vm5, %v17156_v3  ;;  %v17172_v3 = vld [vmem:[%s23309_s27 + $0x367] sm:$0xff] }
 0x33f   : > { %20319 = vmatmul.mubr.msk.f32.gmra.mrb[30].mxu0 %vm700_vm5, %v17157_v4  ;;  %v17173_v4 = vld [vmem:[%s23309_s27 + $0x36f] sm:$0xff] }
 0x340   : > { %20321 = vmatprep.mubr.msk.f32.mxu0 %vm700_vm5, %v17158_v33  ;;  %v17174_v33 = vld [vmem:[%s23309_s27 + $0x387] sm:$0xff] }
 0x343   : > { %20322 = vmatmul.mubr.msk.f32.gmra.mrb[32].mxu0 %vm700_vm5, %v17159_v37  ;;  %v17175_v37 = vld [vmem:[%s23309_s27 + $0x38f] sm:$0xff] }
 0x344   : > { %20324 = vmatprep.mubr.msk.f32.mxu0 %vm700_vm5, %v17160_v38  ;;  %v17176_v38 = vld [vmem:[%s23309_s27 + $0x3a7] sm:$0xff] }
 0x347   : > { %20325 = vmatmul.mubr.msk.f32.gmra.mrb[34].mxu0 %vm700_vm5, %v17161_v6  ;;  %v17177_v6 = vld [vmem:[%s23309_s27 + $0x3af] sm:$0xff] }
 0x348   : > { %20327 = vmatprep.mubr.msk.f32.mxu0 %vm700_vm5, %v17162_v10  ;;  %v17178_v10 = vld [vmem:[%s23309_s27 + $0x3c7] sm:$0xff] }
 0x34b   : > { %20328 = vmatmul.mubr.msk.f32.gmra.mrb[36].mxu0 %vm700_vm5, %v17163_v63  ;;  %v16539_v63 = vld [vmem:[%s27738_s1 + $0x4] sm:$0x7] }
 0x34c   : > { %20330 = vmatprep.mubr.msk.f32.mxu0 %vm700_vm5, %v17164_v0  ;;  %v634_v0 = vld [vmem:[%s23309_s27 + $0x8] sm:$0xff]  ;;  %19683 = vmatprep.subr.msk.mxu1 %vm893_vm4, %v16539_v63 }
 0x34d   : > { %19684 = vmatpush3.msk.msra.mxu1 %vm893_vm4, %v16539_v63  ;;  %19685 = vmatprep.mubr.msk.f32.mxu1 %vm700_vm5, %v634_v0  ;;  %v688_v63 = vld [vmem:[%s23309_s27 + $0x3a8] sm:$0xff]  ;;  %v689_v0 = vld [vmem:[%s23309_s27 + $0x3b0] sm:$0xff] }
 0x34f   : > { %20331 = vmatmul.mubr.msk.f32.gmra.mrb[38].mxu0 %vm700_vm5, %v17165_v52  ;;  %v635_v52 = vld [vmem:[%s23309_s27 + $0x10] sm:$0xff] }
 0x350   : > { %20333 = vmatprep.mubr.msk.f32.mxu0 %vm700_vm5, %v17166_v7  ;;  %v17179_v7 = vld [vmem:[%s23309_s27 + $0x3cf] sm:$0xff]  ;;  %19686 = vmatmul.mubr.msk.f32.vlgmr.msra.gmra.mrb[0].mxu1 %vm700_vm5, %v635_v52  ;;  %v28030_v52 = vld [vmem:[#allocation63_spill] sm:$0xff] }
 0x351   : > { %19688 = vmatprep.mubr.msk.f32.mxu1 %vm700_vm5, %v24539_v17  ;;  %v641_v17 = vld [vmem:[%s23309_s27 + $0x70] sm:$0xff] }
 0x353   : > { %20334 = vmatmul.mubr.msk.f32.gmra.mrb[40].mxu0 %vm700_vm5, %v17167_v61  ;;  %v23132_v61 = vld [vmem:[%s27738_s1] sm:$0x7] }
 0x354   : > { %20336 = vmatprep.mubr.msk.f32.mxu0 %vm700_vm5, %v17168_v55  ;;  %21928 = vmatprep.subr.msk.mxu1 %vm893_vm4, %v23132_v61  ;;  %v638_v55 = vld [vmem:[%s23309_s27 + $0x48] sm:$0xff] }
 0x355   : > { %21929 = vmatpush3.msk.msra.mxu1 %vm893_vm4, %v23132_v61  ;;  %v690_v61 = vld [vmem:[%s23309_s27 + $0x3c8] sm:$0xff] }
 0x356   : > { %19689 = vmatmul.mubr.msk.f32.gmra.mrb[2].mxu1 %vm700_vm5, %v24546_v18  ;;  %v645_v18 = vld [vmem:[%s23309_s27 + $0xb0] sm:$0xff] }
 0x357   : > { %20337 = vmatmul.mubr.msk.f32.gmra.mrb[42].mxu0 %vm700_vm5, %v17169_v1  ;;  %v639_v1 = vld [vmem:[%s23309_s27 + $0x50] sm:$0xff]  ;;  %19691 = vmatprep.mubr.msk.f32.mxu1 %vm700_vm5, %v638_v55 }
 0x358   : > { %20339 = vmatprep.mubr.msk.f32.mxu0 %vm700_vm5, %v17170_v2  ;;  %v647_v2 = vld [vmem:[%s23309_s27 + $0xd0] sm:$0xff] }
 0x359   : > { %v691_v55 = vld [vmem:[%s23309_s27 + $0x3d0] sm:$0xff] }
 0x35a   : > { %19692 = vmatmul.mubr.msk.f32.gmra.mrb[4].mxu1 %vm700_vm5, %v639_v1  ;;  %v28032_v1 = vld [vmem:[#allocation65_spill] sm:$0xff] }
 0x35b   : > { %20340 = vmatmul.mubr.msk.f32.gmra.mrb[44].mxu0 %vm700_vm5, %v17171_v62  ;;  %v649_v62 = vld [vmem:[%s23309_s27 + $0xf0] sm:$0xff] }
 0x35c   : > { %20342 = vmatprep.mubr.msk.f32.mxu0 %vm700_vm5, %v17172_v3  ;;  %v651_v3 = vld [vmem:[%s23309_s27 + $0x110] sm:$0xff] }
 0x35f   : > { %20343 = vmatmul.mubr.msk.f32.gmra.mrb[46].mxu0 %vm700_vm5, %v17173_v4  ;;  %v679_v4 = vld [vmem:[%s23309_s27 + $0x310] sm:$0xff] }
 0x360   : > { %20345 = vmatprep.mubr.msk.f32.mxu0 %vm700_vm5, %v17174_v33  ;;  %v681_v33 = vld [vmem:[%s23309_s27 + $0x330] sm:$0xff] }
 0x363   : > { %20346 = vmatmul.mubr.msk.f32.gmra.mrb[48].mxu0 %vm700_vm5, %v17175_v37  ;;  %v683_v37 = vld [vmem:[%s23309_s27 + $0x350] sm:$0xff] }
 0x364   : > { %20348 = vmatprep.mubr.msk.f32.mxu0 %vm700_vm5, %v17176_v38  ;;  %v28026_v38 = vld [vmem:[#allocation59_spill] sm:$0xff] }
 0x367   : > { %20349 = vmatmul.mubr.msk.f32.gmra.mrb[50].mxu0 %vm700_vm5, %v17177_v6  ;;  %v687_v6 = vld [vmem:[%s23309_s27 + $0x390] sm:$0xff] }
 0x368   : > { %20351 = vmatprep.mubr.msk.f32.mxu0 %vm700_vm5, %v17178_v10  ;;  %v28028_v10 = vld [vmem:[#allocation61_spill] sm:$0xff] }
 0x36b   : > { %20352 = vmatmul.mubr.msk.f32.gmra.mrb[52].mxu0 %vm700_vm5, %v17179_v7  ;;  %v28031_v7 = vld [vmem:[#allocation64_spill] sm:$0xff] }
 0x36c   : > { %20354 = vmatprep.mubr.msk.f32.mxu0 %vm700_vm5, %v24499_v8  ;;  %v640_v8 = vld [vmem:[%s23309_s27 + $0x68] sm:$0xff] }
 0x36d   : > { %19694 = vmatprep.mubr.msk.f32.mxu1 %vm700_vm5, %v640_v8  ;;  %v28033_v8 = vld [vmem:[#allocation66_spill] sm:$0xff] }
 0x36e   : > { %19695 = vmatmul.mubr.msk.f32.gmra.mrb[6].mxu1 %vm700_vm5, %v641_v17  ;;  %v692_v17 = vld [vmem:[%s23309_s27 + $0x3e8] sm:$0xff] }
 0x36f   : > { %20355 = vmatmul.mubr.msk.f32.gmra.mrb[54].mxu0 %vm700_vm5, %v24506_v9  ;;  %v642_v9 = vld [vmem:[%s23309_s27 + $0x88] sm:$0xff] }
 0x370   : > { %20357 = vmatprep.mubr.msk.f32.mxu0 %vm700_vm5, %v24509_v11  ;;  %v643_v11 = vld [vmem:[%s23309_s27 + $0x90] sm:$0xff]  ;;  %19697 = vmatprep.mubr.msk.f32.mxu1 %vm700_vm5, %v642_v9 }
 0x371   : > { %v693_v9 = vld [vmem:[%s23309_s27 + $0x3f0] sm:$0xff] }
 0x372   : > { %19698 = vmatmul.mubr.msk.f32.gmra.mrb[8].mxu1 %vm700_vm5, %v643_v11  ;;  %v28034_v11 = vld [vmem:[#allocation67_spill] sm:$0xff] }
 0x373   : > { %20358 = vmatmul.mubr.msk.f32.gmra.mrb[56].mxu0 %vm700_vm5, %v24516_v12  ;;  %v17188_v12 = vld [vmem:[%s23309_s27 + $0x467] sm:$0xff] }
 0x374   : > { %20360 = vmatprep.mubr.msk.f32.mxu0 %vm700_vm5, %v24519_v13  ;;  %v644_v13 = vld [vmem:[%s23309_s27 + $0xa8] sm:$0xff] }
 0x375   : > { %19700 = vmatprep.mubr.msk.f32.mxu1 %vm700_vm5, %v644_v13  ;;  %v694_v13 = vld [vmem:[%s23309_s27 + $0x408] sm:$0xff] }
 0x376   : > { %19701 = vmatmul.mubr.msk.f32.gmra.mrb[10].mxu1 %vm700_vm5, %v645_v18  ;;  %v695_v18 = vld [vmem:[%s23309_s27 + $0x410] sm:$0xff] }
 0x377   : > { %20361 = vmatmul.mubr.msk.f32.gmra.mrb[58].mxu0 %vm700_vm5, %v24526_v14  ;;  %v17189_v14 = vld [vmem:[%s23309_s27 + $0x46f] sm:$0xff] }
 0x378   : > { %20363 = vmatprep.mubr.msk.f32.mxu0 %vm700_vm5, %v24529_v15  ;;  %v646_v15 = vld [vmem:[%s23309_s27 + $0xc8] sm:$0xff] }
 0x379   : > { %19703 = vmatprep.mubr.msk.f32.mxu1 %vm700_vm5, %v646_v15  ;;  %v28037_v15 = vld [vmem:[#allocation70_spill] sm:$0xff] }
 0x37a   : > { %19704 = vmatmul.mubr.msk.f32.gmra.mrb[12].mxu1 %vm700_vm5, %v647_v2  ;;  %v696_v2 = vld [vmem:[%s23309_s27 + $0x428] sm:$0xff] }
 0x37b   : > { %20364 = vmatmul.mubr.msk.f32.gmra.mrb[60].mxu0 %vm700_vm5, %v24536_v16  ;;  %v648_v16 = vld [vmem:[%s23309_s27 + $0xe8] sm:$0xff] }
 0x37c   : > { %20366 = vmatprep.mubr.msk.f32.mxu0 %vm700_vm5, %v17188_v12  ;;  %19706 = vmatprep.mubr.msk.f32.mxu1 %vm700_vm5, %v648_v16  ;;  %v28035_v12 = vld [vmem:[#allocation68_spill] sm:$0xff]  ;;  %v697_v16 = vld [vmem:[%s23309_s27 + $0x430] sm:$0xff] }
 0x37e   : > { %19707 = vmatmul.mubr.msk.f32.gmra.mrb[14].mxu1 %vm700_vm5, %v649_v62  ;;  %v28038_v62 = vld [vmem:[#allocation71_spill] sm:$0xff] }
 0x37f   : > { %20367 = vmatmul.mubr.msk.f32.gmra.mrb[62].mxu0 %vm700_vm5, %v17189_v14  ;;  %v28036_v14 = vld [vmem:[#allocation69_spill] sm:$0xff] }
 0x380   : > { %20371 = vmatprep.mubr.msk.f32.mxu0 %vm700_vm5, %v24549_v19  ;;  %v650_v19 = vld [vmem:[%s23309_s27 + $0x108] sm:$0xff] }
 0x381   : > { %19709 = vmatprep.mubr.msk.f32.mxu1 %vm700_vm5, %v650_v19  ;;  %v28039_v19 = vld [vmem:[#allocation72_spill] sm:$0xff] }
 0x382   : > { %19710 = vmatmul.mubr.msk.f32.gmra.mrb[16].mxu1 %vm700_vm5, %v651_v3  ;;  %v627_v3 = vld [vmem:[%s23309_s27 + $0x3e7] sm:$0xff] }
 0x383   : > { %20372 = vmatmul.mubr.msk.f32.vlgmr.msra.gmra.mrb[0].mxu0 %vm700_vm5, %v24556_v20  ;;  %v652_v20 = vld [vmem:[%s23309_s27 + $0x128] sm:$0xff] }
 0x384   : > { %20374 = vmatprep.mubr.msk.f32.mxu0 %vm700_vm5, %v24560_v21  ;;  %20468 = vmatpush3.msk.msra.mxu0 %vm893_vm4, %v25075_v5  ;;  %v653_v21 = vld [vmem:[%s23309_s27 + $0x130] sm:$0xff] }
 0x385   : > { %19712 = vmatprep.mubr.msk.f32.mxu1 %vm700_vm5, %v652_v20  ;;  %v677_v5 = vld [vmem:[%s23309_s27 + $0x2f0] sm:$0xff] }
 0x386   : > { %19713 = vmatmul.mubr.msk.f32.gmra.mrb[18].mxu1 %vm700_vm5, %v653_v21  ;;  %v628_v20 = vld [vmem:[%s23309_s27 + $0x3ef] sm:$0xff] }
 0x387   : > { %20375 = vmatmul.mubr.msk.f32.gmra.mrb[2].mxu0 %vm700_vm5, %v24567_v22  ;;  %v654_v22 = vld [vmem:[%s23309_s27 + $0x148] sm:$0xff] }
 0x388   : > { %20377 = vmatprep.mubr.msk.f32.mxu0 %vm700_vm5, %v24570_v23  ;;  %v655_v23 = vld [vmem:[%s23309_s27 + $0x150] sm:$0xff]  ;;  %19715 = vmatprep.mubr.msk.f32.mxu1 %vm700_vm5, %v654_v22 }
 0x389   : > { %v28040_v21 = vld [vmem:[#allocation73_spill] sm:$0xff]  ;;  %v28041_v22 = vld [vmem:[#allocation74_spill] sm:$0xff] }
 0x38a   : > { %19716 = vmatmul.mubr.msk.f32.gmra.mrb[20].mxu1 %vm700_vm5, %v655_v23  ;;  %v629_v23 = vld [vmem:[%s23309_s27 + $0x407] sm:$0xff] }
 0x38b   : > { %20378 = vmatmul.mubr.msk.f32.gmra.mrb[4].mxu0 %vm700_vm5, %v24577_v24  ;;  %v656_v24 = vld [vmem:[%s23309_s27 + $0x168] sm:$0xff] }
 0x38c   : > { %20380 = vmatprep.mubr.msk.f32.mxu0 %vm700_vm5, %v24580_v25  ;;  %v657_v25 = vld [vmem:[%s23309_s27 + $0x170] sm:$0xff]  ;;  %19718 = vmatprep.mubr.msk.f32.mxu1 %vm700_vm5, %v656_v24 }
 0x38d   : > { %v630_v24 = vld [vmem:[%s23309_s27 + $0x40f] sm:$0xff] }
 0x38e   : > { %19719 = vmatmul.mubr.msk.f32.gmra.mrb[22].mxu1 %vm700_vm5, %v657_v25  ;;  %v28042_v25 = vld [vmem:[#allocation75_spill] sm:$0xff] }
 0x38f   : > { %20381 = vmatmul.mubr.msk.f32.gmra.mrb[6].mxu0 %vm700_vm5, %v24587_v26  ;;  %v658_v26 = vld [vmem:[%s23309_s27 + $0x188] sm:$0xff] }
 0x390   : > { %20383 = vmatprep.mubr.msk.f32.mxu0 %vm700_vm5, %v24590_v27  ;;  %v659_v27 = vld [vmem:[%s23309_s27 + $0x190] sm:$0xff]  ;;  %19721 = vmatprep.mubr.msk.f32.mxu1 %vm700_vm5, %v658_v26  ;;  %v631_v26 = vld [vmem:[%s23309_s27 + $0x427] sm:$0xff] }
 0x392   : > { %19722 = vmatmul.mubr.msk.f32.gmra.mrb[24].mxu1 %vm700_vm5, %v659_v27  ;;  %v632_v27 = vld [vmem:[%s23309_s27 + $0x42f] sm:$0xff] }
 0x393   : > { %20384 = vmatmul.mubr.msk.f32.gmra.mrb[8].mxu0 %vm700_vm5, %v24597_v28  ;;  %v660_v28 = vld [vmem:[%s23309_s27 + $0x1a8] sm:$0xff] }
 0x394   : > { %20386 = vmatprep.mubr.msk.f32.mxu0 %vm700_vm5, %v24600_v29  ;;  %v661_v29 = vld [vmem:[%s23309_s27 + $0x1b0] sm:$0xff]  ;;  %19724 = vmatprep.mubr.msk.f32.mxu1 %vm700_vm5, %v660_v28  ;;  %v28043_v28 = vld [vmem:[#allocation76_spill] sm:$0xff] }
 0x396   : > { %19725 = vmatmul.mubr.msk.f32.gmra.mrb[26].mxu1 %vm700_vm5, %v661_v29  ;;  %v28044_v29 = vld [vmem:[#allocation77_spill] sm:$0xff] }
 0x397   : > { %20387 = vmatmul.mubr.msk.f32.gmra.mrb[10].mxu0 %vm700_vm5, %v24607_v30  ;;  %v662_v30 = vld [vmem:[%s23309_s27 + $0x1c8] sm:$0xff] }
 0x398   : > { %20389 = vmatprep.mubr.msk.f32.mxu0 %vm700_vm5, %v24610_v31  ;;  %v663_v31 = vld [vmem:[%s23309_s27 + $0x1d0] sm:$0xff]  ;;  %19727 = vmatprep.mubr.msk.f32.mxu1 %vm700_vm5, %v662_v30 }
 0x399   : > { %v28045_v30 = vld [vmem:[#allocation78_spill] sm:$0xff] }
 0x39a   : > { %19728 = vmatmul.mubr.msk.f32.gmra.mrb[28].mxu1 %vm700_vm5, %v663_v31  ;;  %v28047_v31 = vld [vmem:[#allocation80_spill] sm:$0xff] }
 0x39b   : > { %20390 = vmatmul.mubr.msk.f32.gmra.mrb[12].mxu0 %vm700_vm5, %v24617_v32  ;;  %v664_v32 = vld [vmem:[%s23309_s27 + $0x1e8] sm:$0xff] }
 0x39c   : > { %20392 = vmatprep.mubr.msk.f32.mxu0 %vm700_vm5, %v24620_v34  ;;  %v665_v34 = vld [vmem:[%s23309_s27 + $0x1f0] sm:$0xff]  ;;  %19730 = vmatprep.mubr.msk.f32.mxu1 %vm700_vm5, %v664_v32  ;;  %v17318_v32 = vld [vmem:[%s23309_s27 + $0x468] sm:$0xff] }
 0x39e   : > { %19731 = vmatmul.mubr.msk.f32.gmra.mrb[30].mxu1 %vm700_vm5, %v665_v34  ;;  %v28048_v34 = vld [vmem:[#allocation81_spill] sm:$0xff] }
 0x39f   : > { %20393 = vmatmul.mubr.msk.f32.gmra.mrb[14].mxu0 %vm700_vm5, %v24627_v35  ;;  %v666_v35 = vld [vmem:[%s23309_s27 + $0x248] sm:$0xff] }
 0x3a0   : > { %20395 = vmatprep.mubr.msk.f32.mxu0 %vm700_vm5, %v24630_v36  ;;  %v667_v36 = vld [vmem:[%s23309_s27 + $0x250] sm:$0xff]  ;;  %19733 = vmatprep.mubr.msk.f32.mxu1 %vm700_vm5, %v666_v35 }
 0x3a1   : > { %v17319_v35 = vld [vmem:[%s23309_s27 + $0x470] sm:$0xff] }
 0x3a2   : > { %19734 = vmatmul.mubr.msk.f32.gmra.mrb[32].mxu1 %vm700_vm5, %v667_v36  ;;  %v17386_v36 = vld [vmem:[%s23309_s27 + $0x49] sm:$0xff] }
 0x3a3   : > { %20396 = vmatmul.mubr.msk.f32.gmra.mrb[16].mxu0 %vm700_vm5, %v24637_v39  ;;  %v668_v39 = vld [vmem:[%s23309_s27 + $0x268] sm:$0xff] }
 0x3a4   : > { %20398 = vmatprep.mubr.msk.f32.mxu0 %vm700_vm5, %v24640_v40  ;;  %v669_v40 = vld [vmem:[%s23309_s27 + $0x270] sm:$0xff]  ;;  %19736 = vmatprep.mubr.msk.f32.mxu1 %vm700_vm5, %v668_v39 }
 0x3a5   : > { %v17387_v39 = vld [vmem:[%s23309_s27 + $0x51] sm:$0xff] }
 0x3a6   : > { %19737 = vmatmul.mubr.msk.f32.gmra.mrb[34].mxu1 %vm700_vm5, %v669_v40  ;;  %v17388_v40 = vld [vmem:[%s23309_s27 + $0x69] sm:$0xff] }
 0x3a7   : > { %20399 = vmatmul.mubr.msk.f32.gmra.mrb[18].mxu0 %vm700_vm5, %v24647_v41  ;;  %v670_v41 = vld [vmem:[%s23309_s27 + $0x288] sm:$0xff] }
 0x3a8   : > { %20401 = vmatprep.mubr.msk.f32.mxu0 %vm700_vm5, %v24650_v42  ;;  %v671_v42 = vld [vmem:[%s23309_s27 + $0x290] sm:$0xff]  ;;  %19739 = vmatprep.mubr.msk.f32.mxu1 %vm700_vm5, %v670_v41 }
 0x3a9   : > { %v17389_v41 = vld [vmem:[%s23309_s27 + $0x71] sm:$0xff] }
 0x3aa   : > { %19740 = vmatmul.mubr.msk.f32.gmra.mrb[36].mxu1 %vm700_vm5, %v671_v42  ;;  %v17390_v42 = vld [vmem:[%s23309_s27 + $0x89] sm:$0xff] }
 0x3ab   : > { %20402 = vmatmul.mubr.msk.f32.gmra.mrb[20].mxu0 %vm700_vm5, %v24657_v43  ;;  %v672_v43 = vld [vmem:[%s23309_s27 + $0x2a8] sm:$0xff] }
 0x3ac   : > { %20404 = vmatprep.mubr.msk.f32.mxu0 %vm700_vm5, %v24660_v44  ;;  %v673_v44 = vld [vmem:[%s23309_s27 + $0x2b0] sm:$0xff]  ;;  %19742 = vmatprep.mubr.msk.f32.mxu1 %vm700_vm5, %v672_v43 }
 0x3ad   : > { %v17391_v43 = vld [vmem:[%s23309_s27 + $0x91] sm:$0xff] }
 0x3ae   : > { %19743 = vmatmul.mubr.msk.f32.gmra.mrb[38].mxu1 %vm700_vm5, %v673_v44  ;;  %v17392_v44 = vld [vmem:[%s23309_s27 + $0xa9] sm:$0xff] }
 0x3af   : > { %20405 = vmatmul.mubr.msk.f32.gmra.mrb[22].mxu0 %vm700_vm5, %v24667_v45  ;;  %v674_v45 = vld [vmem:[%s23309_s27 + $0x2c8] sm:$0xff] }
 0x3b0   : > { %20407 = vmatprep.mubr.msk.f32.mxu0 %vm700_vm5, %v24670_v46  ;;  %v675_v46 = vld [vmem:[%s23309_s27 + $0x2d0] sm:$0xff]  ;;  %19745 = vmatprep.mubr.msk.f32.mxu1 %vm700_vm5, %v674_v45 }
 0x3b1   : > { %v17393_v45 = vld [vmem:[%s23309_s27 + $0xb1] sm:$0xff] }
 0x3b2   : > { %19746 = vmatmul.mubr.msk.f32.gmra.mrb[40].mxu1 %vm700_vm5, %v675_v46  ;;  %v17394_v46 = vld [vmem:[%s23309_s27 + $0xc9] sm:$0xff] }
 0x3b3   : > { %20408 = vmatmul.mubr.msk.f32.gmra.mrb[24].mxu0 %vm700_vm5, %v24677_v47  ;;  %v17286_v47 = vld [vmem:[%s23309_s27 + $0x228] sm:$0xff] }
 0x3b4   : > { %20410 = vmatprep.mubr.msk.f32.mxu0 %vm700_vm5, %v24680_v48  ;;  %v676_v48 = vld [vmem:[%s23309_s27 + $0x2e8] sm:$0xff] }
 0x3b5   : > { %19748 = vmatprep.mubr.msk.f32.mxu1 %vm700_vm5, %v676_v48  ;;  %v17396_v48 = vld [vmem:[%s23309_s27 + $0xe9] sm:$0xff] }
 0x3b6   : > { %19749 = vmatmul.mubr.msk.f32.gmra.mrb[42].mxu1 %vm700_vm5, %v677_v5  ;;  %v17397_v5 = vld [vmem:[%s23309_s27 + $0xf1] sm:$0xff] }
 0x3b7   : > { %20411 = vmatmul.mubr.msk.f32.gmra.mrb[26].mxu0 %vm700_vm5, %v24687_v49  ;;  %v17287_v49 = vld [vmem:[%s23309_s27 + $0x230] sm:$0xff] }
 0x3b8   : > { %20413 = vmatprep.mubr.msk.f32.mxu0 %vm700_vm5, %v24690_v50  ;;  %v678_v50 = vld [vmem:[%s23309_s27 + $0x308] sm:$0xff] }
 0x3b9   : > { %19751 = vmatprep.mubr.msk.f32.mxu1 %vm700_vm5, %v678_v50  ;;  %v17399_v50 = vld [vmem:[%s23309_s27 + $0x111] sm:$0xff] }
 0x3ba   : > { %19752 = vmatmul.mubr.msk.f32.gmra.mrb[44].mxu1 %vm700_vm5, %v679_v4  ;;  %v17400_v4 = vld [vmem:[%s23309_s27 + $0x129] sm:$0xff] }
 0x3bb   : > { %20414 = vmatmul.mubr.msk.f32.gmra.mrb[28].mxu0 %vm700_vm5, %v24697_v51  ;;  %v680_v51 = vld [vmem:[%s23309_s27 + $0x328] sm:$0xff] }
 0x3bc   : > { %20416 = vmatprep.mubr.msk.f32.mxu0 %vm700_vm5, %v17286_v47  ;;  %19754 = vmatprep.mubr.msk.f32.mxu1 %vm700_vm5, %v680_v51  ;;  %v17395_v47 = vld [vmem:[%s23309_s27 + $0xd1] sm:$0xff] }
 0x3bd   : > { %v17401_v51 = vld [vmem:[%s23309_s27 + $0x131] sm:$0xff] }
 0x3be   : > { %19755 = vmatmul.mubr.msk.f32.gmra.mrb[46].mxu1 %vm700_vm5, %v681_v33  ;;  %v17402_v33 = vld [vmem:[%s23309_s27 + $0x149] sm:$0xff] }
 0x3bf   : > { %20417 = vmatmul.mubr.msk.f32.gmra.mrb[30].mxu0 %vm700_vm5, %v17287_v49  ;;  %v17398_v49 = vld [vmem:[%s23309_s27 + $0x109] sm:$0xff] }
 0x3c0   : > { %20419 = vmatprep.mubr.msk.f32.mxu0 %vm700_vm5, %v24705_v54  ;;  %v682_v54 = vld [vmem:[%s23309_s27 + $0x348] sm:$0xff] }
 0x3c1   : > { %19757 = vmatprep.mubr.msk.f32.mxu1 %vm700_vm5, %v682_v54  ;;  %v17403_v54 = vld [vmem:[%s23309_s27 + $0x151] sm:$0xff] }
 0x3c2   : > { %19758 = vmatmul.mubr.msk.f32.gmra.mrb[48].mxu1 %vm700_vm5, %v683_v37  ;;  %v17404_v37 = vld [vmem:[%s23309_s27 + $0x169] sm:$0xff] }
 0x3c3   : > { %20420 = vmatmul.mubr.msk.f32.gmra.mrb[32].mxu0 %vm700_vm5, %v24716_v56  ;;  %v684_v56 = vld [vmem:[%s23309_s27 + $0x368] sm:$0xff] }
 0x3c4   : > { %20422 = vmatprep.mubr.msk.f32.mxu0 %vm700_vm5, %v24721_v57  ;;  %v685_v57 = vld [vmem:[%s23309_s27 + $0x370] sm:$0xff]  ;;  %19760 = vmatprep.mubr.msk.f32.mxu1 %vm700_vm5, %v684_v56 }
 0x3c5   : > { %v17405_v56 = vld [vmem:[%s23309_s27 + $0x171] sm:$0xff] }
 0x3c6   : > { %19761 = vmatmul.mubr.msk.f32.gmra.mrb[50].mxu1 %vm700_vm5, %v685_v57  ;;  %v17406_v57 = vld [vmem:[%s23309_s27 + $0x189] sm:$0xff] }
 0x3c7   : > { %20423 = vmatmul.mubr.msk.f32.gmra.mrb[34].mxu0 %vm700_vm5, %v24728_v58  ;;  %v28027_v58 = vld [vmem:[#allocation60_spill] sm:$0xff] }
 0x3c8   : > { %20425 = vmatprep.mubr.msk.f32.mxu0 %vm700_vm5, %v24731_v59  ;;  %v686_v59 = vld [vmem:[%s23309_s27 + $0x388] sm:$0xff] }
 0x3c9   : > { %19763 = vmatprep.mubr.msk.f32.mxu1 %vm700_vm5, %v686_v59  ;;  %v17409_v59 = vld [vmem:[%s23309_s27 + $0x1b1] sm:$0xff] }
 0x3ca   : > { %19764 = vmatmul.mubr.msk.f32.gmra.mrb[52].mxu1 %vm700_vm5, %v687_v6  ;;  %v17410_v6 = vld [vmem:[%s23309_s27 + $0x1c9] sm:$0xff] }
 0x3cb   : > { %20426 = vmatmul.mubr.msk.f32.gmra.mrb[36].mxu0 %vm700_vm5, %v24738_v60  ;;  %v28029_v60 = vld [vmem:[#allocation62_spill] sm:$0xff]  ;;  %19766 = vmatprep.mubr.msk.f32.mxu1 %vm700_vm5, %v688_v63 }
 0x3cc   : > { %20428 = vmatprep.mubr.msk.f32.mxu0 %vm700_vm5, %v28026_v38  ;;  %v17407_v38 = vld [vmem:[%s23309_s27 + $0x191] sm:$0xff] }
 0x3cd   : > { %v17413_v63 = vld [vmem:[%s23309_s27 + $0x1f1] sm:$0xff] }
 0x3ce   : > { %19767 = vmatmul.mubr.msk.f32.gmra.mrb[54].mxu1 %vm700_vm5, %v689_v0  ;;  %v28049_v0 = vld [vmem:[#allocation8_spill] sm:$0xff] }
 0x3cf   : > { %20429 = vmatmul.mubr.msk.f32.gmra.mrb[38].mxu0 %vm700_vm5, %v28027_v58  ;;  %19769 = vmatprep.mubr.msk.f32.mxu1 %vm700_vm5, %v690_v61  ;;  %v17408_v58 = vld [vmem:[%s23309_s27 + $0x1a9] sm:$0xff]  ;;  %v17417_v61 = vld [vmem:[%s23309_s27 + $0x231] sm:$0xff] }
 0x3d0   : > { %20431 = vmatprep.mubr.msk.f32.mxu0 %vm700_vm5, %v28028_v10  ;;  %v17411_v10 = vld [vmem:[%s23309_s27 + $0x1d1] sm:$0xff] }
 0x3d2   : > { %19770 = vmatmul.mubr.msk.f32.gmra.mrb[56].mxu1 %vm700_vm5, %v691_v55  ;;  %v17418_v55 = vld [vmem:[%s23309_s27 + $0x289] sm:$0xff] }
 0x3d3   : > { %20432 = vmatmul.mubr.msk.f32.gmra.mrb[40].mxu0 %vm700_vm5, %v28029_v60  ;;  %19772 = vmatprep.mubr.msk.f32.mxu1 %vm700_vm5, %v692_v17  ;;  %v17412_v60 = vld [vmem:[%s23309_s27 + $0x1e9] sm:$0xff]  ;;  %v17419_v17 = vld [vmem:[%s23309_s27 + $0x291] sm:$0xff] }
 0x3d4   : > { %20434 = vmatprep.mubr.msk.f32.mxu0 %vm700_vm5, %v28030_v52  ;;  %v17416_v52 = vld [vmem:[%s23309_s27 + $0x229] sm:$0xff] }
 0x3d6   : > { %19773 = vmatmul.mubr.msk.f32.gmra.mrb[58].mxu1 %vm700_vm5, %v693_v9  ;;  %v17420_v9 = vld [vmem:[%s23309_s27 + $0x2a9] sm:$0xff] }
 0x3d7   : > { %20435 = vmatmul.mubr.msk.f32.gmra.mrb[42].mxu0 %vm700_vm5, %v28031_v7  ;;  %19775 = vmatprep.mubr.msk.f32.mxu1 %vm700_vm5, %v694_v13  ;;  %v28050_v7 = vld [vmem:[#allocation9_spill] sm:$0xff] }
 0x3d8   : > { %20437 = vmatprep.mubr.msk.f32.mxu0 %vm700_vm5, %v28032_v1  ;;  %v17421_v13 = vld [vmem:[%s23309_s27 + $0x2b1] sm:$0xff] }
 0x3da   : > { %19776 = vmatmul.mubr.msk.f32.gmra.mrb[60].mxu1 %vm700_vm5, %v695_v18  ;;  %v17422_v18 = vld [vmem:[%s23309_s27 + $0x2c9] sm:$0xff] }
 0x3db   : > { %20438 = vmatmul.mubr.msk.f32.gmra.mrb[44].mxu0 %vm700_vm5, %v28033_v8  ;;  %19778 = vmatprep.mubr.msk.f32.mxu1 %vm700_vm5, %v696_v2  ;;  %v17423_v2 = vld [vmem:[%s23309_s27 + $0x2d1] sm:$0xff] }
 0x3dc   : > { %20440 = vmatprep.mubr.msk.f32.mxu0 %vm700_vm5, %v28034_v11 }
 0x3de   : > { %19779 = vmatmul.mubr.msk.f32.gmra.mrb[62].mxu1 %vm700_vm5, %v697_v16  ;;  %v17424_v16 = vld [vmem:[%s23309_s27 + $0x2e9] sm:$0xff] }
 0x3df   : > { %20441 = vmatmul.mubr.msk.f32.gmra.mrb[46].mxu0 %vm700_vm5, %v28035_v12  ;;  %19870 = vmatprep.mubr.msk.f32.mxu1 %vm700_vm5, %v627_v3  ;;  %v17425_v3 = vld [vmem:[%s23309_s27 + $0x2f1] sm:$0xff] }
 0x3e0   : > { %20443 = vmatprep.mubr.msk.f32.mxu0 %vm700_vm5, %v28036_v14 }
 0x3e2   : > { %19871 = vmatmul.mubr.msk.f32.vlgmr.msra.gmra.mrb[58].mxu1 %vm700_vm5, %v628_v20  ;;  %v17426_v20 = vld [vmem:[%s23309_s27 + $0x309] sm:$0xff] }
 0x3e3   : > { %20444 = vmatmul.mubr.msk.f32.gmra.mrb[48].mxu0 %vm700_vm5, %v28037_v15  ;;  %19873 = vmatprep.mubr.msk.f32.mxu1 %vm700_vm5, %v629_v23  ;;  %v17429_v23 = vld [vmem:[%s23309_s27 + $0x331] sm:$0xff] }
 0x3e4   : > { %20446 = vmatprep.mubr.msk.f32.mxu0 %vm700_vm5, %v28038_v62 }
 0x3e6   : > { %19874 = vmatmul.mubr.msk.f32.gmra.mrb[60].mxu1 %vm700_vm5, %v630_v24  ;;  %v17430_v24 = vld [vmem:[%s23309_s27 + $0x349] sm:$0xff] }
 0x3e7   : > { %20447 = vmatmul.mubr.msk.f32.gmra.mrb[50].mxu0 %vm700_vm5, %v28039_v19  ;;  %19876 = vmatprep.mubr.msk.f32.mxu1 %vm700_vm5, %v631_v26  ;;  %v17432_v26 = vld [vmem:[%s23309_s27 + $0x369] sm:$0xff] }
 0x3e8   : > { %20449 = vmatprep.mubr.msk.f32.mxu0 %vm700_vm5, %v28040_v21  ;;  %v17427_v21 = vld [vmem:[%s23309_s27 + $0x311] sm:$0xff] }
 0x3ea   : > { %19877 = vmatmul.mubr.msk.f32.gmra.mrb[62].mxu1 %vm700_vm5, %v632_v27 }
 0x3eb   : > { %20450 = vmatmul.mubr.msk.f32.gmra.mrb[52].mxu0 %vm700_vm5, %v28041_v22  ;;  %v17428_v22 = vld [vmem:[%s23309_s27 + $0x329] sm:$0xff] }
 0x3ec   : > { %20452 = vmatprep.mubr.msk.f32.mxu0 %vm700_vm5, %v28042_v25  ;;  %v17431_v25 = vld [vmem:[%s23309_s27 + $0x351] sm:$0xff] }
 0x3ef   : > { %20453 = vmatmul.mubr.msk.f32.gmra.mrb[54].mxu0 %vm700_vm5, %v24828_v53  ;;  %v28046_v53 = vld [vmem:[#allocation79_spill] sm:$0xff] }
 0x3f0   : > { %20455 = vmatprep.mubr.msk.f32.mxu0 %vm700_vm5, %v28043_v28 }
 0x3f3   : > { %20456 = vmatmul.mubr.msk.f32.gmra.mrb[56].mxu0 %vm700_vm5, %v28044_v29  ;;  %v17433_v29 = vld [vmem:[%s23309_s27 + $0x371] sm:$0xff] }
 0x3f4   : > { %20458 = vmatprep.mubr.msk.f32.mxu0 %vm700_vm5, %v28045_v30  ;;  %v17517_v30 = vld [vmem:[%s27740_s3 + $0x10] sm:$0xff] }
 0x3f7   : > { %20459 = vmatmul.mubr.msk.f32.gmra.mrb[58].mxu0 %vm700_vm5, %v28046_v53  ;;  %v17518_v53 = vld [vmem:[%s27740_s3 + $0x18] sm:$0xff] }
 0x3f8   : > { %20461 = vmatprep.mubr.msk.f32.mxu0 %vm700_vm5, %v28047_v31  ;;  %v17434_v31 = vld [vmem:[%s23309_s27 + $0x389] sm:$0xff] }
 0x3fb   : > { %20462 = vmatmul.mubr.msk.f32.gmra.mrb[60].mxu0 %vm700_vm5, %v28048_v34  ;;  %v21788_v34 = vpack.c.bf16 %v17518_v53, %v17517_v30 }
 0x3fc   : > { %20464 = vmatprep.mubr.msk.f32.mxu0 %vm700_vm5, %v17318_v32 }
 0x3fd   : > { %21789 = vmatprep.subr.bf16.mxu1 %v21788_v34 }
 0x3fe   : > { %21791 = vmatpush3.bf16.msra.mxu1 %v21788_v34 }
 0x3ff   : > { %20465 = vmatmul.mubr.msk.f32.gmra.mrb[62].mxu0 %vm700_vm5, %v17319_v35 }
 0x400   : > { %20469 = vmatprep.mubr.msk.f32.mxu0 %vm700_vm5, %v17386_v36  ;;  %v17435_v36 = vld [vmem:[%s23309_s27 + $0x391] sm:$0xff] }
 0x403   : > { %20470 = vmatmul.mubr.msk.f32.vlgmr.msra.gmra.mrb[0].mxu0 %vm700_vm5, %v17387_v39  ;;  %v17436_v39 = vld [vmem:[%s23309_s27 + $0x3a9] sm:$0xff] }
 0x404   : > { %20472 = vmatprep.mubr.msk.f32.mxu0 %vm700_vm5, %v17388_v40 }
 0x407   : > { %20473 = vmatmul.mubr.msk.f32.gmra.mrb[2].mxu0 %vm700_vm5, %v17389_v41  ;;  %v7101_v41 = vld [vmem:[#allocation2 + $0x8] sm:$0xff] }
 0x408   : > { %20475 = vmatprep.mubr.msk.f32.mxu0 %vm700_vm5, %v17390_v42  ;;  %20569 = vmatprep.mubr.msk.f32.mxu1 %vm6970_vm6, %v7101_v41  ;;  %v7099_v41 = vld [vmem:[%s27740_s3] sm:$0xff] }
 0x40b   : > { %20476 = vmatmul.mubr.msk.f32.gmra.mrb[4].mxu0 %vm700_vm5, %v17391_v43  ;;  %v7102_v43 = vld [vmem:[#allocation2 + $0x10] sm:$0xff] }
 0x40c   : > { %20478 = vmatprep.mubr.msk.f32.mxu0 %vm700_vm5, %v17392_v44  ;;  %20570 = vmatmul.mubr.msk.f32.vlgmr.msra.gmra.mrb[64].mxu1 %vm6970_vm6, %v7102_v43  ;;  %v17437_v44 = vld [vmem:[%s23309_s27 + $0x3b1] sm:$0xff]  ;;  %v7100_v43 = vld [vmem:[%s27740_s3 + $0x8] sm:$0xff] }
 0x40f   : > { %20479 = vmatmul.mubr.msk.f32.gmra.mrb[6].mxu0 %vm700_vm5, %v17393_v45  ;;  %v17438_v45 = vld [vmem:[%s23309_s27 + $0x3c9] sm:$0xff] }
 0x410   : > { %20481 = vmatprep.mubr.msk.f32.mxu0 %vm700_vm5, %v17394_v46 }
 0x413   : > { %20482 = vmatmul.mubr.msk.f32.gmra.mrb[8].mxu0 %vm700_vm5, %v17395_v47 }
 0x414   : > { %20484 = vmatprep.mubr.msk.f32.mxu0 %vm700_vm5, %v17396_v48  ;;  %v17439_v48 = vld [vmem:[%s23309_s27 + $0x3d1] sm:$0xff] }
 0x417   : > { %20485 = vmatmul.mubr.msk.f32.gmra.mrb[10].mxu0 %vm700_vm5, %v17397_v5  ;;  %v17440_v5 = vld [vmem:[%s23309_s27 + $0x3e9] sm:$0xff] }
 0x418   : > { %20487 = vmatprep.mubr.msk.f32.mxu0 %vm700_vm5, %v17398_v49 }
 0x41b   : > { %20488 = vmatmul.mubr.msk.f32.gmra.mrb[12].mxu0 %vm700_vm5, %v17399_v50 }
 0x41c   : > { %20490 = vmatprep.mubr.msk.f32.mxu0 %vm700_vm5, %v17400_v4  ;;  %v17441_v4 = vld [vmem:[%s23309_s27 + $0x3f1] sm:$0xff] }
 0x41f   : > { %20491 = vmatmul.mubr.msk.f32.gmra.mrb[14].mxu0 %vm700_vm5, %v17401_v51  ;;  %v17442_v51 = vld [vmem:[%s23309_s27 + $0x409] sm:$0xff] }
 0x420   : > { %20493 = vmatprep.mubr.msk.f32.mxu0 %vm700_vm5, %v17402_v33 }
 0x423   : > { %20494 = vmatmul.mubr.msk.f32.gmra.mrb[16].mxu0 %vm700_vm5, %v17403_v54  ;;  %v25482_v1 = vpop.f32.mrb[0].mxu1 }
 0x424   : > { %20496 = vmatprep.mubr.msk.f32.mxu0 %vm700_vm5, %v17404_v37  ;;  %v25484_v8 = vpop.f32.mrb[1].mxu1  ;;  %v17443_v37 = vld [vmem:[%s23309_s27 + $0x411] sm:$0xff] }
 0x427   : > { %20497 = vmatmul.mubr.msk.f32.gmra.mrb[18].mxu0 %vm700_vm5, %v17405_v56  ;;  %v17444_v56 = vld [vmem:[%s23309_s27 + $0x429] sm:$0xff] }
 0x428   : > { %20499 = vmatprep.mubr.msk.f32.mxu0 %vm700_vm5, %v17406_v57 }
 0x429   : > { %v25490_v11 = vpop.f32.mrb[2].mxu1 }
 0x42a   : > { %v25492_v12 = vpop.f32.mrb[3].mxu1 }
 0x42b   : > { %20500 = vmatmul.mubr.msk.f32.gmra.mrb[20].mxu0 %vm700_vm5, %v17407_v38 }
 0x42c   : > { %20502 = vmatprep.mubr.msk.f32.mxu0 %vm700_vm5, %v17408_v58  ;;  %v17445_v58 = vld [vmem:[%s23309_s27 + $0x431] sm:$0xff] }
 0x42d   : > { %v25498_v14 = vpop.f32.mrb[4].mxu1 }
 0x42e   : > { %v25500_v15 = vpop.f32.mrb[5].mxu1 }
 0x42f   : > { %20503 = vmatmul.mubr.msk.f32.gmra.mrb[22].mxu0 %vm700_vm5, %v17409_v59  ;;  %v17446_v59 = vld [vmem:[%s23309_s27 + $0x449] sm:$0xff] }
 0x430   : > { %20505 = vmatprep.mubr.msk.f32.mxu0 %vm700_vm5, %v17410_v6 }
 0x433   : > { %20506 = vmatmul.mubr.msk.f32.gmra.mrb[24].mxu0 %vm700_vm5, %v17411_v10 }
 0x434   : > { %20508 = vmatprep.mubr.msk.f32.mxu0 %vm700_vm5, %v17412_v60  ;;  %v17447_v60 = vld [vmem:[%s23309_s27 + $0x451] sm:$0xff] }
 0x437   : > { %20509 = vmatmul.mubr.msk.f32.gmra.mrb[26].mxu0 %vm700_vm5, %v17413_v63  ;;  %v17448_v63 = vld [vmem:[%s23309_s27 + $0x469] sm:$0xff] }
 0x438   : > { %20511 = vmatprep.mubr.msk.f32.mxu0 %vm700_vm5, %v28049_v0 }
 0x43b   : > { %20512 = vmatmul.mubr.msk.f32.gmra.mrb[28].mxu0 %vm700_vm5, %v28050_v7  ;;  %v17449_v7 = vld [vmem:[%s23309_s27 + $0x471] sm:$0xff] }
 0x43c   : > { %20514 = vmatprep.mubr.msk.f32.mxu0 %vm700_vm5, %v17416_v52 }
 0x43f   : > { %20515 = vmatmul.mubr.msk.f32.gmra.mrb[30].mxu0 %vm700_vm5, %v17417_v61 }
 0x440   : > { %20517 = vmatprep.mubr.msk.f32.mxu0 %vm700_vm5, %v17418_v55 }
 0x441   : > { %v25506_v62 = vpop.f32.mrb[6].mxu1 }
 0x442   : > { %v25508_v19 = vpop.f32.mrb[7].mxu1 }
 0x443   : > { %20518 = vmatmul.mubr.msk.f32.gmra.mrb[32].mxu0 %vm700_vm5, %v17419_v17 }
 0x444   : > { %20520 = vmatprep.mubr.msk.f32.mxu0 %vm700_vm5, %v17420_v9 }
 0x445   : > { %v25526_v27 = vpop.f32.mrb[8].mxu1 }
 0x446   : > { %v25528_v28 = vpop.f32.mrb[9].mxu1 }
 0x447   : > { %20521 = vmatmul.mubr.msk.f32.gmra.mrb[34].mxu0 %vm700_vm5, %v17421_v13 }
 0x448   : > { %20523 = vmatprep.mubr.msk.f32.mxu0 %vm700_vm5, %v17422_v18 }
 0x449   : > { %v25540_v32 = vpop.f32.mrb[10].mxu1 }
 0x44a   : > { %v25542_v35 = vpop.f32.mrb[11].mxu1 }
 0x44b   : > { %20524 = vmatmul.mubr.msk.f32.gmra.mrb[36].mxu0 %vm700_vm5, %v17423_v2 }
 0x44c   : > { %20526 = vmatprep.mubr.msk.f32.mxu0 %vm700_vm5, %v17424_v16 }
 0x44d   : > { %v25548_v40 = vpop.f32.mrb[12].mxu1 }
 0x44e   : > { %v25550_v42 = vpop.f32.mrb[13].mxu1 }
 0x44f   : > { %20527 = vmatmul.mubr.msk.f32.gmra.mrb[38].mxu0 %vm700_vm5, %v17425_v3 }
 0x450   : > { %20529 = vmatprep.mubr.msk.f32.mxu0 %vm700_vm5, %v17426_v20 }
 0x451   : > { %v25558_v46 = vpop.f32.mrb[14].mxu1 }
 0x452   : > { %v25560_v47 = vpop.f32.mrb[15].mxu1 }
 0x453   : > { %20530 = vmatmul.mubr.msk.f32.gmra.mrb[40].mxu0 %vm700_vm5, %v17427_v21 }
 0x454   : > { %20532 = vmatprep.mubr.msk.f32.mxu0 %vm700_vm5, %v17428_v22 }
 0x455   : > { %v25566_v49 = vpop.f32.mrb[16].mxu1 }
 0x456   : > { %v25568_v50 = vpop.f32.mrb[17].mxu1 }
 0x457   : > { %20533 = vmatmul.mubr.msk.f32.gmra.mrb[42].mxu0 %vm700_vm5, %v17429_v23 }
 0x458   : > { %20535 = vmatprep.mubr.msk.f32.mxu0 %vm700_vm5, %v17430_v24 }
 0x459   : > { %v25574_v33 = vpop.f32.mrb[18].mxu1 }
 0x45a   : > { %v25576_v54 = vpop.f32.mrb[19].mxu1 }
 0x45b   : > { %20536 = vmatmul.mubr.msk.f32.gmra.mrb[44].mxu0 %vm700_vm5, %v17431_v25 }
 0x45c   : > { %20538 = vmatprep.mubr.msk.f32.mxu0 %vm700_vm5, %v17432_v26 }
 0x45d   : > { %v25582_v57 = vpop.f32.mrb[20].mxu1 }
 0x45e   : > { %v25584_v38 = vpop.f32.mrb[21].mxu1 }
 0x45f   : > { %20539 = vmatmul.mubr.msk.f32.gmra.mrb[46].mxu0 %vm700_vm5, %v17433_v29 }
 0x460   : > { %20541 = vmatprep.mubr.msk.f32.mxu0 %vm700_vm5, %v17434_v31 }
 0x461   : > { %v25590_v6 = vpop.f32.mrb[22].mxu1 }
 0x462   : > { %v25592_v10 = vpop.f32.mrb[23].mxu1 }
 0x463   : > { %20542 = vmatmul.mubr.msk.f32.gmra.mrb[48].mxu0 %vm700_vm5, %v17435_v36 }
 0x464   : > { %20544 = vmatprep.mubr.msk.f32.mxu0 %vm700_vm5, %v17436_v39 }
 0x465   : > { %v25598_v0 = vpop.f32.mrb[24].mxu1 }
 0x466   : > { %v25600_v52 = vpop.f32.mrb[25].mxu1 }
 0x467   : > { %20545 = vmatmul.mubr.msk.f32.gmra.mrb[50].mxu0 %vm700_vm5, %v17437_v44 }
 0x468   : > { %20547 = vmatprep.mubr.msk.f32.mxu0 %vm700_vm5, %v17438_v45  ;;  %v21792_v45 = vpack.c.bf16 %v7100_v43, %v7099_v41 }
 0x469   : > { %v25605_v61 = vpop.f32.mrb[26].mxu1 }
 0x46a   : > { %v25607_v55 = vpop.f32.mrb[27].mxu1  ;;  %21793 = vmatprep.subr.bf16.mxu1 %v21792_v45 }
 0x46b   : > { %20548 = vmatmul.mubr.msk.f32.gmra.mrb[52].mxu0 %vm700_vm5, %v17439_v48  ;;  %21795 = vmatpush3.bf16.msra.mxu1 %v21792_v45 }
 0x46c   : > { %20550 = vmatprep.mubr.msk.f32.mxu0 %vm700_vm5, %v17440_v5 }
 0x46d   : > { %v25610_v17 = vpop.f32.mrb[28].mxu1 }
 0x46e   : > { %v25612_v9 = vpop.f32.mrb[29].mxu1 }
 0x46f   : > { %20551 = vmatmul.mubr.msk.f32.gmra.mrb[54].mxu0 %vm700_vm5, %v17441_v4 }
 0x470   : > { %20553 = vmatprep.mubr.msk.f32.mxu0 %vm700_vm5, %v17442_v51 }
 0x471   : > { %v25614_v13 = vpop.f32.mrb[30].mxu1 }
 0x472   : > { %v25616_v18 = vpop.f32.mrb[31].mxu1 }
 0x473   : > { %20554 = vmatmul.mubr.msk.f32.gmra.mrb[56].mxu0 %vm700_vm5, %v17443_v37 }
 0x474   : > { %20556 = vmatprep.mubr.msk.f32.mxu0 %vm700_vm5, %v17444_v56 }
 0x475   : > { %v25618_v2 = vpop.f32.mrb[32].mxu1 }
 0x476   : > { %v25620_v16 = vpop.f32.mrb[33].mxu1 }
 0x477   : > { %20557 = vmatmul.mubr.msk.f32.gmra.mrb[58].mxu0 %vm700_vm5, %v17445_v58 }
 0x478   : > { %20559 = vmatprep.mubr.msk.f32.mxu0 %vm700_vm5, %v17446_v59 }
 0x479   : > { %v25622_v3 = vpop.f32.mrb[34].mxu1 }
 0x47a   : > { %v25624_v20 = vpop.f32.mrb[35].mxu1 }
 0x47b   : > { %20560 = vmatmul.mubr.msk.f32.gmra.mrb[60].mxu0 %vm700_vm5, %v17447_v60 }
 0x47c   : > { %20562 = vmatprep.mubr.msk.f32.mxu0 %vm700_vm5, %v17448_v63 }
 0x47d   : > { %v25626_v21 = vpop.f32.mrb[36].mxu1 }
 0x47e   : > { %v25628_v22 = vpop.f32.mrb[37].mxu1 }
 0x47f   : > { %20563 = vmatmul.mubr.msk.f32.gmra.mrb[62].mxu0 %vm700_vm5, %v17449_v7 }
 0x481   : > { %v25630_v23 = vpop.f32.mrb[38].mxu1 }
 0x482   : > { %v25632_v24 = vpop.f32.mrb[39].mxu1 }
 0x485   : > { %v25634_v25 = vpop.f32.mrb[40].mxu1 }
 0x486   : > { %v25636_v26 = vpop.f32.mrb[41].mxu1 }
 0x489   : > { %v25638_v29 = vpop.f32.mrb[42].mxu1 }
 0x48a   : > { %v25640_v30 = vpop.f32.mrb[43].mxu1 }
 0x48d   : > { %v25642_v53 = vpop.f32.mrb[44].mxu1 }
 0x48e   : > { %v25644_v31 = vpop.f32.mrb[45].mxu1 }
 0x491   : > { %v25646_v34 = vpop.f32.mrb[46].mxu1 }
 0x492   : > { %v25648_v36 = vpop.f32.mrb[47].mxu1 }
 0x495   : > { %v25650_v39 = vpop.f32.mrb[48].mxu1 }
 0x496   : > { %v25658_v44 = vpop.f32.mrb[49].mxu1 }
 0x499   : > { %v25660_v48 = vpop.f32.mrb[50].mxu1 }
 0x49a   : > { %28051 = vst [vmem:[#allocation10_spill] sm:$0xff] %v25660_v48  ;;  %v25662_v5 = vpop.f32.mrb[51].mxu1 }
 0x49b   : > { %28052 = vst [vmem:[#allocation11_spill] sm:$0xff] %v25662_v5 }
 0x49d   : > { %v25664_v4 = vpop.f32.mrb[52].mxu1 }
 0x49e   : > { %28053 = vst [vmem:[#allocation12_spill] sm:$0xff] %v25664_v4  ;;  %v25666_v51 = vpop.f32.mrb[53].mxu1 }
 0x49f   : > { %28054 = vst [vmem:[#allocation13_spill] sm:$0xff] %v25666_v51 }
 0x4a1   : > { %v25668_v37 = vpop.f32.mrb[54].mxu1 }
 0x4a2   : > { %28055 = vst [vmem:[#allocation14_spill] sm:$0xff] %v25668_v37  ;;  %v25670_v56 = vpop.f32.mrb[55].mxu1 }
 0x4a3   : > { %28056 = vst [vmem:[#allocation15_spill] sm:$0xff] %v25670_v56  ;;  %v25691_v56 = vld [vmem:[%s27739_s2] ss:$0 sm:$0xff] }
 0x4a5   : > { %v25672_v58 = vpop.f32.mrb[56].mxu1 }
 0x4a6   : > { %28057 = vst [vmem:[#allocation16_spill] sm:$0xff] %v25672_v58  ;;  %v25674_v59 = vpop.f32.mrb[57].mxu1 }
 0x4a7   : > { %28058 = vst [vmem:[#allocation17_spill] sm:$0xff] %v25674_v59 }
 0x4b5   : > { %v25676_v60 = vpop.f32.mrb[58].mxu1 }
 0x4b6   : > { %28059 = vst [vmem:[#allocation18_spill] sm:$0xff] %v25676_v60  ;;  %v25678_v63 = vpop.f32.mrb[59].mxu1 }
 0x4b7   : > { %28060 = vst [vmem:[#allocation19_spill] sm:$0xff] %v25678_v63 }
 0x4b9   : > { %v25680_v7 = vpop.f32.mrb[60].mxu1 }
 0x4ba   : > { %28061 = vst [vmem:[#allocation20_spill] sm:$0xff] %v25680_v7  ;;  %v25682_v41 = vpop.f32.mrb[61].mxu1 }
 0x4bb   : > { %28062 = vst [vmem:[#allocation21_spill] sm:$0xff] %v25682_v41 }
 0x4bd   : > { %v25684_v43 = vpop.f32.mrb[62].mxu1 }
 0x4be   : > { %28063 = vst [vmem:[#allocation22_spill] sm:$0xff] %v25684_v43  ;;  %v25686_v45 = vpop.f32.mrb[63].mxu1 }
 0x4bf   : > { %28064 = vst [vmem:[#allocation23_spill] sm:$0xff] %v25686_v45 }
 0x4d6   : > { %v20471_v51 = vpop.f32.mrb[0].mxu0 }
 0x4d7   : > { %v21930_v59 = vadd.f32 %v20471_v51, %v25482_v1  ;;  %v6451_v58 = vpop.f32.mrb[1].mxu0 }
 0x4d8   : > { %v21931_v60 = vadd.f32 %v6451_v58, %v25484_v8 }
 0x4d9   : > { %v6842_v63 = vadd.f32 %v21930_v59, %v25691_v56 }
 0x4da   : > { %v6841_v7 = vadd.f32 %v21931_v60, %v25691_v56  ;;  %v20474_v41 = vpop.f32.mrb[2].mxu0 }
 0x4db   : > { %v6906_v37 = vmax.f32 %v6842_v63, 0.0  ;;  %v21932_v43 = vadd.f32 %v20474_v41, %v25490_v11  ;;  %v6461_v45 = vpop.f32.mrb[3].mxu0 }
 0x4dc   : > { %v6905_v4 = vmax.f32 %v6841_v7, 0.0  ;;  %v21933_v5 = vadd.f32 %v6461_v45, %v25492_v12 }
 0x4dd   : > { %6972 = vst.msk [vmem:[#allocation2 + $0x30] sm:$0xff] %vm6970_vm6, %v6906_v37  ;;  %v6844_v48 = vadd.f32 %v21932_v43, %v25691_v56 }
 0x4de   : > { %6971 = vst.msk [vmem:[#allocation2 + $0x28] sm:$0xff] %vm6970_vm6, %v6905_v4  ;;  %v6843_v1 = vadd.f32 %v21933_v5, %v25691_v56  ;;  %v20477_v8 = vpop.f32.mrb[4].mxu0 }
 0x4df   : > { %v6908_v51 = vmax.f32 %v6844_v48, 0.0  ;;  %v21934_v58 = vadd.f32 %v20477_v8, %v25498_v14  ;;  %v6471_v59 = vpop.f32.mrb[5].mxu0 }
 0x4e0   : > { %v6907_v60 = vmax.f32 %v6843_v1, 0.0  ;;  %v21935_v11 = vadd.f32 %v6471_v59, %v25500_v15 }
 0x4e1   : > { %6974 = vst.msk [vmem:[#allocation2 + $0x50] sm:$0xff] %vm6970_vm6, %v6908_v51  ;;  %v6846_v12 = vadd.f32 %v21934_v58, %v25691_v56 }
 0x4e2   : > { %6973 = vst.msk [vmem:[#allocation2 + $0x48] sm:$0xff] %vm6970_vm6, %v6907_v60  ;;  %v6845_v37 = vadd.f32 %v21935_v11, %v25691_v56  ;;  %v20480_v63 = vpop.f32.mrb[6].mxu0 }
 0x4e3   : > { %v6910_v4 = vmax.f32 %v6846_v12, 0.0  ;;  %v21936_v5 = vadd.f32 %v20480_v63, %v25506_v62  ;;  %v6481_v7 = vpop.f32.mrb[7].mxu0 }
 0x4e4   : > { %v6909_v48 = vmax.f32 %v6845_v37, 0.0  ;;  %v21937_v14 = vadd.f32 %v6481_v7, %v25508_v19  ;;  %v7104_v1 = vld [vmem:[#allocation2 + $0x30] sm:$0xff] }
 0x4e5   : > { %6976 = vst.msk [vmem:[#allocation2 + $0x70] sm:$0xff] %vm6970_vm6, %v6910_v4  ;;  %v6848_v15 = vadd.f32 %v21936_v5, %v25691_v56  ;;  %v7103_v41 = vld [vmem:[#allocation2 + $0x28] sm:$0xff] }
 0x4e6   : > { %6975 = vst.msk [vmem:[#allocation2 + $0x68] sm:$0xff] %vm6970_vm6, %v6909_v48  ;;  %v6847_v43 = vadd.f32 %v21937_v14, %v25691_v56  ;;  %v20483_v45 = vpop.f32.mrb[8].mxu0  ;;  %20572 = vmatprep.mubr.msk.f32.mxu1 %vm6970_vm6, %v7103_v41 }
 0x4e7   : > { %v6912_v8 = vmax.f32 %v6848_v15, 0.0  ;;  %v21938_v62 = vadd.f32 %v20483_v45, %v25526_v27  ;;  %v6491_v51 = vpop.f32.mrb[9].mxu0  ;;  %20573 = vmatmul.mubr.msk.f32.gmra.mrb[66].mxu1 %vm6970_vm6, %v7104_v1 }
 0x4e8   : > { %v6911_v19 = vmax.f32 %v6847_v43, 0.0  ;;  %v21939_v58 = vadd.f32 %v6491_v51, %v25528_v28  ;;  %v7106_v37 = vld [vmem:[#allocation2 + $0x50] sm:$0xff] }
 0x4e9   : > { %6978 = vst.msk [vmem:[#allocation2 + $0x90] sm:$0xff] %vm6970_vm6, %v6912_v8  ;;  %v6850_v59 = vadd.f32 %v21938_v62, %v25691_v56  ;;  %v7105_v60 = vld [vmem:[#allocation2 + $0x48] sm:$0xff] }
 0x4ea   : > { %6977 = vst.msk [vmem:[#allocation2 + $0x88] sm:$0xff] %vm6970_vm6, %v6911_v19  ;;  %v6849_v11 = vadd.f32 %v21939_v58, %v25691_v56  ;;  %v20486_v12 = vpop.f32.mrb[10].mxu0  ;;  %20575 = vmatprep.mubr.msk.f32.mxu1 %vm6970_vm6, %v7105_v60 }
 0x4eb   : > { %v6914_v27 = vmax.f32 %v6850_v59, 0.0  ;;  %v21940_v63 = vadd.f32 %v20486_v12, %v25540_v32  ;;  %v6501_v4 = vpop.f32.mrb[11].mxu0  ;;  %20576 = vmatmul.mubr.msk.f32.gmra.mrb[68].mxu1 %vm6970_vm6, %v7106_v37 }
 0x4ec   : > { %v6913_v28 = vmax.f32 %v6849_v11, 0.0  ;;  %v21941_v5 = vadd.f32 %v6501_v4, %v25542_v35  ;;  %v7108_v41 = vld [vmem:[#allocation2 + $0x70] sm:$0xff] }
 0x4ed   : > { %6980 = vst.msk [vmem:[#allocation2 + $0xb0] sm:$0xff] %vm6970_vm6, %v6914_v27  ;;  %v6852_v7 = vadd.f32 %v21940_v63, %v25691_v56  ;;  %v7107_v48 = vld [vmem:[#allocation2 + $0x68] sm:$0xff] }
 0x4ee   : > { %6979 = vst.msk [vmem:[#allocation2 + $0xa8] sm:$0xff] %vm6970_vm6, %v6913_v28  ;;  %v6851_v14 = vadd.f32 %v21941_v5, %v25691_v56  ;;  %v20489_v15 = vpop.f32.mrb[12].mxu0  ;;  %20578 = vmatprep.mubr.msk.f32.mxu1 %vm6970_vm6, %v7107_v48 }
 0x4ef   : > { %v6916_v32 = vmax.f32 %v6852_v7, 0.0  ;;  %v21942_v43 = vadd.f32 %v20489_v15, %v25548_v40  ;;  %v6511_v45 = vpop.f32.mrb[13].mxu0  ;;  %20579 = vmatmul.mubr.msk.f32.gmra.mrb[70].mxu1 %vm6970_vm6, %v7108_v41 }
 0x4f0   : > { %v6915_v35 = vmax.f32 %v6851_v14, 0.0  ;;  %v21943_v1 = vadd.f32 %v6511_v45, %v25550_v42  ;;  %v7110_v58 = vld [vmem:[#allocation2 + $0x90] sm:$0xff] }
 0x4f1   : > { %6982 = vst.msk [vmem:[#allocation2 + $0xd0] sm:$0xff] %vm6970_vm6, %v6916_v32  ;;  %v6854_v8 = vadd.f32 %v21942_v43, %v25691_v56  ;;  %v7109_v62 = vld [vmem:[#allocation2 + $0x88] sm:$0xff] }
 0x4f2   : > { %6981 = vst.msk [vmem:[#allocation2 + $0xc8] sm:$0xff] %vm6970_vm6, %v6915_v35  ;;  %v6853_v51 = vadd.f32 %v21943_v1, %v25691_v56  ;;  %v20492_v19 = vpop.f32.mrb[14].mxu0  ;;  %20581 = vmatprep.mubr.msk.f32.mxu1 %vm6970_vm6, %v7109_v62 }
 0x4f3   : > { %v6918_v40 = vmax.f32 %v6854_v8, 0.0  ;;  %v21944_v59 = vadd.f32 %v20492_v19, %v25558_v46  ;;  %v6521_v60 = vpop.f32.mrb[15].mxu0  ;;  %20582 = vmatmul.mubr.msk.f32.gmra.mrb[72].mxu1 %vm6970_vm6, %v7110_v58 }
 0x4f4   : > { %v6917_v42 = vmax.f32 %v6853_v51, 0.0  ;;  %v21945_v11 = vadd.f32 %v6521_v60, %v25560_v47  ;;  %v7112_v4 = vld [vmem:[#allocation2 + $0xb0] sm:$0xff] }
 0x4f5   : > { %6984 = vst.msk [vmem:[#allocation2 + $0xf0] sm:$0xff] %vm6970_vm6, %v6918_v40  ;;  %v6856_v12 = vadd.f32 %v21944_v59, %v25691_v56  ;;  %v7111_v37 = vld [vmem:[#allocation2 + $0xa8] sm:$0xff] }
 0x4f6   : > { %6983 = vst.msk [vmem:[#allocation2 + $0xe8] sm:$0xff] %vm6970_vm6, %v6917_v42  ;;  %v6855_v27 = vadd.f32 %v21945_v11, %v25691_v56  ;;  %v20495_v63 = vpop.f32.mrb[16].mxu0  ;;  %20584 = vmatprep.mubr.msk.f32.mxu1 %vm6970_vm6, %v7111_v37 }
 0x4f7   : > { %v6920_v46 = vmax.f32 %v6856_v12, 0.0  ;;  %v21946_v28 = vadd.f32 %v20495_v63, %v25566_v49  ;;  %v6531_v5 = vpop.f32.mrb[17].mxu0  ;;  %20585 = vmatmul.mubr.msk.f32.gmra.mrb[74].mxu1 %vm6970_vm6, %v7112_v4 }
 0x4f8   : > { %v6919_v47 = vmax.f32 %v6855_v27, 0.0  ;;  %v21947_v7 = vadd.f32 %v6531_v5, %v25568_v50  ;;  %v7114_v32 = vld [vmem:[#allocation2 + $0xd0] sm:$0xff] }
 0x4f9   : > { %6986 = vst.msk [vmem:[#allocation2 + $0x110] sm:$0xff] %vm6970_vm6, %v6920_v46  ;;  %v6858_v48 = vadd.f32 %v21946_v28, %v25691_v56  ;;  %v7113_v14 = vld [vmem:[#allocation2 + $0xc8] sm:$0xff] }
 0x4fa   : > { %6985 = vst.msk [vmem:[#allocation2 + $0x108] sm:$0xff] %vm6970_vm6, %v6919_v47  ;;  %v6857_v15 = vadd.f32 %v21947_v7, %v25691_v56  ;;  %v20498_v41 = vpop.f32.mrb[18].mxu0  ;;  %20587 = vmatprep.mubr.msk.f32.mxu1 %vm6970_vm6, %v7113_v14 }
 0x4fb   : > { %v6922_v49 = vmax.f32 %v6858_v48, 0.0  ;;  %v21948_v43 = vadd.f32 %v20498_v41, %v25574_v33  ;;  %v6541_v45 = vpop.f32.mrb[19].mxu0  ;;  %20588 = vmatmul.mubr.msk.f32.gmra.mrb[76].mxu1 %vm6970_vm6, %v7114_v32 }
 0x4fc   : > { %v6921_v50 = vmax.f32 %v6857_v15, 0.0  ;;  %v21949_v35 = vadd.f32 %v6541_v45, %v25576_v54  ;;  %v7116_v19 = vld [vmem:[#allocation2 + $0xf0] sm:$0xff] }
 0x4fd   : > { %6988 = vst.msk [vmem:[#allocation2 + $0x130] sm:$0xff] %vm6970_vm6, %v6922_v49  ;;  %v6860_v1 = vadd.f32 %v21948_v43, %v25691_v56  ;;  %v7115_v8 = vld [vmem:[#allocation2 + $0xe8] sm:$0xff] }
 0x4fe   : > { %6987 = vst.msk [vmem:[#allocation2 + $0x128] sm:$0xff] %vm6970_vm6, %v6921_v50  ;;  %v6859_v62 = vadd.f32 %v21949_v35, %v25691_v56  ;;  %v20501_v51 = vpop.f32.mrb[20].mxu0  ;;  %20590 = vmatprep.mubr.msk.f32.mxu1 %vm6970_vm6, %v7115_v8 }
 0x4ff   : > { %v6924_v33 = vmax.f32 %v6860_v1, 0.0  ;;  %v21950_v58 = vadd.f32 %v20501_v51, %v25582_v57  ;;  %v6551_v40 = vpop.f32.mrb[21].mxu0  ;;  %20591 = vmatmul.mubr.msk.f32.gmra.mrb[78].mxu1 %vm6970_vm6, %v7116_v19 }
 0x500   : > { %v6923_v54 = vmax.f32 %v6859_v62, 0.0  ;;  %v21951_v59 = vadd.f32 %v6551_v40, %v25584_v38  ;;  %v7118_v37 = vld [vmem:[#allocation2 + $0x110] sm:$0xff] }
 0x501   : > { %6990 = vst.msk [vmem:[#allocation2 + $0x150] sm:$0xff] %vm6970_vm6, %v6924_v33  ;;  %v6862_v60 = vadd.f32 %v21950_v58, %v25691_v56  ;;  %v7117_v42 = vld [vmem:[#allocation2 + $0x108] sm:$0xff] }
 0x502   : > { %6989 = vst.msk [vmem:[#allocation2 + $0x148] sm:$0xff] %vm6970_vm6, %v6923_v54  ;;  %v6861_v11 = vadd.f32 %v21951_v59, %v25691_v56  ;;  %v20504_v12 = vpop.f32.mrb[22].mxu0  ;;  %20593 = vmatprep.mubr.msk.f32.mxu1 %vm6970_vm6, %v7117_v42 }
 0x503   : > { %v6926_v57 = vmax.f32 %v6862_v60, 0.0  ;;  %v21952_v27 = vadd.f32 %v20504_v12, %v25590_v6  ;;  %v6561_v63 = vpop.f32.mrb[23].mxu0  ;;  %20594 = vmatmul.mubr.msk.f32.gmra.mrb[80].mxu1 %vm6970_vm6, %v7118_v37 }
 0x504   : > { %v6925_v38 = vmax.f32 %v6861_v11, 0.0  ;;  %v21953_v4 = vadd.f32 %v6561_v63, %v25592_v10  ;;  %v7120_v7 = vld [vmem:[#allocation2 + $0x130] sm:$0xff] }
 0x505   : > { %6992 = vst.msk [vmem:[#allocation2 + $0x170] sm:$0xff] %vm6970_vm6, %v6926_v57  ;;  %v6864_v46 = vadd.f32 %v21952_v27, %v25691_v56  ;;  %v7119_v28 = vld [vmem:[#allocation2 + $0x128] sm:$0xff] }
 0x506   : > { %6991 = vst.msk [vmem:[#allocation2 + $0x168] sm:$0xff] %vm6970_vm6, %v6925_v38  ;;  %v6863_v5 = vadd.f32 %v21953_v4, %v25691_v56  ;;  %v20507_v47 = vpop.f32.mrb[24].mxu0  ;;  %20596 = vmatprep.mubr.msk.f32.mxu1 %vm6970_vm6, %v7119_v28 }
 0x507   : > { %v6928_v6 = vmax.f32 %v6864_v46, 0.0  ;;  %v21954_v48 = vadd.f32 %v20507_v47, %v25598_v0  ;;  %v6571_v14 = vpop.f32.mrb[25].mxu0  ;;  %20597 = vmatmul.mubr.msk.f32.gmra.mrb[82].mxu1 %vm6970_vm6, %v7120_v7 }
 0x508   : > { %v6927_v10 = vmax.f32 %v6863_v5, 0.0  ;;  %v21955_v15 = vadd.f32 %v6571_v14, %v25600_v52  ;;  %v7122_v45 = vld [vmem:[#allocation2 + $0x150] sm:$0xff] }
 0x509   : > { %6994 = vst.msk [vmem:[#allocation2 + $0x190] sm:$0xff] %vm6970_vm6, %v6928_v6  ;;  %v6866_v41 = vadd.f32 %v21954_v48, %v25691_v56  ;;  %v7121_v32 = vld [vmem:[#allocation2 + $0x148] sm:$0xff] }
 0x50a   : > { %6993 = vst.msk [vmem:[#allocation2 + $0x188] sm:$0xff] %vm6970_vm6, %v6927_v10  ;;  %v6865_v49 = vadd.f32 %v21955_v15, %v25691_v56  ;;  %v20510_v43 = vpop.f32.mrb[26].mxu0  ;;  %20599 = vmatprep.mubr.msk.f32.mxu1 %vm6970_vm6, %v7121_v32 }
 0x50b   : > { %v6930_v0 = vmax.f32 %v6866_v41, 0.0  ;;  %v21956_v50 = vadd.f32 %v20510_v43, %v25605_v61  ;;  %v6581_v35 = vpop.f32.mrb[27].mxu0  ;;  %20600 = vmatmul.mubr.msk.f32.gmra.mrb[84].mxu1 %vm6970_vm6, %v7122_v45 }
 0x50c   : > { %v6929_v52 = vmax.f32 %v6865_v49, 0.0  ;;  %v21957_v1 = vadd.f32 %v6581_v35, %v25607_v55  ;;  %v7124_v33 = vld [vmem:[#allocation2 + $0x170] sm:$0xff] }
 0x50d   : > { %6996 = vst.msk [vmem:[#allocation2 + $0x1b0] sm:$0xff] %vm6970_vm6, %v6930_v0  ;;  %v6868_v8 = vadd.f32 %v21956_v50, %v25691_v56  ;;  %v7123_v62 = vld [vmem:[#allocation2 + $0x168] sm:$0xff] }
 0x50e   : > { %6995 = vst.msk [vmem:[#allocation2 + $0x1a8] sm:$0xff] %vm6970_vm6, %v6929_v52  ;;  %v6867_v51 = vadd.f32 %v21957_v1, %v25691_v56  ;;  %v20513_v19 = vpop.f32.mrb[28].mxu0  ;;  %20602 = vmatprep.mubr.msk.f32.mxu1 %vm6970_vm6, %v7123_v62  ;;  %v7133_v0 = vld [vmem:[#allocation2 + $0x248] sm:$0xff] }
 0x50f   : > { %v6932_v61 = vmax.f32 %v6868_v8, 0.0  ;;  %v21958_v58 = vadd.f32 %v20513_v19, %v25610_v17  ;;  %v6591_v40 = vpop.f32.mrb[29].mxu0  ;;  %20603 = vmatmul.mubr.msk.f32.gmra.mrb[86].mxu1 %vm6970_vm6, %v7124_v33 }
 0x510   : > { %v6931_v55 = vmax.f32 %v6867_v51, 0.0  ;;  %v21959_v54 = vadd.f32 %v6591_v40, %v25612_v9  ;;  %v7126_v12 = vld [vmem:[#allocation2 + $0x190] sm:$0xff] }
 0x511   : > { %6998 = vst.msk [vmem:[#allocation2 + $0x1d0] sm:$0xff] %vm6970_vm6, %v6932_v61  ;;  %v6870_v59 = vadd.f32 %v21958_v58, %v25691_v56  ;;  %v7125_v60 = vld [vmem:[#allocation2 + $0x188] sm:$0xff]  ;;  %v7134_v51 = vld [vmem:[#allocation2 + $0x250] sm:$0xff] }
 0x512   : > { %6997 = vst.msk [vmem:[#allocation2 + $0x1c8] sm:$0xff] %vm6970_vm6, %v6931_v55  ;;  %v6869_v42 = vadd.f32 %v21959_v54, %v25691_v56  ;;  %v20516_v11 = vpop.f32.mrb[30].mxu0  ;;  %20605 = vmatprep.mubr.msk.f32.mxu1 %vm6970_vm6, %v7125_v60  ;;  %v17648_v55 = vld [vmem:[%s27740_s3 + $0x28] sm:$0xff] }
 0x513   : > { %v6934_v17 = vmax.f32 %v6870_v59, 0.0  ;;  %v21960_v37 = vadd.f32 %v20516_v11, %v25614_v13  ;;  %v6601_v57 = vpop.f32.mrb[31].mxu0  ;;  %20606 = vmatmul.mubr.msk.f32.gmra.mrb[88].mxu1 %vm6970_vm6, %v7126_v12 }
 0x514   : > { %v6933_v9 = vmax.f32 %v6869_v42, 0.0  ;;  %v21961_v27 = vadd.f32 %v6601_v57, %v25616_v18  ;;  %v7128_v28 = vld [vmem:[#allocation2 + $0x1b0] sm:$0xff] }
 0x515   : > { %7000 = vst.msk [vmem:[#allocation2 + $0x1f0] sm:$0xff] %vm6970_vm6, %v6934_v17  ;;  %v6872_v63 = vadd.f32 %v21960_v37, %v25691_v56  ;;  %v7127_v38 = vld [vmem:[#allocation2 + $0x1a8] sm:$0xff] }
 0x516   : > { %6999 = vst.msk [vmem:[#allocation2 + $0x1e8] sm:$0xff] %vm6970_vm6, %v6933_v9  ;;  %v6871_v4 = vadd.f32 %v21961_v27, %v25691_v56  ;;  %v20519_v46 = vpop.f32.mrb[32].mxu0  ;;  %20608 = vmatprep.mubr.msk.f32.mxu1 %vm6970_vm6, %v7127_v38 }
 0x517   : > { %v6936_v13 = vmax.f32 %v6872_v63, 0.0  ;;  %v21962_v5 = vadd.f32 %v20519_v46, %v25618_v2  ;;  %v6611_v47 = vpop.f32.mrb[33].mxu0  ;;  %20609 = vmatmul.mubr.msk.f32.gmra.mrb[90].mxu1 %vm6970_vm6, %v7128_v28 }
 0x518   : > { %v6935_v18 = vmax.f32 %v6871_v4, 0.0  ;;  %v21963_v7 = vadd.f32 %v6611_v47, %v25620_v16  ;;  %v7130_v15 = vld [vmem:[#allocation2 + $0x1d0] sm:$0xff] }
 0x519   : > { %7002 = vst.msk [vmem:[#allocation2 + $0x210] sm:$0xff] %vm6970_vm6, %v6936_v13  ;;  %v6874_v6 = vadd.f32 %v21962_v5, %v25691_v56  ;;  %v7129_v48 = vld [vmem:[#allocation2 + $0x1c8] sm:$0xff] }
 0x51a   : > { %7001 = vst.msk [vmem:[#allocation2 + $0x208] sm:$0xff] %vm6970_vm6, %v6935_v18  ;;  %v6873_v14 = vadd.f32 %v21963_v7, %v25691_v56  ;;  %v20522_v10 = vpop.f32.mrb[34].mxu0  ;;  %20611 = vmatprep.mubr.msk.f32.mxu1 %vm6970_vm6, %v7129_v48 }
 0x51b   : > { %v6938_v2 = vmax.f32 %v6874_v6, 0.0  ;;  %v21964_v41 = vadd.f32 %v20522_v10, %v25622_v3  ;;  %v6621_v32 = vpop.f32.mrb[35].mxu0  ;;  %20612 = vmatmul.mubr.msk.f32.gmra.mrb[92].mxu1 %vm6970_vm6, %v7130_v15 }
 0x51c   : > { %v6937_v16 = vmax.f32 %v6873_v14, 0.0  ;;  %v21965_v49 = vadd.f32 %v6621_v32, %v25624_v20  ;;  %v7132_v3 = vld [vmem:[#allocation2 + $0x1f0] sm:$0xff] }
 0x51d   : > { %7004 = vst.msk [vmem:[#allocation2 + $0x270] sm:$0xff] %vm6970_vm6, %v6938_v2  ;;  %v6876_v43 = vadd.f32 %v21964_v41, %v25691_v56  ;;  %v7131_v45 = vld [vmem:[#allocation2 + $0x1e8] sm:$0xff] }
 0x51e   : > { %7003 = vst.msk [vmem:[#allocation2 + $0x268] sm:$0xff] %vm6970_vm6, %v6937_v16  ;;  %v6875_v50 = vadd.f32 %v21965_v49, %v25691_v56  ;;  %v20525_v35 = vpop.f32.mrb[36].mxu0  ;;  %20614 = vmatprep.mubr.msk.f32.mxu1 %vm6970_vm6, %v7131_v45 }
 0x51f   : > { %v6940_v52 = vmax.f32 %v6876_v43, 0.0  ;;  %v21966_v1 = vadd.f32 %v20525_v35, %v25626_v21  ;;  %v6631_v8 = vpop.f32.mrb[37].mxu0  ;;  %20615 = vmatmul.mubr.msk.f32.gmra.mrb[94].mxu1 %vm6970_vm6, %v7132_v3 }
 0x520   : > { %v6939_v20 = vmax.f32 %v6875_v50, 0.0  ;;  %v21967_v62 = vadd.f32 %v6631_v8, %v25628_v22  ;;  %20617 = vmatprep.mubr.msk.f32.mxu1 %vm6970_vm6, %v7133_v0  ;;  %v17647_v22 = vld [vmem:[%s27740_s3 + $0x20] sm:$0xff] }
 0x521   : > { %7006 = vst.msk [vmem:[#allocation2 + $0x290] sm:$0xff] %vm6970_vm6, %v6940_v52  ;;  %v6878_v19 = vadd.f32 %v21966_v1, %v25691_v56  ;;  %v25845_v60 = vpack.c.bf16 %v17648_v55, %v17647_v22 }
 0x522   : > { %7005 = vst.msk [vmem:[#allocation2 + $0x288] sm:$0xff] %vm6970_vm6, %v6939_v20  ;;  %v6877_v33 = vadd.f32 %v21967_v62, %v25691_v56  ;;  %v20528_v61 = vpop.f32.mrb[38].mxu0 }
 0x523   : > { %v6942_v58 = vmax.f32 %v6878_v19, 0.0  ;;  %v21968_v21 = vadd.f32 %v20528_v61, %v25630_v23  ;;  %v6641_v40 = vpop.f32.mrb[39].mxu0  ;;  %20618 = vmatmul.mubr.msk.f32.gmra.mrb[96].mxu1 %vm6970_vm6, %v7134_v51  ;;  %21797 = vmatprep.subr.bf16.mxu1 %v25845_v60 }
 0x524   : > { %v6941_v54 = vmax.f32 %v6877_v33, 0.0  ;;  %v21969_v59 = vadd.f32 %v6641_v40, %v25632_v24  ;;  %v7136_v17 = vld [vmem:[#allocation2 + $0x270] sm:$0xff] }
 0x525   : > { %7008 = vst.msk [vmem:[#allocation2 + $0x2b0] sm:$0xff] %vm6970_vm6, %v6942_v58  ;;  %v6880_v23 = vadd.f32 %v21968_v21, %v25691_v56  ;;  %v7135_v42 = vld [vmem:[#allocation2 + $0x268] sm:$0xff]  ;;  %v28065_v40 = vld [vmem:[#allocation10_spill] sm:$0xff] }
 0x526   : > { %7007 = vst.msk [vmem:[#allocation2 + $0x2a8] sm:$0xff] %vm6970_vm6, %v6941_v54  ;;  %v6879_v11 = vadd.f32 %v21969_v59, %v25691_v56  ;;  %v20531_v12 = vpop.f32.mrb[40].mxu0  ;;  %20620 = vmatprep.mubr.msk.f32.mxu1 %vm6970_vm6, %v7135_v42  ;;  %v28066_v54 = vld [vmem:[#allocation11_spill] sm:$0xff] }
 0x527   : > { %v6944_v37 = vmax.f32 %v6880_v23, 0.0  ;;  %v21970_v24 = vadd.f32 %v20531_v12, %v25634_v25  ;;  %v6651_v57 = vpop.f32.mrb[41].mxu0  ;;  %20621 = vmatmul.mubr.msk.f32.gmra.mrb[98].mxu1 %vm6970_vm6, %v7136_v17 }
 0x528   : > { %v6943_v9 = vmax.f32 %v6879_v11, 0.0  ;;  %v21971_v27 = vadd.f32 %v6651_v57, %v25636_v26  ;;  %v7138_v28 = vld [vmem:[#allocation2 + $0x290] sm:$0xff] }
 0x529   : > { %7010 = vst.msk [vmem:[#allocation2 + $0x2d0] sm:$0xff] %vm6970_vm6, %v6944_v37  ;;  %v6882_v63 = vadd.f32 %v21970_v24, %v25691_v56  ;;  %v7137_v38 = vld [vmem:[#allocation2 + $0x288] sm:$0xff] }
 0x52a   : > { %7009 = vst.msk [vmem:[#allocation2 + $0x2c8] sm:$0xff] %vm6970_vm6, %v6943_v9  ;;  %v6881_v4 = vadd.f32 %v21971_v27, %v25691_v56  ;;  %v20534_v46 = vpop.f32.mrb[42].mxu0  ;;  %20623 = vmatprep.mubr.msk.f32.mxu1 %vm6970_vm6, %v7137_v38  ;;  %v28067_v24 = vld [vmem:[#allocation12_spill] sm:$0xff] }
 0x52b   : > { %v6946_v25 = vmax.f32 %v6882_v63, 0.0  ;;  %v21972_v13 = vadd.f32 %v20534_v46, %v25638_v29  ;;  %v6661_v5 = vpop.f32.mrb[43].mxu0  ;;  %20624 = vmatmul.mubr.msk.f32.gmra.mrb[100].mxu1 %vm6970_vm6, %v7138_v28  ;;  %v28068_v63 = vld [vmem:[#allocation13_spill] sm:$0xff] }
 0x52c   : > { %v6945_v26 = vmax.f32 %v6881_v4, 0.0  ;;  %v21973_v47 = vadd.f32 %v6661_v5, %v25640_v30  ;;  %v7140_v14 = vld [vmem:[#allocation2 + $0x2b0] sm:$0xff] }
 0x52d   : > { %7012 = vst.msk [vmem:[#allocation2 + $0x2f0] sm:$0xff] %vm6970_vm6, %v6946_v25  ;;  %v6884_v18 = vadd.f32 %v21972_v13, %v25691_v56  ;;  %v7139_v7 = vld [vmem:[#allocation2 + $0x2a8] sm:$0xff] }
 0x52e   : > { %7011 = vst.msk [vmem:[#allocation2 + $0x2e8] sm:$0xff] %vm6970_vm6, %v6945_v26  ;;  %v6883_v6 = vadd.f32 %v21973_v47, %v25691_v56  ;;  %v20537_v48 = vpop.f32.mrb[44].mxu0  ;;  %20626 = vmatprep.mubr.msk.f32.mxu1 %vm6970_vm6, %v7139_v7  ;;  %v28069_v26 = vld [vmem:[#allocation14_spill] sm:$0xff] }
 0x52f   : > { %v6948_v29 = vmax.f32 %v6884_v18, 0.0  ;;  %v21974_v10 = vadd.f32 %v20537_v48, %v25642_v53  ;;  %v6671_v15 = vpop.f32.mrb[45].mxu0  ;;  %20627 = vmatmul.mubr.msk.f32.gmra.mrb[102].mxu1 %vm6970_vm6, %v7140_v14 }
 0x530   : > { %v6947_v30 = vmax.f32 %v6883_v6, 0.0  ;;  %v21975_v2 = vadd.f32 %v6671_v15, %v25644_v31  ;;  %v7142_v43 = vld [vmem:[#allocation2 + $0x2d0] sm:$0xff]  ;;  %v28070_v6 = vld [vmem:[#allocation15_spill] sm:$0xff] }
 0x531   : > { %7014 = vst.msk [vmem:[#allocation2 + $0x310] sm:$0xff] %vm6970_vm6, %v6948_v29  ;;  %v6886_v41 = vadd.f32 %v21974_v10, %v25691_v56  ;;  %v7141_v32 = vld [vmem:[#allocation2 + $0x2c8] sm:$0xff] }
 0x532   : > { %7013 = vst.msk [vmem:[#allocation2 + $0x308] sm:$0xff] %vm6970_vm6, %v6947_v30  ;;  %v6885_v16 = vadd.f32 %v21975_v2, %v25691_v56  ;;  %v20540_v49 = vpop.f32.mrb[46].mxu0  ;;  %20629 = vmatprep.mubr.msk.f32.mxu1 %vm6970_vm6, %v7141_v32 }
 0x533   : > { %v6950_v53 = vmax.f32 %v6886_v41, 0.0  ;;  %v21976_v45 = vadd.f32 %v20540_v49, %v25646_v34  ;;  %v6681_v0 = vpop.f32.mrb[47].mxu0  ;;  %20630 = vmatmul.mubr.msk.f32.gmra.mrb[104].mxu1 %vm6970_vm6, %v7142_v43  ;;  %v28071_v41 = vld [vmem:[#allocation16_spill] sm:$0xff]  ;;  %v28072_v43 = vld [vmem:[#allocation17_spill] sm:$0xff] }
 0x534   : > { %v6949_v31 = vmax.f32 %v6885_v16, 0.0  ;;  %v21977_v50 = vadd.f32 %v6681_v0, %v25648_v36  ;;  %v7144_v8 = vld [vmem:[#allocation2 + $0x2f0] sm:$0xff] }
 0x535   : > { %7016 = vst.msk [vmem:[#allocation2 + $0x330] sm:$0xff] %vm6970_vm6, %v6950_v53  ;;  %v6888_v35 = vadd.f32 %v21976_v45, %v25691_v56  ;;  %v7143_v3 = vld [vmem:[#allocation2 + $0x2e8] sm:$0xff] }
 0x536   : > { %7015 = vst.msk [vmem:[#allocation2 + $0x328] sm:$0xff] %vm6970_vm6, %v6949_v31  ;;  %v6887_v52 = vadd.f32 %v21977_v50, %v25691_v56  ;;  %v20543_v1 = vpop.f32.mrb[48].mxu0  ;;  %20632 = vmatprep.mubr.msk.f32.mxu1 %vm6970_vm6, %v7143_v3 }
 0x537   : > { %v6952_v34 = vmax.f32 %v6888_v35, 0.0  ;;  %v21978_v20 = vadd.f32 %v20543_v1, %v25650_v39  ;;  %v6691_v62 = vpop.f32.mrb[49].mxu0  ;;  %20633 = vmatmul.mubr.msk.f32.gmra.mrb[106].mxu1 %vm6970_vm6, %v7144_v8 }
 0x538   : > { %v6951_v36 = vmax.f32 %v6887_v52, 0.0  ;;  %v21979_v51 = vadd.f32 %v6691_v62, %v25658_v44  ;;  %v7146_v21 = vld [vmem:[#allocation2 + $0x310] sm:$0xff] }
 0x539   : > { %7018 = vst.msk [vmem:[#allocation2 + $0x350] sm:$0xff] %vm6970_vm6, %v6952_v34  ;;  %v6890_v19 = vadd.f32 %v21978_v20, %v25691_v56  ;;  %v7145_v33 = vld [vmem:[#allocation2 + $0x308] sm:$0xff]  ;;  %v28073_v52 = vld [vmem:[#allocation18_spill] sm:$0xff]  ;;  %v28074_v20 = vld [vmem:[#allocation19_spill] sm:$0xff] }
 0x53a   : > { %7017 = vst.msk [vmem:[#allocation2 + $0x348] sm:$0xff] %vm6970_vm6, %v6951_v36  ;;  %v6889_v61 = vadd.f32 %v21979_v51, %v25691_v56  ;;  %v20546_v58 = vpop.f32.mrb[50].mxu0  ;;  %20635 = vmatprep.mubr.msk.f32.mxu1 %vm6970_vm6, %v7145_v33 }
 0x53b   : > { %v6954_v39 = vmax.f32 %v6890_v19, 0.0  ;;  %v21980_v22 = vadd.f32 %v20546_v58, %v28065_v40  ;;  %v6701_v55 = vpop.f32.mrb[51].mxu0  ;;  %20636 = vmatmul.mubr.msk.f32.gmra.mrb[108].mxu1 %vm6970_vm6, %v7146_v21  ;;  %v28075_v21 = vld [vmem:[#allocation20_spill] sm:$0xff] }
 0x53c   : > { %v6953_v44 = vmax.f32 %v6889_v61, 0.0  ;;  %v21981_v59 = vadd.f32 %v6701_v55, %v28066_v54  ;;  %v7148_v17 = vld [vmem:[#allocation2 + $0x330] sm:$0xff] }
 0x53d   : > { %7020 = vst.msk [vmem:[#allocation2 + $0x370] sm:$0xff] %vm6970_vm6, %v6954_v39  ;;  %v6892_v23 = vadd.f32 %v21980_v22, %v25691_v56  ;;  %v7147_v42 = vld [vmem:[#allocation2 + $0x328] sm:$0xff] }
 0x53e   : > { %7019 = vst.msk [vmem:[#allocation2 + $0x368] sm:$0xff] %vm6970_vm6, %v6953_v44  ;;  %v6891_v11 = vadd.f32 %v21981_v59, %v25691_v56  ;;  %v20549_v12 = vpop.f32.mrb[52].mxu0  ;;  %20638 = vmatprep.mubr.msk.f32.mxu1 %vm6970_vm6, %v7147_v42  ;;  %v28076_v55 = vld [vmem:[#allocation21_spill] sm:$0xff] }
 0x53f   : > { %v6956_v37 = vmax.f32 %v6892_v23, 0.0  ;;  %v21982_v57 = vadd.f32 %v20549_v12, %v28067_v24  ;;  %v6711_v9 = vpop.f32.mrb[53].mxu0  ;;  %20639 = vmatmul.mubr.msk.f32.gmra.mrb[110].mxu1 %vm6970_vm6, %v7148_v17  ;;  %v28077_v17 = vld [vmem:[#allocation22_spill] sm:$0xff] }
 0x540   : > { %v6955_v27 = vmax.f32 %v6891_v11, 0.0  ;;  %v21983_v38 = vadd.f32 %v6711_v9, %v28068_v63  ;;  %v7150_v13 = vld [vmem:[#allocation2 + $0x350] sm:$0xff]  ;;  %v28078_v9 = vld [vmem:[#allocation23_spill] sm:$0xff] }
 0x541   : > { %7022 = vst.msk [vmem:[#allocation2 + $0x390] sm:$0xff] %vm6970_vm6, %v6956_v37  ;;  %v6894_v4 = vadd.f32 %v21982_v57, %v25691_v56  ;;  %v7149_v46 = vld [vmem:[#allocation2 + $0x348] sm:$0xff] }
 0x542   : > { %7021 = vst.msk [vmem:[#allocation2 + $0x388] sm:$0xff] %vm6970_vm6, %v6955_v27  ;;  %v6893_v28 = vadd.f32 %v21983_v38, %v25691_v56  ;;  %v20552_v25 = vpop.f32.mrb[54].mxu0  ;;  %20641 = vmatprep.mubr.msk.f32.mxu1 %vm6970_vm6, %v7149_v46 }
 0x543   : > { %v6958_v5 = vmax.f32 %v6894_v4, 0.0  ;;  %v21984_v47 = vadd.f32 %v20552_v25, %v28069_v26  ;;  %v6721_v18 = vpop.f32.mrb[55].mxu0  ;;  %20642 = vmatmul.mubr.msk.f32.gmra.mrb[112].mxu1 %vm6970_vm6, %v7150_v13 }
 0x544   : > { %v6957_v7 = vmax.f32 %v6893_v28, 0.0  ;;  %v21985_v48 = vadd.f32 %v6721_v18, %v28070_v6  ;;  %v7152_v30 = vld [vmem:[#allocation2 + $0x370] sm:$0xff] }
 0x545   : > { %7024 = vst.msk [vmem:[#allocation2 + $0x3b0] sm:$0xff] %vm6970_vm6, %v6958_v5  ;;  %v6896_v14 = vadd.f32 %v21984_v47, %v25691_v56  ;;  %v7151_v29 = vld [vmem:[#allocation2 + $0x368] sm:$0xff] }
 0x546   : > { %7023 = vst.msk [vmem:[#allocation2 + $0x3a8] sm:$0xff] %vm6970_vm6, %v6957_v7  ;;  %v6895_v10 = vadd.f32 %v21985_v48, %v25691_v56  ;;  %v20555_v15 = vpop.f32.mrb[56].mxu0  ;;  %20644 = vmatprep.mubr.msk.f32.mxu1 %vm6970_vm6, %v7151_v29  ;;  %v7035_v47 = vld [vmem:[#allocation2 + $0x7] sm:$0xff]  ;;  %v7036_v18 = vld [vmem:[#allocation2 + $0xf] sm:$0xff] }
 0x547   : > { %v6960_v2 = vmax.f32 %v6896_v14, 0.0  ;;  %v21986_v32 = vadd.f32 %v20555_v15, %v28071_v41  ;;  %v6731_v16 = vpop.f32.mrb[57].mxu0  ;;  %20645 = vmatmul.mubr.msk.f32.gmra.mrb[114].mxu1 %vm6970_vm6, %v7152_v30  ;;  %v25958_v7 = vld [vmem:[#allocation2 + $0x27] sm:$0xff]  ;;  %v25963_v6 = vld [vmem:[#allocation2 + $0x2f] sm:$0xff] }
 0x548   : > { %v6959_v49 = vmax.f32 %v6895_v10, 0.0  ;;  %v21987_v53 = vadd.f32 %v6731_v16, %v28072_v43  ;;  %v7154_v35 = vld [vmem:[#allocation2 + $0x390] sm:$0xff]  ;;  %v25967_v48 = vld [vmem:[#allocation2 + $0x47] sm:$0xff] }
 0x549   : > { %7026 = vst.msk [vmem:[#allocation2 + $0x3d0] sm:$0xff] %vm6970_vm6, %v6960_v2  ;;  %v6898_v45 = vadd.f32 %v21986_v32, %v25691_v56  ;;  %v7153_v0 = vld [vmem:[#allocation2 + $0x388] sm:$0xff] }
 0x54a   : > { %7025 = vst.msk [vmem:[#allocation2 + $0x3c8] sm:$0xff] %vm6970_vm6, %v6959_v49  ;;  %v6897_v31 = vadd.f32 %v21987_v53, %v25691_v56  ;;  %v20558_v50 = vpop.f32.mrb[58].mxu0  ;;  %20647 = vmatprep.mubr.msk.f32.mxu1 %vm6970_vm6, %v7153_v0  ;;  %v25971_v14 = vld [vmem:[#allocation2 + $0x4f] sm:$0xff]  ;;  %v25975_v29 = vld [vmem:[#allocation2 + $0x67] sm:$0xff] }
 0x54b   : > { %v6962_v3 = vmax.f32 %v6898_v45, 0.0  ;;  %v21988_v1 = vadd.f32 %v20558_v50, %v28073_v52  ;;  %v6741_v8 = vpop.f32.mrb[59].mxu0  ;;  %20648 = vmatmul.mubr.msk.f32.gmra.mrb[116].mxu1 %vm6970_vm6, %v7154_v35  ;;  %v25983_v10 = vld [vmem:[#allocation2 + $0x87] sm:$0xff]  ;;  %v25987_v15 = vld [vmem:[#allocation2 + $0x8f] sm:$0xff] }
 0x54c   : > { %v6961_v34 = vmax.f32 %v6897_v31, 0.0  ;;  %v21989_v62 = vadd.f32 %v6741_v8, %v28074_v20  ;;  %v7156_v61 = vld [vmem:[#allocation2 + $0x3b0] sm:$0xff]  ;;  %v25991_v30 = vld [vmem:[#allocation2 + $0xa7] sm:$0xff] }
 0x54d   : > { %7028 = vst.msk [vmem:[#allocation2 + $0x3f0] sm:$0xff] %vm6970_vm6, %v6962_v3  ;;  %v6900_v36 = vadd.f32 %v21988_v1, %v25691_v56  ;;  %v7155_v51 = vld [vmem:[#allocation2 + $0x3a8] sm:$0xff] }
 0x54e   : > { %7027 = vst.msk [vmem:[#allocation2 + $0x3e8] sm:$0xff] %vm6970_vm6, %v6961_v34  ;;  %v6899_v19 = vadd.f32 %v21989_v62, %v25691_v56  ;;  %v20561_v33 = vpop.f32.mrb[60].mxu0  ;;  %20650 = vmatprep.mubr.msk.f32.mxu1 %vm6970_vm6, %v7155_v51  ;;  %v25995_v2 = vld [vmem:[#allocation2 + $0xaf] sm:$0xff]  ;;  %v25999_v41 = vld [vmem:[#allocation2 + $0xc7] sm:$0xff] }
 0x54f   : > { %v6964_v58 = vmax.f32 %v6900_v36, 0.0  ;;  %v21990_v39 = vadd.f32 %v20561_v33, %v28075_v21  ;;  %v6751_v40 = vpop.f32.mrb[61].mxu0  ;;  %20651 = vmatmul.mubr.msk.f32.gmra.mrb[118].mxu1 %vm6970_vm6, %v7156_v61  ;;  %v26003_v32 = vld [vmem:[#allocation2 + $0xcf] sm:$0xff]  ;;  %v26007_v16 = vld [vmem:[#allocation2 + $0xe7] sm:$0xff]  ;;  %v17714_v21 = vld [vmem:[%s27740_s3 + $0x38] sm:$0xff] }
 0x550   : > { %v6963_v22 = vmax.f32 %v6899_v19, 0.0  ;;  %v21991_v44 = vadd.f32 %v6751_v40, %v28076_v55  ;;  %v7158_v11 = vld [vmem:[#allocation2 + $0x3d0] sm:$0xff]  ;;  %v26015_v43 = vld [vmem:[#allocation2 + $0x107] sm:$0xff] }
 0x551   : > { %7030 = vst.msk [vmem:[#allocation2 + $0x410] sm:$0xff] %vm6970_vm6, %v6964_v58  ;;  %v6902_v54 = vadd.f32 %v21990_v39, %v25691_v56  ;;  %v7157_v59 = vld [vmem:[#allocation2 + $0x3c8] sm:$0xff]  ;;  %v17713_v58 = vld [vmem:[%s27740_s3 + $0x30] sm:$0xff] }
 0x552   : > { %7029 = vst.msk [vmem:[#allocation2 + $0x408] sm:$0xff] %vm6970_vm6, %v6963_v22  ;;  %v6901_v23 = vadd.f32 %v21991_v44, %v25691_v56  ;;  %v20564_v42 = vpop.f32.mrb[62].mxu0  ;;  %20653 = vmatprep.mubr.msk.f32.mxu1 %vm6970_vm6, %v7157_v59  ;;  %v26011_v49 = vld [vmem:[#allocation2 + $0xef] sm:$0xff]  ;;  %v26023_v45 = vld [vmem:[#allocation2 + $0x127] sm:$0xff]  ;;  %v26091_v39 = vpack.c.bf16 %v17714_v21, %v17713_v58 }
 0x553   : > { %v6966_v12 = vmax.f32 %v6902_v54, 0.0  ;;  %v21992_v37 = vadd.f32 %v20564_v42, %v28077_v17  ;;  %v6761_v24 = vpop.f32.mrb[63].mxu0  ;;  %20654 = vmatmul.mubr.msk.f32.gmra.mrb[120].mxu1 %vm6970_vm6, %v7158_v11  ;;  %v26019_v53 = vld [vmem:[#allocation2 + $0x10f] sm:$0xff]  ;;  %v26031_v31 = vld [vmem:[#allocation2 + $0x147] sm:$0xff] }
 0x554   : > { %v6965_v57 = vmax.f32 %v6901_v23, 0.0  ;;  %v21993_v27 = vadd.f32 %v6761_v24, %v28078_v9  ;;  %v7160_v46 = vld [vmem:[#allocation2 + $0x3f0] sm:$0xff]  ;;  %v26039_v35 = vld [vmem:[#allocation2 + $0x167] sm:$0xff] }
 0x555   : > { %7032 = vst.msk [vmem:[#allocation2 + $0x430] sm:$0xff] %vm6970_vm6, %v6966_v12  ;;  %v6904_v63 = vadd.f32 %v21992_v37, %v25691_v56  ;;  %v7159_v38 = vld [vmem:[#allocation2 + $0x3e8] sm:$0xff]  ;;  %v8323_v58 = vld [vmem:[#allocation2 + $0x11] sm:$0xff] }
 0x556   : > { %7031 = vst.msk [vmem:[#allocation2 + $0x428] sm:$0xff] %vm6970_vm6, %v6965_v57  ;;  %v6903_v4 = vadd.f32 %v21993_v27, %v25691_v56  ;;  %20656 = vmatprep.mubr.msk.f32.mxu1 %vm6970_vm6, %v7159_v38  ;;  %v26027_v0 = vld [vmem:[#allocation2 + $0x12f] sm:$0xff]  ;;  %v26047_v52 = vld [vmem:[#allocation2 + $0x187] sm:$0xff] }
 0x557   : > { %v6968_v28 = vmax.f32 %v6904_v63, 0.0  ;;  %20657 = vmatmul.mubr.msk.f32.gmra.mrb[122].mxu1 %vm6970_vm6, %v7160_v46  ;;  %v26035_v50 = vld [vmem:[#allocation2 + $0x14f] sm:$0xff]  ;;  %v26055_v8 = vld [vmem:[#allocation2 + $0x1a7] sm:$0xff] }
 0x558   : > { %v6967_v25 = vmax.f32 %v6903_v4, 0.0  ;;  %v7162_v5 = vld [vmem:[#allocation2 + $0x410] sm:$0xff]  ;;  %v26063_v20 = vld [vmem:[#allocation2 + $0x1c7] sm:$0xff] }
 0x559   : > { %7034 = vst.msk [vmem:[#allocation2 + $0x450] sm:$0xff] %vm6970_vm6, %v6968_v28  ;;  %v7161_v13 = vld [vmem:[#allocation2 + $0x408] sm:$0xff] }
 0x55a   : > { %7033 = vst.msk [vmem:[#allocation2 + $0x448] sm:$0xff] %vm6970_vm6, %v6967_v25  ;;  %20659 = vmatprep.mubr.msk.f32.mxu1 %vm6970_vm6, %v7161_v13  ;;  %v26043_v3 = vld [vmem:[#allocation2 + $0x16f] sm:$0xff]  ;;  %v26071_v36 = vld [vmem:[#allocation2 + $0x1e7] sm:$0xff] }
 0x55b   : > { %20660 = vmatmul.mubr.msk.f32.gmra.mrb[124].mxu1 %vm6970_vm6, %v7162_v5  ;;  %v26051_v1 = vld [vmem:[#allocation2 + $0x18f] sm:$0xff]  ;;  %v7067_v51 = vld [vmem:[#allocation2 + $0x247] sm:$0xff] }
 0x55c   : > { %v7164_v56 = vld [vmem:[#allocation2 + $0x430] sm:$0xff]  ;;  %v26081_v61 = vld [vmem:[#allocation2 + $0x267] sm:$0xff] }
 0x55d   : > { %v7163_v26 = vld [vmem:[#allocation2 + $0x428] sm:$0xff] }
 0x55e   : > { %20662 = vmatprep.mubr.msk.f32.mxu1 %vm6970_vm6, %v7163_v26  ;;  %v26059_v34 = vld [vmem:[#allocation2 + $0x1af] sm:$0xff]  ;;  %v26098_v22 = vld [vmem:[#allocation2 + $0x287] sm:$0xff] }
 0x55f   : > { %20663 = vmatmul.mubr.msk.f32.gmra.mrb[126].mxu1 %vm6970_vm6, %v7164_v56  ;;  %v26067_v62 = vld [vmem:[#allocation2 + $0x1cf] sm:$0xff]  ;;  %v26106_v44 = vld [vmem:[#allocation2 + $0x2a7] sm:$0xff] }
 0x560   : > { %20669 = vmatprep.mubr.msk.f32.mxu1 %vm6970_vm6, %v7035_v47  ;;  %v26075_v19 = vld [vmem:[#allocation2 + $0x1ef] sm:$0xff]  ;;  %v26114_v59 = vld [vmem:[#allocation2 + $0x2c7] sm:$0xff] }
 0x561   : > { %v7068_v33 = vld [vmem:[#allocation2 + $0x24f] sm:$0xff]  ;;  %v26122_v42 = vld [vmem:[#allocation2 + $0x2e7] sm:$0xff] }
 0x562   : > { %v26093_v40 = vld [vmem:[#allocation2 + $0x26f] sm:$0xff]  ;;  %v26130_v12 = vld [vmem:[#allocation2 + $0x307] sm:$0xff] }
 0x563   : > { %20670 = vmatmul.mubr.msk.f32.vlgmr.msra.gmra.mrb[64].mxu1 %vm6970_vm6, %v7036_v18  ;;  %v26102_v55 = vld [vmem:[#allocation2 + $0x28f] sm:$0xff]  ;;  %v26138_v37 = vld [vmem:[#allocation2 + $0x327] sm:$0xff] }
 0x564   : > { %20672 = vmatprep.mubr.msk.f32.mxu1 %vm6970_vm6, %v25958_v7  ;;  %21799 = vmatpush3.bf16.msra.mxu1 %v25845_v60  ;;  %v25979_v60 = vld [vmem:[#allocation2 + $0x6f] sm:$0xff]  ;;  %v26146_v57 = vld [vmem:[#allocation2 + $0x347] sm:$0xff] }
 0x565   : > { %21801 = vmatprep.subr.bf16.mxu1 %v26091_v39  ;;  %v26110_v54 = vld [vmem:[#allocation2 + $0x2af] sm:$0xff]  ;;  %v26154_v27 = vld [vmem:[#allocation2 + $0x367] sm:$0xff] }
 0x566   : > { %v26118_v23 = vld [vmem:[#allocation2 + $0x2cf] sm:$0xff]  ;;  %v26162_v38 = vld [vmem:[#allocation2 + $0x387] sm:$0xff] }
 0x567   : > { %20673 = vmatmul.mubr.msk.f32.gmra.mrb[66].mxu1 %vm6970_vm6, %v25963_v6  ;;  %v26126_v11 = vld [vmem:[#allocation2 + $0x2ef] sm:$0xff]  ;;  %v26170_v46 = vld [vmem:[#allocation2 + $0x3a7] sm:$0xff] }
 0x568   : > { %20675 = vmatprep.mubr.msk.f32.mxu1 %vm6970_vm6, %v25967_v48  ;;  %v26134_v17 = vld [vmem:[#allocation2 + $0x30f] sm:$0xff]  ;;  %v26178_v25 = vld [vmem:[#allocation2 + $0x3c7] sm:$0xff] }
 0x569   : > { %v26142_v24 = vld [vmem:[#allocation2 + $0x32f] sm:$0xff]  ;;  %v26186_v5 = vld [vmem:[#allocation2 + $0x3e7] sm:$0xff] }
 0x56a   : > { %v26150_v9 = vld [vmem:[#allocation2 + $0x34f] sm:$0xff]  ;;  %v26194_v47 = vld [vmem:[#allocation2 + $0x407] sm:$0xff] }
 0x56b   : > { %20676 = vmatmul.mubr.msk.f32.gmra.mrb[68].mxu1 %vm6970_vm6, %v25971_v14  ;;  %v26158_v63 = vld [vmem:[#allocation2 + $0x36f] sm:$0xff]  ;;  %v26202_v18 = vld [vmem:[#allocation2 + $0x427] sm:$0xff] }
 0x56c   : > { %20678 = vmatprep.mubr.msk.f32.mxu1 %vm6970_vm6, %v25975_v29  ;;  %v26166_v4 = vld [vmem:[#allocation2 + $0x38f] sm:$0xff]  ;;  %28080 = vst [vmem:[#allocation25_spill] sm:$0xff] %v26202_v18 }
 0x56d   : > { %v26174_v28 = vld [vmem:[#allocation2 + $0x3af] sm:$0xff] }
 0x56e   : > { %v26182_v13 = vld [vmem:[#allocation2 + $0x3cf] sm:$0xff] }
 0x56f   : > { %20679 = vmatmul.mubr.msk.f32.gmra.mrb[70].mxu1 %vm6970_vm6, %v25979_v60  ;;  %v26190_v26 = vld [vmem:[#allocation2 + $0x3ef] sm:$0xff] }
 0x570   : > { %20681 = vmatprep.mubr.msk.f32.mxu1 %vm6970_vm6, %v25983_v10  ;;  %v26198_v56 = vld [vmem:[#allocation2 + $0x40f] sm:$0xff] }
 0x571   : > { %28079 = vst [vmem:[#allocation24_spill] sm:$0xff] %v26198_v56  ;;  %v26212_v21 = vld [vmem:[#allocation2 + $0x29] sm:$0xff] }
 0x572   : > { %28082 = vst [vmem:[#allocation27_spill] sm:$0xff] %v26212_v21 }
 0x573   : > { %20682 = vmatmul.mubr.msk.f32.gmra.mrb[72].mxu1 %vm6970_vm6, %v25987_v15 }
 0x574   : > { %20684 = vmatprep.mubr.msk.f32.mxu1 %vm6970_vm6, %v25991_v30 }
 0x577   : > { %20685 = vmatmul.mubr.msk.f32.gmra.mrb[74].mxu1 %vm6970_vm6, %v25995_v2 }
 0x578   : > { %20687 = vmatprep.mubr.msk.f32.mxu1 %vm6970_vm6, %v25999_v41 }
 0x57b   : > { %20688 = vmatmul.mubr.msk.f32.gmra.mrb[76].mxu1 %vm6970_vm6, %v26003_v32 }
 0x57c   : > { %20690 = vmatprep.mubr.msk.f32.mxu1 %vm6970_vm6, %v26007_v16 }
 0x57f   : > { %20691 = vmatmul.mubr.msk.f32.gmra.mrb[78].mxu1 %vm6970_vm6, %v26011_v49 }
 0x580   : > { %20693 = vmatprep.mubr.msk.f32.mxu1 %vm6970_vm6, %v26015_v43 }
 0x583   : > { %20694 = vmatmul.mubr.msk.f32.gmra.mrb[80].mxu1 %vm6970_vm6, %v26019_v53 }
 0x584   : > { %20696 = vmatprep.mubr.msk.f32.mxu1 %vm6970_vm6, %v26023_v45 }
 0x587   : > { %20697 = vmatmul.mubr.msk.f32.gmra.mrb[82].mxu1 %vm6970_vm6, %v26027_v0 }
 0x588   : > { %20699 = vmatprep.mubr.msk.f32.mxu1 %vm6970_vm6, %v26031_v31 }
 0x58b   : > { %20700 = vmatmul.mubr.msk.f32.gmra.mrb[84].mxu1 %vm6970_vm6, %v26035_v50 }
 0x58c   : > { %20702 = vmatprep.mubr.msk.f32.mxu1 %vm6970_vm6, %v26039_v35 }
 0x58f   : > { %20703 = vmatmul.mubr.msk.f32.gmra.mrb[86].mxu1 %vm6970_vm6, %v26043_v3 }
 0x590   : > { %20705 = vmatprep.mubr.msk.f32.mxu1 %vm6970_vm6, %v26047_v52 }
 0x593   : > { %20706 = vmatmul.mubr.msk.f32.gmra.mrb[88].mxu1 %vm6970_vm6, %v26051_v1 }
 0x594   : > { %20708 = vmatprep.mubr.msk.f32.mxu1 %vm6970_vm6, %v26055_v8 }
 0x597   : > { %20709 = vmatmul.mubr.msk.f32.gmra.mrb[90].mxu1 %vm6970_vm6, %v26059_v34 }
 0x598   : > { %20711 = vmatprep.mubr.msk.f32.mxu1 %vm6970_vm6, %v26063_v20 }
 0x59b   : > { %20712 = vmatmul.mubr.msk.f32.gmra.mrb[92].mxu1 %vm6970_vm6, %v26067_v62 }
 0x59c   : > { %20714 = vmatprep.mubr.msk.f32.mxu1 %vm6970_vm6, %v26071_v36 }
 0x59f   : > { %20715 = vmatmul.mubr.msk.f32.gmra.mrb[94].mxu1 %vm6970_vm6, %v26075_v19 }
 0x5a0   : > { %20717 = vmatprep.mubr.msk.f32.mxu1 %vm6970_vm6, %v7067_v51  ;;  %v8322_v51 = vld [vmem:[#allocation2 + $0x9] sm:$0xff] }
 0x5a3   : > { %20718 = vmatmul.mubr.msk.f32.gmra.mrb[96].mxu1 %vm6970_vm6, %v7068_v33  ;;  %v26206_v33 = vld [vmem:[#allocation2 + $0x42f] sm:$0xff] }
 0x5a4   : > { %20720 = vmatprep.mubr.msk.f32.mxu1 %vm6970_vm6, %v26081_v61  ;;  %28081 = vst [vmem:[#allocation26_spill] sm:$0xff] %v26206_v33 }
 0x5a7   : > { %20721 = vmatmul.mubr.msk.f32.gmra.mrb[98].mxu1 %vm6970_vm6, %v26093_v40 }
 0x5a8   : > { %20723 = vmatprep.mubr.msk.f32.mxu1 %vm6970_vm6, %v26098_v22 }
 0x5ab   : > { %20724 = vmatmul.mubr.msk.f32.gmra.mrb[100].mxu1 %vm6970_vm6, %v26102_v55 }
 0x5ac   : > { %20726 = vmatprep.mubr.msk.f32.mxu1 %vm6970_vm6, %v26106_v44 }
 0x5af   : > { %20727 = vmatmul.mubr.msk.f32.gmra.mrb[102].mxu1 %vm6970_vm6, %v26110_v54 }
 0x5b0   : > { %20729 = vmatprep.mubr.msk.f32.mxu1 %vm6970_vm6, %v26114_v59 }
 0x5b3   : > { %20730 = vmatmul.mubr.msk.f32.gmra.mrb[104].mxu1 %vm6970_vm6, %v26118_v23 }
 0x5b4   : > { %20732 = vmatprep.mubr.msk.f32.mxu1 %vm6970_vm6, %v26122_v42 }
 0x5b7   : > { %20733 = vmatmul.mubr.msk.f32.gmra.mrb[106].mxu1 %vm6970_vm6, %v26126_v11 }
 0x5b8   : > { %20735 = vmatprep.mubr.msk.f32.mxu1 %vm6970_vm6, %v26130_v12 }
 0x5bb   : > { %20736 = vmatmul.mubr.msk.f32.gmra.mrb[108].mxu1 %vm6970_vm6, %v26134_v17 }
 0x5bc   : > { %20738 = vmatprep.mubr.msk.f32.mxu1 %vm6970_vm6, %v26138_v37 }
 0x5bf   : > { %20739 = vmatmul.mubr.msk.f32.gmra.mrb[110].mxu1 %vm6970_vm6, %v26142_v24 }
 0x5c0   : > { %20741 = vmatprep.mubr.msk.f32.mxu1 %vm6970_vm6, %v26146_v57 }
 0x5c3   : > { %20742 = vmatmul.mubr.msk.f32.gmra.mrb[112].mxu1 %vm6970_vm6, %v26150_v9 }
 0x5c4   : > { %20744 = vmatprep.mubr.msk.f32.mxu1 %vm6970_vm6, %v26154_v27 }
 0x5c7   : > { %20745 = vmatmul.mubr.msk.f32.gmra.mrb[114].mxu1 %vm6970_vm6, %v26158_v63 }
 0x5c8   : > { %20747 = vmatprep.mubr.msk.f32.mxu1 %vm6970_vm6, %v26162_v38 }
 0x5cb   : > { %20748 = vmatmul.mubr.msk.f32.gmra.mrb[116].mxu1 %vm6970_vm6, %v26166_v4 }
 0x5cc   : > { %20750 = vmatprep.mubr.msk.f32.mxu1 %vm6970_vm6, %v26170_v46 }
 0x5cf   : > { %20751 = vmatmul.mubr.msk.f32.gmra.mrb[118].mxu1 %vm6970_vm6, %v26174_v28 }
 0x5d0   : > { %20753 = vmatprep.mubr.msk.f32.mxu1 %vm6970_vm6, %v26178_v25 }
 0x5d3   : > { %20754 = vmatmul.mubr.msk.f32.gmra.mrb[120].mxu1 %vm6970_vm6, %v26182_v13 }
 0x5d4   : > { %20756 = vmatprep.mubr.msk.f32.mxu1 %vm6970_vm6, %v26186_v5 }
 0x5d7   : > { %20757 = vmatmul.mubr.msk.f32.gmra.mrb[122].mxu1 %vm6970_vm6, %v26190_v26 }
 0x5d8   : > { %20759 = vmatprep.mubr.msk.f32.mxu1 %vm6970_vm6, %v26194_v47 }
 0x5db   : > { %20760 = vmatmul.mubr.msk.f32.gmra.mrb[124].mxu1 %vm6970_vm6, %v26198_v56  ;;  %v26217_v56 = vld [vmem:[#allocation2 + $0x31] sm:$0xff] }
 0x5dc   : > { %20762 = vmatprep.mubr.msk.f32.mxu1 %vm6970_vm6, %v26202_v18  ;;  %28083 = vst [vmem:[#allocation28_spill] sm:$0xff] %v26217_v56  ;;  %v26221_v18 = vld [vmem:[#allocation2 + $0x49] sm:$0xff] }
 0x5dd   : > { %28084 = vst [vmem:[#allocation29_spill] sm:$0xff] %v26221_v18 }
 0x5df   : > { %20763 = vmatmul.mubr.msk.f32.gmra.mrb[126].mxu1 %vm6970_vm6, %v26206_v33 }
 0x5e0   : > { %20769 = vmatprep.mubr.msk.f32.mxu1 %vm6970_vm6, %v8322_v51  ;;  %v26225_v51 = vld [vmem:[#allocation2 + $0x51] sm:$0xff] }
 0x5e1   : > { %28085 = vst [vmem:[#allocation30_spill] sm:$0xff] %v26225_v51 }
 0x5e3   : > { %20770 = vmatmul.mubr.msk.f32.vlgmr.msra.gmra.mrb[64].mxu1 %vm6970_vm6, %v8323_v58  ;;  %v26229_v58 = vld [vmem:[#allocation2 + $0x69] sm:$0xff] }
 0x5e4   : > { %20772 = vmatprep.mubr.msk.f32.mxu1 %vm6970_vm6, %v26212_v21  ;;  %21803 = vmatpush3.bf16.msra.mxu1 %v26091_v39  ;;  %28086 = vst [vmem:[#allocation31_spill] sm:$0xff] %v26229_v58  ;;  %v26233_v39 = vld [vmem:[#allocation2 + $0x71] sm:$0xff] }
 0x5e5   : > { %28087 = vst [vmem:[#allocation32_spill] sm:$0xff] %v26233_v39  ;;  %v26329_v21 = vld [vmem:[#allocation2 + $0x1f1] sm:$0xff] }
 0x5e6   : > { %28111 = vst [vmem:[#allocation56_spill] sm:$0xff] %v26329_v21 }
 0x5e7   : > { %20773 = vmatmul.mubr.msk.f32.gmra.mrb[66].mxu1 %vm6970_vm6, %v26217_v56  ;;  %v26237_v56 = vld [vmem:[#allocation2 + $0x89] sm:$0xff] }
 0x5e8   : > { %20775 = vmatprep.mubr.msk.f32.mxu1 %vm6970_vm6, %v26221_v18  ;;  %28088 = vst [vmem:[#allocation33_spill] sm:$0xff] %v26237_v56  ;;  %v26241_v18 = vld [vmem:[#allocation2 + $0x91] sm:$0xff] }
 0x5e9   : > { %28089 = vst [vmem:[#allocation34_spill] sm:$0xff] %v26241_v18 }
 0x5eb   : > { %20776 = vmatmul.mubr.msk.f32.gmra.mrb[68].mxu1 %vm6970_vm6, %v26225_v51  ;;  %v26245_v51 = vld [vmem:[#allocation2 + $0xa9] sm:$0xff] }
 0x5ec   : > { %20778 = vmatprep.mubr.msk.f32.mxu1 %vm6970_vm6, %v26229_v58  ;;  %28090 = vst [vmem:[#allocation35_spill] sm:$0xff] %v26245_v51  ;;  %v26249_v58 = vld [vmem:[#allocation2 + $0xb1] sm:$0xff] }
 0x5ed   : > { %28091 = vst [vmem:[#allocation36_spill] sm:$0xff] %v26249_v58 }
 0x5ef   : > { %20779 = vmatmul.mubr.msk.f32.gmra.mrb[70].mxu1 %vm6970_vm6, %v26233_v39  ;;  %v26253_v39 = vld [vmem:[#allocation2 + $0xc9] sm:$0xff] }
 0x5f0   : > { %20781 = vmatprep.mubr.msk.f32.mxu1 %vm6970_vm6, %v26237_v56  ;;  %28092 = vst [vmem:[#allocation37_spill] sm:$0xff] %v26253_v39  ;;  %v26257_v56 = vld [vmem:[#allocation2 + $0xd1] sm:$0xff] }
 0x5f1   : > { %28093 = vst [vmem:[#allocation38_spill] sm:$0xff] %v26257_v56 }
 0x5f3   : > { %20782 = vmatmul.mubr.msk.f32.gmra.mrb[72].mxu1 %vm6970_vm6, %v26241_v18  ;;  %v26261_v18 = vld [vmem:[#allocation2 + $0xe9] sm:$0xff] }
 0x5f4   : > { %20784 = vmatprep.mubr.msk.f32.mxu1 %vm6970_vm6, %v26245_v51  ;;  %28094 = vst [vmem:[#allocation39_spill] sm:$0xff] %v26261_v18  ;;  %v26265_v51 = vld [vmem:[#allocation2 + $0xf1] sm:$0xff] }
 0x5f5   : > { %28095 = vst [vmem:[#allocation40_spill] sm:$0xff] %v26265_v51 }
 0x5f7   : > { %20785 = vmatmul.mubr.msk.f32.gmra.mrb[74].mxu1 %vm6970_vm6, %v26249_v58  ;;  %v26269_v58 = vld [vmem:[#allocation2 + $0x109] sm:$0xff] }
 0x5f8   : > { %20787 = vmatprep.mubr.msk.f32.mxu1 %vm6970_vm6, %v26253_v39  ;;  %28096 = vst [vmem:[#allocation41_spill] sm:$0xff] %v26269_v58  ;;  %v26273_v39 = vld [vmem:[#allocation2 + $0x111] sm:$0xff] }
 0x5f9   : > { %28097 = vst [vmem:[#allocation42_spill] sm:$0xff] %v26273_v39 }
 0x5fb   : > { %20788 = vmatmul.mubr.msk.f32.gmra.mrb[76].mxu1 %vm6970_vm6, %v26257_v56  ;;  %v26277_v56 = vld [vmem:[#allocation2 + $0x129] sm:$0xff] }
 0x5fc   : > { %20790 = vmatprep.mubr.msk.f32.mxu1 %vm6970_vm6, %v26261_v18  ;;  %28098 = vst [vmem:[#allocation43_spill] sm:$0xff] %v26277_v56  ;;  %v26281_v18 = vld [vmem:[#allocation2 + $0x131] sm:$0xff] }
 0x5fd   : > { %28099 = vst [vmem:[#allocation44_spill] sm:$0xff] %v26281_v18 }
 0x5ff   : > { %20791 = vmatmul.mubr.msk.f32.gmra.mrb[78].mxu1 %vm6970_vm6, %v26265_v51  ;;  %v26285_v51 = vld [vmem:[#allocation2 + $0x149] sm:$0xff] }
 0x600   : > { %20793 = vmatprep.mubr.msk.f32.mxu1 %vm6970_vm6, %v26269_v58  ;;  %28100 = vst [vmem:[#allocation45_spill] sm:$0xff] %v26285_v51  ;;  %v26289_v58 = vld [vmem:[#allocation2 + $0x151] sm:$0xff] }
 0x601   : > { %28101 = vst [vmem:[#allocation46_spill] sm:$0xff] %v26289_v58 }
 0x603   : > { %20794 = vmatmul.mubr.msk.f32.gmra.mrb[80].mxu1 %vm6970_vm6, %v26273_v39  ;;  %v26293_v39 = vld [vmem:[#allocation2 + $0x169] sm:$0xff] }
 0x604   : > { %20796 = vmatprep.mubr.msk.f32.mxu1 %vm6970_vm6, %v26277_v56  ;;  %28102 = vst [vmem:[#allocation47_spill] sm:$0xff] %v26293_v39  ;;  %v26297_v56 = vld [vmem:[#allocation2 + $0x171] sm:$0xff] }
 0x605   : > { %28103 = vst [vmem:[#allocation48_spill] sm:$0xff] %v26297_v56 }
 0x607   : > { %20797 = vmatmul.mubr.msk.f32.gmra.mrb[82].mxu1 %vm6970_vm6, %v26281_v18  ;;  %v26301_v18 = vld [vmem:[#allocation2 + $0x189] sm:$0xff] }
 0x608   : > { %20799 = vmatprep.mubr.msk.f32.mxu1 %vm6970_vm6, %v26285_v51  ;;  %28104 = vst [vmem:[#allocation49_spill] sm:$0xff] %v26301_v18  ;;  %v26305_v51 = vld [vmem:[#allocation2 + $0x191] sm:$0xff] }
 0x609   : > { %28105 = vst [vmem:[#allocation50_spill] sm:$0xff] %v26305_v51 }
 0x60b   : > { %20800 = vmatmul.mubr.msk.f32.gmra.mrb[84].mxu1 %vm6970_vm6, %v26289_v58  ;;  %v26309_v58 = vld [vmem:[#allocation2 + $0x1a9] sm:$0xff] }
 0x60c   : > { %20802 = vmatprep.mubr.msk.f32.mxu1 %vm6970_vm6, %v26293_v39  ;;  %28106 = vst [vmem:[#allocation51_spill] sm:$0xff] %v26309_v58  ;;  %v26313_v39 = vld [vmem:[#allocation2 + $0x1b1] sm:$0xff] }
 0x60d   : > { %28107 = vst [vmem:[#allocation52_spill] sm:$0xff] %v26313_v39 }
 0x60f   : > { %20803 = vmatmul.mubr.msk.f32.gmra.mrb[86].mxu1 %vm6970_vm6, %v26297_v56  ;;  %v26317_v56 = vld [vmem:[#allocation2 + $0x1c9] sm:$0xff] }
 0x610   : > { %20805 = vmatprep.mubr.msk.f32.mxu1 %vm6970_vm6, %v26301_v18  ;;  %28108 = vst [vmem:[#allocation53_spill] sm:$0xff] %v26317_v56  ;;  %v26321_v18 = vld [vmem:[#allocation2 + $0x1d1] sm:$0xff] }
 0x611   : > { %28109 = vst [vmem:[#allocation54_spill] sm:$0xff] %v26321_v18 }
 0x613   : > { %20806 = vmatmul.mubr.msk.f32.gmra.mrb[88].mxu1 %vm6970_vm6, %v26305_v51  ;;  %v26325_v51 = vld [vmem:[#allocation2 + $0x1e9] sm:$0xff] }
 0x614   : > { %20808 = vmatprep.mubr.msk.f32.mxu1 %vm6970_vm6, %v26309_v58  ;;  %28110 = vst [vmem:[#allocation55_spill] sm:$0xff] %v26325_v51  ;;  %v8354_v58 = vld [vmem:[#allocation2 + $0x249] sm:$0xff] }
 0x617   : > { %20809 = vmatmul.mubr.msk.f32.gmra.mrb[90].mxu1 %vm6970_vm6, %v26313_v39  ;;  %v8355_v39 = vld [vmem:[#allocation2 + $0x251] sm:$0xff] }
 0x618   : > { %20811 = vmatprep.mubr.msk.f32.mxu1 %vm6970_vm6, %v26317_v56  ;;  %v26335_v56 = vld [vmem:[#allocation2 + $0x269] sm:$0xff] }
 0x619   : > { %28112 = vst [vmem:[#allocation57_spill] sm:$0xff] %v26335_v56 }
 0x61b   : > { %20812 = vmatmul.mubr.msk.f32.gmra.mrb[92].mxu1 %vm6970_vm6, %v26321_v18  ;;  %v17779_v18 = vld [vmem:[%s27740_s3 + $0x40] sm:$0xff] }
 0x61c   : > { %20814 = vmatprep.mubr.msk.f32.mxu1 %vm6970_vm6, %v26325_v51  ;;  %v17780_v51 = vld [vmem:[%s27740_s3 + $0x48] sm:$0xff] }
 0x61d   : > { %v26345_v33 = vpack.c.bf16 %v17780_v51, %v17779_v18  ;;  %v26364_v18 = vld [vmem:[#allocation2 + $0x2b1] sm:$0xff]  ;;  %v26368_v51 = vld [vmem:[#allocation2 + $0x2c9] sm:$0xff] }
 0x61e   : > { %28116 = vst [vmem:[#allocation61_spill] sm:$0xff] %v26364_v18  ;;  %28117 = vst [vmem:[#allocation62_spill] sm:$0xff] %v26368_v51 }
 0x61f   : > { %20815 = vmatmul.mubr.msk.f32.gmra.mrb[94].mxu1 %vm6970_vm6, %v26329_v21  ;;  %v26347_v21 = vld [vmem:[#allocation2 + $0x271] sm:$0xff]  ;;  %21805 = vmatprep.subr.bf16.mxu1 %v26345_v33 }
 0x620   : > { %20817 = vmatprep.mubr.msk.f32.mxu1 %vm6970_vm6, %v8354_v58  ;;  %v26352_v58 = vld [vmem:[#allocation2 + $0x289] sm:$0xff] }
 0x621   : > { %28113 = vst [vmem:[#allocation58_spill] sm:$0xff] %v26352_v58 }
 0x623   : > { %20818 = vmatmul.mubr.msk.f32.gmra.mrb[96].mxu1 %vm6970_vm6, %v8355_v39  ;;  %v26356_v39 = vld [vmem:[#allocation2 + $0x291] sm:$0xff] }
 0x624   : > { %20820 = vmatprep.mubr.msk.f32.mxu1 %vm6970_vm6, %v26335_v56  ;;  %28114 = vst [vmem:[#allocation59_spill] sm:$0xff] %v26356_v39  ;;  %v26360_v56 = vld [vmem:[#allocation2 + $0x2a9] sm:$0xff] }
 0x625   : > { %28115 = vst [vmem:[#allocation60_spill] sm:$0xff] %v26360_v56 }
 0x627   : > { %20821 = vmatmul.mubr.msk.f32.gmra.mrb[98].mxu1 %vm6970_vm6, %v26347_v21 }
 0x628   : > { %20823 = vmatprep.mubr.msk.f32.mxu1 %vm6970_vm6, %v26352_v58  ;;  %v26372_v58 = vld [vmem:[#allocation2 + $0x2d1] sm:$0xff] }
 0x629   : > { %28118 = vst [vmem:[#allocation63_spill] sm:$0xff] %v26372_v58 }
 0x62b   : > { %20824 = vmatmul.mubr.msk.f32.gmra.mrb[100].mxu1 %vm6970_vm6, %v26356_v39  ;;  %v26376_v39 = vld [vmem:[#allocation2 + $0x2e9] sm:$0xff] }
 0x62c   : > { %20826 = vmatprep.mubr.msk.f32.mxu1 %vm6970_vm6, %v26360_v56  ;;  %28119 = vst [vmem:[#allocation64_spill] sm:$0xff] %v26376_v39  ;;  %v26380_v56 = vld [vmem:[#allocation2 + $0x2f1] sm:$0xff] }
 0x62d   : > { %28120 = vst [vmem:[#allocation65_spill] sm:$0xff] %v26380_v56 }
 0x62f   : > { %20827 = vmatmul.mubr.msk.f32.gmra.mrb[102].mxu1 %vm6970_vm6, %v26364_v18  ;;  %v26384_v18 = vld [vmem:[#allocation2 + $0x309] sm:$0xff] }
 0x630   : > { %20829 = vmatprep.mubr.msk.f32.mxu1 %vm6970_vm6, %v26368_v51  ;;  %28121 = vst [vmem:[#allocation66_spill] sm:$0xff] %v26384_v18  ;;  %v26388_v51 = vld [vmem:[#allocation2 + $0x311] sm:$0xff] }
 0x631   : > { %28122 = vst [vmem:[#allocation67_spill] sm:$0xff] %v26388_v51 }
 0x633   : > { %20830 = vmatmul.mubr.msk.f32.gmra.mrb[104].mxu1 %vm6970_vm6, %v26372_v58  ;;  %v26392_v58 = vld [vmem:[#allocation2 + $0x329] sm:$0xff] }
 0x634   : > { %20832 = vmatprep.mubr.msk.f32.mxu1 %vm6970_vm6, %v26376_v39  ;;  %28123 = vst [vmem:[#allocation68_spill] sm:$0xff] %v26392_v58  ;;  %v26396_v39 = vld [vmem:[#allocation2 + $0x331] sm:$0xff] }
 0x635   : > { %28124 = vst [vmem:[#allocation69_spill] sm:$0xff] %v26396_v39 }
 0x637   : > { %20833 = vmatmul.mubr.msk.f32.gmra.mrb[106].mxu1 %vm6970_vm6, %v26380_v56  ;;  %v26400_v56 = vld [vmem:[#allocation2 + $0x349] sm:$0xff] }
 0x638   : > { %20835 = vmatprep.mubr.msk.f32.mxu1 %vm6970_vm6, %v26384_v18  ;;  %28125 = vst [vmem:[#allocation70_spill] sm:$0xff] %v26400_v56  ;;  %v26404_v18 = vld [vmem:[#allocation2 + $0x351] sm:$0xff] }
 0x639   : > { %28126 = vst [vmem:[#allocation71_spill] sm:$0xff] %v26404_v18 }
 0x63b   : > { %20836 = vmatmul.mubr.msk.f32.gmra.mrb[108].mxu1 %vm6970_vm6, %v26388_v51  ;;  %v26408_v51 = vld [vmem:[#allocation2 + $0x369] sm:$0xff] }
 0x63c   : > { %20838 = vmatprep.mubr.msk.f32.mxu1 %vm6970_vm6, %v26392_v58  ;;  %28127 = vst [vmem:[#allocation72_spill] sm:$0xff] %v26408_v51  ;;  %v26412_v58 = vld [vmem:[#allocation2 + $0x371] sm:$0xff] }
 0x63d   : > { %28128 = vst [vmem:[#allocation73_spill] sm:$0xff] %v26412_v58 }
 0x63f   : > { %20839 = vmatmul.mubr.msk.f32.gmra.mrb[110].mxu1 %vm6970_vm6, %v26396_v39  ;;  %v26416_v39 = vld [vmem:[#allocation2 + $0x389] sm:$0xff] }
 0x640   : > { %20841 = vmatprep.mubr.msk.f32.mxu1 %vm6970_vm6, %v26400_v56  ;;  %28129 = vst [vmem:[#allocation74_spill] sm:$0xff] %v26416_v39  ;;  %v26420_v56 = vld [vmem:[#allocation2 + $0x391] sm:$0xff] }
 0x641   : > { %28130 = vst [vmem:[#allocation75_spill] sm:$0xff] %v26420_v56 }
 0x643   : > { %20842 = vmatmul.mubr.msk.f32.gmra.mrb[112].mxu1 %vm6970_vm6, %v26404_v18  ;;  %v26424_v18 = vld [vmem:[#allocation2 + $0x3a9] sm:$0xff] }
 0x644   : > { %20844 = vmatprep.mubr.msk.f32.mxu1 %vm6970_vm6, %v26408_v51  ;;  %28131 = vst [vmem:[#allocation76_spill] sm:$0xff] %v26424_v18  ;;  %v26428_v51 = vld [vmem:[#allocation2 + $0x3b1] sm:$0xff] }
 0x645   : > { %28132 = vst [vmem:[#allocation77_spill] sm:$0xff] %v26428_v51 }
 0x647   : > { %20845 = vmatmul.mubr.msk.f32.gmra.mrb[114].mxu1 %vm6970_vm6, %v26412_v58  ;;  %v26432_v58 = vld [vmem:[#allocation2 + $0x3c9] sm:$0xff] }
 0x648   : > { %20847 = vmatprep.mubr.msk.f32.mxu1 %vm6970_vm6, %v26416_v39  ;;  %28133 = vst [vmem:[#allocation78_spill] sm:$0xff] %v26432_v58  ;;  %v26436_v39 = vld [vmem:[#allocation2 + $0x3d1] sm:$0xff] }
 0x649   : > { %28134 = vst [vmem:[#allocation79_spill] sm:$0xff] %v26436_v39 }
 0x64b   : > { %20848 = vmatmul.mubr.msk.f32.gmra.mrb[116].mxu1 %vm6970_vm6, %v26420_v56  ;;  %v26440_v56 = vld [vmem:[#allocation2 + $0x3e9] sm:$0xff] }
 0x64c   : > { %20850 = vmatprep.mubr.msk.f32.mxu1 %vm6970_vm6, %v26424_v18  ;;  %28135 = vst [vmem:[#allocation80_spill] sm:$0xff] %v26440_v56  ;;  %v26444_v18 = vld [vmem:[#allocation2 + $0x3f1] sm:$0xff] }
 0x64f   : > { %20851 = vmatmul.mubr.msk.f32.gmra.mrb[118].mxu1 %vm6970_vm6, %v26428_v51  ;;  %v26448_v51 = vld [vmem:[#allocation2 + $0x409] sm:$0xff] }
 0x650   : > { %20853 = vmatprep.mubr.msk.f32.mxu1 %vm6970_vm6, %v26432_v58  ;;  %v26452_v58 = vld [vmem:[#allocation2 + $0x411] sm:$0xff] }
 0x653   : > { %20854 = vmatmul.mubr.msk.f32.gmra.mrb[120].mxu1 %vm6970_vm6, %v26436_v39  ;;  %v26456_v39 = vld [vmem:[#allocation2 + $0x429] sm:$0xff] }
 0x654   : > { %20856 = vmatprep.mubr.msk.f32.mxu1 %vm6970_vm6, %v26440_v56  ;;  %v26460_v56 = vld [vmem:[#allocation2 + $0x431] sm:$0xff] }
 0x657   : > { %20857 = vmatmul.mubr.msk.f32.gmra.mrb[122].mxu1 %vm6970_vm6, %v26444_v18 }
 0x658   : > { %20859 = vmatprep.mubr.msk.f32.mxu1 %vm6970_vm6, %v26448_v51 }
 0x65b   : > { %20860 = vmatmul.mubr.msk.f32.gmra.mrb[124].mxu1 %vm6970_vm6, %v26452_v58 }
 0x65c   : > { %20862 = vmatprep.mubr.msk.f32.mxu1 %vm6970_vm6, %v26456_v39 }
 0x65f   : > { %20863 = vmatmul.mubr.msk.f32.gmra.mrb[126].mxu1 %vm6970_vm6, %v26460_v56 }
 0x660   : > { %20869 = vmatprep.mubr.msk.f32.mxu1 %vm6970_vm6, %v25958_v7  ;;  %v26525_v7 = vld [vmem:[#allocation2 + $0x207] sm:$0xff] }
 0x663   : > { %20870 = vmatmul.mubr.msk.f32.vlgmr.msra.gmra.mrb[64].mxu1 %vm6970_vm6, %v25963_v6  ;;  %v26529_v6 = vld [vmem:[#allocation2 + $0x20f] sm:$0xff] }
 0x664   : > { %20872 = vmatprep.mubr.msk.f32.mxu1 %vm6970_vm6, %v25967_v48  ;;  %21807 = vmatpush3.bf16.msra.mxu1 %v26345_v33  ;;  %v17845_v48 = vld [vmem:[%s27740_s3 + $0x50] sm:$0xff]  ;;  %v26780_v33 = vld [vmem:[#allocation2 + $0x328] sm:$0xff] }
 0x667   : > { %20873 = vmatmul.mubr.msk.f32.gmra.mrb[66].mxu1 %vm6970_vm6, %v25971_v14  ;;  %v17846_v14 = vld [vmem:[%s27740_s3 + $0x58] sm:$0xff] }
 0x668   : > { %20875 = vmatprep.mubr.msk.f32.mxu1 %vm6970_vm6, %v25975_v29  ;;  %v21808_v29 = vpack.c.bf16 %v17846_v14, %v17845_v48  ;;  %v26784_v48 = vld [vmem:[#allocation2 + $0x330] sm:$0xff]  ;;  %v26788_v14 = vld [vmem:[#allocation2 + $0x348] sm:$0xff] }
 0x66a   : > { %21809 = vmatprep.subr.bf16.mxu1 %v21808_v29 }
 0x66b   : > { %20876 = vmatmul.mubr.msk.f32.gmra.mrb[68].mxu1 %vm6970_vm6, %v25979_v60  ;;  %v28136_v60 = vld [vmem:[#allocation24_spill] sm:$0xff] }
 0x66c   : > { %20878 = vmatprep.mubr.msk.f32.mxu1 %vm6970_vm6, %v25983_v10  ;;  %v28137_v10 = vld [vmem:[#allocation25_spill] sm:$0xff] }
 0x66f   : > { %20879 = vmatmul.mubr.msk.f32.gmra.mrb[70].mxu1 %vm6970_vm6, %v25987_v15  ;;  %v28138_v15 = vld [vmem:[#allocation26_spill] sm:$0xff] }
 0x670   : > { %20881 = vmatprep.mubr.msk.f32.mxu1 %vm6970_vm6, %v25991_v30  ;;  %v26599_v30 = vld [vmem:[#allocation2 + $0x447] sm:$0xff] }
 0x673   : > { %20882 = vmatmul.mubr.msk.f32.gmra.mrb[72].mxu1 %vm6970_vm6, %v25995_v2  ;;  %v26603_v2 = vld [vmem:[#allocation2 + $0x44f] sm:$0xff] }
 0x674   : > { %20884 = vmatprep.mubr.msk.f32.mxu1 %vm6970_vm6, %v25999_v41  ;;  %v9738_v41 = vld [vmem:[#allocation2 + $0x28] sm:$0xff] }
 0x677   : > { %20885 = vmatmul.mubr.msk.f32.gmra.mrb[74].mxu1 %vm6970_vm6, %v26003_v32  ;;  %v9739_v32 = vld [vmem:[#allocation2 + $0x30] sm:$0xff] }
 0x678   : > { %20887 = vmatprep.mubr.msk.f32.mxu1 %vm6970_vm6, %v26007_v16  ;;  %v26609_v16 = vld [vmem:[#allocation2 + $0x48] sm:$0xff] }
 0x67b   : > { %20888 = vmatmul.mubr.msk.f32.gmra.mrb[76].mxu1 %vm6970_vm6, %v26011_v49  ;;  %v26613_v49 = vld [vmem:[#allocation2 + $0x50] sm:$0xff] }
 0x67c   : > { %20890 = vmatprep.mubr.msk.f32.mxu1 %vm6970_vm6, %v26015_v43  ;;  %v26617_v43 = vld [vmem:[#allocation2 + $0x68] sm:$0xff] }
 0x67f   : > { %20891 = vmatmul.mubr.msk.f32.gmra.mrb[78].mxu1 %vm6970_vm6, %v26019_v53  ;;  %v26621_v53 = vld [vmem:[#allocation2 + $0x70] sm:$0xff] }
 0x680   : > { %20893 = vmatprep.mubr.msk.f32.mxu1 %vm6970_vm6, %v26023_v45  ;;  %v26625_v45 = vld [vmem:[#allocation2 + $0x88] sm:$0xff] }
 0x683   : > { %20894 = vmatmul.mubr.msk.f32.gmra.mrb[80].mxu1 %vm6970_vm6, %v26027_v0  ;;  %v26629_v0 = vld [vmem:[#allocation2 + $0x90] sm:$0xff] }
 0x684   : > { %20896 = vmatprep.mubr.msk.f32.mxu1 %vm6970_vm6, %v26031_v31  ;;  %v26633_v31 = vld [vmem:[#allocation2 + $0xa8] sm:$0xff] }
 0x687   : > { %20897 = vmatmul.mubr.msk.f32.gmra.mrb[82].mxu1 %vm6970_vm6, %v26035_v50  ;;  %v26637_v50 = vld [vmem:[#allocation2 + $0xb0] sm:$0xff] }
 0x688   : > { %20899 = vmatprep.mubr.msk.f32.mxu1 %vm6970_vm6, %v26039_v35  ;;  %v26641_v35 = vld [vmem:[#allocation2 + $0xc8] sm:$0xff] }
 0x68b   : > { %20900 = vmatmul.mubr.msk.f32.gmra.mrb[84].mxu1 %vm6970_vm6, %v26043_v3  ;;  %v26645_v3 = vld [vmem:[#allocation2 + $0xd0] sm:$0xff] }
 0x68c   : > { %20902 = vmatprep.mubr.msk.f32.mxu1 %vm6970_vm6, %v26047_v52  ;;  %v26649_v52 = vld [vmem:[#allocation2 + $0xe8] sm:$0xff] }
 0x68f   : > { %20903 = vmatmul.mubr.msk.f32.gmra.mrb[86].mxu1 %vm6970_vm6, %v26051_v1  ;;  %v26653_v1 = vld [vmem:[#allocation2 + $0xf0] sm:$0xff] }
 0x690   : > { %20905 = vmatprep.mubr.msk.f32.mxu1 %vm6970_vm6, %v26055_v8  ;;  %v26657_v8 = vld [vmem:[#allocation2 + $0x108] sm:$0xff] }
 0x693   : > { %20906 = vmatmul.mubr.msk.f32.gmra.mrb[88].mxu1 %vm6970_vm6, %v26059_v34  ;;  %v26661_v34 = vld [vmem:[#allocation2 + $0x110] sm:$0xff] }
 0x694   : > { %20908 = vmatprep.mubr.msk.f32.mxu1 %vm6970_vm6, %v26063_v20  ;;  %v26665_v20 = vld [vmem:[#allocation2 + $0x128] sm:$0xff] }
 0x697   : > { %20909 = vmatmul.mubr.msk.f32.gmra.mrb[90].mxu1 %vm6970_vm6, %v26067_v62  ;;  %v26669_v62 = vld [vmem:[#allocation2 + $0x130] sm:$0xff] }
 0x698   : > { %20911 = vmatprep.mubr.msk.f32.mxu1 %vm6970_vm6, %v26071_v36  ;;  %v26673_v36 = vld [vmem:[#allocation2 + $0x148] sm:$0xff] }
 0x69b   : > { %20912 = vmatmul.mubr.msk.f32.gmra.mrb[92].mxu1 %vm6970_vm6, %v26075_v19  ;;  %v26677_v19 = vld [vmem:[#allocation2 + $0x150] sm:$0xff] }
 0x69c   : > { %20914 = vmatprep.mubr.msk.f32.mxu1 %vm6970_vm6, %v26525_v7 }
 0x69f   : > { %20915 = vmatmul.mubr.msk.f32.gmra.mrb[94].mxu1 %vm6970_vm6, %v26529_v6 }
 0x6a0   : > { %20917 = vmatprep.mubr.msk.f32.mxu1 %vm6970_vm6, %v26081_v61  ;;  %v26681_v61 = vld [vmem:[#allocation2 + $0x168] sm:$0xff] }
 0x6a3   : > { %20918 = vmatmul.mubr.msk.f32.gmra.mrb[96].mxu1 %vm6970_vm6, %v26093_v40  ;;  %v26685_v40 = vld [vmem:[#allocation2 + $0x170] sm:$0xff] }
 0x6a4   : > { %20920 = vmatprep.mubr.msk.f32.mxu1 %vm6970_vm6, %v26098_v22  ;;  %v26689_v22 = vld [vmem:[#allocation2 + $0x188] sm:$0xff] }
 0x6a7   : > { %20921 = vmatmul.mubr.msk.f32.gmra.mrb[98].mxu1 %vm6970_vm6, %v26102_v55  ;;  %v26693_v55 = vld [vmem:[#allocation2 + $0x190] sm:$0xff] }
 0x6a8   : > { %20923 = vmatprep.mubr.msk.f32.mxu1 %vm6970_vm6, %v26106_v44  ;;  %v26697_v44 = vld [vmem:[#allocation2 + $0x1a8] sm:$0xff] }
 0x6ab   : > { %20924 = vmatmul.mubr.msk.f32.gmra.mrb[100].mxu1 %vm6970_vm6, %v26110_v54  ;;  %v26701_v54 = vld [vmem:[#allocation2 + $0x1b0] sm:$0xff] }
 0x6ac   : > { %20926 = vmatprep.mubr.msk.f32.mxu1 %vm6970_vm6, %v26114_v59  ;;  %v26705_v59 = vld [vmem:[#allocation2 + $0x1c8] sm:$0xff] }
 0x6af   : > { %20927 = vmatmul.mubr.msk.f32.gmra.mrb[102].mxu1 %vm6970_vm6, %v26118_v23  ;;  %v26709_v23 = vld [vmem:[#allocation2 + $0x1d0] sm:$0xff] }
 0x6b0   : > { %20929 = vmatprep.mubr.msk.f32.mxu1 %vm6970_vm6, %v26122_v42  ;;  %v26713_v42 = vld [vmem:[#allocation2 + $0x1e8] sm:$0xff] }
 0x6b3   : > { %20930 = vmatmul.mubr.msk.f32.gmra.mrb[104].mxu1 %vm6970_vm6, %v26126_v11  ;;  %v26717_v11 = vld [vmem:[#allocation2 + $0x1f0] sm:$0xff] }
 0x6b4   : > { %20932 = vmatprep.mubr.msk.f32.mxu1 %vm6970_vm6, %v26130_v12  ;;  %v26721_v12 = vld [vmem:[#allocation2 + $0x208] sm:$0xff] }
 0x6b7   : > { %20933 = vmatmul.mubr.msk.f32.gmra.mrb[106].mxu1 %vm6970_vm6, %v26134_v17  ;;  %v26725_v17 = vld [vmem:[#allocation2 + $0x210] sm:$0xff] }
 0x6b8   : > { %20935 = vmatprep.mubr.msk.f32.mxu1 %vm6970_vm6, %v26138_v37  ;;  %v9770_v37 = vld [vmem:[#allocation2 + $0x268] sm:$0xff] }
 0x6bb   : > { %20936 = vmatmul.mubr.msk.f32.gmra.mrb[108].mxu1 %vm6970_vm6, %v26142_v24  ;;  %v9771_v24 = vld [vmem:[#allocation2 + $0x270] sm:$0xff] }
 0x6bc   : > { %20938 = vmatprep.mubr.msk.f32.mxu1 %vm6970_vm6, %v26146_v57  ;;  %v26731_v57 = vld [vmem:[#allocation2 + $0x288] sm:$0xff] }
 0x6bf   : > { %20939 = vmatmul.mubr.msk.f32.gmra.mrb[110].mxu1 %vm6970_vm6, %v26150_v9  ;;  %v17911_v9 = vld [vmem:[%s27740_s3 + $0x60] sm:$0xff] }
 0x6c0   : > { %20941 = vmatprep.mubr.msk.f32.mxu1 %vm6970_vm6, %v26154_v27  ;;  %v17912_v27 = vld [vmem:[%s27740_s3 + $0x68] sm:$0xff] }
 0x6c3   : > { %20942 = vmatmul.mubr.msk.f32.gmra.mrb[112].mxu1 %vm6970_vm6, %v26158_v63  ;;  %v26741_v63 = vpack.c.bf16 %v17912_v27, %v17911_v9  ;;  %v26824_v9 = vld [vmem:[#allocation2 + $0x3d0] sm:$0xff]  ;;  %v26828_v27 = vld [vmem:[#allocation2 + $0x3e8] sm:$0xff] }
 0x6c4   : > { %20944 = vmatprep.mubr.msk.f32.mxu1 %vm6970_vm6, %v26162_v38  ;;  %v26743_v38 = vld [vmem:[#allocation2 + $0x290] sm:$0xff]  ;;  %28145 = vst [vmem:[#allocation13_spill] sm:$0xff] %v26824_v9  ;;  %28146 = vst [vmem:[#allocation14_spill] sm:$0xff] %v26828_v27 }
 0x6c7   : > { %20945 = vmatmul.mubr.msk.f32.gmra.mrb[114].mxu1 %vm6970_vm6, %v26166_v4  ;;  %v26748_v4 = vld [vmem:[#allocation2 + $0x2a8] sm:$0xff] }
 0x6c8   : > { %20947 = vmatprep.mubr.msk.f32.mxu1 %vm6970_vm6, %v26170_v46  ;;  %v26752_v46 = vld [vmem:[#allocation2 + $0x2b0] sm:$0xff] }
 0x6cb   : > { %20948 = vmatmul.mubr.msk.f32.gmra.mrb[116].mxu1 %vm6970_vm6, %v26174_v28  ;;  %v26756_v28 = vld [vmem:[#allocation2 + $0x2c8] sm:$0xff] }
 0x6cc   : > { %20950 = vmatprep.mubr.msk.f32.mxu1 %vm6970_vm6, %v26178_v25  ;;  %v26760_v25 = vld [vmem:[#allocation2 + $0x2d0] sm:$0xff] }
 0x6cf   : > { %20951 = vmatmul.mubr.msk.f32.gmra.mrb[118].mxu1 %vm6970_vm6, %v26182_v13  ;;  %v26764_v13 = vld [vmem:[#allocation2 + $0x2e8] sm:$0xff] }
 0x6d0   : > { %20953 = vmatprep.mubr.msk.f32.mxu1 %vm6970_vm6, %v26186_v5  ;;  %v26768_v5 = vld [vmem:[#allocation2 + $0x2f0] sm:$0xff] }
 0x6d3   : > { %20954 = vmatmul.mubr.msk.f32.gmra.mrb[120].mxu1 %vm6970_vm6, %v26190_v26  ;;  %v26772_v26 = vld [vmem:[#allocation2 + $0x308] sm:$0xff] }
 0x6d4   : > { %20956 = vmatprep.mubr.msk.f32.mxu1 %vm6970_vm6, %v26194_v47  ;;  %v26776_v47 = vld [vmem:[#allocation2 + $0x310] sm:$0xff] }
 0x6d7   : > { %20957 = vmatmul.mubr.msk.f32.gmra.mrb[122].mxu1 %vm6970_vm6, %v28136_v60  ;;  %v26796_v60 = vld [vmem:[#allocation2 + $0x368] sm:$0xff] }
 0x6d8   : > { %20959 = vmatprep.mubr.msk.f32.mxu1 %vm6970_vm6, %v28137_v10  ;;  %v26800_v10 = vld [vmem:[#allocation2 + $0x370] sm:$0xff] }
 0x6d9   : > { %28139 = vst [vmem:[#allocation81_spill] sm:$0xff] %v26800_v10 }
 0x6db   : > { %20960 = vmatmul.mubr.msk.f32.gmra.mrb[124].mxu1 %vm6970_vm6, %v28138_v15  ;;  %v26804_v15 = vld [vmem:[#allocation2 + $0x388] sm:$0xff] }
 0x6dc   : > { %20962 = vmatprep.mubr.msk.f32.mxu1 %vm6970_vm6, %v26599_v30  ;;  %28140 = vst [vmem:[#allocation8_spill] sm:$0xff] %v26804_v15 }
 0x6df   : > { %20963 = vmatmul.mubr.msk.f32.gmra.mrb[126].mxu1 %vm6970_vm6, %v26603_v2 }
 0x6e0   : > { %20969 = vmatprep.mubr.msk.f32.mxu1 %vm6970_vm6, %v9738_v41  ;;  %v26808_v41 = vld [vmem:[#allocation2 + $0x390] sm:$0xff] }
 0x6e1   : > { %28141 = vst [vmem:[#allocation9_spill] sm:$0xff] %v26808_v41 }
 0x6e3   : > { %20970 = vmatmul.mubr.msk.f32.vlgmr.msra.gmra.mrb[64].mxu1 %vm6970_vm6, %v9739_v32  ;;  %v26812_v32 = vld [vmem:[#allocation2 + $0x3a8] sm:$0xff] }
 0x6e4   : > { %20972 = vmatprep.mubr.msk.f32.mxu1 %vm6970_vm6, %v26609_v16  ;;  %21811 = vmatpush3.bf16.msra.mxu1 %v21808_v29  ;;  %v26792_v29 = vld [vmem:[#allocation2 + $0x350] sm:$0xff]  ;;  %28142 = vst [vmem:[#allocation10_spill] sm:$0xff] %v26812_v32 }
 0x6e5   : > { %21813 = vmatprep.subr.bf16.mxu1 %v26741_v63 }
 0x6e7   : > { %20973 = vmatmul.mubr.msk.f32.gmra.mrb[66].mxu1 %vm6970_vm6, %v26613_v49 }
 0x6e8   : > { %20975 = vmatprep.mubr.msk.f32.mxu1 %vm6970_vm6, %v26617_v43 }
 0x6eb   : > { %20976 = vmatmul.mubr.msk.f32.gmra.mrb[68].mxu1 %vm6970_vm6, %v26621_v53 }
 0x6ec   : > { %20978 = vmatprep.mubr.msk.f32.mxu1 %vm6970_vm6, %v26625_v45 }
 0x6ef   : > { %20979 = vmatmul.mubr.msk.f32.gmra.mrb[70].mxu1 %vm6970_vm6, %v26629_v0 }
 0x6f0   : > { %20981 = vmatprep.mubr.msk.f32.mxu1 %vm6970_vm6, %v26633_v31 }
 0x6f3   : > { %20982 = vmatmul.mubr.msk.f32.gmra.mrb[72].mxu1 %vm6970_vm6, %v26637_v50 }
 0x6f4   : > { %20984 = vmatprep.mubr.msk.f32.mxu1 %vm6970_vm6, %v26641_v35 }
 0x6f7   : > { %20985 = vmatmul.mubr.msk.f32.gmra.mrb[74].mxu1 %vm6970_vm6, %v26645_v3 }
 0x6f8   : > { %20987 = vmatprep.mubr.msk.f32.mxu1 %vm6970_vm6, %v26649_v52 }
 0x6fb   : > { %20988 = vmatmul.mubr.msk.f32.gmra.mrb[76].mxu1 %vm6970_vm6, %v26653_v1 }
 0x6fc   : > { %20990 = vmatprep.mubr.msk.f32.mxu1 %vm6970_vm6, %v26657_v8 }
 0x6ff   : > { %20991 = vmatmul.mubr.msk.f32.gmra.mrb[78].mxu1 %vm6970_vm6, %v26661_v34 }
 0x700   : > { %20993 = vmatprep.mubr.msk.f32.mxu1 %vm6970_vm6, %v26665_v20 }
 0x703   : > { %20994 = vmatmul.mubr.msk.f32.gmra.mrb[80].mxu1 %vm6970_vm6, %v26669_v62 }
 0x704   : > { %20996 = vmatprep.mubr.msk.f32.mxu1 %vm6970_vm6, %v26673_v36 }
 0x707   : > { %20997 = vmatmul.mubr.msk.f32.gmra.mrb[82].mxu1 %vm6970_vm6, %v26677_v19 }
 0x708   : > { %20999 = vmatprep.mubr.msk.f32.mxu1 %vm6970_vm6, %v26681_v61 }
 0x70b   : > { %21000 = vmatmul.mubr.msk.f32.gmra.mrb[84].mxu1 %vm6970_vm6, %v26685_v40 }
 0x70c   : > { %21002 = vmatprep.mubr.msk.f32.mxu1 %vm6970_vm6, %v26689_v22 }
 0x70f   : > { %21003 = vmatmul.mubr.msk.f32.gmra.mrb[86].mxu1 %vm6970_vm6, %v26693_v55 }
 0x710   : > { %21005 = vmatprep.mubr.msk.f32.mxu1 %vm6970_vm6, %v26697_v44 }
 0x713   : > { %21006 = vmatmul.mubr.msk.f32.gmra.mrb[88].mxu1 %vm6970_vm6, %v26701_v54 }
 0x714   : > { %21008 = vmatprep.mubr.msk.f32.mxu1 %vm6970_vm6, %v26705_v59 }
 0x717   : > { %21009 = vmatmul.mubr.msk.f32.gmra.mrb[90].mxu1 %vm6970_vm6, %v26709_v23 }
 0x718   : > { %21011 = vmatprep.mubr.msk.f32.mxu1 %vm6970_vm6, %v26713_v42 }
 0x71b   : > { %21012 = vmatmul.mubr.msk.f32.gmra.mrb[92].mxu1 %vm6970_vm6, %v26717_v11 }
 0x71c   : > { %21014 = vmatprep.mubr.msk.f32.mxu1 %vm6970_vm6, %v26721_v12 }
 0x71f   : > { %21015 = vmatmul.mubr.msk.f32.gmra.mrb[94].mxu1 %vm6970_vm6, %v26725_v17 }
 0x720   : > { %21017 = vmatprep.mubr.msk.f32.mxu1 %vm6970_vm6, %v9770_v37  ;;  %v26816_v37 = vld [vmem:[#allocation2 + $0x3b0] sm:$0xff] }
 0x721   : > { %28143 = vst [vmem:[#allocation11_spill] sm:$0xff] %v26816_v37 }
 0x723   : > { %21018 = vmatmul.mubr.msk.f32.gmra.mrb[96].mxu1 %vm6970_vm6, %v9771_v24  ;;  %v26820_v24 = vld [vmem:[#allocation2 + $0x3c8] sm:$0xff] }
 0x724   : > { %21020 = vmatprep.mubr.msk.f32.mxu1 %vm6970_vm6, %v26731_v57  ;;  %28144 = vst [vmem:[#allocation12_spill] sm:$0xff] %v26820_v24 }
 0x727   : > { %21021 = vmatmul.mubr.msk.f32.gmra.mrb[98].mxu1 %vm6970_vm6, %v26743_v38 }
 0x728   : > { %21023 = vmatprep.mubr.msk.f32.mxu1 %vm6970_vm6, %v26748_v4 }
 0x72b   : > { %21024 = vmatmul.mubr.msk.f32.gmra.mrb[100].mxu1 %vm6970_vm6, %v26752_v46 }
 0x72c   : > { %21026 = vmatprep.mubr.msk.f32.mxu1 %vm6970_vm6, %v26756_v28 }
 0x72f   : > { %21027 = vmatmul.mubr.msk.f32.gmra.mrb[102].mxu1 %vm6970_vm6, %v26760_v25 }
 0x730   : > { %21029 = vmatprep.mubr.msk.f32.mxu1 %vm6970_vm6, %v26764_v13 }
 0x733   : > { %21030 = vmatmul.mubr.msk.f32.gmra.mrb[104].mxu1 %vm6970_vm6, %v26768_v5 }
 0x734   : > { %21032 = vmatprep.mubr.msk.f32.mxu1 %vm6970_vm6, %v26772_v26 }
 0x737   : > { %21033 = vmatmul.mubr.msk.f32.gmra.mrb[106].mxu1 %vm6970_vm6, %v26776_v47 }
 0x738   : > { %21035 = vmatprep.mubr.msk.f32.mxu1 %vm6970_vm6, %v26780_v33 }
 0x73b   : > { %21036 = vmatmul.mubr.msk.f32.gmra.mrb[108].mxu1 %vm6970_vm6, %v26784_v48 }
 0x73c   : > { %21038 = vmatprep.mubr.msk.f32.mxu1 %vm6970_vm6, %v26788_v14 }
 0x73f   : > { %21039 = vmatmul.mubr.msk.f32.gmra.mrb[110].mxu1 %vm6970_vm6, %v26792_v29 }
 0x740   : > { %21041 = vmatprep.mubr.msk.f32.mxu1 %vm6970_vm6, %v26796_v60 }
 0x743   : > { %21042 = vmatmul.mubr.msk.f32.gmra.mrb[112].mxu1 %vm6970_vm6, %v26800_v10  ;;  %v28193_v10 = vld [vmem:[#allocation64_spill] sm:$0xff] }
 0x744   : > { %21044 = vmatprep.mubr.msk.f32.mxu1 %vm6970_vm6, %v26804_v15  ;;  %v28159_v15 = vld [vmem:[#allocation32_spill] sm:$0xff] }
 0x747   : > { %21045 = vmatmul.mubr.msk.f32.gmra.mrb[114].mxu1 %vm6970_vm6, %v26808_v41  ;;  %v28155_v41 = vld [vmem:[#allocation28_spill] sm:$0xff] }
 0x748   : > { %21047 = vmatprep.mubr.msk.f32.mxu1 %vm6970_vm6, %v26812_v32  ;;  %v26832_v32 = vld [vmem:[#allocation2 + $0x3f0] sm:$0xff] }
 0x749   : > { %28147 = vst [vmem:[#allocation15_spill] sm:$0xff] %v26832_v32 }
 0x74b   : > { %21048 = vmatmul.mubr.msk.f32.gmra.mrb[116].mxu1 %vm6970_vm6, %v26816_v37  ;;  %v26836_v37 = vld [vmem:[#allocation2 + $0x408] sm:$0xff] }
 0x74c   : > { %21050 = vmatprep.mubr.msk.f32.mxu1 %vm6970_vm6, %v26820_v24  ;;  %28148 = vst [vmem:[#allocation16_spill] sm:$0xff] %v26836_v37  ;;  %v26840_v24 = vld [vmem:[#allocation2 + $0x410] sm:$0xff] }
 0x74d   : > { %28149 = vst [vmem:[#allocation17_spill] sm:$0xff] %v26840_v24 }
 0x74f   : > { %21051 = vmatmul.mubr.msk.f32.gmra.mrb[118].mxu1 %vm6970_vm6, %v26824_v9  ;;  %v26844_v9 = vld [vmem:[#allocation2 + $0x428] sm:$0xff] }
 0x750   : > { %21053 = vmatprep.mubr.msk.f32.mxu1 %vm6970_vm6, %v26828_v27  ;;  %28150 = vst [vmem:[#allocation18_spill] sm:$0xff] %v26844_v9  ;;  %v26848_v27 = vld [vmem:[#allocation2 + $0x430] sm:$0xff] }
 0x751   : > { %28151 = vst [vmem:[#allocation19_spill] sm:$0xff] %v26848_v27 }
 0x753   : > { %21054 = vmatmul.mubr.msk.f32.gmra.mrb[120].mxu1 %vm6970_vm6, %v26832_v32  ;;  %v26852_v32 = vld [vmem:[#allocation2 + $0x448] sm:$0xff] }
 0x754   : > { %21056 = vmatprep.mubr.msk.f32.mxu1 %vm6970_vm6, %v26836_v37  ;;  %28152 = vst [vmem:[#allocation20_spill] sm:$0xff] %v26852_v32  ;;  %v26856_v37 = vld [vmem:[#allocation2 + $0x450] sm:$0xff] }
 0x755   : > { %28153 = vst [vmem:[#allocation21_spill] sm:$0xff] %v26856_v37 }
 0x757   : > { %21057 = vmatmul.mubr.msk.f32.gmra.mrb[122].mxu1 %vm6970_vm6, %v26840_v24  ;;  %v28154_v24 = vld [vmem:[#allocation27_spill] sm:$0xff] }
 0x758   : > { %21059 = vmatprep.mubr.msk.f32.mxu1 %vm6970_vm6, %v26844_v9  ;;  %v28156_v9 = vld [vmem:[#allocation29_spill] sm:$0xff] }
 0x75b   : > { %21060 = vmatmul.mubr.msk.f32.gmra.mrb[124].mxu1 %vm6970_vm6, %v26848_v27  ;;  %v28157_v27 = vld [vmem:[#allocation30_spill] sm:$0xff] }
 0x75c   : > { %21062 = vmatprep.mubr.msk.f32.mxu1 %vm6970_vm6, %v26852_v32  ;;  %v28158_v32 = vld [vmem:[#allocation31_spill] sm:$0xff] }
 0x75f   : > { %21063 = vmatmul.mubr.msk.f32.gmra.mrb[126].mxu1 %vm6970_vm6, %v26856_v37  ;;  %v28160_v37 = vld [vmem:[#allocation33_spill] sm:$0xff] }
 0x760   : > { %21069 = vmatprep.mubr.msk.f32.mxu1 %vm6970_vm6, %v28154_v24  ;;  %v28161_v24 = vld [vmem:[#allocation34_spill] sm:$0xff] }
 0x763   : > { %21070 = vmatmul.mubr.msk.f32.vlgmr.msra.gmra.mrb[64].mxu1 %vm6970_vm6, %v28155_v41  ;;  %v28162_v41 = vld [vmem:[#allocation35_spill] sm:$0xff] }
 0x764   : > { %21072 = vmatprep.mubr.msk.f32.mxu1 %vm6970_vm6, %v28156_v9  ;;  %21815 = vmatpush3.bf16.msra.mxu1 %v26741_v63  ;;  %v28163_v9 = vld [vmem:[#allocation36_spill] sm:$0xff]  ;;  %v28164_v63 = vld [vmem:[#allocation37_spill] sm:$0xff] }
 0x767   : > { %21073 = vmatmul.mubr.msk.f32.gmra.mrb[66].mxu1 %vm6970_vm6, %v28157_v27  ;;  %v28165_v27 = vld [vmem:[#allocation38_spill] sm:$0xff] }
 0x768   : > { %21075 = vmatprep.mubr.msk.f32.mxu1 %vm6970_vm6, %v28158_v32  ;;  %v28166_v32 = vld [vmem:[#allocation39_spill] sm:$0xff] }
 0x76b   : > { %21076 = vmatmul.mubr.msk.f32.gmra.mrb[68].mxu1 %vm6970_vm6, %v28159_v15  ;;  %v28167_v15 = vld [vmem:[#allocation40_spill] sm:$0xff] }
 0x76c   : > { %21078 = vmatprep.mubr.msk.f32.mxu1 %vm6970_vm6, %v28160_v37  ;;  %v28168_v37 = vld [vmem:[#allocation41_spill] sm:$0xff] }
 0x76f   : > { %21079 = vmatmul.mubr.msk.f32.gmra.mrb[70].mxu1 %vm6970_vm6, %v28161_v24  ;;  %v28169_v24 = vld [vmem:[#allocation42_spill] sm:$0xff] }
 0x770   : > { %21081 = vmatprep.mubr.msk.f32.mxu1 %vm6970_vm6, %v28162_v41  ;;  %v28170_v41 = vld [vmem:[#allocation43_spill] sm:$0xff] }
 0x773   : > { %21082 = vmatmul.mubr.msk.f32.gmra.mrb[72].mxu1 %vm6970_vm6, %v28163_v9  ;;  %v28171_v9 = vld [vmem:[#allocation44_spill] sm:$0xff] }
 0x774   : > { %21084 = vmatprep.mubr.msk.f32.mxu1 %vm6970_vm6, %v28164_v63  ;;  %v28172_v63 = vld [vmem:[#allocation45_spill] sm:$0xff] }
 0x777   : > { %21085 = vmatmul.mubr.msk.f32.gmra.mrb[74].mxu1 %vm6970_vm6, %v28165_v27  ;;  %v28173_v27 = vld [vmem:[#allocation46_spill] sm:$0xff] }
 0x778   : > { %21087 = vmatprep.mubr.msk.f32.mxu1 %vm6970_vm6, %v28166_v32  ;;  %v28174_v32 = vld [vmem:[#allocation47_spill] sm:$0xff] }
 0x77b   : > { %21088 = vmatmul.mubr.msk.f32.gmra.mrb[76].mxu1 %vm6970_vm6, %v28167_v15  ;;  %v28175_v15 = vld [vmem:[#allocation48_spill] sm:$0xff] }
 0x77c   : > { %21090 = vmatprep.mubr.msk.f32.mxu1 %vm6970_vm6, %v28168_v37  ;;  %v28176_v37 = vld [vmem:[#allocation49_spill] sm:$0xff] }
 0x77f   : > { %21091 = vmatmul.mubr.msk.f32.gmra.mrb[78].mxu1 %vm6970_vm6, %v28169_v24  ;;  %v28177_v24 = vld [vmem:[#allocation50_spill] sm:$0xff] }
 0x780   : > { %21093 = vmatprep.mubr.msk.f32.mxu1 %vm6970_vm6, %v28170_v41  ;;  %v28178_v41 = vld [vmem:[#allocation51_spill] sm:$0xff] }
 0x783   : > { %21094 = vmatmul.mubr.msk.f32.gmra.mrb[80].mxu1 %vm6970_vm6, %v28171_v9  ;;  %v28179_v9 = vld [vmem:[#allocation52_spill] sm:$0xff] }
 0x784   : > { %21096 = vmatprep.mubr.msk.f32.mxu1 %vm6970_vm6, %v28172_v63  ;;  %v28180_v63 = vld [vmem:[#allocation53_spill] sm:$0xff] }
 0x787   : > { %21097 = vmatmul.mubr.msk.f32.gmra.mrb[82].mxu1 %vm6970_vm6, %v28173_v27  ;;  %v28181_v27 = vld [vmem:[#allocation54_spill] sm:$0xff] }
 0x788   : > { %21099 = vmatprep.mubr.msk.f32.mxu1 %vm6970_vm6, %v28174_v32  ;;  %v28182_v32 = vld [vmem:[#allocation55_spill] sm:$0xff] }
 0x78b   : > { %21100 = vmatmul.mubr.msk.f32.gmra.mrb[84].mxu1 %vm6970_vm6, %v28175_v15  ;;  %v28183_v15 = vld [vmem:[#allocation56_spill] sm:$0xff] }
 0x78c   : > { %21102 = vmatprep.mubr.msk.f32.mxu1 %vm6970_vm6, %v28176_v37  ;;  %v26921_v37 = vld [vmem:[#allocation2 + $0x209] sm:$0xff] }
 0x78d   : > { %28184 = vst [vmem:[#allocation22_spill] sm:$0xff] %v26921_v37 }
 0x78f   : > { %21103 = vmatmul.mubr.msk.f32.gmra.mrb[86].mxu1 %vm6970_vm6, %v28177_v24  ;;  %v26925_v24 = vld [vmem:[#allocation2 + $0x211] sm:$0xff] }
 0x790   : > { %21105 = vmatprep.mubr.msk.f32.mxu1 %vm6970_vm6, %v28178_v41  ;;  %28185 = vst [vmem:[#allocation23_spill] sm:$0xff] %v26925_v24  ;;  %v28186_v41 = vld [vmem:[#allocation57_spill] sm:$0xff] }
 0x793   : > { %21106 = vmatmul.mubr.msk.f32.gmra.mrb[88].mxu1 %vm6970_vm6, %v28179_v9  ;;  %v17977_v9 = vld [vmem:[%s27740_s3 + $0x70] sm:$0xff] }
 0x794   : > { %21108 = vmatprep.mubr.msk.f32.mxu1 %vm6970_vm6, %v28180_v63  ;;  %v17978_v63 = vld [vmem:[%s27740_s3 + $0x78] sm:$0xff] }
 0x797   : > { %21109 = vmatmul.mubr.msk.f32.gmra.mrb[90].mxu1 %vm6970_vm6, %v28181_v27  ;;  %v28187_v27 = vld [vmem:[#allocation58_spill] sm:$0xff] }
 0x798   : > { %21111 = vmatprep.mubr.msk.f32.mxu1 %vm6970_vm6, %v28182_v32  ;;  %v21816_v32 = vpack.c.bf16 %v17978_v63, %v17977_v9  ;;  %v28194_v9 = vld [vmem:[#allocation65_spill] sm:$0xff]  ;;  %v28195_v63 = vld [vmem:[#allocation66_spill] sm:$0xff] }
 0x79a   : > { %21817 = vmatprep.subr.bf16.mxu1 %v21816_v32 }
 0x79b   : > { %21112 = vmatmul.mubr.msk.f32.gmra.mrb[92].mxu1 %vm6970_vm6, %v28183_v15  ;;  %v28188_v15 = vld [vmem:[#allocation59_spill] sm:$0xff] }
 0x79c   : > { %21114 = vmatprep.mubr.msk.f32.mxu1 %vm6970_vm6, %v26921_v37  ;;  %v28192_v37 = vld [vmem:[#allocation63_spill] sm:$0xff] }
 0x79f   : > { %21115 = vmatmul.mubr.msk.f32.gmra.mrb[94].mxu1 %vm6970_vm6, %v26925_v24  ;;  %v28191_v24 = vld [vmem:[#allocation62_spill] sm:$0xff] }
 0x7a0   : > { %21117 = vmatprep.mubr.msk.f32.mxu1 %vm6970_vm6, %v28186_v41  ;;  %v28189_v41 = vld [vmem:[#allocation60_spill] sm:$0xff] }
 0x7a3   : > { %21118 = vmatmul.mubr.msk.f32.gmra.mrb[96].mxu1 %vm6970_vm6, %v26347_v21  ;;  %v28190_v21 = vld [vmem:[#allocation61_spill] sm:$0xff] }
 0x7a4   : > { %21120 = vmatprep.mubr.msk.f32.mxu1 %vm6970_vm6, %v28187_v27  ;;  %v28196_v27 = vld [vmem:[#allocation67_spill] sm:$0xff] }
 0x7a7   : > { %21121 = vmatmul.mubr.msk.f32.gmra.mrb[98].mxu1 %vm6970_vm6, %v28188_v15  ;;  %v28197_v15 = vld [vmem:[#allocation68_spill] sm:$0xff] }
 0x7a8   : > { %21123 = vmatprep.mubr.msk.f32.mxu1 %vm6970_vm6, %v28189_v41  ;;  %v28198_v41 = vld [vmem:[#allocation69_spill] sm:$0xff] }
 0x7ab   : > { %21124 = vmatmul.mubr.msk.f32.gmra.mrb[100].mxu1 %vm6970_vm6, %v28190_v21  ;;  %v28202_v21 = vld [vmem:[#allocation73_spill] sm:$0xff] }
 0x7ac   : > { %21126 = vmatprep.mubr.msk.f32.mxu1 %vm6970_vm6, %v28191_v24  ;;  %v28199_v24 = vld [vmem:[#allocation70_spill] sm:$0xff] }
 0x7af   : > { %21127 = vmatmul.mubr.msk.f32.gmra.mrb[102].mxu1 %vm6970_vm6, %v28192_v37  ;;  %v28200_v37 = vld [vmem:[#allocation71_spill] sm:$0xff] }
 0x7b0   : > { %21129 = vmatprep.mubr.msk.f32.mxu1 %vm6970_vm6, %v28193_v10  ;;  %v28201_v10 = vld [vmem:[#allocation72_spill] sm:$0xff] }
 0x7b3   : > { %21130 = vmatmul.mubr.msk.f32.gmra.mrb[104].mxu1 %vm6970_vm6, %v28194_v9  ;;  %v28203_v9 = vld [vmem:[#allocation74_spill] sm:$0xff] }
 0x7b4   : > { %21132 = vmatprep.mubr.msk.f32.mxu1 %vm6970_vm6, %v28195_v63  ;;  %v28204_v63 = vld [vmem:[#allocation75_spill] sm:$0xff] }
 0x7b7   : > { %21133 = vmatmul.mubr.msk.f32.gmra.mrb[106].mxu1 %vm6970_vm6, %v28196_v27  ;;  %v28205_v27 = vld [vmem:[#allocation76_spill] sm:$0xff] }
 0x7b8   : > { %21135 = vmatprep.mubr.msk.f32.mxu1 %vm6970_vm6, %v28197_v15  ;;  %v28206_v15 = vld [vmem:[#allocation77_spill] sm:$0xff] }
 0x7bb   : > { %21136 = vmatmul.mubr.msk.f32.gmra.mrb[108].mxu1 %vm6970_vm6, %v28198_v41  ;;  %v28207_v41 = vld [vmem:[#allocation78_spill] sm:$0xff] }
 0x7bc   : > { %21138 = vmatprep.mubr.msk.f32.mxu1 %vm6970_vm6, %v28199_v24  ;;  %v28208_v24 = vld [vmem:[#allocation79_spill] sm:$0xff] }
 0x7bf   : > { %21139 = vmatmul.mubr.msk.f32.gmra.mrb[110].mxu1 %vm6970_vm6, %v28200_v37  ;;  %v28209_v37 = vld [vmem:[#allocation80_spill] sm:$0xff] }
 0x7c0   : > { %21141 = vmatprep.mubr.msk.f32.mxu1 %vm6970_vm6, %v28201_v10  ;;  %v26995_v10 = vld [vmem:[#allocation2 + $0x449] sm:$0xff] }
 0x7c3   : > { %21142 = vmatmul.mubr.msk.f32.gmra.mrb[112].mxu1 %vm6970_vm6, %v28202_v21  ;;  %v26999_v21 = vld [vmem:[#allocation2 + $0x451] sm:$0xff] }
 0x7c4   : > { %21144 = vmatprep.mubr.msk.f32.mxu1 %vm6970_vm6, %v28203_v9  ;;  %v11160_v9 = vld [vmem:[#allocation2 + $0x8f] sm:$0xff] }
 0x7c7   : > { %21145 = vmatmul.mubr.msk.f32.gmra.mrb[114].mxu1 %vm6970_vm6, %v28204_v63  ;;  %v11161_v63 = vld [vmem:[#allocation2 + $0xa7] sm:$0xff] }
 0x7c8   : > { %21147 = vmatprep.mubr.msk.f32.mxu1 %vm6970_vm6, %v28205_v27  ;;  %v11162_v27 = vld [vmem:[#allocation2 + $0xaf] sm:$0xff] }
 0x7cb   : > { %21148 = vmatmul.mubr.msk.f32.gmra.mrb[116].mxu1 %vm6970_vm6, %v28206_v15  ;;  %v11163_v15 = vld [vmem:[#allocation2 + $0xc7] sm:$0xff] }
 0x7cc   : > { %21150 = vmatprep.mubr.msk.f32.mxu1 %vm6970_vm6, %v28207_v41  ;;  %v11164_v41 = vld [vmem:[#allocation2 + $0xcf] sm:$0xff] }
 0x7cf   : > { %21151 = vmatmul.mubr.msk.f32.gmra.mrb[118].mxu1 %vm6970_vm6, %v28208_v24  ;;  %v11166_v24 = vld [vmem:[#allocation2 + $0xef] sm:$0xff] }
 0x7d0   : > { %21153 = vmatprep.mubr.msk.f32.mxu1 %vm6970_vm6, %v28209_v37  ;;  %v11167_v37 = vld [vmem:[#allocation2 + $0x107] sm:$0xff] }
 0x7d3   : > { %21154 = vmatmul.mubr.msk.f32.gmra.mrb[120].mxu1 %vm6970_vm6, %v26444_v18  ;;  %v11155_v18 = vld [vmem:[#allocation2 + $0x47] sm:$0xff] }
 0x7d4   : > { %21156 = vmatprep.mubr.msk.f32.mxu1 %vm6970_vm6, %v26448_v51  ;;  %v11159_v51 = vld [vmem:[#allocation2 + $0x87] sm:$0xff] }
 0x7d7   : > { %21157 = vmatmul.mubr.msk.f32.gmra.mrb[122].mxu1 %vm6970_vm6, %v26452_v58  ;;  %v11156_v58 = vld [vmem:[#allocation2 + $0x4f] sm:$0xff] }
 0x7d8   : > { %21159 = vmatprep.mubr.msk.f32.mxu1 %vm6970_vm6, %v26456_v39  ;;  %v11157_v39 = vld [vmem:[#allocation2 + $0x67] sm:$0xff] }
 0x7db   : > { %21160 = vmatmul.mubr.msk.f32.gmra.mrb[124].mxu1 %vm6970_vm6, %v26460_v56  ;;  %v11158_v56 = vld [vmem:[#allocation2 + $0x6f] sm:$0xff] }
 0x7dc   : > { %21162 = vmatprep.mubr.msk.f32.mxu1 %vm6970_vm6, %v26995_v10 }
 0x7df   : > { %21163 = vmatmul.mubr.msk.f32.gmra.mrb[126].mxu1 %vm6970_vm6, %v26999_v21 }
 0x7e0   : > { %21169 = vmatprep.mubr.msk.f32.mxu1 %vm6970_vm6, %v11155_v18  ;;  %v11168_v18 = vld [vmem:[#allocation2 + $0x10f] sm:$0xff] }
 0x7e3   : > { %21170 = vmatmul.mubr.msk.f32.vlgmr.msra.gmra.mrb[64].mxu1 %vm6970_vm6, %v11156_v58  ;;  %v11169_v58 = vld [vmem:[#allocation2 + $0x127] sm:$0xff] }
 0x7e4   : > { %21172 = vmatprep.mubr.msk.f32.mxu1 %vm6970_vm6, %v11157_v39  ;;  %21819 = vmatpush3.bf16.msra.mxu1 %v21816_v32  ;;  %v11165_v32 = vld [vmem:[#allocation2 + $0xe7] sm:$0xff]  ;;  %v11170_v39 = vld [vmem:[#allocation2 + $0x12f] sm:$0xff] }
 0x7e7   : > { %21173 = vmatmul.mubr.msk.f32.gmra.mrb[66].mxu1 %vm6970_vm6, %v11158_v56  ;;  %v11171_v56 = vld [vmem:[#allocation2 + $0x147] sm:$0xff] }
 0x7e8   : > { %21175 = vmatprep.mubr.msk.f32.mxu1 %vm6970_vm6, %v11159_v51  ;;  %v11172_v51 = vld [vmem:[#allocation2 + $0x14f] sm:$0xff] }
 0x7eb   : > { %21176 = vmatmul.mubr.msk.f32.gmra.mrb[68].mxu1 %vm6970_vm6, %v11160_v9  ;;  %v11173_v9 = vld [vmem:[#allocation2 + $0x167] sm:$0xff] }
 0x7ec   : > { %21178 = vmatprep.mubr.msk.f32.mxu1 %vm6970_vm6, %v11161_v63  ;;  %v11174_v63 = vld [vmem:[#allocation2 + $0x16f] sm:$0xff] }
 0x7ef   : > { %21179 = vmatmul.mubr.msk.f32.gmra.mrb[70].mxu1 %vm6970_vm6, %v11162_v27  ;;  %v11175_v27 = vld [vmem:[#allocation2 + $0x187] sm:$0xff] }
 0x7f0   : > { %21181 = vmatprep.mubr.msk.f32.mxu1 %vm6970_vm6, %v11163_v15  ;;  %v11176_v15 = vld [vmem:[#allocation2 + $0x18f] sm:$0xff] }
 0x7f3   : > { %21182 = vmatmul.mubr.msk.f32.gmra.mrb[72].mxu1 %vm6970_vm6, %v11164_v41  ;;  %v11177_v41 = vld [vmem:[#allocation2 + $0x1a7] sm:$0xff] }
 0x7f4   : > { %21184 = vmatprep.mubr.msk.f32.mxu1 %vm6970_vm6, %v11165_v32  ;;  %v11178_v32 = vld [vmem:[#allocation2 + $0x1af] sm:$0xff] }
 0x7f7   : > { %21185 = vmatmul.mubr.msk.f32.gmra.mrb[74].mxu1 %vm6970_vm6, %v11166_v24  ;;  %v11179_v24 = vld [vmem:[#allocation2 + $0x1c7] sm:$0xff] }
 0x7f8   : > { %21187 = vmatprep.mubr.msk.f32.mxu1 %vm6970_vm6, %v11167_v37  ;;  %v11180_v37 = vld [vmem:[#allocation2 + $0x1cf] sm:$0xff] }
 0x7fb   : > { %21188 = vmatmul.mubr.msk.f32.gmra.mrb[76].mxu1 %vm6970_vm6, %v11168_v18  ;;  %v11181_v18 = vld [vmem:[#allocation2 + $0x1e7] sm:$0xff] }
 0x7fc   : > { %21190 = vmatprep.mubr.msk.f32.mxu1 %vm6970_vm6, %v11169_v58  ;;  %v11182_v58 = vld [vmem:[#allocation2 + $0x1ef] sm:$0xff] }
 0x7ff   : > { %21191 = vmatmul.mubr.msk.f32.gmra.mrb[78].mxu1 %vm6970_vm6, %v11170_v39  ;;  %v11185_v39 = vld [vmem:[#allocation2 + $0x227] sm:$0xff] }
 0x800   : > { %21193 = vmatprep.mubr.msk.f32.mxu1 %vm6970_vm6, %v11171_v56  ;;  %v11186_v56 = vld [vmem:[#allocation2 + $0x22f] sm:$0xff] }
 0x803   : > { %21194 = vmatmul.mubr.msk.f32.gmra.mrb[80].mxu1 %vm6970_vm6, %v11172_v51  ;;  %v11187_v51 = vld [vmem:[#allocation2 + $0x287] sm:$0xff] }
 0x804   : > { %21196 = vmatprep.mubr.msk.f32.mxu1 %vm6970_vm6, %v11173_v9  ;;  %v11188_v9 = vld [vmem:[#allocation2 + $0x28f] sm:$0xff] }
 0x807   : > { %21197 = vmatmul.mubr.msk.f32.gmra.mrb[82].mxu1 %vm6970_vm6, %v11174_v63  ;;  %v11189_v63 = vld [vmem:[#allocation2 + $0x2a7] sm:$0xff] }
 0x808   : > { %21199 = vmatprep.mubr.msk.f32.mxu1 %vm6970_vm6, %v11175_v27 }
 0x80b   : > { %21200 = vmatmul.mubr.msk.f32.gmra.mrb[84].mxu1 %vm6970_vm6, %v11176_v15  ;;  %v11190_v15 = vld [vmem:[#allocation2 + $0x2af] sm:$0xff] }
 0x80c   : > { %21202 = vmatprep.mubr.msk.f32.mxu1 %vm6970_vm6, %v11177_v41  ;;  %v11191_v41 = vld [vmem:[#allocation2 + $0x2c7] sm:$0xff] }
 0x80f   : > { %21203 = vmatmul.mubr.msk.f32.gmra.mrb[86].mxu1 %vm6970_vm6, %v11178_v32  ;;  %v11192_v32 = vld [vmem:[#allocation2 + $0x2cf] sm:$0xff] }
 0x810   : > { %21205 = vmatprep.mubr.msk.f32.mxu1 %vm6970_vm6, %v11179_v24  ;;  %v11193_v24 = vld [vmem:[#allocation2 + $0x2e7] sm:$0xff] }
 0x813   : > { %21206 = vmatmul.mubr.msk.f32.gmra.mrb[88].mxu1 %vm6970_vm6, %v11180_v37  ;;  %v11194_v37 = vld [vmem:[#allocation2 + $0x2ef] sm:$0xff] }
 0x814   : > { %21208 = vmatprep.mubr.msk.f32.mxu1 %vm6970_vm6, %v11181_v18  ;;  %v11195_v18 = vld [vmem:[#allocation2 + $0x307] sm:$0xff] }
 0x817   : > { %21209 = vmatmul.mubr.msk.f32.gmra.mrb[90].mxu1 %vm6970_vm6, %v11182_v58  ;;  %v11196_v58 = vld [vmem:[#allocation2 + $0x30f] sm:$0xff] }
 0x818   : > { %21211 = vmatprep.mubr.msk.f32.mxu1 %vm6970_vm6, %v26525_v7  ;;  %v18043_v7 = vld [vmem:[%s27740_s3 + $0x80] sm:$0xff] }
 0x81b   : > { %21212 = vmatmul.mubr.msk.f32.gmra.mrb[92].mxu1 %vm6970_vm6, %v26529_v6  ;;  %v18044_v6 = vld [vmem:[%s27740_s3 + $0x88] sm:$0xff] }
 0x81c   : > { %21214 = vmatprep.mubr.msk.f32.mxu1 %vm6970_vm6, %v11185_v39  ;;  %v21820_v27 = vpack.c.bf16 %v18044_v6, %v18043_v7  ;;  %v11197_v39 = vld [vmem:[#allocation2 + $0x327] sm:$0xff]  ;;  %v11202_v7 = vld [vmem:[#allocation2 + $0x36f] sm:$0xff] }
 0x81d   : > { %v11203_v6 = vld [vmem:[#allocation2 + $0x387] sm:$0xff] }
 0x81e   : > { %21821 = vmatprep.subr.bf16.mxu1 %v21820_v27 }
 0x81f   : > { %21215 = vmatmul.mubr.msk.f32.gmra.mrb[94].mxu1 %vm6970_vm6, %v11186_v56  ;;  %v11198_v56 = vld [vmem:[#allocation2 + $0x32f] sm:$0xff] }
 0x820   : > { %21217 = vmatprep.mubr.msk.f32.mxu1 %vm6970_vm6, %v11187_v51  ;;  %v11199_v51 = vld [vmem:[#allocation2 + $0x347] sm:$0xff] }
 0x823   : > { %21218 = vmatmul.mubr.msk.f32.gmra.mrb[96].mxu1 %vm6970_vm6, %v11188_v9  ;;  %v11200_v9 = vld [vmem:[#allocation2 + $0x34f] sm:$0xff] }
 0x824   : > { %21220 = vmatprep.mubr.msk.f32.mxu1 %vm6970_vm6, %v11189_v63  ;;  %v11201_v63 = vld [vmem:[#allocation2 + $0x367] sm:$0xff] }
 0x827   : > { %21221 = vmatmul.mubr.msk.f32.gmra.mrb[98].mxu1 %vm6970_vm6, %v11190_v15  ;;  %v11204_v15 = vld [vmem:[#allocation2 + $0x38f] sm:$0xff] }
 0x828   : > { %21223 = vmatprep.mubr.msk.f32.mxu1 %vm6970_vm6, %v11191_v41  ;;  %v11205_v41 = vld [vmem:[#allocation2 + $0x3a7] sm:$0xff] }
 0x82b   : > { %21224 = vmatmul.mubr.msk.f32.gmra.mrb[100].mxu1 %vm6970_vm6, %v11192_v32  ;;  %v11206_v32 = vld [vmem:[#allocation2 + $0x3af] sm:$0xff] }
 0x82c   : > { %21226 = vmatprep.mubr.msk.f32.mxu1 %vm6970_vm6, %v11193_v24  ;;  %v11207_v24 = vld [vmem:[#allocation2 + $0x3c7] sm:$0xff] }
 0x82f   : > { %21227 = vmatmul.mubr.msk.f32.gmra.mrb[102].mxu1 %vm6970_vm6, %v11194_v37  ;;  %v11208_v37 = vld [vmem:[#allocation2 + $0x3cf] sm:$0xff] }
 0x830   : > { %21229 = vmatprep.mubr.msk.f32.mxu1 %vm6970_vm6, %v11195_v18  ;;  %v11209_v18 = vld [vmem:[#allocation2 + $0x3e7] sm:$0xff] }
 0x833   : > { %21230 = vmatmul.mubr.msk.f32.gmra.mrb[104].mxu1 %vm6970_vm6, %v11196_v58  ;;  %v11210_v58 = vld [vmem:[#allocation2 + $0x3ef] sm:$0xff] }
 0x834   : > { %21232 = vmatprep.mubr.msk.f32.mxu1 %vm6970_vm6, %v11197_v39  ;;  %v11211_v39 = vld [vmem:[#allocation2 + $0x407] sm:$0xff] }
 0x837   : > { %21233 = vmatmul.mubr.msk.f32.gmra.mrb[106].mxu1 %vm6970_vm6, %v11198_v56  ;;  %v11212_v56 = vld [vmem:[#allocation2 + $0x40f] sm:$0xff] }
 0x838   : > { %21235 = vmatprep.mubr.msk.f32.mxu1 %vm6970_vm6, %v11199_v51  ;;  %v11213_v51 = vld [vmem:[#allocation2 + $0x427] sm:$0xff] }
 0x83b   : > { %21236 = vmatmul.mubr.msk.f32.gmra.mrb[108].mxu1 %vm6970_vm6, %v11200_v9  ;;  %v11214_v9 = vld [vmem:[#allocation2 + $0x42f] sm:$0xff] }
 0x83c   : > { %21238 = vmatprep.mubr.msk.f32.mxu1 %vm6970_vm6, %v11201_v63  ;;  %v11217_v63 = vld [vmem:[#allocation2 + $0x467] sm:$0xff] }
 0x83f   : > { %21239 = vmatmul.mubr.msk.f32.gmra.mrb[110].mxu1 %vm6970_vm6, %v11202_v7  ;;  %v11218_v7 = vld [vmem:[#allocation2 + $0x46f] sm:$0xff] }
 0x840   : > { %21241 = vmatprep.mubr.msk.f32.mxu1 %vm6970_vm6, %v11203_v6  ;;  %v12601_v6 = vld [vmem:[#allocation2 + $0x229] sm:$0xff] }
 0x843   : > { %21242 = vmatmul.mubr.msk.f32.gmra.mrb[112].mxu1 %vm6970_vm6, %v11204_v15  ;;  %v28226_v15 = vld [vmem:[#allocation23_spill] sm:$0xff] }
 0x844   : > { %21244 = vmatprep.mubr.msk.f32.mxu1 %vm6970_vm6, %v11205_v41  ;;  %v12602_v41 = vld [vmem:[#allocation2 + $0x231] sm:$0xff] }
 0x847   : > { %21245 = vmatmul.mubr.msk.f32.gmra.mrb[114].mxu1 %vm6970_vm6, %v11206_v32  ;;  %v12603_v32 = vld [vmem:[#allocation2 + $0x289] sm:$0xff] }
 0x848   : > { %21247 = vmatprep.mubr.msk.f32.mxu1 %vm6970_vm6, %v11207_v24  ;;  %v12604_v24 = vld [vmem:[#allocation2 + $0x291] sm:$0xff] }
 0x84b   : > { %21248 = vmatmul.mubr.msk.f32.gmra.mrb[116].mxu1 %vm6970_vm6, %v11208_v37  ;;  %v12605_v37 = vld [vmem:[#allocation2 + $0x2a9] sm:$0xff] }
 0x84c   : > { %21250 = vmatprep.mubr.msk.f32.mxu1 %vm6970_vm6, %v11209_v18  ;;  %v12606_v18 = vld [vmem:[#allocation2 + $0x2b1] sm:$0xff] }
 0x84f   : > { %21251 = vmatmul.mubr.msk.f32.gmra.mrb[118].mxu1 %vm6970_vm6, %v11210_v58  ;;  %v12607_v58 = vld [vmem:[#allocation2 + $0x2c9] sm:$0xff] }
 0x850   : > { %21253 = vmatprep.mubr.msk.f32.mxu1 %vm6970_vm6, %v11211_v39  ;;  %v12608_v39 = vld [vmem:[#allocation2 + $0x2d1] sm:$0xff] }
 0x853   : > { %21254 = vmatmul.mubr.msk.f32.gmra.mrb[120].mxu1 %vm6970_vm6, %v11212_v56  ;;  %v12609_v56 = vld [vmem:[#allocation2 + $0x2e9] sm:$0xff] }
 0x854   : > { %21256 = vmatprep.mubr.msk.f32.mxu1 %vm6970_vm6, %v11213_v51  ;;  %v12610_v51 = vld [vmem:[#allocation2 + $0x2f1] sm:$0xff] }
 0x857   : > { %21257 = vmatmul.mubr.msk.f32.gmra.mrb[122].mxu1 %vm6970_vm6, %v11214_v9  ;;  %v12611_v9 = vld [vmem:[#allocation2 + $0x309] sm:$0xff] }
 0x858   : > { %21259 = vmatprep.mubr.msk.f32.mxu1 %vm6970_vm6, %v26599_v30  ;;  %v11893_v30 = vld [vmem:[#allocation2 + $0x228] sm:$0xff] }
 0x85b   : > { %21260 = vmatmul.mubr.msk.f32.gmra.mrb[124].mxu1 %vm6970_vm6, %v26603_v2  ;;  %v11894_v2 = vld [vmem:[#allocation2 + $0x230] sm:$0xff] }
 0x85c   : > { %21262 = vmatprep.mubr.msk.f32.mxu1 %vm6970_vm6, %v11217_v63  ;;  %v12612_v63 = vld [vmem:[#allocation2 + $0x311] sm:$0xff] }
 0x85f   : > { %21263 = vmatmul.mubr.msk.f32.gmra.mrb[126].mxu1 %vm6970_vm6, %v11218_v7  ;;  %v12613_v7 = vld [vmem:[#allocation2 + $0x329] sm:$0xff] }
 0x860   : > { %21269 = vmatprep.mubr.msk.f32.mxu1 %vm6970_vm6, %v26609_v16  ;;  %v28210_v16 = vld [vmem:[#allocation81_spill] sm:$0xff] }
 0x863   : > { %21270 = vmatmul.mubr.msk.f32.vlgmr.msra.gmra.mrb[64].mxu1 %vm6970_vm6, %v26613_v49  ;;  %v28211_v49 = vld [vmem:[#allocation8_spill] sm:$0xff] }
 0x864   : > { %21272 = vmatprep.mubr.msk.f32.mxu1 %vm6970_vm6, %v26617_v43  ;;  %21823 = vmatpush3.bf16.msra.mxu1 %v21820_v27  ;;  %v28212_v43 = vld [vmem:[#allocation9_spill] sm:$0xff]  ;;  %v28225_v27 = vld [vmem:[#allocation22_spill] sm:$0xff] }
 0x867   : > { %21273 = vmatmul.mubr.msk.f32.gmra.mrb[66].mxu1 %vm6970_vm6, %v26621_v53  ;;  %v28213_v53 = vld [vmem:[#allocation10_spill] sm:$0xff] }
 0x868   : > { %21275 = vmatprep.mubr.msk.f32.mxu1 %vm6970_vm6, %v26625_v45  ;;  %v28214_v45 = vld [vmem:[#allocation11_spill] sm:$0xff] }
 0x86b   : > { %21276 = vmatmul.mubr.msk.f32.gmra.mrb[68].mxu1 %vm6970_vm6, %v26629_v0  ;;  %v28215_v0 = vld [vmem:[#allocation12_spill] sm:$0xff] }
 0x86c   : > { %21278 = vmatprep.mubr.msk.f32.mxu1 %vm6970_vm6, %v26633_v31  ;;  %v28216_v31 = vld [vmem:[#allocation13_spill] sm:$0xff] }
 0x86f   : > { %21279 = vmatmul.mubr.msk.f32.gmra.mrb[70].mxu1 %vm6970_vm6, %v26637_v50  ;;  %v28217_v50 = vld [vmem:[#allocation14_spill] sm:$0xff] }
 0x870   : > { %21281 = vmatprep.mubr.msk.f32.mxu1 %vm6970_vm6, %v26641_v35  ;;  %v28218_v35 = vld [vmem:[#allocation15_spill] sm:$0xff] }
 0x873   : > { %21282 = vmatmul.mubr.msk.f32.gmra.mrb[72].mxu1 %vm6970_vm6, %v26645_v3  ;;  %v28219_v3 = vld [vmem:[#allocation16_spill] sm:$0xff] }
 0x874   : > { %21284 = vmatprep.mubr.msk.f32.mxu1 %vm6970_vm6, %v26649_v52  ;;  %v28220_v52 = vld [vmem:[#allocation17_spill] sm:$0xff] }
 0x877   : > { %21285 = vmatmul.mubr.msk.f32.gmra.mrb[74].mxu1 %vm6970_vm6, %v26653_v1  ;;  %v28221_v1 = vld [vmem:[#allocation18_spill] sm:$0xff] }
 0x878   : > { %21287 = vmatprep.mubr.msk.f32.mxu1 %vm6970_vm6, %v26657_v8  ;;  %v28222_v8 = vld [vmem:[#allocation19_spill] sm:$0xff] }
 0x87b   : > { %21288 = vmatmul.mubr.msk.f32.gmra.mrb[76].mxu1 %vm6970_vm6, %v26661_v34  ;;  %v28223_v34 = vld [vmem:[#allocation20_spill] sm:$0xff] }
 0x87c   : > { %21290 = vmatprep.mubr.msk.f32.mxu1 %vm6970_vm6, %v26665_v20  ;;  %v11925_v20 = vld [vmem:[#allocation2 + $0x468] sm:$0xff] }
 0x87f   : > { %21291 = vmatmul.mubr.msk.f32.gmra.mrb[78].mxu1 %vm6970_vm6, %v26669_v62  ;;  %v28224_v62 = vld [vmem:[#allocation21_spill] sm:$0xff] }
 0x880   : > { %21293 = vmatprep.mubr.msk.f32.mxu1 %vm6970_vm6, %v26673_v36  ;;  %v11926_v36 = vld [vmem:[#allocation2 + $0x470] sm:$0xff] }
 0x883   : > { %21294 = vmatmul.mubr.msk.f32.gmra.mrb[80].mxu1 %vm6970_vm6, %v26677_v19  ;;  %v12571_v19 = vld [vmem:[#allocation2 + $0x49] sm:$0xff] }
 0x884   : > { %21296 = vmatprep.mubr.msk.f32.mxu1 %vm6970_vm6, %v26681_v61  ;;  %v12572_v61 = vld [vmem:[#allocation2 + $0x51] sm:$0xff] }
 0x887   : > { %21297 = vmatmul.mubr.msk.f32.gmra.mrb[82].mxu1 %vm6970_vm6, %v26685_v40  ;;  %v12573_v40 = vld [vmem:[#allocation2 + $0x69] sm:$0xff] }
 0x888   : > { %21299 = vmatprep.mubr.msk.f32.mxu1 %vm6970_vm6, %v26689_v22  ;;  %v12574_v22 = vld [vmem:[#allocation2 + $0x71] sm:$0xff] }
 0x88b   : > { %21300 = vmatmul.mubr.msk.f32.gmra.mrb[84].mxu1 %vm6970_vm6, %v26693_v55  ;;  %v12575_v55 = vld [vmem:[#allocation2 + $0x89] sm:$0xff] }
 0x88c   : > { %21302 = vmatprep.mubr.msk.f32.mxu1 %vm6970_vm6, %v26697_v44  ;;  %v12576_v44 = vld [vmem:[#allocation2 + $0x91] sm:$0xff] }
 0x88f   : > { %21303 = vmatmul.mubr.msk.f32.gmra.mrb[86].mxu1 %vm6970_vm6, %v26701_v54  ;;  %v12577_v54 = vld [vmem:[#allocation2 + $0xa9] sm:$0xff] }
 0x890   : > { %21305 = vmatprep.mubr.msk.f32.mxu1 %vm6970_vm6, %v26705_v59  ;;  %v12578_v59 = vld [vmem:[#allocation2 + $0xb1] sm:$0xff] }
 0x893   : > { %21306 = vmatmul.mubr.msk.f32.gmra.mrb[88].mxu1 %vm6970_vm6, %v26709_v23  ;;  %v12579_v23 = vld [vmem:[#allocation2 + $0xc9] sm:$0xff] }
 0x894   : > { %21308 = vmatprep.mubr.msk.f32.mxu1 %vm6970_vm6, %v26713_v42  ;;  %v12580_v42 = vld [vmem:[#allocation2 + $0xd1] sm:$0xff] }
 0x897   : > { %21309 = vmatmul.mubr.msk.f32.gmra.mrb[90].mxu1 %vm6970_vm6, %v26717_v11  ;;  %v12581_v11 = vld [vmem:[#allocation2 + $0xe9] sm:$0xff] }
 0x898   : > { %21311 = vmatprep.mubr.msk.f32.mxu1 %vm6970_vm6, %v26721_v12  ;;  %v12582_v12 = vld [vmem:[#allocation2 + $0xf1] sm:$0xff] }
 0x89b   : > { %21312 = vmatmul.mubr.msk.f32.gmra.mrb[92].mxu1 %vm6970_vm6, %v26725_v17  ;;  %v12583_v17 = vld [vmem:[#allocation2 + $0x109] sm:$0xff] }
 0x89c   : > { %21314 = vmatprep.mubr.msk.f32.mxu1 %vm6970_vm6, %v11893_v30  ;;  %v12614_v30 = vld [vmem:[#allocation2 + $0x331] sm:$0xff] }
 0x89f   : > { %21315 = vmatmul.mubr.msk.f32.gmra.mrb[94].mxu1 %vm6970_vm6, %v11894_v2  ;;  %v12615_v2 = vld [vmem:[#allocation2 + $0x349] sm:$0xff] }
 0x8a0   : > { %21317 = vmatprep.mubr.msk.f32.mxu1 %vm6970_vm6, %v26731_v57  ;;  %v12584_v57 = vld [vmem:[#allocation2 + $0x111] sm:$0xff] }
 0x8a3   : > { %21318 = vmatmul.mubr.msk.f32.gmra.mrb[96].mxu1 %vm6970_vm6, %v26743_v38  ;;  %v12585_v38 = vld [vmem:[#allocation2 + $0x129] sm:$0xff] }
 0x8a4   : > { %21320 = vmatprep.mubr.msk.f32.mxu1 %vm6970_vm6, %v26748_v4  ;;  %v12586_v4 = vld [vmem:[#allocation2 + $0x131] sm:$0xff] }
 0x8a7   : > { %21321 = vmatmul.mubr.msk.f32.gmra.mrb[98].mxu1 %vm6970_vm6, %v26752_v46  ;;  %v12587_v46 = vld [vmem:[#allocation2 + $0x149] sm:$0xff] }
 0x8a8   : > { %21323 = vmatprep.mubr.msk.f32.mxu1 %vm6970_vm6, %v26756_v28  ;;  %v12588_v28 = vld [vmem:[#allocation2 + $0x151] sm:$0xff] }
 0x8ab   : > { %21324 = vmatmul.mubr.msk.f32.gmra.mrb[100].mxu1 %vm6970_vm6, %v26760_v25  ;;  %v12589_v25 = vld [vmem:[#allocation2 + $0x169] sm:$0xff] }
 0x8ac   : > { %21326 = vmatprep.mubr.msk.f32.mxu1 %vm6970_vm6, %v26764_v13  ;;  %v12590_v13 = vld [vmem:[#allocation2 + $0x171] sm:$0xff] }
 0x8af   : > { %21327 = vmatmul.mubr.msk.f32.gmra.mrb[102].mxu1 %vm6970_vm6, %v26768_v5  ;;  %v12591_v5 = vld [vmem:[#allocation2 + $0x189] sm:$0xff] }
 0x8b0   : > { %21329 = vmatprep.mubr.msk.f32.mxu1 %vm6970_vm6, %v26772_v26  ;;  %v12592_v26 = vld [vmem:[#allocation2 + $0x191] sm:$0xff] }
 0x8b3   : > { %21330 = vmatmul.mubr.msk.f32.gmra.mrb[104].mxu1 %vm6970_vm6, %v26776_v47  ;;  %v12593_v47 = vld [vmem:[#allocation2 + $0x1a9] sm:$0xff] }
 0x8b4   : > { %21332 = vmatprep.mubr.msk.f32.mxu1 %vm6970_vm6, %v26780_v33  ;;  %v12594_v33 = vld [vmem:[#allocation2 + $0x1b1] sm:$0xff] }
 0x8b7   : > { %21333 = vmatmul.mubr.msk.f32.gmra.mrb[106].mxu1 %vm6970_vm6, %v26784_v48  ;;  %v12595_v48 = vld [vmem:[#allocation2 + $0x1c9] sm:$0xff] }
 0x8b8   : > { %21335 = vmatprep.mubr.msk.f32.mxu1 %vm6970_vm6, %v26788_v14  ;;  %v12596_v14 = vld [vmem:[#allocation2 + $0x1d1] sm:$0xff] }
 0x8bb   : > { %21336 = vmatmul.mubr.msk.f32.gmra.mrb[108].mxu1 %vm6970_vm6, %v26792_v29  ;;  %v12597_v29 = vld [vmem:[#allocation2 + $0x1e9] sm:$0xff] }
 0x8bc   : > { %21338 = vmatprep.mubr.msk.f32.mxu1 %vm6970_vm6, %v26796_v60  ;;  %v12598_v60 = vld [vmem:[#allocation2 + $0x1f1] sm:$0xff] }
 0x8bf   : > { %21339 = vmatmul.mubr.msk.f32.gmra.mrb[110].mxu1 %vm6970_vm6, %v28210_v16  ;;  %v12616_v16 = vld [vmem:[#allocation2 + $0x351] sm:$0xff] }
 0x8c0   : > { %21341 = vmatprep.mubr.msk.f32.mxu1 %vm6970_vm6, %v28211_v49  ;;  %v12617_v49 = vld [vmem:[#allocation2 + $0x369] sm:$0xff] }
 0x8c3   : > { %21342 = vmatmul.mubr.msk.f32.gmra.mrb[112].mxu1 %vm6970_vm6, %v28212_v43  ;;  %v12618_v43 = vld [vmem:[#allocation2 + $0x371] sm:$0xff] }
 0x8c4   : > { %21344 = vmatprep.mubr.msk.f32.mxu1 %vm6970_vm6, %v28213_v53  ;;  %v12619_v53 = vld [vmem:[#allocation2 + $0x389] sm:$0xff] }
 0x8c7   : > { %21345 = vmatmul.mubr.msk.f32.gmra.mrb[114].mxu1 %vm6970_vm6, %v28214_v45  ;;  %v12620_v45 = vld [vmem:[#allocation2 + $0x391] sm:$0xff] }
 0x8c8   : > { %21347 = vmatprep.mubr.msk.f32.mxu1 %vm6970_vm6, %v28215_v0  ;;  %v12621_v0 = vld [vmem:[#allocation2 + $0x3a9] sm:$0xff] }
 0x8cb   : > { %21348 = vmatmul.mubr.msk.f32.gmra.mrb[116].mxu1 %vm6970_vm6, %v28216_v31  ;;  %v12622_v31 = vld [vmem:[#allocation2 + $0x3b1] sm:$0xff] }
 0x8cc   : > { %21350 = vmatprep.mubr.msk.f32.mxu1 %vm6970_vm6, %v28217_v50  ;;  %v12623_v50 = vld [vmem:[#allocation2 + $0x3c9] sm:$0xff] }
 0x8cf   : > { %21351 = vmatmul.mubr.msk.f32.gmra.mrb[118].mxu1 %vm6970_vm6, %v28218_v35  ;;  %v18110_v35 = vld [vmem:[%s27742_s5 + $0x20] sm:$0xff] }
 0x8d0   : > { %21353 = vmatprep.mubr.msk.f32.mxu1 %vm6970_vm6, %v28219_v3  ;;  %v18111_v3 = vld [vmem:[%s27742_s5 + $0x28] sm:$0xff] }
 0x8d3   : > { %21354 = vmatmul.mubr.msk.f32.gmra.mrb[120].mxu1 %vm6970_vm6, %v28220_v52  ;;  %v21824_v52 = vpack.c.bf16 %v18111_v3, %v18110_v35 }
 0x8d4   : > { %21356 = vmatprep.mubr.msk.f32.mxu1 %vm6970_vm6, %v28221_v1  ;;  %v12624_v1 = vld [vmem:[#allocation2 + $0x3d1] sm:$0xff] }
 0x8d5   : > { %21825 = vmatprep.subr.bf16.mxu0 %v21824_v52 }
 0x8d6   : > { %21827 = vmatpush3.bf16.msra.mxu0 %v21824_v52 }
 0x8d7   : > { %21357 = vmatmul.mubr.msk.f32.gmra.mrb[122].mxu1 %vm6970_vm6, %v28222_v8  ;;  %v18112_v8 = vld [vmem:[%s27742_s5 + $0x30] sm:$0xff] }
 0x8d8   : > { %21359 = vmatprep.mubr.msk.f32.mxu1 %vm6970_vm6, %v28223_v34  ;;  %v18113_v34 = vld [vmem:[%s27742_s5 + $0x38] sm:$0xff] }
 0x8db   : > { %21360 = vmatmul.mubr.msk.f32.gmra.mrb[124].mxu1 %vm6970_vm6, %v28224_v62  ;;  %v21828_v62 = vpack.c.bf16 %v18113_v34, %v18112_v8 }
 0x8dc   : > { %21362 = vmatprep.mubr.msk.f32.mxu1 %vm6970_vm6, %v11925_v20  ;;  %v12625_v20 = vld [vmem:[#allocation2 + $0x3e9] sm:$0xff] }
 0x8dd   : > { %21829 = vmatprep.subr.bf16.mxu0 %v21828_v62 }
 0x8de   : > { %21831 = vmatpush3.bf16.msra.mxu0 %v21828_v62 }
 0x8df   : > { %21363 = vmatmul.mubr.msk.f32.gmra.mrb[126].mxu1 %vm6970_vm6, %v11926_v36  ;;  %v12626_v36 = vld [vmem:[#allocation2 + $0x3f1] sm:$0xff] }
 0x8e0   : > { %21369 = vmatprep.mubr.msk.f32.mxu1 %vm6970_vm6, %v12571_v19  ;;  %v13565_v19 = vld [vmem:[#allocation3 + $0x8] ss:$2 sm:$0xff] }
 0x8e3   : > { %21370 = vmatmul.mubr.msk.f32.vlgmr.msra.gmra.mrb[64].mxu1 %vm6970_vm6, %v12572_v61  ;;  %v13597_v61 = vld [vmem:[#allocation3 + $0x9] ss:$2 sm:$0xff] }
 0x8e4   : > { %21372 = vmatprep.mubr.msk.f32.mxu1 %vm6970_vm6, %v12573_v40  ;;  %v12627_v40 = vld [vmem:[#allocation2 + $0x409] sm:$0xff] }
 0x8e7   : > { %21373 = vmatmul.mubr.msk.f32.gmra.mrb[66].mxu1 %vm6970_vm6, %v12574_v22  ;;  %v13628_v22 = vmax.f32 %v13565_v19, %v13597_v61 }
 0x8e8   : > { %21375 = vmatprep.mubr.msk.f32.mxu1 %vm6970_vm6, %v12575_v55  ;;  %v12628_v55 = vld [vmem:[#allocation2 + $0x411] sm:$0xff] }
 0x8e9   : > { %21473 = vmatprep.mubr.msk.f32.mxu0 %vm13447_vm7, %v13628_v22 }
 0x8eb   : > { %21376 = vmatmul.mubr.msk.f32.gmra.mrb[68].mxu1 %vm6970_vm6, %v12576_v44  ;;  %v12629_v44 = vld [vmem:[#allocation2 + $0x429] sm:$0xff] }
 0x8ec   : > { %21378 = vmatprep.mubr.msk.f32.mxu1 %vm6970_vm6, %v12577_v54  ;;  %v12630_v54 = vld [vmem:[#allocation2 + $0x431] sm:$0xff] }
 0x8ef   : > { %21379 = vmatmul.mubr.msk.f32.gmra.mrb[70].mxu1 %vm6970_vm6, %v12578_v59  ;;  %v12633_v59 = vld [vmem:[#allocation2 + $0x469] sm:$0xff] }
 0x8f0   : > { %21381 = vmatprep.mubr.msk.f32.mxu1 %vm6970_vm6, %v12579_v23  ;;  %v12634_v23 = vld [vmem:[#allocation2 + $0x471] sm:$0xff] }
 0x8f3   : > { %21382 = vmatmul.mubr.msk.f32.gmra.mrb[72].mxu1 %vm6970_vm6, %v12580_v42 }
 0x8f4   : > { %21384 = vmatprep.mubr.msk.f32.mxu1 %vm6970_vm6, %v12581_v11  ;;  %v27285_v11 = vld [vmem:[%s27741_s4] ss:$0 sm:$0xff] }
 0x8f7   : > { %21385 = vmatmul.mubr.msk.f32.gmra.mrb[74].mxu1 %vm6970_vm6, %v12582_v12 }
 0x8f8   : > { %21387 = vmatprep.mubr.msk.f32.mxu1 %vm6970_vm6, %v12583_v17 }
 0x8fb   : > { %21388 = vmatmul.mubr.msk.f32.gmra.mrb[76].mxu1 %vm6970_vm6, %v12584_v57 }
 0x8fc   : > { %21390 = vmatprep.mubr.msk.f32.mxu1 %vm6970_vm6, %v12585_v38  ;;  %v13561_v38 = vld [vmem:[%s27742_s5 + $0x8] sm:$0xff] }
 0x8ff   : > { %21391 = vmatmul.mubr.msk.f32.gmra.mrb[78].mxu1 %vm6970_vm6, %v12586_v4 }
 0x900   : > { %21393 = vmatprep.mubr.msk.f32.mxu1 %vm6970_vm6, %v12587_v46 }
 0x903   : > { %21394 = vmatmul.mubr.msk.f32.gmra.mrb[80].mxu1 %vm6970_vm6, %v12588_v28 }
 0x904   : > { %21396 = vmatprep.mubr.msk.f32.mxu1 %vm6970_vm6, %v12589_v25 }
 0x907   : > { %21397 = vmatmul.mubr.msk.f32.gmra.mrb[82].mxu1 %vm6970_vm6, %v12590_v13 }
 0x908   : > { %21399 = vmatprep.mubr.msk.f32.mxu1 %vm6970_vm6, %v12591_v5 }
 0x90b   : > { %21400 = vmatmul.mubr.msk.f32.gmra.mrb[84].mxu1 %vm6970_vm6, %v12592_v26 }
 0x90c   : > { %21402 = vmatprep.mubr.msk.f32.mxu1 %vm6970_vm6, %v12593_v47 }
 0x90f   : > { %21403 = vmatmul.mubr.msk.f32.gmra.mrb[86].mxu1 %vm6970_vm6, %v12594_v33 }
 0x910   : > { %21405 = vmatprep.mubr.msk.f32.mxu1 %vm6970_vm6, %v12595_v48 }
 0x913   : > { %21406 = vmatmul.mubr.msk.f32.gmra.mrb[88].mxu1 %vm6970_vm6, %v12596_v14 }
 0x914   : > { %21408 = vmatprep.mubr.msk.f32.mxu1 %vm6970_vm6, %v12597_v29 }
 0x917   : > { %21409 = vmatmul.mubr.msk.f32.gmra.mrb[90].mxu1 %vm6970_vm6, %v12598_v60 }
 0x918   : > { %21411 = vmatprep.mubr.msk.f32.mxu1 %vm6970_vm6, %v28225_v27 }
 0x91b   : > { %21412 = vmatmul.mubr.msk.f32.gmra.mrb[92].mxu1 %vm6970_vm6, %v28226_v15 }
 0x91c   : > { %21414 = vmatprep.mubr.msk.f32.mxu1 %vm6970_vm6, %v12601_v6 }
 0x91f   : > { %21415 = vmatmul.mubr.msk.f32.gmra.mrb[94].mxu1 %vm6970_vm6, %v12602_v41 }
 0x920   : > { %21417 = vmatprep.mubr.msk.f32.mxu1 %vm6970_vm6, %v12603_v32 }
 0x923   : > { %21418 = vmatmul.mubr.msk.f32.gmra.mrb[96].mxu1 %vm6970_vm6, %v12604_v24 }
 0x924   : > { %21420 = vmatprep.mubr.msk.f32.mxu1 %vm6970_vm6, %v12605_v37 }
 0x927   : > { %21421 = vmatmul.mubr.msk.f32.gmra.mrb[98].mxu1 %vm6970_vm6, %v12606_v18 }
 0x928   : > { %21423 = vmatprep.mubr.msk.f32.mxu1 %vm6970_vm6, %v12607_v58 }
 0x92b   : > { %21424 = vmatmul.mubr.msk.f32.gmra.mrb[100].mxu1 %vm6970_vm6, %v12608_v39 }
 0x92c   : > { %21426 = vmatprep.mubr.msk.f32.mxu1 %vm6970_vm6, %v12609_v56 }
 0x92f   : > { %21427 = vmatmul.mubr.msk.f32.gmra.mrb[102].mxu1 %vm6970_vm6, %v12610_v51 }
 0x930   : > { %21429 = vmatprep.mubr.msk.f32.mxu1 %vm6970_vm6, %v12611_v9  ;;  %v13562_v9 = vld [vmem:[%s27742_s5 + $0x10] sm:$0xff] }
 0x933   : > { %21430 = vmatmul.mubr.msk.f32.gmra.mrb[104].mxu1 %vm6970_vm6, %v12612_v63  ;;  %v13563_v63 = vld [vmem:[%s27742_s5 + $0x18] sm:$0xff] }
 0x934   : > { %21432 = vmatprep.mubr.msk.f32.mxu1 %vm6970_vm6, %v12613_v7 }
 0x937   : > { %21433 = vmatmul.mubr.msk.f32.gmra.mrb[106].mxu1 %vm6970_vm6, %v12614_v30 }
 0x938   : > { %21435 = vmatprep.mubr.msk.f32.mxu1 %vm6970_vm6, %v12615_v2 }
 0x93b   : > { %21436 = vmatmul.mubr.msk.f32.gmra.mrb[108].mxu1 %vm6970_vm6, %v12616_v16 }
 0x93c   : > { %21438 = vmatprep.mubr.msk.f32.mxu1 %vm6970_vm6, %v12617_v49 }
 0x93f   : > { %21439 = vmatmul.mubr.msk.f32.gmra.mrb[110].mxu1 %vm6970_vm6, %v12618_v43 }
 0x940   : > { %21441 = vmatprep.mubr.msk.f32.mxu1 %vm6970_vm6, %v12619_v53 }
 0x943   : > { %21442 = vmatmul.mubr.msk.f32.gmra.mrb[112].mxu1 %vm6970_vm6, %v12620_v45  ;;  %v21836_v45 = vpack.c.bf16 %v13563_v63, %v13562_v9 }
 0x944   : > { %21444 = vmatprep.mubr.msk.f32.mxu1 %vm6970_vm6, %v12621_v0 }
 0x947   : > { %21445 = vmatmul.mubr.msk.f32.gmra.mrb[114].mxu1 %vm6970_vm6, %v12622_v31 }
 0x948   : > { %21447 = vmatprep.mubr.msk.f32.mxu1 %vm6970_vm6, %v12623_v50 }
 0x94b   : > { %21448 = vmatmul.mubr.msk.f32.gmra.mrb[116].mxu1 %vm6970_vm6, %v12624_v1 }
 0x94c   : > { %21450 = vmatprep.mubr.msk.f32.mxu1 %vm6970_vm6, %v12625_v20 }
 0x94f   : > { %21451 = vmatmul.mubr.msk.f32.gmra.mrb[118].mxu1 %vm6970_vm6, %v12626_v36 }
 0x950   : > { %21453 = vmatprep.mubr.msk.f32.mxu1 %vm6970_vm6, %v12627_v40 }
 0x953   : > { %21454 = vmatmul.mubr.msk.f32.gmra.mrb[120].mxu1 %vm6970_vm6, %v12628_v55 }
 0x954   : > { %21456 = vmatprep.mubr.msk.f32.mxu1 %vm6970_vm6, %v12629_v44 }
 0x957   : > { %21457 = vmatmul.mubr.msk.f32.gmra.mrb[122].mxu1 %vm6970_vm6, %v12630_v54 }
 0x958   : > { %21459 = vmatprep.mubr.msk.f32.mxu1 %vm6970_vm6, %v26995_v10 }
 0x95b   : > { %21460 = vmatmul.mubr.msk.f32.gmra.mrb[124].mxu1 %vm6970_vm6, %v26999_v21  ;;  %v13560_v21 = vld [vmem:[%s27742_s5] sm:$0xff] }
 0x95c   : > { %21462 = vmatprep.mubr.msk.f32.mxu1 %vm6970_vm6, %v12633_v59  ;;  %v21832_v28 = vpack.c.bf16 %v13561_v38, %v13560_v21 }
 0x95e   : > { %21833 = vmatprep.subr.bf16.mxu0 %v21832_v28 }
 0x95f   : > { %21463 = vmatmul.mubr.msk.f32.gmra.mrb[126].mxu1 %vm6970_vm6, %v12634_v23 }
 0x9b6   : > { %v21371_v42 = vpop.f32.mrb[64].mxu1 }
 0x9b7   : > { %v12896_v12 = vpop.f32.mrb[65].mxu1  ;;  %v13287_v17 = vadd.f32 %v21371_v42, %v27285_v11 }
 0x9b8   : > { %v13286_v10 = vadd.f32 %v27285_v11, %v12896_v12 }
 0x9b9   : > { %v13351_v13 = vmax.f32 %v13287_v17, 0.0 }
 0x9ba   : > { %v21374_v57 = vpop.f32.mrb[66].mxu1  ;;  %v13350_v26 = vmax.f32 %v13286_v10, 0.0 }
 0x9bb   : > { %v13289_v4 = vadd.f32 %v21374_v57, %v27285_v11  ;;  %v12906_v46 = vpop.f32.mrb[67].mxu1 }
 0x9bc   : > { %v13288_v25 = vadd.f32 %v27285_v11, %v12906_v46  ;;  %v18147_v46 = vld [vmem:[%s27742_s5 + $0x48] sm:$0xff] }
 0x9bd   : > { %v13353_v5 = vmax.f32 %v13289_v4, 0.0  ;;  %v18146_v4 = vld [vmem:[%s27742_s5 + $0x40] sm:$0xff] }
 0x9be   : > { %v13352_v47 = vmax.f32 %v13288_v25, 0.0  ;;  %v21377_v33 = vpop.f32.mrb[68].mxu1 }
 0x9bf   : > { %v13415_v48 = vmax.f32 %v13351_v13, %v13353_v5  ;;  %v12916_v14 = vpop.f32.mrb[69].mxu1  ;;  %v13291_v60 = vadd.f32 %v21377_v33, %v27285_v11  ;;  %v27331_v5 = vpack.c.bf16 %v18147_v46, %v18146_v4 }
 0x9c0   : > { %v13414_v29 = vmax.f32 %v13350_v26, %v13352_v47  ;;  %v13290_v27 = vadd.f32 %v27285_v11, %v12916_v14 }
 0x9c1   : > { %13449 = vst.msk [vmem:[#allocation3 + $0x30] sm:$0xff] %vm13447_vm7, %v13415_v48  ;;  %v13355_v24 = vmax.f32 %v13291_v60, 0.0 }
 0x9c2   : > { %13448 = vst.msk [vmem:[#allocation3 + $0x28] sm:$0xff] %vm13447_vm7, %v13414_v29  ;;  %v21380_v6 = vpop.f32.mrb[70].mxu1  ;;  %v13354_v18 = vmax.f32 %v13290_v27, 0.0 }
 0x9c3   : > { %v13293_v15 = vadd.f32 %v21380_v6, %v27285_v11  ;;  %v12926_v41 = vpop.f32.mrb[71].mxu1 }
 0x9c4   : > { %v13292_v32 = vadd.f32 %v27285_v11, %v12926_v41 }
 0x9c5   : > { %v13357_v37 = vmax.f32 %v13293_v15, 0.0 }
 0x9c6   : > { %v13356_v58 = vmax.f32 %v13292_v32, 0.0  ;;  %v21383_v39 = vpop.f32.mrb[72].mxu1 }
 0x9c7   : > { %v13417_v56 = vmax.f32 %v13355_v24, %v13357_v37  ;;  %v12936_v51 = vpop.f32.mrb[73].mxu1  ;;  %v13295_v30 = vadd.f32 %v21383_v39, %v27285_v11 }
 0x9c8   : > { %v13416_v7 = vmax.f32 %v13354_v18, %v13356_v58  ;;  %v13294_v49 = vadd.f32 %v27285_v11, %v12936_v51 }
 0x9c9   : > { %13451 = vst.msk [vmem:[#allocation3 + $0x50] sm:$0xff] %vm13447_vm7, %v13417_v56  ;;  %v13567_v2 = vld [vmem:[#allocation3 + $0x28] ss:$2 sm:$0xff]  ;;  %v13599_v16 = vld [vmem:[#allocation3 + $0x29] ss:$2 sm:$0xff]  ;;  %v13359_v35 = vmax.f32 %v13295_v30, 0.0 }
 0x9ca   : > { %13450 = vst.msk [vmem:[#allocation3 + $0x48] sm:$0xff] %vm13447_vm7, %v13416_v7  ;;  %v21386_v43 = vpop.f32.mrb[74].mxu1  ;;  %v13629_v53 = vmax.f32 %v13567_v2, %v13599_v16  ;;  %v13358_v52 = vmax.f32 %v13294_v49, 0.0 }
 0x9cb   : > { %v13297_v0 = vadd.f32 %v21386_v43, %v27285_v11  ;;  %v12946_v31 = vpop.f32.mrb[75].mxu1 }
 0x9cc   : > { %v13296_v50 = vadd.f32 %v27285_v11, %v12946_v31  ;;  %21474 = vmatmul.mubr.msk.f32.vlgmr.msra.gmra.mrb[64].mxu0 %vm13447_vm7, %v13629_v53 }
 0x9cd   : > { %v13361_v3 = vmax.f32 %v13297_v0, 0.0  ;;  %21835 = vmatpush3.bf16.msra.mxu0 %v21832_v28 }
 0x9ce   : > { %v13360_v1 = vmax.f32 %v13296_v50, 0.0  ;;  %v21389_v8 = vpop.f32.mrb[76].mxu1  ;;  %21837 = vmatprep.subr.bf16.mxu0 %v21836_v45 }
 0x9cf   : > { %v13419_v34 = vmax.f32 %v13359_v35, %v13361_v3  ;;  %v12956_v20 = vpop.f32.mrb[77].mxu1  ;;  %v13299_v36 = vadd.f32 %v21389_v8, %v27285_v11 }
 0x9d0   : > { %v13418_v62 = vmax.f32 %v13358_v52, %v13360_v1  ;;  %v13298_v40 = vadd.f32 %v27285_v11, %v12956_v20 }
 0x9d1   : > { %13453 = vst.msk [vmem:[#allocation3 + $0x70] sm:$0xff] %vm13447_vm7, %v13419_v34  ;;  %v13569_v19 = vld [vmem:[#allocation3 + $0x48] ss:$2 sm:$0xff]  ;;  %v13601_v61 = vld [vmem:[#allocation3 + $0x49] ss:$2 sm:$0xff]  ;;  %21839 = vmatpush3.bf16.msra.mxu0 %v21836_v45  ;;  %v13363_v23 = vmax.f32 %v13299_v36, 0.0 }
 0x9d2   : > { %13452 = vst.msk [vmem:[#allocation3 + $0x68] sm:$0xff] %vm13447_vm7, %v13418_v62  ;;  %v21392_v22 = vpop.f32.mrb[78].mxu1  ;;  %v13630_v55 = vmax.f32 %v13569_v19, %v13601_v61  ;;  %v13362_v12 = vmax.f32 %v13298_v40, 0.0  ;;  %21841 = vmatprep.subr.bf16.mxu0 %v27331_v5 }
 0x9d3   : > { %v13301_v44 = vadd.f32 %v21392_v22, %v27285_v11  ;;  %v12966_v54 = vpop.f32.mrb[79].mxu1 }
 0x9d4   : > { %v13300_v59 = vadd.f32 %v27285_v11, %v12966_v54  ;;  %21476 = vmatprep.mubr.msk.f32.mxu0 %vm13447_vm7, %v13630_v55 }
 0x9d5   : > { %v13365_v42 = vmax.f32 %v13301_v44, 0.0 }
 0x9d6   : > { %v13364_v17 = vmax.f32 %v13300_v59, 0.0  ;;  %v21395_v10 = vpop.f32.mrb[80].mxu1 }
 0x9d7   : > { %v13421_v57 = vmax.f32 %v13363_v23, %v13365_v42  ;;  %v12976_v21 = vpop.f32.mrb[81].mxu1  ;;  %v13303_v28 = vadd.f32 %v21395_v10, %v27285_v11 }
 0x9d8   : > { %v13420_v38 = vmax.f32 %v13362_v12, %v13364_v17  ;;  %v13302_v26 = vadd.f32 %v27285_v11, %v12976_v21 }
 0x9d9   : > { %13455 = vst.msk [vmem:[#allocation3 + $0x90] sm:$0xff] %vm13447_vm7, %v13421_v57  ;;  %v13571_v25 = vld [vmem:[#allocation3 + $0x68] ss:$2 sm:$0xff]  ;;  %v13603_v13 = vld [vmem:[#allocation3 + $0x69] ss:$2 sm:$0xff]  ;;  %v13367_v60 = vmax.f32 %v13303_v28, 0.0 }
 0x9da   : > { %13454 = vst.msk [vmem:[#allocation3 + $0x88] sm:$0xff] %vm13447_vm7, %v13420_v38  ;;  %v21398_v47 = vpop.f32.mrb[82].mxu1  ;;  %v13631_v33 = vmax.f32 %v13571_v25, %v13603_v13  ;;  %v13366_v6 = vmax.f32 %v13302_v26, 0.0  ;;  %v13581_v28 = vld [vmem:[#allocation3 + $0x148] ss:$2 sm:$0xff] }
 0x9db   : > { %v13305_v48 = vadd.f32 %v21398_v47, %v27285_v11  ;;  %v12986_v14 = vpop.f32.mrb[83].mxu1  ;;  %v13613_v47 = vld [vmem:[#allocation3 + $0x149] ss:$2 sm:$0xff] }
 0x9dc   : > { %v13304_v29 = vadd.f32 %v27285_v11, %v12986_v14  ;;  %21477 = vmatmul.mubr.msk.f32.gmra.mrb[66].mxu0 %vm13447_vm7, %v13631_v33 }
 0x9dd   : > { %v13369_v27 = vmax.f32 %v13305_v48, 0.0 }
 0x9de   : > { %v13368_v15 = vmax.f32 %v13304_v29, 0.0  ;;  %v21401_v41 = vpop.f32.mrb[84].mxu1 }
 0x9df   : > { %v13423_v32 = vmax.f32 %v13367_v60, %v13369_v27  ;;  %v12996_v24 = vpop.f32.mrb[85].mxu1  ;;  %v13307_v18 = vadd.f32 %v21401_v41, %v27285_v11 }
 0x9e0   : > { %v13422_v37 = vmax.f32 %v13366_v6, %v13368_v15  ;;  %v13306_v56 = vadd.f32 %v27285_v11, %v12996_v24  ;;  %v13636_v6 = vmax.f32 %v13581_v28, %v13613_v47 }
 0x9e1   : > { %13457 = vst.msk [vmem:[#allocation3 + $0xb0] sm:$0xff] %vm13447_vm7, %v13423_v32  ;;  %v13573_v58 = vld [vmem:[#allocation3 + $0x88] ss:$2 sm:$0xff]  ;;  %v13605_v39 = vld [vmem:[#allocation3 + $0x89] ss:$2 sm:$0xff]  ;;  %v13371_v2 = vmax.f32 %v13307_v18, 0.0 }
 0x9e2   : > { %13456 = vst.msk [vmem:[#allocation3 + $0xa8] sm:$0xff] %vm13447_vm7, %v13422_v37  ;;  %v21404_v51 = vpop.f32.mrb[86].mxu1  ;;  %v13632_v9 = vmax.f32 %v13573_v58, %v13605_v39  ;;  %v13370_v49 = vmax.f32 %v13306_v56, 0.0 }
 0x9e3   : > { %v13309_v63 = vadd.f32 %v21404_v51, %v27285_v11  ;;  %v13006_v7 = vpop.f32.mrb[87].mxu1 }
 0x9e4   : > { %v13308_v30 = vadd.f32 %v27285_v11, %v13006_v7  ;;  %21479 = vmatprep.mubr.msk.f32.mxu0 %vm13447_vm7, %v13632_v9 }
 0x9e5   : > { %v13373_v16 = vmax.f32 %v13309_v63, 0.0 }
 0x9e6   : > { %v13372_v43 = vmax.f32 %v13308_v30, 0.0  ;;  %v21407_v53 = vpop.f32.mrb[88].mxu1 }
 0x9e7   : > { %v13425_v45 = vmax.f32 %v13371_v2, %v13373_v16  ;;  %v13016_v0 = vpop.f32.mrb[89].mxu1  ;;  %v13311_v50 = vadd.f32 %v21407_v53, %v27285_v11 }
 0x9e8   : > { %v13424_v31 = vmax.f32 %v13370_v49, %v13372_v43  ;;  %v13310_v52 = vadd.f32 %v27285_v11, %v13016_v0 }
 0x9e9   : > { %13459 = vst.msk [vmem:[#allocation3 + $0xd0] sm:$0xff] %vm13447_vm7, %v13425_v45  ;;  %v13575_v35 = vld [vmem:[#allocation3 + $0xa8] ss:$2 sm:$0xff]  ;;  %v13607_v3 = vld [vmem:[#allocation3 + $0xa9] ss:$2 sm:$0xff]  ;;  %v13375_v36 = vmax.f32 %v13311_v50, 0.0 }
 0x9ea   : > { %13458 = vst.msk [vmem:[#allocation3 + $0xc8] sm:$0xff] %vm13447_vm7, %v13424_v31  ;;  %v21410_v1 = vpop.f32.mrb[90].mxu1  ;;  %v13633_v8 = vmax.f32 %v13575_v35, %v13607_v3  ;;  %v13374_v61 = vmax.f32 %v13310_v52, 0.0 }
 0x9eb   : > { %v13313_v34 = vadd.f32 %v21410_v1, %v27285_v11  ;;  %v13026_v20 = vpop.f32.mrb[91].mxu1 }
 0x9ec   : > { %v13312_v62 = vadd.f32 %v27285_v11, %v13026_v20  ;;  %21480 = vmatmul.mubr.msk.f32.gmra.mrb[68].mxu0 %vm13447_vm7, %v13633_v8 }
 0x9ed   : > { %v13377_v19 = vmax.f32 %v13313_v34, 0.0 }
 0x9ee   : > { %v13376_v40 = vmax.f32 %v13312_v62, 0.0  ;;  %v21413_v22 = vpop.f32.mrb[92].mxu1 }
 0x9ef   : > { %v13427_v55 = vmax.f32 %v13375_v36, %v13377_v19  ;;  %v13036_v44 = vpop.f32.mrb[93].mxu1  ;;  %v13315_v59 = vadd.f32 %v21413_v22, %v27285_v11 }
 0x9f0   : > { %v13426_v54 = vmax.f32 %v13374_v61, %v13376_v40  ;;  %v13314_v12 = vadd.f32 %v27285_v11, %v13036_v44 }
 0x9f1   : > { %13461 = vst.msk [vmem:[#allocation3 + $0xf0] sm:$0xff] %vm13447_vm7, %v13427_v55  ;;  %v13577_v23 = vld [vmem:[#allocation3 + $0xc8] ss:$2 sm:$0xff]  ;;  %v13609_v42 = vld [vmem:[#allocation3 + $0xc9] ss:$2 sm:$0xff]  ;;  %v13379_v4 = vmax.f32 %v13315_v59, 0.0 }
 0x9f2   : > { %13460 = vst.msk [vmem:[#allocation3 + $0xe8] sm:$0xff] %vm13447_vm7, %v13426_v54  ;;  %v21416_v17 = vpop.f32.mrb[94].mxu1  ;;  %v13634_v10 = vmax.f32 %v13577_v23, %v13609_v42  ;;  %v13378_v25 = vmax.f32 %v13314_v12, 0.0 }
 0x9f3   : > { %v13317_v57 = vadd.f32 %v21416_v17, %v27285_v11  ;;  %v13046_v21 = vpop.f32.mrb[95].mxu1 }
 0x9f4   : > { %v13316_v38 = vadd.f32 %v27285_v11, %v13046_v21  ;;  %21482 = vmatprep.mubr.msk.f32.mxu0 %vm13447_vm7, %v13634_v10 }
 0x9f5   : > { %v13381_v46 = vmax.f32 %v13317_v57, 0.0 }
 0x9f6   : > { %v13380_v13 = vmax.f32 %v13316_v38, 0.0  ;;  %v21419_v26 = vpop.f32.mrb[96].mxu1 }
 0x9f7   : > { %v13429_v33 = vmax.f32 %v13379_v4, %v13381_v46  ;;  %v13056_v48 = vpop.f32.mrb[97].mxu1  ;;  %v13319_v29 = vadd.f32 %v21419_v26, %v27285_v11 }
 0x9f8   : > { %v13428_v14 = vmax.f32 %v13378_v25, %v13380_v13  ;;  %v13318_v15 = vadd.f32 %v27285_v11, %v13056_v48 }
 0x9f9   : > { %13463 = vst.msk [vmem:[#allocation3 + $0x110] sm:$0xff] %vm13447_vm7, %v13429_v33  ;;  %v13579_v60 = vld [vmem:[#allocation3 + $0xe8] ss:$2 sm:$0xff]  ;;  %v13611_v27 = vld [vmem:[#allocation3 + $0xe9] ss:$2 sm:$0xff]  ;;  %v13383_v58 = vmax.f32 %v13319_v29, 0.0 }
 0x9fa   : > { %13462 = vst.msk [vmem:[#allocation3 + $0x108] sm:$0xff] %vm13447_vm7, %v13428_v14  ;;  %v21422_v41 = vpop.f32.mrb[98].mxu1  ;;  %v13635_v32 = vmax.f32 %v13579_v60, %v13611_v27  ;;  %v13382_v56 = vmax.f32 %v13318_v15, 0.0 }
 0x9fb   : > { %v13321_v24 = vadd.f32 %v21422_v41, %v27285_v11  ;;  %v13066_v37 = vpop.f32.mrb[99].mxu1 }
 0x9fc   : > { %v13320_v18 = vadd.f32 %v27285_v11, %v13066_v37  ;;  %21483 = vmatmul.mubr.msk.f32.gmra.mrb[70].mxu0 %vm13447_vm7, %v13635_v32 }
 0x9fd   : > { %v13385_v39 = vmax.f32 %v13321_v24, 0.0  ;;  %21485 = vmatprep.mubr.msk.f32.mxu0 %vm13447_vm7, %v13636_v6 }
 0x9fe   : > { %v13384_v51 = vmax.f32 %v13320_v18, 0.0  ;;  %v21425_v9 = vpop.f32.mrb[100].mxu1 }
 0x9ff   : > { %v13431_v63 = vmax.f32 %v13383_v58, %v13385_v39  ;;  %v13076_v7 = vpop.f32.mrb[101].mxu1  ;;  %v13323_v2 = vadd.f32 %v21425_v9, %v27285_v11 }
 0xa00   : > { %v13430_v30 = vmax.f32 %v13382_v56, %v13384_v51  ;;  %v13322_v16 = vadd.f32 %v27285_v11, %v13076_v7 }
 0xa01   : > { %13465 = vst.msk [vmem:[#allocation3 + $0x170] sm:$0xff] %vm13447_vm7, %v13431_v63  ;;  %v13387_v0 = vmax.f32 %v13323_v2, 0.0 }
 0xa02   : > { %13464 = vst.msk [vmem:[#allocation3 + $0x168] sm:$0xff] %vm13447_vm7, %v13430_v30  ;;  %v21428_v49 = vpop.f32.mrb[102].mxu1  ;;  %v13386_v50 = vmax.f32 %v13322_v16, 0.0 }
 0xa03   : > { %v13325_v43 = vadd.f32 %v21428_v49, %v27285_v11  ;;  %v13086_v53 = vpop.f32.mrb[103].mxu1 }
 0xa04   : > { %v13324_v45 = vadd.f32 %v27285_v11, %v13086_v53 }
 0xa05   : > { %v13389_v31 = vmax.f32 %v13325_v43, 0.0 }
 0xa06   : > { %v13388_v35 = vmax.f32 %v13324_v45, 0.0  ;;  %v21431_v3 = vpop.f32.mrb[104].mxu1 }
 0xa07   : > { %v13433_v52 = vmax.f32 %v13387_v0, %v13389_v31  ;;  %v13096_v1 = vpop.f32.mrb[105].mxu1  ;;  %v13327_v34 = vadd.f32 %v21431_v3, %v27285_v11 }
 0xa08   : > { %v13432_v8 = vmax.f32 %v13386_v50, %v13388_v35  ;;  %v13326_v36 = vadd.f32 %v27285_v11, %v13096_v1 }
 0xa09   : > { %13467 = vst.msk [vmem:[#allocation3 + $0x190] sm:$0xff] %vm13447_vm7, %v13433_v52  ;;  %v13583_v20 = vld [vmem:[#allocation3 + $0x168] ss:$2 sm:$0xff]  ;;  %v13615_v62 = vld [vmem:[#allocation3 + $0x169] ss:$2 sm:$0xff]  ;;  %v13391_v44 = vmax.f32 %v13327_v34, 0.0 }
 0xa0a   : > { %13466 = vst.msk [vmem:[#allocation3 + $0x188] sm:$0xff] %vm13447_vm7, %v13432_v8  ;;  %v21434_v19 = vpop.f32.mrb[106].mxu1  ;;  %v13637_v61 = vmax.f32 %v13583_v20, %v13615_v62  ;;  %v13390_v59 = vmax.f32 %v13326_v36, 0.0 }
 0xa0b   : > { %v13329_v40 = vadd.f32 %v21434_v19, %v27285_v11  ;;  %v13106_v22 = vpop.f32.mrb[107].mxu1 }
 0xa0c   : > { %v13328_v55 = vadd.f32 %v27285_v11, %v13106_v22  ;;  %21486 = vmatmul.mubr.msk.f32.gmra.mrb[72].mxu0 %vm13447_vm7, %v13637_v61 }
 0xa0d   : > { %v13393_v54 = vmax.f32 %v13329_v40, 0.0 }
 0xa0e   : > { %v13392_v23 = vmax.f32 %v13328_v55, 0.0  ;;  %v21437_v42 = vpop.f32.mrb[108].mxu1 }
 0xa0f   : > { %v13435_v12 = vmax.f32 %v13391_v44, %v13393_v54  ;;  %v13116_v17 = vpop.f32.mrb[109].mxu1  ;;  %v13331_v57 = vadd.f32 %v21437_v42, %v27285_v11 }
 0xa10   : > { %v13434_v10 = vmax.f32 %v13390_v59, %v13392_v23  ;;  %v13330_v4 = vadd.f32 %v27285_v11, %v13116_v17 }
 0xa11   : > { %13469 = vst.msk [vmem:[#allocation3 + $0x1b0] sm:$0xff] %vm13447_vm7, %v13435_v12  ;;  %v13585_v21 = vld [vmem:[#allocation3 + $0x188] ss:$2 sm:$0xff]  ;;  %v13617_v38 = vld [vmem:[#allocation3 + $0x189] ss:$2 sm:$0xff]  ;;  %v13395_v47 = vmax.f32 %v13331_v57, 0.0 }
 0xa12   : > { %13468 = vst.msk [vmem:[#allocation3 + $0x1a8] sm:$0xff] %vm13447_vm7, %v13434_v10  ;;  %v21440_v46 = vpop.f32.mrb[110].mxu1  ;;  %v13638_v28 = vmax.f32 %v13585_v21, %v13617_v38  ;;  %v13394_v48 = vmax.f32 %v13330_v4, 0.0 }
 0xa13   : > { %v13333_v25 = vadd.f32 %v21440_v46, %v27285_v11  ;;  %v13126_v13 = vpop.f32.mrb[111].mxu1 }
 0xa14   : > { %v13332_v26 = vadd.f32 %v27285_v11, %v13126_v13  ;;  %21488 = vmatprep.mubr.msk.f32.mxu0 %vm13447_vm7, %v13638_v28 }
 0xa15   : > { %v13397_v33 = vmax.f32 %v13333_v25, 0.0 }
 0xa16   : > { %v13396_v14 = vmax.f32 %v13332_v26, 0.0  ;;  %v21443_v29 = vpop.f32.mrb[112].mxu1 }
 0xa17   : > { %v13437_v60 = vmax.f32 %v13395_v47, %v13397_v33  ;;  %v13136_v27 = vpop.f32.mrb[113].mxu1  ;;  %v13335_v15 = vadd.f32 %v21443_v29, %v27285_v11 }
 0xa18   : > { %v13436_v6 = vmax.f32 %v13394_v48, %v13396_v14  ;;  %v13334_v24 = vadd.f32 %v27285_v11, %v13136_v27 }
 0xa19   : > { %13471 = vst.msk [vmem:[#allocation3 + $0x1d0] sm:$0xff] %vm13447_vm7, %v13437_v60  ;;  %v13587_v41 = vld [vmem:[#allocation3 + $0x1a8] ss:$2 sm:$0xff]  ;;  %v13619_v32 = vld [vmem:[#allocation3 + $0x1a9] ss:$2 sm:$0xff]  ;;  %v13399_v51 = vmax.f32 %v13335_v15, 0.0 }
 0xa1a   : > { %13470 = vst.msk [vmem:[#allocation3 + $0x1c8] sm:$0xff] %vm13447_vm7, %v13436_v6  ;;  %v21446_v37 = vpop.f32.mrb[114].mxu1  ;;  %v13639_v18 = vmax.f32 %v13587_v41, %v13619_v32  ;;  %v13398_v63 = vmax.f32 %v13334_v24, 0.0  ;;  %v13481_v32 = vld [vmem:[#allocation3 + $0x6] ss:$2 sm:$0xff] }
 0xa1b   : > { %v13337_v58 = vadd.f32 %v21446_v37, %v27285_v11  ;;  %v13146_v39 = vpop.f32.mrb[115].mxu1  ;;  %v13513_v24 = vld [vmem:[#allocation3 + $0x7] ss:$2 sm:$0xff] }
 0xa1c   : > { %v13336_v56 = vadd.f32 %v27285_v11, %v13146_v39  ;;  %21489 = vmatmul.mubr.msk.f32.gmra.mrb[74].mxu0 %vm13447_vm7, %v13639_v18 }
 0xa1d   : > { %v13401_v9 = vmax.f32 %v13337_v58, 0.0 }
 0xa1e   : > { %v13400_v7 = vmax.f32 %v13336_v56, 0.0  ;;  %v21449_v30 = vpop.f32.mrb[116].mxu1  ;;  %v13544_v56 = vmax.f32 %v13481_v32, %v13513_v24  ;;  %v18168_v32 = vld [vmem:[%s27742_s5 + $0x70] sm:$0xff]  ;;  %v18169_v24 = vld [vmem:[%s27742_s5 + $0x78] sm:$0xff] }
 0xa1f   : > { %v13439_v2 = vmax.f32 %v13399_v51, %v13401_v9  ;;  %v13156_v16 = vpop.f32.mrb[117].mxu1  ;;  %v13339_v43 = vadd.f32 %v21449_v30, %v27285_v11  ;;  %v13483_v9 = vld [vmem:[#allocation3 + $0x26] ss:$2 sm:$0xff] }
 0xa20   : > { %v13438_v49 = vmax.f32 %v13398_v63, %v13400_v7  ;;  %v13338_v0 = vadd.f32 %v27285_v11, %v13156_v16  ;;  %v18148_v63 = vld [vmem:[%s27742_s5 + $0x50] sm:$0xff]  ;;  %v18149_v7 = vld [vmem:[%s27742_s5 + $0x58] sm:$0xff] }
 0xa21   : > { %13473 = vst.msk [vmem:[#allocation3 + $0x1f0] sm:$0xff] %vm13447_vm7, %v13439_v2  ;;  %v13589_v53 = vld [vmem:[#allocation3 + $0x1c8] ss:$2 sm:$0xff]  ;;  %v13621_v45 = vld [vmem:[#allocation3 + $0x1c9] ss:$2 sm:$0xff]  ;;  %v13403_v1 = vmax.f32 %v13339_v43, 0.0  ;;  %v21844_v43 = vpack.c.bf16 %v18149_v7, %v18148_v63 }
 0xa22   : > { %13472 = vst.msk [vmem:[#allocation3 + $0x1e8] sm:$0xff] %vm13447_vm7, %v13438_v49  ;;  %v21452_v31 = vpop.f32.mrb[118].mxu1  ;;  %v13640_v50 = vmax.f32 %v13589_v53, %v13621_v45  ;;  %v13402_v34 = vmax.f32 %v13338_v0, 0.0  ;;  %v13485_v30 = vld [vmem:[#allocation3 + $0x46] ss:$2 sm:$0xff] }
 0xa23   : > { %v13341_v35 = vadd.f32 %v21452_v31, %v27285_v11  ;;  %v13166_v3 = vpop.f32.mrb[119].mxu1  ;;  %v13517_v2 = vld [vmem:[#allocation3 + $0x47] ss:$2 sm:$0xff]  ;;  %v13487_v49 = vld [vmem:[#allocation3 + $0x66] ss:$2 sm:$0xff] }
 0xa24   : > { %v13340_v52 = vadd.f32 %v27285_v11, %v13166_v3  ;;  %21491 = vmatprep.mubr.msk.f32.mxu0 %vm13447_vm7, %v13640_v50  ;;  %v13546_v53 = vmax.f32 %v13485_v30, %v13517_v2  ;;  %v13519_v45 = vld [vmem:[#allocation3 + $0x67] ss:$2 sm:$0xff]  ;;  %v13489_v50 = vld [vmem:[#allocation3 + $0x86] ss:$2 sm:$0xff] }
 0xa25   : > { %v13405_v8 = vmax.f32 %v13341_v35, 0.0  ;;  %v18166_v0 = vld [vmem:[%s27742_s5 + $0x60] sm:$0xff]  ;;  %v18167_v31 = vld [vmem:[%s27742_s5 + $0x68] sm:$0xff]  ;;  %v13547_v3 = vmax.f32 %v13487_v49, %v13519_v45 }
 0xa26   : > { %v13404_v20 = vmax.f32 %v13340_v52, 0.0  ;;  %v21455_v62 = vpop.f32.mrb[120].mxu1  ;;  %v13521_v35 = vld [vmem:[#allocation3 + $0x87] ss:$2 sm:$0xff]  ;;  %v27435_v52 = vpack.c.bf16 %v18167_v31, %v18166_v0  ;;  %v14044_v7 = vld [vmem:[#allocation3 + $0x8a] ss:$2 sm:$0xff] }
 0xa27   : > { %v13441_v36 = vmax.f32 %v13403_v1, %v13405_v8  ;;  %v13176_v19 = vpop.f32.mrb[121].mxu1  ;;  %v13343_v40 = vadd.f32 %v21455_v62, %v27285_v11  ;;  %v13548_v1 = vmax.f32 %v13489_v50, %v13521_v35  ;;  %v13491_v8 = vld [vmem:[#allocation3 + $0xa6] ss:$2 sm:$0xff]  ;;  %v13525_v62 = vld [vmem:[#allocation3 + $0xc7] ss:$2 sm:$0xff] }
 0xa28   : > { %v13440_v61 = vmax.f32 %v13402_v34, %v13404_v20  ;;  %v13342_v44 = vadd.f32 %v27285_v11, %v13176_v19  ;;  %v13523_v34 = vld [vmem:[#allocation3 + $0xa7] ss:$2 sm:$0xff]  ;;  %v13493_v20 = vld [vmem:[#allocation3 + $0xc6] ss:$2 sm:$0xff] }
 0xa29   : > { %13475 = vst.msk [vmem:[#allocation3 + $0x210] sm:$0xff] %vm13447_vm7, %v13441_v36  ;;  %v13591_v22 = vld [vmem:[#allocation3 + $0x1e8] ss:$2 sm:$0xff]  ;;  %v13623_v55 = vld [vmem:[#allocation3 + $0x1e9] ss:$2 sm:$0xff]  ;;  %v13407_v17 = vmax.f32 %v13343_v40, 0.0  ;;  %v13549_v36 = vmax.f32 %v13491_v8, %v13523_v34 }
 0xa2a   : > { %13474 = vst.msk [vmem:[#allocation3 + $0x208] sm:$0xff] %vm13447_vm7, %v13440_v61  ;;  %v21458_v54 = vpop.f32.mrb[122].mxu1  ;;  %v13641_v59 = vmax.f32 %v13591_v22, %v13623_v55  ;;  %v13406_v57 = vmax.f32 %v13342_v44, 0.0  ;;  %v13497_v19 = vld [vmem:[#allocation3 + $0x146] ss:$2 sm:$0xff] }
 0xa2b   : > { %v13345_v23 = vadd.f32 %v21458_v54, %v27285_v11  ;;  %v13186_v42 = vpop.f32.mrb[123].mxu1  ;;  %v13529_v61 = vld [vmem:[#allocation3 + $0x147] ss:$2 sm:$0xff]  ;;  %v13495_v40 = vld [vmem:[#allocation3 + $0xe6] ss:$2 sm:$0xff] }
 0xa2c   : > { %v13344_v12 = vadd.f32 %v27285_v11, %v13186_v42  ;;  %21492 = vmatmul.mubr.msk.f32.gmra.mrb[76].mxu0 %vm13447_vm7, %v13641_v59  ;;  %v13527_v22 = vld [vmem:[#allocation3 + $0xe7] ss:$2 sm:$0xff]  ;;  %v13552_v55 = vmax.f32 %v13497_v19, %v13529_v61  ;;  %v13499_v54 = vld [vmem:[#allocation3 + $0x166] ss:$2 sm:$0xff] }
 0xa2d   : > { %v13409_v10 = vmax.f32 %v13345_v23, 0.0  ;;  %v13551_v44 = vmax.f32 %v13495_v40, %v13527_v22  ;;  %v13531_v59 = vld [vmem:[#allocation3 + $0x167] ss:$2 sm:$0xff]  ;;  %v13501_v23 = vld [vmem:[#allocation3 + $0x186] ss:$2 sm:$0xff] }
 0xa2e   : > { %v13408_v21 = vmax.f32 %v13344_v12, 0.0  ;;  %v21461_v38 = vpop.f32.mrb[124].mxu1  ;;  %v13533_v42 = vld [vmem:[#allocation3 + $0x187] ss:$2 sm:$0xff]  ;;  %v13553_v12 = vmax.f32 %v13499_v54, %v13531_v59  ;;  %v14048_v45 = vld [vmem:[#allocation3 + $0xca] ss:$2 sm:$0xff] }
 0xa2f   : > { %v13443_v4 = vmax.f32 %v13407_v17, %v13409_v10  ;;  %v13196_v46 = vpop.f32.mrb[125].mxu1  ;;  %v13347_v25 = vadd.f32 %v21461_v38, %v27285_v11  ;;  %v13554_v17 = vmax.f32 %v13501_v23, %v13533_v42  ;;  %v13503_v10 = vld [vmem:[#allocation3 + $0x1a6] ss:$2 sm:$0xff]  ;;  %v13537_v38 = vld [vmem:[#allocation3 + $0x1c7] ss:$2 sm:$0xff] }
 0xa30   : > { %v13442_v28 = vmax.f32 %v13406_v57, %v13408_v21  ;;  %v13346_v47 = vadd.f32 %v27285_v11, %v13196_v46  ;;  %v13535_v57 = vld [vmem:[#allocation3 + $0x1a7] ss:$2 sm:$0xff]  ;;  %v13505_v21 = vld [vmem:[#allocation3 + $0x1c6] ss:$2 sm:$0xff] }
 0xa31   : > { %13477 = vst.msk [vmem:[#allocation3 + $0x230] sm:$0xff] %vm13447_vm7, %v13443_v4  ;;  %v13593_v13 = vld [vmem:[#allocation3 + $0x208] ss:$2 sm:$0xff]  ;;  %v13625_v26 = vld [vmem:[#allocation3 + $0x209] ss:$2 sm:$0xff]  ;;  %v13411_v27 = vmax.f32 %v13347_v25, 0.0  ;;  %v13555_v4 = vmax.f32 %v13503_v10, %v13535_v57  ;;  %v13556_v46 = vmax.f32 %v13505_v21, %v13537_v38 }
 0xa32   : > { %13476 = vst.msk [vmem:[#allocation3 + $0x228] sm:$0xff] %vm13447_vm7, %v13442_v28  ;;  %v21464_v33 = vpop.f32.mrb[126].mxu1  ;;  %v13642_v48 = vmax.f32 %v13593_v13, %v13625_v26  ;;  %v13410_v15 = vmax.f32 %v13346_v47, 0.0  ;;  %v13507_v28 = vld [vmem:[#allocation3 + $0x1e6] ss:$2 sm:$0xff] }
 0xa33   : > { %v13349_v14 = vadd.f32 %v21464_v33, %v27285_v11  ;;  %v13206_v29 = vpop.f32.mrb[127].mxu1  ;;  %v13539_v25 = vld [vmem:[#allocation3 + $0x1e7] ss:$2 sm:$0xff]  ;;  %v13509_v13 = vld [vmem:[#allocation3 + $0x206] ss:$2 sm:$0xff] }
 0xa34   : > { %v13348_v60 = vadd.f32 %v27285_v11, %v13206_v29  ;;  %21494 = vmatprep.mubr.msk.f32.mxu0 %vm13447_vm7, %v13642_v48  ;;  %v13515_v11 = vld [vmem:[#allocation3 + $0x27] ss:$2 sm:$0xff]  ;;  %v13557_v47 = vmax.f32 %v13507_v28, %v13539_v25  ;;  %v14036_v33 = vld [vmem:[#allocation3 + $0xa] ss:$2 sm:$0xff] }
 0xa35   : > { %v13413_v6 = vmax.f32 %v13349_v14, 0.0  ;;  %v13545_v16 = vmax.f32 %v13483_v9, %v13515_v11  ;;  %v13541_v26 = vld [vmem:[#allocation3 + $0x207] ss:$2 sm:$0xff]  ;;  %v14052_v50 = vld [vmem:[#allocation3 + $0x14a] ss:$2 sm:$0xff] }
 0xa36   : > { %v13412_v41 = vmax.f32 %v13348_v60, 0.0  ;;  %v14068_v48 = vld [vmem:[#allocation3 + $0xb] ss:$2 sm:$0xff]  ;;  %v13558_v14 = vmax.f32 %v13509_v13, %v13541_v26  ;;  %v18186_v11 = vld [vmem:[%s27742_s5 + $0x80] sm:$0xff]  ;;  %v14058_v40 = vld [vmem:[#allocation3 + $0x1aa] ss:$2 sm:$0xff] }
 0xa37   : > { %v13445_v37 = vmax.f32 %v13411_v27, %v13413_v6  ;;  %v14099_v27 = vmax.f32 %v14036_v33, %v14068_v48  ;;  %v14074_v9 = vld [vmem:[#allocation3 + $0x6b] ss:$2 sm:$0xff]  ;;  %v14062_v23 = vld [vmem:[#allocation3 + $0x1ea] ss:$2 sm:$0xff] }
 0xa38   : > { %v13444_v18 = vmax.f32 %v13410_v15, %v13412_v41  ;;  %v14038_v15 = vld [vmem:[#allocation3 + $0x2a] ss:$2 sm:$0xff]  ;;  %v14070_v41 = vld [vmem:[#allocation3 + $0x2b] ss:$2 sm:$0xff] }
 0xa39   : > { %13479 = vst.msk [vmem:[#allocation3 + $0x250] sm:$0xff] %vm13447_vm7, %v13445_v37  ;;  %v13595_v58 = vld [vmem:[#allocation3 + $0x228] ss:$2 sm:$0xff]  ;;  %v13627_v39 = vld [vmem:[#allocation3 + $0x229] ss:$2 sm:$0xff]  ;;  %v18189_v33 = vld [vmem:[%s27742_s5 + $0x98] sm:$0xff] }
 0xa3a   : > { %13478 = vst.msk [vmem:[#allocation3 + $0x248] sm:$0xff] %vm13447_vm7, %v13444_v18  ;;  %v13643_v51 = vmax.f32 %v13595_v58, %v13627_v39  ;;  %v13511_v29 = vld [vmem:[#allocation3 + $0x226] ss:$2 sm:$0xff]  ;;  %v13543_v60 = vld [vmem:[#allocation3 + $0x227] ss:$2 sm:$0xff]  ;;  %v14100_v58 = vmax.f32 %v14038_v15, %v14070_v41 }
 0xa3b   : > { %v13559_v6 = vmax.f32 %v13511_v29, %v13543_v60  ;;  %v14040_v37 = vld [vmem:[#allocation3 + $0x4a] ss:$2 sm:$0xff]  ;;  %v14072_v18 = vld [vmem:[#allocation3 + $0x4b] ss:$2 sm:$0xff]  ;;  %v18206_v41 = vld [vmem:[%s27742_s5 + $0xa0] sm:$0xff] }
 0xa3c   : > { %21495 = vmatmul.mubr.msk.f32.gmra.mrb[78].mxu0 %vm13447_vm7, %v13643_v51  ;;  %v14042_v39 = vld [vmem:[#allocation3 + $0x6a] ss:$2 sm:$0xff]  ;;  %v14101_v51 = vmax.f32 %v14040_v37, %v14072_v18  ;;  %v14076_v30 = vld [vmem:[#allocation3 + $0x8b] ss:$2 sm:$0xff] }
 0xa3d   : > { %21505 = vmatprep.mubr.msk.f32.mxu0 %vm13447_vm7, %v13544_v56  ;;  %v21852_v56 = vpack.c.bf16 %v18169_v24, %v18168_v32  ;;  %v18187_v63 = vld [vmem:[%s27742_s5 + $0x88] sm:$0xff]  ;;  %v14102_v2 = vmax.f32 %v14042_v39, %v14074_v9  ;;  %v14103_v49 = vmax.f32 %v14044_v7, %v14076_v30 }
 0xa3e   : > { %v14080_v0 = vld [vmem:[#allocation3 + $0xcb] ss:$2 sm:$0xff]  ;;  %v14066_v21 = vld [vmem:[#allocation3 + $0x22a] ss:$2 sm:$0xff] }
 0xa3f   : > { %v14084_v35 = vld [vmem:[#allocation3 + $0x14b] ss:$2 sm:$0xff]  ;;  %v14332_v25 = vld [vmem:[#allocation3 + $0x46] ss:$2 sm:$0xff] }
 0xa40   : > { %21506 = vmatmul.mubr.msk.f32.vlgmr.msra.gmra.mrb[64].mxu0 %vm13447_vm7, %v13545_v16  ;;  %v27467_v16 = vpack.c.bf16 %v18187_v63, %v18186_v11  ;;  %v14107_v8 = vmax.f32 %v14052_v50, %v14084_v35  ;;  %v14088_v19 = vld [vmem:[#allocation3 + $0x18b] ss:$2 sm:$0xff]  ;;  %v14334_v48 = vld [vmem:[#allocation3 + $0x66] ss:$2 sm:$0xff] }
 0xa41   : > { %21508 = vmatprep.mubr.msk.f32.mxu0 %vm13447_vm7, %v13546_v53  ;;  %21843 = vmatpush3.bf16.msra.mxu0 %v27331_v5  ;;  %v13550_v5 = vmax.f32 %v13493_v20, %v13525_v62  ;;  %v14078_v53 = vld [vmem:[#allocation3 + $0xab] ss:$2 sm:$0xff]  ;;  %v14054_v20 = vld [vmem:[#allocation3 + $0x16a] ss:$2 sm:$0xff] }
 0xa42   : > { %21845 = vmatprep.subr.bf16.mxu0 %v21844_v43  ;;  %v14086_v62 = vld [vmem:[#allocation3 + $0x16b] ss:$2 sm:$0xff]  ;;  %v14336_v60 = vld [vmem:[#allocation3 + $0x86] ss:$2 sm:$0xff] }
 0xa43   : > { %v14108_v61 = vmax.f32 %v14054_v20, %v14086_v62  ;;  %v14090_v22 = vld [vmem:[#allocation3 + $0x1ab] ss:$2 sm:$0xff]  ;;  %v14338_v24 = vld [vmem:[#allocation3 + $0xa6] ss:$2 sm:$0xff] }
 0xa44   : > { %21509 = vmatmul.mubr.msk.f32.gmra.mrb[66].mxu0 %vm13447_vm7, %v13547_v3  ;;  %v14105_v3 = vmax.f32 %v14048_v45, %v14080_v0  ;;  %v14110_v54 = vmax.f32 %v14058_v40, %v14090_v22  ;;  %v14094_v42 = vld [vmem:[#allocation3 + $0x1eb] ss:$2 sm:$0xff]  ;;  %v14342_v9 = vld [vmem:[#allocation3 + $0xe6] ss:$2 sm:$0xff] }
 0xa45   : > { %21511 = vmatprep.mubr.msk.f32.mxu0 %vm13447_vm7, %v13548_v1  ;;  %21847 = vmatpush3.bf16.msra.mxu0 %v21844_v43  ;;  %v14046_v43 = vld [vmem:[#allocation3 + $0xaa] ss:$2 sm:$0xff]  ;;  %v14082_v1 = vld [vmem:[#allocation3 + $0xeb] ss:$2 sm:$0xff]  ;;  %v14112_v10 = vmax.f32 %v14062_v23, %v14094_v42 }
 0xa46   : > { %21849 = vmatprep.subr.bf16.mxu0 %v27435_v52  ;;  %v14104_v31 = vmax.f32 %v14046_v43, %v14078_v53  ;;  %v14098_v38 = vld [vmem:[#allocation3 + $0x22b] ss:$2 sm:$0xff]  ;;  %v14344_v30 = vld [vmem:[#allocation3 + $0x106] ss:$2 sm:$0xff] }
 0xa47   : > { %v14114_v28 = vmax.f32 %v14066_v21, %v14098_v38  ;;  %v14364_v26 = vld [vmem:[#allocation3 + $0x47] ss:$2 sm:$0xff]  ;;  %v14348_v45 = vld [vmem:[#allocation3 + $0x186] ss:$2 sm:$0xff] }
 0xa48   : > { %21512 = vmatmul.mubr.msk.f32.gmra.mrb[68].mxu0 %vm13447_vm7, %v13549_v36  ;;  %v14056_v36 = vld [vmem:[#allocation3 + $0x18a] ss:$2 sm:$0xff]  ;;  %v14394_v29 = vmax.f32 %v14332_v25, %v14364_v26  ;;  %v14368_v15 = vld [vmem:[#allocation3 + $0x87] ss:$2 sm:$0xff] }
 0xa49   : > { %21514 = vmatprep.mubr.msk.f32.mxu0 %vm13447_vm7, %v13550_v5  ;;  %v14109_v5 = vmax.f32 %v14056_v36, %v14088_v19  ;;  %v18207_v32 = vld [vmem:[%s27742_s5 + $0xa8] sm:$0xff]  ;;  %v14396_v18 = vmax.f32 %v14336_v60, %v14368_v15  ;;  %v18226_v26 = vld [vmem:[%s27742_s5 + $0xc0] sm:$0xff] }
 0xa4a   : > { %v14370_v37 = vld [vmem:[#allocation3 + $0xa7] ss:$2 sm:$0xff]  ;;  %v14356_v36 = vld [vmem:[#allocation3 + $0x206] ss:$2 sm:$0xff] }
 0xa4b   : > { %v14397_v39 = vmax.f32 %v14338_v24, %v14370_v37  ;;  %v14374_v11 = vld [vmem:[#allocation3 + $0xe7] ss:$2 sm:$0xff]  ;;  %v14626_v42 = vld [vmem:[#allocation3 + $0x48] ss:$2 sm:$0xff] }
 0xa4c   : > { %21515 = vmatmul.mubr.msk.f32.gmra.mrb[70].mxu0 %vm13447_vm7, %v13551_v44  ;;  %v14092_v44 = vld [vmem:[#allocation3 + $0x1cb] ss:$2 sm:$0xff]  ;;  %v14399_v7 = vmax.f32 %v14342_v9, %v14374_v11  ;;  %v14628_v21 = vld [vmem:[#allocation3 + $0x68] ss:$2 sm:$0xff] }
 0xa4d   : > { %21517 = vmatprep.mubr.msk.f32.mxu0 %vm13447_vm7, %v13552_v55  ;;  %v14060_v55 = vld [vmem:[#allocation3 + $0x1ca] ss:$2 sm:$0xff]  ;;  %v14380_v0 = vld [vmem:[#allocation3 + $0x187] ss:$2 sm:$0xff] }
 0xa4e   : > { %v14111_v59 = vmax.f32 %v14060_v55, %v14092_v44  ;;  %v14382_v50 = vld [vmem:[#allocation3 + $0x1a7] ss:$2 sm:$0xff]  ;;  %v14402_v35 = vmax.f32 %v14348_v45, %v14380_v0  ;;  %v14360_v55 = vld [vmem:[#allocation3 + $0x246] ss:$2 sm:$0xff] }
 0xa4f   : > { %v14388_v19 = vld [vmem:[#allocation3 + $0x207] ss:$2 sm:$0xff]  ;;  %v14636_v15 = vld [vmem:[#allocation3 + $0xe8] ss:$2 sm:$0xff] }
 0xa50   : > { %21518 = vmatmul.mubr.msk.f32.gmra.mrb[72].mxu0 %vm13447_vm7, %v13553_v12  ;;  %v14064_v12 = vld [vmem:[#allocation3 + $0x20a] ss:$2 sm:$0xff]  ;;  %v14406_v40 = vmax.f32 %v14356_v36, %v14388_v19  ;;  %v14392_v44 = vld [vmem:[#allocation3 + $0x247] ss:$2 sm:$0xff] }
 0xa51   : > { %21520 = vmatprep.mubr.msk.f32.mxu0 %vm13447_vm7, %v13554_v17  ;;  %v14096_v17 = vld [vmem:[#allocation3 + $0x20b] ss:$2 sm:$0xff]  ;;  %v14408_v23 = vmax.f32 %v14360_v55, %v14392_v44  ;;  %v14638_v37 = vld [vmem:[#allocation3 + $0x108] ss:$2 sm:$0xff] }
 0xa52   : > { %v14113_v57 = vmax.f32 %v14064_v12, %v14096_v17  ;;  %v14658_v17 = vld [vmem:[#allocation3 + $0x49] ss:$2 sm:$0xff]  ;;  %v14642_v9 = vld [vmem:[#allocation3 + $0x188] ss:$2 sm:$0xff] }
 0xa53   : > { %v14660_v38 = vld [vmem:[#allocation3 + $0x69] ss:$2 sm:$0xff]  ;;  %v14920_v19 = vld [vmem:[#allocation3 + $0x4a] ss:$2 sm:$0xff] }
 0xa54   : > { %21521 = vmatmul.mubr.msk.f32.gmra.mrb[74].mxu0 %vm13447_vm7, %v13555_v4  ;;  %v14330_v4 = vld [vmem:[#allocation3 + $0x26] ss:$2 sm:$0xff]  ;;  %v14689_v25 = vmax.f32 %v14628_v21, %v14660_v38  ;;  %v14674_v11 = vld [vmem:[#allocation3 + $0x189] ss:$2 sm:$0xff] }
 0xa55   : > { %21523 = vmatprep.mubr.msk.f32.mxu0 %vm13447_vm7, %v13556_v46  ;;  %v14362_v46 = vld [vmem:[#allocation3 + $0x27] ss:$2 sm:$0xff]  ;;  %v14922_v55 = vld [vmem:[#allocation3 + $0x6a] ss:$2 sm:$0xff] }
 0xa56   : > { %v14393_v13 = vmax.f32 %v14330_v4, %v14362_v46  ;;  %v14688_v4 = vmax.f32 %v14626_v42, %v14658_v17  ;;  %v14630_v46 = vld [vmem:[#allocation3 + $0x88] ss:$2 sm:$0xff]  ;;  %v14954_v44 = vld [vmem:[#allocation3 + $0x6b] ss:$2 sm:$0xff]  ;;  %v18246_v17 = vld [vmem:[%s27742_s5 + $0xe0] sm:$0xff] }
 0xa57   : > { %v14983_v42 = vmax.f32 %v14922_v55, %v14954_v44  ;;  %v14958_v21 = vld [vmem:[#allocation3 + $0xab] ss:$2 sm:$0xff] }
 0xa58   : > { %21524 = vmatmul.mubr.msk.f32.gmra.mrb[76].mxu0 %vm13447_vm7, %v13557_v47  ;;  %v18188_v47 = vld [vmem:[%s27742_s5 + $0x90] sm:$0xff] }
 0xa59   : > { %21526 = vmatprep.mubr.msk.f32.mxu0 %vm13447_vm7, %v13558_v14  ;;  %v14366_v14 = vld [vmem:[#allocation3 + $0x67] ss:$2 sm:$0xff] }
 0xa5a   : > { %v15253_v55 = vld [vmem:[#allocation3 + $0xc7] ss:$2 sm:$0xff] }
 0xa5c   : > { %21527 = vmatmul.mubr.msk.f32.gmra.mrb[78].mxu0 %vm13447_vm7, %v13559_v6  ;;  %v14395_v6 = vmax.f32 %v14334_v48, %v14366_v14  ;;  %v14664_v48 = vld [vmem:[#allocation3 + $0xa9] ss:$2 sm:$0xff] }
 0xa5d   : > { %21537 = vmatprep.mubr.msk.f32.mxu0 %vm13447_vm7, %v14099_v27  ;;  %v21860_v27 = vpack.c.bf16 %v18189_v33, %v18188_v47  ;;  %v18227_v47 = vld [vmem:[%s27742_s5 + $0xc8] sm:$0xff] }
 0xa5e   : > { %v14632_v33 = vld [vmem:[#allocation3 + $0xa8] ss:$2 sm:$0xff] }
 0xa5f   : > { %v14691_v60 = vmax.f32 %v14632_v33, %v14664_v48  ;;  %v14932_v48 = vld [vmem:[#allocation3 + $0x10a] ss:$2 sm:$0xff] }
 0xa60   : > { %21538 = vmatmul.mubr.msk.f32.vlgmr.msra.gmra.mrb[64].mxu0 %vm13447_vm7, %v14100_v58  ;;  %v27499_v58 = vpack.c.bf16 %v18207_v32, %v18206_v41  ;;  %v14668_v41 = vld [vmem:[#allocation3 + $0xe9] ss:$2 sm:$0xff] }
 0xa61   : > { %21540 = vmatprep.mubr.msk.f32.mxu0 %vm13447_vm7, %v14101_v51  ;;  %21851 = vmatpush3.bf16.msra.mxu0 %v27435_v52  ;;  %v14050_v52 = vld [vmem:[#allocation3 + $0xea] ss:$2 sm:$0xff]  ;;  %v14372_v51 = vld [vmem:[#allocation3 + $0xc7] ss:$2 sm:$0xff]  ;;  %v14693_v24 = vmax.f32 %v14636_v15, %v14668_v41 }
 0xa62   : > { %21853 = vmatprep.subr.bf16.mxu0 %v21852_v56  ;;  %v14106_v34 = vmax.f32 %v14050_v52, %v14082_v1  ;;  %v14352_v52 = vld [vmem:[#allocation3 + $0x1c6] ss:$2 sm:$0xff]  ;;  %v14384_v1 = vld [vmem:[#allocation3 + $0x1c7] ss:$2 sm:$0xff] }
 0xa63   : > { %v14404_v20 = vmax.f32 %v14352_v52, %v14384_v1  ;;  %v14936_v15 = vld [vmem:[#allocation3 + $0x18a] ss:$2 sm:$0xff]  ;;  %v14968_v41 = vld [vmem:[#allocation3 + $0x18b] ss:$2 sm:$0xff] }
 0xa64   : > { %21541 = vmatmul.mubr.msk.f32.gmra.mrb[66].mxu0 %vm13447_vm7, %v14102_v2  ;;  %v14376_v2 = vld [vmem:[#allocation3 + $0x107] ss:$2 sm:$0xff] }
 0xa65   : > { %21543 = vmatprep.mubr.msk.f32.mxu0 %vm13447_vm7, %v14103_v49  ;;  %21855 = vmatpush3.bf16.msra.mxu0 %v21852_v56  ;;  %v14340_v56 = vld [vmem:[#allocation3 + $0xc6] ss:$2 sm:$0xff]  ;;  %v14378_v49 = vld [vmem:[#allocation3 + $0x167] ss:$2 sm:$0xff]  ;;  %v14400_v43 = vmax.f32 %v14344_v30, %v14376_v2  ;;  %v14696_v30 = vmax.f32 %v14642_v9, %v14674_v11 }
 0xa66   : > { %21857 = vmatprep.subr.bf16.mxu0 %v27467_v16  ;;  %v14398_v63 = vmax.f32 %v14340_v56, %v14372_v51 }
 0xa68   : > { %21544 = vmatmul.mubr.msk.f32.gmra.mrb[68].mxu0 %vm13447_vm7, %v14104_v31  ;;  %v14350_v31 = vld [vmem:[#allocation3 + $0x1a6] ss:$2 sm:$0xff] }
 0xa69   : > { %21546 = vmatprep.mubr.msk.f32.mxu0 %vm13447_vm7, %v14105_v3  ;;  %v14403_v3 = vmax.f32 %v14350_v31, %v14382_v50  ;;  %v14650_v31 = vld [vmem:[#allocation3 + $0x208] ss:$2 sm:$0xff]  ;;  %v14682_v50 = vld [vmem:[#allocation3 + $0x209] ss:$2 sm:$0xff] }
 0xa6a   : > { %v14700_v52 = vmax.f32 %v14650_v31, %v14682_v50  ;;  %v15215_v50 = vld [vmem:[#allocation3 + $0x66] ss:$2 sm:$0xff] }
 0xa6c   : > { %21547 = vmatmul.mubr.msk.f32.gmra.mrb[70].mxu0 %vm13447_vm7, %v14106_v34  ;;  %v14386_v34 = vld [vmem:[#allocation3 + $0x1e7] ss:$2 sm:$0xff] }
 0xa6d   : > { %21549 = vmatprep.mubr.msk.f32.mxu0 %vm13447_vm7, %v14107_v8  ;;  %v14354_v8 = vld [vmem:[#allocation3 + $0x1e6] ss:$2 sm:$0xff] }
 0xa6e   : > { %v14405_v62 = vmax.f32 %v14354_v8, %v14386_v34  ;;  %v14654_v8 = vld [vmem:[#allocation3 + $0x248] ss:$2 sm:$0xff]  ;;  %v14686_v34 = vld [vmem:[#allocation3 + $0x249] ss:$2 sm:$0xff] }
 0xa6f   : > { %v14702_v36 = vmax.f32 %v14654_v8, %v14686_v34  ;;  %v15217_v8 = vld [vmem:[#allocation3 + $0x86] ss:$2 sm:$0xff]  ;;  %v15249_v34 = vld [vmem:[#allocation3 + $0x87] ss:$2 sm:$0xff] }
 0xa70   : > { %21550 = vmatmul.mubr.msk.f32.gmra.mrb[72].mxu0 %vm13447_vm7, %v14108_v61  ;;  %v14358_v61 = vld [vmem:[#allocation3 + $0x226] ss:$2 sm:$0xff] }
 0xa71   : > { %21552 = vmatprep.mubr.msk.f32.mxu0 %vm13447_vm7, %v14109_v5  ;;  %v14390_v5 = vld [vmem:[#allocation3 + $0x227] ss:$2 sm:$0xff] }
 0xa72   : > { %v14407_v22 = vmax.f32 %v14358_v61, %v14390_v5  ;;  %v14952_v5 = vld [vmem:[#allocation3 + $0x4b] ss:$2 sm:$0xff] }
 0xa74   : > { %21553 = vmatmul.mubr.msk.f32.gmra.mrb[74].mxu0 %vm13447_vm7, %v14110_v54  ;;  %v14624_v54 = vld [vmem:[#allocation3 + $0x28] ss:$2 sm:$0xff] }
 0xa75   : > { %21555 = vmatprep.mubr.msk.f32.mxu0 %vm13447_vm7, %v14111_v59  ;;  %v14656_v59 = vld [vmem:[#allocation3 + $0x29] ss:$2 sm:$0xff] }
 0xa76   : > { %v14687_v12 = vmax.f32 %v14624_v54, %v14656_v59  ;;  %v14982_v54 = vmax.f32 %v14920_v19, %v14952_v5  ;;  %v14924_v59 = vld [vmem:[#allocation3 + $0x8a] ss:$2 sm:$0xff]  ;;  %v15278_v19 = vmax.f32 %v15217_v8, %v15249_v34  ;;  %v18266_v5 = vld [vmem:[%s27742_s5 + $0x100] sm:$0xff] }
 0xa77   : > { %v15517_v34 = vld [vmem:[#allocation3 + $0xe8] ss:$2 sm:$0xff] }
 0xa78   : > { %21556 = vmatmul.mubr.msk.f32.gmra.mrb[76].mxu0 %vm13447_vm7, %v14112_v10  ;;  %v18208_v10 = vld [vmem:[%s27742_s5 + $0xb0] sm:$0xff] }
 0xa79   : > { %21558 = vmatprep.mubr.msk.f32.mxu0 %vm13447_vm7, %v14113_v57  ;;  %v18209_v57 = vld [vmem:[%s27742_s5 + $0xb8] sm:$0xff] }
 0xa7c   : > { %21559 = vmatmul.mubr.msk.f32.gmra.mrb[78].mxu0 %vm13447_vm7, %v14114_v28  ;;  %v21868_v28 = vpack.c.bf16 %v18209_v57, %v18208_v10  ;;  %v18247_v10 = vld [vmem:[%s27742_s5 + $0xe8] sm:$0xff] }
 0xa7d   : > { %21569 = vmatprep.mubr.msk.f32.mxu0 %vm13447_vm7, %v14393_v13  ;;  %v14662_v13 = vld [vmem:[#allocation3 + $0x89] ss:$2 sm:$0xff]  ;;  %v14926_v57 = vld [vmem:[#allocation3 + $0xaa] ss:$2 sm:$0xff] }
 0xa7e   : > { %v14690_v14 = vmax.f32 %v14630_v46, %v14662_v13  ;;  %v14985_v46 = vmax.f32 %v14926_v57, %v14958_v21  ;;  %v14930_v13 = vld [vmem:[#allocation3 + $0xea] ss:$2 sm:$0xff]  ;;  %v15259_v57 = vld [vmem:[#allocation3 + $0x127] ss:$2 sm:$0xff] }
 0xa80   : > { %21570 = vmatmul.mubr.msk.f32.vlgmr.msra.gmra.mrb[64].mxu0 %vm13447_vm7, %v14394_v29  ;;  %v27531_v29 = vpack.c.bf16 %v18227_v47, %v18226_v26  ;;  %v14962_v26 = vld [vmem:[#allocation3 + $0xeb] ss:$2 sm:$0xff] }
 0xa81   : > { %21572 = vmatprep.mubr.msk.f32.mxu0 %vm13447_vm7, %v14395_v6  ;;  %21859 = vmatpush3.bf16.msra.mxu0 %v27467_v16  ;;  %v14346_v16 = vld [vmem:[#allocation3 + $0x166] ss:$2 sm:$0xff]  ;;  %v14666_v6 = vld [vmem:[#allocation3 + $0xc9] ss:$2 sm:$0xff]  ;;  %v14987_v33 = vmax.f32 %v14930_v13, %v14962_v26 }
 0xa82   : > { %21861 = vmatprep.subr.bf16.mxu0 %v21860_v27  ;;  %v14401_v53 = vmax.f32 %v14346_v16, %v14378_v49  ;;  %v14646_v16 = vld [vmem:[#allocation3 + $0x1c8] ss:$2 sm:$0xff]  ;;  %v14678_v49 = vld [vmem:[#allocation3 + $0x1c9] ss:$2 sm:$0xff] }
 0xa83   : > { %v14698_v45 = vmax.f32 %v14646_v16, %v14678_v49  ;;  %v15231_v13 = vld [vmem:[#allocation3 + $0x1a6] ss:$2 sm:$0xff]  ;;  %v15263_v26 = vld [vmem:[#allocation3 + $0x1a7] ss:$2 sm:$0xff] }
 0xa84   : > { %21573 = vmatmul.mubr.msk.f32.gmra.mrb[66].mxu0 %vm13447_vm7, %v14396_v18  ;;  %v14670_v18 = vld [vmem:[#allocation3 + $0x109] ss:$2 sm:$0xff] }
 0xa85   : > { %21575 = vmatprep.mubr.msk.f32.mxu0 %vm13447_vm7, %v14397_v39  ;;  %21863 = vmatpush3.bf16.msra.mxu0 %v21860_v27  ;;  %v14634_v27 = vld [vmem:[#allocation3 + $0xc8] ss:$2 sm:$0xff]  ;;  %v14672_v39 = vld [vmem:[#allocation3 + $0x169] ss:$2 sm:$0xff]  ;;  %v14694_v56 = vmax.f32 %v14638_v37, %v14670_v18  ;;  %v14990_v37 = vmax.f32 %v14936_v15, %v14968_v41 }
 0xa86   : > { %21865 = vmatprep.subr.bf16.mxu0 %v27499_v58  ;;  %v14692_v32 = vmax.f32 %v14634_v27, %v14666_v6 }
 0xa88   : > { %21576 = vmatmul.mubr.msk.f32.gmra.mrb[68].mxu0 %vm13447_vm7, %v14398_v63  ;;  %v14644_v63 = vld [vmem:[#allocation3 + $0x1a8] ss:$2 sm:$0xff] }
 0xa89   : > { %21578 = vmatprep.mubr.msk.f32.mxu0 %vm13447_vm7, %v14399_v7  ;;  %v14676_v7 = vld [vmem:[#allocation3 + $0x1a9] ss:$2 sm:$0xff] }
 0xa8a   : > { %v14697_v2 = vmax.f32 %v14644_v63, %v14676_v7  ;;  %v14944_v63 = vld [vmem:[#allocation3 + $0x20a] ss:$2 sm:$0xff]  ;;  %v14976_v7 = vld [vmem:[#allocation3 + $0x20b] ss:$2 sm:$0xff] }
 0xa8b   : > { %v14994_v16 = vmax.f32 %v14944_v63, %v14976_v7  ;;  %v15539_v63 = vld [vmem:[#allocation3 + $0x49] ss:$2 sm:$0xff]  ;;  %v15509_v7 = vld [vmem:[#allocation3 + $0x68] ss:$2 sm:$0xff] }
 0xa8c   : > { %21579 = vmatmul.mubr.msk.f32.gmra.mrb[70].mxu0 %vm13447_vm7, %v14400_v43  ;;  %v14648_v43 = vld [vmem:[#allocation3 + $0x1e8] ss:$2 sm:$0xff] }
 0xa8d   : > { %21581 = vmatprep.mubr.msk.f32.mxu0 %vm13447_vm7, %v14401_v53  ;;  %v14680_v53 = vld [vmem:[#allocation3 + $0x1e9] ss:$2 sm:$0xff] }
 0xa8e   : > { %v14699_v0 = vmax.f32 %v14648_v43, %v14680_v53  ;;  %v14948_v43 = vld [vmem:[#allocation3 + $0x24a] ss:$2 sm:$0xff]  ;;  %v14980_v53 = vld [vmem:[#allocation3 + $0x24b] ss:$2 sm:$0xff] }
 0xa8f   : > { %v14996_v31 = vmax.f32 %v14948_v43, %v14980_v53  ;;  %v15511_v43 = vld [vmem:[#allocation3 + $0x88] ss:$2 sm:$0xff]  ;;  %v15543_v53 = vld [vmem:[#allocation3 + $0x89] ss:$2 sm:$0xff] }
 0xa90   : > { %21582 = vmatmul.mubr.msk.f32.gmra.mrb[72].mxu0 %vm13447_vm7, %v14402_v35  ;;  %v14652_v35 = vld [vmem:[#allocation3 + $0x228] ss:$2 sm:$0xff] }
 0xa91   : > { %21584 = vmatprep.mubr.msk.f32.mxu0 %vm13447_vm7, %v14403_v3  ;;  %v14684_v3 = vld [vmem:[#allocation3 + $0x229] ss:$2 sm:$0xff] }
 0xa92   : > { %v14701_v1 = vmax.f32 %v14652_v35, %v14684_v3  ;;  %v15247_v3 = vld [vmem:[#allocation3 + $0x67] ss:$2 sm:$0xff] }
 0xa94   : > { %21585 = vmatmul.mubr.msk.f32.gmra.mrb[74].mxu0 %vm13447_vm7, %v14404_v20  ;;  %v14918_v20 = vld [vmem:[#allocation3 + $0x2a] ss:$2 sm:$0xff] }
 0xa95   : > { %21587 = vmatprep.mubr.msk.f32.mxu0 %vm13447_vm7, %v14405_v62  ;;  %v14950_v62 = vld [vmem:[#allocation3 + $0x2b] ss:$2 sm:$0xff] }
 0xa96   : > { %v14981_v61 = vmax.f32 %v14918_v20, %v14950_v62  ;;  %v15277_v20 = vmax.f32 %v15215_v50, %v15247_v3  ;;  %v15219_v62 = vld [vmem:[#allocation3 + $0xa6] ss:$2 sm:$0xff] }
 0xa97   : > { %v15513_v50 = vld [vmem:[#allocation3 + $0xa8] ss:$2 sm:$0xff] }
 0xa98   : > { %21588 = vmatmul.mubr.msk.f32.gmra.mrb[76].mxu0 %vm13447_vm7, %v14406_v40  ;;  %v18228_v40 = vld [vmem:[%s27742_s5 + $0xd0] sm:$0xff] }
 0xa99   : > { %21590 = vmatprep.mubr.msk.f32.mxu0 %vm13447_vm7, %v14407_v22  ;;  %v18229_v22 = vld [vmem:[%s27742_s5 + $0xd8] sm:$0xff]  ;;  %v15515_v3 = vld [vmem:[#allocation3 + $0xc8] ss:$2 sm:$0xff] }
 0xa9c   : > { %21591 = vmatmul.mubr.msk.f32.gmra.mrb[78].mxu0 %vm13447_vm7, %v14408_v23  ;;  %v21876_v23 = vpack.c.bf16 %v18229_v22, %v18228_v40  ;;  %v18267_v40 = vld [vmem:[%s27742_s5 + $0x108] sm:$0xff] }
 0xa9d   : > { %21601 = vmatprep.mubr.msk.f32.mxu0 %vm13447_vm7, %v14687_v12  ;;  %v14956_v12 = vld [vmem:[#allocation3 + $0x8b] ss:$2 sm:$0xff]  ;;  %v15221_v22 = vld [vmem:[#allocation3 + $0xc6] ss:$2 sm:$0xff] }
 0xa9e   : > { %v14984_v38 = vmax.f32 %v14924_v59, %v14956_v12  ;;  %v15280_v59 = vmax.f32 %v15221_v22, %v15253_v55  ;;  %v15225_v12 = vld [vmem:[#allocation3 + $0x106] ss:$2 sm:$0xff] }
 0xa9f   : > { %v15523_v55 = vld [vmem:[#allocation3 + $0x188] ss:$2 sm:$0xff] }
 0xaa0   : > { %21602 = vmatmul.mubr.msk.f32.vlgmr.msra.gmra.mrb[64].mxu0 %vm13447_vm7, %v14688_v4  ;;  %v27563_v4 = vpack.c.bf16 %v18247_v10, %v18246_v17  ;;  %v15257_v17 = vld [vmem:[#allocation3 + $0x107] ss:$2 sm:$0xff]  ;;  %v15227_v10 = vld [vmem:[#allocation3 + $0x126] ss:$2 sm:$0xff] }
 0xaa1   : > { %21604 = vmatprep.mubr.msk.f32.mxu0 %vm13447_vm7, %v14689_v25  ;;  %21867 = vmatpush3.bf16.msra.mxu0 %v27499_v58  ;;  %v14640_v58 = vld [vmem:[#allocation3 + $0x168] ss:$2 sm:$0xff]  ;;  %v14960_v25 = vld [vmem:[#allocation3 + $0xcb] ss:$2 sm:$0xff] }
 0xaa2   : > { %21869 = vmatprep.subr.bf16.mxu0 %v21868_v28  ;;  %v14695_v51 = vmax.f32 %v14640_v58, %v14672_v39  ;;  %v14940_v58 = vld [vmem:[#allocation3 + $0x1ca] ss:$2 sm:$0xff]  ;;  %v14972_v39 = vld [vmem:[#allocation3 + $0x1cb] ss:$2 sm:$0xff] }
 0xaa3   : > { %v14992_v9 = vmax.f32 %v14940_v58, %v14972_v39  ;;  %v15243_v58 = vld [vmem:[#allocation3 + $0x266] ss:$2 sm:$0xff]  ;;  %v15275_v39 = vld [vmem:[#allocation3 + $0x267] ss:$2 sm:$0xff] }
 0xaa4   : > { %21605 = vmatmul.mubr.msk.f32.gmra.mrb[66].mxu0 %vm13447_vm7, %v14690_v14  ;;  %v14964_v14 = vld [vmem:[#allocation3 + $0x10b] ss:$2 sm:$0xff] }
 0xaa5   : > { %21607 = vmatprep.mubr.msk.f32.mxu0 %vm13447_vm7, %v14691_v60  ;;  %21871 = vmatpush3.bf16.msra.mxu0 %v21868_v28  ;;  %v14928_v28 = vld [vmem:[#allocation3 + $0xca] ss:$2 sm:$0xff]  ;;  %v14966_v60 = vld [vmem:[#allocation3 + $0x16b] ss:$2 sm:$0xff]  ;;  %v14988_v27 = vmax.f32 %v14932_v48, %v14964_v14  ;;  %v15285_v48 = vmax.f32 %v15231_v13, %v15263_v26 }
 0xaa6   : > { %21873 = vmatprep.subr.bf16.mxu0 %v27531_v29  ;;  %v14986_v47 = vmax.f32 %v14928_v28, %v14960_v25  ;;  %v15261_v28 = vld [vmem:[#allocation3 + $0x187] ss:$2 sm:$0xff]  ;;  %v15535_v26 = vld [vmem:[#allocation3 + $0x248] ss:$2 sm:$0xff] }
 0xaa7   : > { %v15565_v13 = vld [vmem:[#allocation3 + $0x229] ss:$2 sm:$0xff] }
 0xaa8   : > { %21608 = vmatmul.mubr.msk.f32.gmra.mrb[68].mxu0 %vm13447_vm7, %v14692_v32  ;;  %v14938_v32 = vld [vmem:[#allocation3 + $0x1aa] ss:$2 sm:$0xff] }
 0xaa9   : > { %21610 = vmatprep.mubr.msk.f32.mxu0 %vm13447_vm7, %v14693_v24  ;;  %v14970_v24 = vld [vmem:[#allocation3 + $0x1ab] ss:$2 sm:$0xff] }
 0xaaa   : > { %v14991_v18 = vmax.f32 %v14938_v32, %v14970_v24  ;;  %v15239_v32 = vld [vmem:[#allocation3 + $0x226] ss:$2 sm:$0xff]  ;;  %v15271_v24 = vld [vmem:[#allocation3 + $0x227] ss:$2 sm:$0xff] }
 0xaac   : > { %21611 = vmatmul.mubr.msk.f32.gmra.mrb[70].mxu0 %vm13447_vm7, %v14694_v56  ;;  %v14942_v56 = vld [vmem:[#allocation3 + $0x1ea] ss:$2 sm:$0xff] }
 0xaad   : > { %21613 = vmatprep.mubr.msk.f32.mxu0 %vm13447_vm7, %v14695_v51  ;;  %v14974_v51 = vld [vmem:[#allocation3 + $0x1eb] ss:$2 sm:$0xff] }
 0xaae   : > { %v14993_v11 = vmax.f32 %v14942_v56, %v14974_v51  ;;  %v15289_v56 = vmax.f32 %v15239_v32, %v15271_v24  ;;  %v15835_v32 = vld [vmem:[#allocation3 + $0x6b] ss:$2 sm:$0xff]  ;;  %v15805_v24 = vld [vmem:[#allocation3 + $0x8a] ss:$2 sm:$0xff] }
 0xab0   : > { %21614 = vmatmul.mubr.msk.f32.gmra.mrb[72].mxu0 %vm13447_vm7, %v14696_v30  ;;  %v14946_v30 = vld [vmem:[#allocation3 + $0x22a] ss:$2 sm:$0xff] }
 0xab1   : > { %21616 = vmatprep.mubr.msk.f32.mxu0 %vm13447_vm7, %v14697_v2  ;;  %v14978_v2 = vld [vmem:[#allocation3 + $0x22b] ss:$2 sm:$0xff] }
 0xab2   : > { %v14995_v49 = vmax.f32 %v14946_v30, %v14978_v2  ;;  %v15541_v2 = vld [vmem:[#allocation3 + $0x69] ss:$2 sm:$0xff] }
 0xab4   : > { %21617 = vmatmul.mubr.msk.f32.gmra.mrb[74].mxu0 %vm13447_vm7, %v14698_v45  ;;  %v15213_v45 = vld [vmem:[#allocation3 + $0x46] ss:$2 sm:$0xff] }
 0xab5   : > { %21619 = vmatprep.mubr.msk.f32.mxu0 %vm13447_vm7, %v14699_v0  ;;  %v15245_v0 = vld [vmem:[#allocation3 + $0x47] ss:$2 sm:$0xff] }
 0xab6   : > { %v15276_v35 = vmax.f32 %v15213_v45, %v15245_v0  ;;  %v15571_v45 = vmax.f32 %v15509_v7, %v15541_v2  ;;  %v15811_v7 = vld [vmem:[#allocation3 + $0xea] ss:$2 sm:$0xff] }
 0xab7   : > { %v15813_v2 = vld [vmem:[#allocation3 + $0x10a] ss:$2 sm:$0xff] }
 0xab8   : > { %21620 = vmatmul.mubr.msk.f32.gmra.mrb[76].mxu0 %vm13447_vm7, %v14700_v52  ;;  %v18248_v52 = vld [vmem:[%s27742_s5 + $0xf0] sm:$0xff] }
 0xab9   : > { %21622 = vmatprep.mubr.msk.f32.mxu0 %vm13447_vm7, %v14701_v1  ;;  %v18249_v1 = vld [vmem:[%s27742_s5 + $0xf8] sm:$0xff] }
 0xabc   : > { %21623 = vmatmul.mubr.msk.f32.gmra.mrb[78].mxu0 %vm13447_vm7, %v14702_v36  ;;  %v21884_v36 = vpack.c.bf16 %v18249_v1, %v18248_v52  ;;  %v15547_v52 = vld [vmem:[#allocation3 + $0xc9] ss:$2 sm:$0xff] }
 0xabd   : > { %21633 = vmatprep.mubr.msk.f32.mxu0 %vm13447_vm7, %v14981_v61  ;;  %v15251_v61 = vld [vmem:[#allocation3 + $0xa7] ss:$2 sm:$0xff]  ;;  %v15574_v8 = vmax.f32 %v15515_v3, %v15547_v52  ;;  %v15819_v3 = vld [vmem:[#allocation3 + $0x1aa] ss:$2 sm:$0xff] }
 0xabe   : > { %v15279_v44 = vmax.f32 %v15219_v62, %v15251_v61  ;;  %v15519_v62 = vld [vmem:[#allocation3 + $0x108] ss:$2 sm:$0xff]  ;;  %v15553_v61 = vld [vmem:[#allocation3 + $0x129] ss:$2 sm:$0xff] }
 0xabf   : > { %v15851_v52 = vld [vmem:[#allocation3 + $0x1ab] ss:$2 sm:$0xff] }
 0xac0   : > { %21634 = vmatmul.mubr.msk.f32.vlgmr.msra.gmra.mrb[64].mxu0 %vm13447_vm7, %v14982_v54  ;;  %v27595_v54 = vpack.c.bf16 %v18267_v40, %v18266_v5 }
 0xac1   : > { %21636 = vmatprep.mubr.msk.f32.mxu0 %vm13447_vm7, %v14983_v42  ;;  %21875 = vmatpush3.bf16.msra.mxu0 %v27531_v29  ;;  %v14934_v29 = vld [vmem:[#allocation3 + $0x16a] ss:$2 sm:$0xff]  ;;  %v15255_v42 = vld [vmem:[#allocation3 + $0xe7] ss:$2 sm:$0xff] }
 0xac2   : > { %21877 = vmatprep.subr.bf16.mxu0 %v21876_v23  ;;  %v14989_v6 = vmax.f32 %v14934_v29, %v14966_v60  ;;  %v15235_v29 = vld [vmem:[#allocation3 + $0x1e6] ss:$2 sm:$0xff]  ;;  %v15267_v60 = vld [vmem:[#allocation3 + $0x1e7] ss:$2 sm:$0xff] }
 0xac3   : > { %v15287_v15 = vmax.f32 %v15235_v29, %v15267_v60 }
 0xac4   : > { %21637 = vmatmul.mubr.msk.f32.gmra.mrb[66].mxu0 %vm13447_vm7, %v14984_v38  ;;  %v15282_v38 = vmax.f32 %v15225_v12, %v15257_v17  ;;  %v15559_v12 = vld [vmem:[#allocation3 + $0x1c9] ss:$2 sm:$0xff] }
 0xac5   : > { %21639 = vmatprep.mubr.msk.f32.mxu0 %vm13447_vm7, %v14985_v46  ;;  %21879 = vmatpush3.bf16.msra.mxu0 %v21876_v23  ;;  %v15223_v23 = vld [vmem:[#allocation3 + $0xe6] ss:$2 sm:$0xff] }
 0xac6   : > { %21881 = vmatprep.subr.bf16.mxu0 %v27563_v4  ;;  %v15281_v21 = vmax.f32 %v15223_v23, %v15255_v42  ;;  %v15229_v46 = vld [vmem:[#allocation3 + $0x186] ss:$2 sm:$0xff]  ;;  %v15557_v23 = vld [vmem:[#allocation3 + $0x1a9] ss:$2 sm:$0xff] }
 0xac7   : > { %v15284_v25 = vmax.f32 %v15229_v46, %v15261_v28  ;;  %v15527_v42 = vld [vmem:[#allocation3 + $0x1c8] ss:$2 sm:$0xff] }
 0xac8   : > { %21640 = vmatmul.mubr.msk.f32.gmra.mrb[68].mxu0 %vm13447_vm7, %v14986_v47  ;;  %v15233_v47 = vld [vmem:[#allocation3 + $0x1c6] ss:$2 sm:$0xff] }
 0xac9   : > { %21642 = vmatprep.mubr.msk.f32.mxu0 %vm13447_vm7, %v14987_v33  ;;  %v15265_v33 = vld [vmem:[#allocation3 + $0x1c7] ss:$2 sm:$0xff] }
 0xaca   : > { %v15286_v14 = vmax.f32 %v15233_v47, %v15265_v33  ;;  %v15567_v47 = vld [vmem:[#allocation3 + $0x249] ss:$2 sm:$0xff]  ;;  %v15537_v33 = vld [vmem:[#allocation3 + $0x268] ss:$2 sm:$0xff] }
 0xacb   : > { %v15584_v29 = vmax.f32 %v15535_v26, %v15567_v47 }
 0xacc   : > { %21643 = vmatmul.mubr.msk.f32.gmra.mrb[70].mxu0 %vm13447_vm7, %v14988_v27  ;;  %v15237_v27 = vld [vmem:[#allocation3 + $0x206] ss:$2 sm:$0xff] }
 0xacd   : > { %21645 = vmatprep.mubr.msk.f32.mxu0 %vm13447_vm7, %v14989_v6  ;;  %v15269_v6 = vld [vmem:[#allocation3 + $0x207] ss:$2 sm:$0xff] }
 0xace   : > { %v15288_v41 = vmax.f32 %v15237_v27, %v15269_v6  ;;  %v15801_v27 = vld [vmem:[#allocation3 + $0x4a] ss:$2 sm:$0xff]  ;;  %v15833_v6 = vld [vmem:[#allocation3 + $0x4b] ss:$2 sm:$0xff] }
 0xad0   : > { %21646 = vmatmul.mubr.msk.f32.gmra.mrb[72].mxu0 %vm13447_vm7, %v14990_v37  ;;  %v15241_v37 = vld [vmem:[#allocation3 + $0x246] ss:$2 sm:$0xff] }
 0xad1   : > { %21648 = vmatprep.mubr.msk.f32.mxu0 %vm13447_vm7, %v14991_v18  ;;  %v15273_v18 = vld [vmem:[#allocation3 + $0x247] ss:$2 sm:$0xff] }
 0xad2   : > { %v15290_v51 = vmax.f32 %v15241_v37, %v15273_v18  ;;  %v15837_v37 = vld [vmem:[#allocation3 + $0x8b] ss:$2 sm:$0xff] }
 0xad4   : > { %21649 = vmatmul.mubr.msk.f32.gmra.mrb[74].mxu0 %vm13447_vm7, %v14992_v9  ;;  %v15291_v9 = vmax.f32 %v15243_v58, %v15275_v39  ;;  %v15866_v58 = vmax.f32 %v15805_v24, %v15837_v37  ;;  %v15807_v39 = vld [vmem:[#allocation3 + $0xaa] ss:$2 sm:$0xff] }
 0xad5   : > { %21651 = vmatprep.mubr.msk.f32.mxu0 %vm13447_vm7, %v14993_v11  ;;  %v15507_v11 = vld [vmem:[#allocation3 + $0x48] ss:$2 sm:$0xff] }
 0xad6   : > { %v15570_v30 = vmax.f32 %v15507_v11, %v15539_v63 }
 0xad8   : > { %21652 = vmatmul.mubr.msk.f32.gmra.mrb[76].mxu0 %vm13447_vm7, %v14994_v16  ;;  %v18268_v16 = vld [vmem:[%s27742_s5 + $0x110] sm:$0xff] }
 0xad9   : > { %21654 = vmatprep.mubr.msk.f32.mxu0 %vm13447_vm7, %v14995_v49  ;;  %v18269_v49 = vld [vmem:[%s27742_s5 + $0x118] sm:$0xff] }
 0xada   : > { %v21892_v0 = vpack.c.bf16 %v18269_v49, %v18268_v16  ;;  %v15845_v16 = vld [vmem:[#allocation3 + $0x10b] ss:$2 sm:$0xff]  ;;  %v15815_v49 = vld [vmem:[#allocation3 + $0x12a] ss:$2 sm:$0xff] }
 0xadc   : > { %21655 = vmatmul.mubr.msk.f32.gmra.mrb[78].mxu0 %vm13447_vm7, %v14996_v31  ;;  %v15572_v31 = vmax.f32 %v15511_v43, %v15543_v53  ;;  %v15847_v43 = vld [vmem:[#allocation3 + $0x12b] ss:$2 sm:$0xff] }
 0xadd   : > { %21665 = vmatprep.mubr.msk.f32.mxu0 %vm13447_vm7, %v15276_v35  ;;  %v15545_v35 = vld [vmem:[#allocation3 + $0xa9] ss:$2 sm:$0xff] }
 0xade   : > { %v15573_v1 = vmax.f32 %v15513_v50, %v15545_v35  ;;  %v15849_v50 = vld [vmem:[#allocation3 + $0x18b] ss:$2 sm:$0xff] }
 0xae0   : > { %21666 = vmatmul.mubr.msk.f32.vlgmr.msra.gmra.mrb[64].mxu0 %vm13447_vm7, %v15277_v20  ;;  %v15549_v20 = vld [vmem:[#allocation3 + $0xe9] ss:$2 sm:$0xff] }
 0xae1   : > { %21668 = vmatprep.mubr.msk.f32.mxu0 %vm13447_vm7, %v15278_v19  ;;  %21883 = vmatpush3.bf16.msra.mxu0 %v27563_v4  ;;  %v15283_v4 = vmax.f32 %v15227_v10, %v15259_v57  ;;  %v15521_v19 = vld [vmem:[#allocation3 + $0x128] ss:$2 sm:$0xff]  ;;  %v15575_v5 = vmax.f32 %v15517_v34, %v15549_v20  ;;  %v15580_v10 = vmax.f32 %v15527_v42, %v15559_v12 }
 0xae2   : > { %21885 = vmatprep.subr.bf16.mxu0 %v21884_v36  ;;  %v15577_v22 = vmax.f32 %v15521_v19, %v15553_v61  ;;  %v15529_v57 = vld [vmem:[#allocation3 + $0x1e8] ss:$2 sm:$0xff]  ;;  %v15873_v34 = vmax.f32 %v15819_v3, %v15851_v52  ;;  %v15857_v61 = vld [vmem:[#allocation3 + $0x20b] ss:$2 sm:$0xff] }
 0xae3   : > { %v15825_v19 = vld [vmem:[#allocation3 + $0x20a] ss:$2 sm:$0xff] }
 0xae4   : > { %21669 = vmatmul.mubr.msk.f32.gmra.mrb[66].mxu0 %vm13447_vm7, %v15279_v44  ;;  %v15555_v44 = vld [vmem:[#allocation3 + $0x189] ss:$2 sm:$0xff] }
 0xae5   : > { %21671 = vmatprep.mubr.msk.f32.mxu0 %vm13447_vm7, %v15280_v59  ;;  %21887 = vmatpush3.bf16.msra.mxu0 %v21884_v36  ;;  %v15551_v36 = vld [vmem:[#allocation3 + $0x109] ss:$2 sm:$0xff]  ;;  %v15525_v59 = vld [vmem:[#allocation3 + $0x1a8] ss:$2 sm:$0xff] }
 0xae6   : > { %21889 = vmatprep.subr.bf16.mxu0 %v27595_v54  ;;  %v15576_v40 = vmax.f32 %v15519_v62, %v15551_v36  ;;  %v15579_v17 = vmax.f32 %v15525_v59, %v15557_v23  ;;  %v15823_v62 = vld [vmem:[#allocation3 + $0x1ea] ss:$2 sm:$0xff]  ;;  %v15855_v36 = vld [vmem:[#allocation3 + $0x1eb] ss:$2 sm:$0xff] }
 0xae7   : > { %v15831_v59 = vld [vmem:[#allocation3 + $0x26a] ss:$2 sm:$0xff]  ;;  %v15863_v23 = vld [vmem:[#allocation3 + $0x26b] ss:$2 sm:$0xff] }
 0xae8   : > { %21672 = vmatmul.mubr.msk.f32.gmra.mrb[68].mxu0 %vm13447_vm7, %v15281_v21  ;;  %v15561_v21 = vld [vmem:[#allocation3 + $0x1e9] ss:$2 sm:$0xff] }
 0xae9   : > { %21674 = vmatprep.mubr.msk.f32.mxu0 %vm13447_vm7, %v15282_v38  ;;  %v15531_v38 = vld [vmem:[#allocation3 + $0x208] ss:$2 sm:$0xff]  ;;  %v15581_v46 = vmax.f32 %v15529_v57, %v15561_v21  ;;  %v23200_v57 = vmov 0.0   ;;  %v16134_v21 = vld [vmem:[#allocation4] sm:$0x1] }
 0xaea   : > { %21785 = vmatprep.mubr.msk.f32.mxu1 %vm23199_vm8, %v23200_v57 }
 0xaec   : > { %21675 = vmatmul.mubr.msk.f32.gmra.mrb[70].mxu0 %vm13447_vm7, %v15283_v4  ;;  %v15563_v4 = vld [vmem:[#allocation3 + $0x209] ss:$2 sm:$0xff] }
 0xaed   : > { %21677 = vmatprep.mubr.msk.f32.mxu0 %vm13447_vm7, %v15284_v25  ;;  %v15582_v28 = vmax.f32 %v15531_v38, %v15563_v4  ;;  %v15533_v25 = vld [vmem:[#allocation3 + $0x228] ss:$2 sm:$0xff]  ;;  %v23201_v38 = vmov 0   ;;  %v18286_v4 = vld [vmem:[%s27743_s6] ss:$0 sm:$0xff] }
 0xaee   : > { %23127 = vset.pattern.permute.xlu0 %v23201_v38 }
 0xaef   : > { %16137 = vperm.xlu0 %23127, %v16134_v21  }
 0xaf0   : > { %21678 = vmatmul.mubr.msk.f32.gmra.mrb[72].mxu0 %vm13447_vm7, %v15285_v48  ;;  %v15569_v48 = vld [vmem:[#allocation3 + $0x269] ss:$2 sm:$0xff] }
 0xaf1   : > { %21680 = vmatprep.mubr.msk.f32.mxu0 %vm13447_vm7, %v15286_v14  ;;  %v15583_v14 = vmax.f32 %v15533_v25, %v15565_v13  ;;  %v15585_v60 = vmax.f32 %v15537_v33, %v15569_v48 }
 0xaf4   : > { %21681 = vmatmul.mubr.msk.f32.gmra.mrb[74].mxu0 %vm13447_vm7, %v15287_v15  ;;  %v15864_v15 = vmax.f32 %v15801_v27, %v15833_v6 }
 0xaf5   : > { %21683 = vmatprep.mubr.msk.f32.mxu0 %vm13447_vm7, %v15288_v41  ;;  %v15803_v41 = vld [vmem:[#allocation3 + $0x6a] ss:$2 sm:$0xff] }
 0xaf6   : > { %v15865_v18 = vmax.f32 %v15803_v41, %v15835_v32 }
 0xaf8   : > { %21684 = vmatmul.mubr.msk.f32.gmra.mrb[76].mxu0 %vm13447_vm7, %v15289_v56  ;;  %v15839_v56 = vld [vmem:[#allocation3 + $0xab] ss:$2 sm:$0xff] }
 0xaf9   : > { %21686 = vmatprep.mubr.msk.f32.mxu0 %vm13447_vm7, %v15290_v51  ;;  %v15809_v51 = vld [vmem:[#allocation3 + $0xca] ss:$2 sm:$0xff]  ;;  %v15867_v11 = vmax.f32 %v15807_v39, %v15839_v56 }
 0xafc   : > { %21687 = vmatmul.mubr.msk.f32.gmra.mrb[78].mxu0 %vm13447_vm7, %v15291_v9  ;;  %v15841_v9 = vld [vmem:[#allocation3 + $0xcb] ss:$2 sm:$0xff] }
 0xafd   : > { %21697 = vmatprep.mubr.msk.f32.mxu0 %vm13447_vm7, %v15570_v30  ;;  %v15868_v63 = vmax.f32 %v15809_v51, %v15841_v9  ;;  %v15843_v30 = vld [vmem:[#allocation3 + $0xeb] ss:$2 sm:$0xff] }
 0xafe   : > { %v15869_v53 = vmax.f32 %v15811_v7, %v15843_v30 }
 0xb00   : > { %21698 = vmatmul.mubr.msk.f32.vlgmr.msra.gmra.mrb[64].mxu0 %vm13447_vm7, %v15571_v45  ;;  %v15870_v45 = vmax.f32 %v15813_v2, %v15845_v16 }
 0xb01   : > { %21700 = vmatprep.mubr.msk.f32.mxu0 %vm13447_vm7, %v15572_v31  ;;  %21891 = vmatpush3.bf16.msra.mxu0 %v27595_v54  ;;  %v15578_v54 = vmax.f32 %v15523_v55, %v15555_v44  ;;  %v15817_v31 = vld [vmem:[#allocation3 + $0x18a] ss:$2 sm:$0xff]  ;;  %v15859_v55 = vld [vmem:[#allocation3 + $0x22b] ss:$2 sm:$0xff] }
 0xb02   : > { %21893 = vmatprep.subr.bf16.mxu0 %v21892_v0  ;;  %v15872_v35 = vmax.f32 %v15817_v31, %v15849_v50  ;;  %v15829_v44 = vld [vmem:[#allocation3 + $0x24a] ss:$2 sm:$0xff] }
 0xb04   : > { %21701 = vmatmul.mubr.msk.f32.gmra.mrb[66].mxu0 %vm13447_vm7, %v15573_v1  ;;  %v15821_v1 = vld [vmem:[#allocation3 + $0x1ca] ss:$2 sm:$0xff] }
 0xb05   : > { %21703 = vmatprep.mubr.msk.f32.mxu0 %vm13447_vm7, %v15574_v8  ;;  %21895 = vmatpush3.bf16.msra.mxu0 %v21892_v0  ;;  %v15871_v0 = vmax.f32 %v15815_v49, %v15847_v43  ;;  %v15853_v8 = vld [vmem:[#allocation3 + $0x1cb] ss:$2 sm:$0xff] }
 0xb06   : > { %v15874_v20 = vmax.f32 %v15821_v1, %v15853_v8 }
 0xb08   : > { %21704 = vmatmul.mubr.msk.f32.gmra.mrb[68].mxu0 %vm13447_vm7, %v15575_v5  ;;  %v15875_v5 = vmax.f32 %v15823_v62, %v15855_v36 }
 0xb09   : > { %21706 = vmatprep.mubr.msk.f32.mxu0 %vm13447_vm7, %v15576_v40  ;;  %v15876_v40 = vmax.f32 %v15825_v19, %v15857_v61 }
 0xb0c   : > { %21707 = vmatmul.mubr.msk.f32.gmra.mrb[70].mxu0 %vm13447_vm7, %v15577_v22  ;;  %v15827_v22 = vld [vmem:[#allocation3 + $0x22a] ss:$2 sm:$0xff] }
 0xb0d   : > { %21709 = vmatprep.mubr.msk.f32.mxu0 %vm13447_vm7, %v15578_v54  ;;  %v15861_v54 = vld [vmem:[#allocation3 + $0x24b] ss:$2 sm:$0xff]  ;;  %v15877_v42 = vmax.f32 %v15827_v22, %v15859_v55 }
 0xb0e   : > { %v15878_v12 = vmax.f32 %v15829_v44, %v15861_v54 }
 0xb10   : > { %21710 = vmatmul.mubr.msk.f32.gmra.mrb[72].mxu0 %vm13447_vm7, %v15579_v17  ;;  %v15879_v17 = vmax.f32 %v15831_v59, %v15863_v23 }
 0xb11   : > { %21712 = vmatprep.mubr.msk.f32.mxu0 %vm13447_vm7, %v15580_v10  ;;  %v23198_v10 = vmov 0.0|0.0  }
 0xb12   : > { %21896 = vmatprep.subr.bf16.mxu1 %v23198_v10 }
 0xb14   : > { %21713 = vmatmul.mubr.msk.f32.gmra.mrb[74].mxu0 %vm13447_vm7, %v15581_v46 }
 0xb15   : > { %21715 = vmatprep.mubr.msk.f32.mxu0 %vm13447_vm7, %v15582_v28 }
 0xb18   : > { %21716 = vmatmul.mubr.msk.f32.gmra.mrb[76].mxu0 %vm13447_vm7, %v15583_v14 }
 0xb19   : > { %21718 = vmatprep.mubr.msk.f32.mxu0 %vm13447_vm7, %v15584_v29 }
 0xb1c   : > { %21719 = vmatmul.mubr.msk.f32.gmra.mrb[78].mxu0 %vm13447_vm7, %v15585_v60 }
 0xb1d   : > { %21729 = vmatprep.mubr.msk.f32.mxu0 %vm13447_vm7, %v15864_v15 }
 0xb20   : > { %21730 = vmatmul.mubr.msk.f32.vlgmr.msra.gmra.mrb[64].mxu0 %vm13447_vm7, %v15865_v18 }
 0xb21   : > { %21732 = vmatprep.mubr.msk.f32.mxu0 %vm13447_vm7, %v15866_v58 }
 0xb24   : > { %21733 = vmatmul.mubr.msk.f32.gmra.mrb[66].mxu0 %vm13447_vm7, %v15867_v11 }
 0xb25   : > { %21735 = vmatprep.mubr.msk.f32.mxu0 %vm13447_vm7, %v15868_v63 }
 0xb28   : > { %21736 = vmatmul.mubr.msk.f32.gmra.mrb[68].mxu0 %vm13447_vm7, %v15869_v53 }
 0xb29   : > { %21738 = vmatprep.mubr.msk.f32.mxu0 %vm13447_vm7, %v15870_v45 }
 0xb2c   : > { %21739 = vmatmul.mubr.msk.f32.gmra.mrb[70].mxu0 %vm13447_vm7, %v15871_v0 }
 0xb2d   : > { %21741 = vmatprep.mubr.msk.f32.mxu0 %vm13447_vm7, %v15872_v35 }
 0xb30   : > { %21742 = vmatmul.mubr.msk.f32.gmra.mrb[72].mxu0 %vm13447_vm7, %v15873_v34 }
 0xb31   : > { %21744 = vmatprep.mubr.msk.f32.mxu0 %vm13447_vm7, %v15874_v20 }
 0xb34   : > { %21745 = vmatmul.mubr.msk.f32.gmra.mrb[74].mxu0 %vm13447_vm7, %v15875_v5 }
 0xb35   : > { %21747 = vmatprep.mubr.msk.f32.mxu0 %vm13447_vm7, %v15876_v40 }
 0xb38   : > { %21748 = vmatmul.mubr.msk.f32.gmra.mrb[76].mxu0 %vm13447_vm7, %v15877_v42 }
 0xb39   : > { %21750 = vmatprep.mubr.msk.f32.mxu0 %vm13447_vm7, %v15878_v12  ;;  %v16133_v12 = vld [vmem:[%s27744_s7] sm:$0x1] }
 0xb3c   : > { %21751 = vmatmul.mubr.msk.f32.gmra.mrb[78].mxu0 %vm13447_vm7, %v15879_v17  ;;  %v16140_v17 = vlaneseq }
 0xb3e   : > { %v16141_v57 = vshrl.u32 %v16140_v17, 7 }
 0xb40   : > { %v16142_v21 = vsub.s32 0, %v16141_v57 }
 0xb6e   : > { %v16138_v38 = vpop.permute.xlu0 %16137 }
 0xbf3   : > { %v21731_v46 = vpop.f32.mrb[64].mxu0 }
 0xbf4   : > { %v16102_v28 = vadd.f32 %v21731_v46, %v18286_v4  ;;  %v15999_v25 = vpop.f32.mrb[65].mxu0 }
 0xbf5   : > { %v16101_v13 = vadd.f32 %v18286_v4, %v15999_v25 }
 0xbf6   : > { %v16118_v26 = vmax.f32 %v16102_v28, 0.0 }
 0xbf7   : > { %v16117_v47 = vmax.f32 %v16101_v13, 0.0  ;;  %v21734_v33 = vpop.f32.mrb[66].mxu0 }
 0xbf8   : > { %v16104_v48 = vadd.f32 %v21734_v33, %v18286_v4  ;;  %v16009_v14 = vpop.f32.mrb[67].mxu0 }
 0xbf9   : > { %v21897_v60 = vpack.c.bf16 %v16118_v26, %v16117_v47  ;;  %v16103_v27 = vadd.f32 %v18286_v4, %v16009_v14 }
 0xbfa   : > { %v16120_v6 = vmax.f32 %v16104_v48, 0.0 }
 0xbfb   : > { %v16119_v15 = vmax.f32 %v16103_v27, 0.0  ;;  %v21737_v41 = vpop.f32.mrb[68].mxu0  ;;  %21899 = vmatpush3.bf16.xpose.msk.msra.mxu1 %vm27656_vm9, %v21897_v60 }
 0xbfc   : > { %v16106_v32 = vadd.f32 %v21737_v41, %v18286_v4  ;;  %v16019_v24 = vpop.f32.mrb[69].mxu0  ;;  %21900 = vmatprep.subr.bf16.mxu1 %v23198_v10 }
 0xbfd   : > { %v21901_v37 = vpack.c.bf16 %v16120_v6, %v16119_v15  ;;  %v16105_v18 = vadd.f32 %v18286_v4, %v16019_v24 }
 0xbfe   : > { %v16122_v58 = vmax.f32 %v16106_v32, 0.0 }
 0xbff   : > { %v16121_v39 = vmax.f32 %v16105_v18, 0.0  ;;  %v21740_v56 = vpop.f32.mrb[70].mxu0 }
 0xc00   : > { %v16108_v51 = vadd.f32 %v21740_v56, %v18286_v4  ;;  %v16029_v9 = vpop.f32.mrb[71].mxu0 }
 0xc01   : > { %v21905_v11 = vpack.c.bf16 %v16122_v58, %v16121_v39  ;;  %v16107_v63 = vadd.f32 %v18286_v4, %v16029_v9 }
 0xc02   : > { %v16124_v7 = vmax.f32 %v16108_v51, 0.0 }
 0xc03   : > { %v16123_v30 = vmax.f32 %v16107_v63, 0.0  ;;  %v21743_v2 = vpop.f32.mrb[72].mxu0  ;;  %21903 = vmatpush3.bf16.xpose.msk.msra.mxu1 %vm27656_vm9, %v21901_v37 }
 0xc04   : > { %v16110_v16 = vadd.f32 %v21743_v2, %v18286_v4  ;;  %v16039_v49 = vpop.f32.mrb[73].mxu0  ;;  %21904 = vmatprep.subr.bf16.mxu1 %v23198_v10 }
 0xc05   : > { %v21909_v43 = vpack.c.bf16 %v16124_v7, %v16123_v30  ;;  %v16109_v53 = vadd.f32 %v18286_v4, %v16039_v49 }
 0xc06   : > { %v16126_v45 = vmax.f32 %v16110_v16, 0.0 }
 0xc07   : > { %v16125_v0 = vmax.f32 %v16109_v53, 0.0  ;;  %v21746_v31 = vpop.f32.mrb[74].mxu0 }
 0xc08   : > { %v16112_v50 = vadd.f32 %v21746_v31, %v18286_v4  ;;  %v16049_v35 = vpop.f32.mrb[75].mxu0 }
 0xc09   : > { %v21913_v3 = vpack.c.bf16 %v16126_v45, %v16125_v0  ;;  %v16111_v52 = vadd.f32 %v18286_v4, %v16049_v35 }
 0xc0a   : > { %v16128_v1 = vmax.f32 %v16112_v50, 0.0 }
 0xc0b   : > { %v16127_v8 = vmax.f32 %v16111_v52, 0.0  ;;  %v21749_v34 = vpop.f32.mrb[76].mxu0  ;;  %21907 = vmatpush3.bf16.xpose.msk.msra.mxu1 %vm27656_vm9, %v21905_v11 }
 0xc0c   : > { %v16114_v20 = vadd.f32 %v21749_v34, %v18286_v4  ;;  %v16059_v62 = vpop.f32.mrb[77].mxu0  ;;  %21908 = vmatprep.subr.bf16.mxu1 %v23198_v10 }
 0xc0d   : > { %v21917_v36 = vpack.c.bf16 %v16128_v1, %v16127_v8  ;;  %v16113_v19 = vadd.f32 %v18286_v4, %v16059_v62 }
 0xc0e   : > { %v16130_v61 = vmax.f32 %v16114_v20, 0.0 }
 0xc0f   : > { %v16129_v5 = vmax.f32 %v16113_v19, 0.0  ;;  %v21752_v40 = vpop.f32.mrb[78].mxu0 }
 0xc10   : > { %v16116_v22 = vadd.f32 %v21752_v40, %v18286_v4  ;;  %v16069_v55 = vpop.f32.mrb[79].mxu0 }
 0xc11   : > { %v21921_v44 = vpack.c.bf16 %v16130_v61, %v16129_v5  ;;  %v16115_v54 = vadd.f32 %v18286_v4, %v16069_v55  ;;  %v16143_v4 = vrot.slane %v16138_v38, %v16142_v21 }
 0xc12   : > { %v16132_v59 = vmax.f32 %v16116_v22, 0.0 }
 0xc13   : > { %v16131_v23 = vmax.f32 %v16115_v54, 0.0  ;;  %21911 = vmatpush3.bf16.xpose.msk.msra.mxu1 %vm27656_vm9, %v21909_v43 }
 0xc14   : > { %21912 = vmatprep.subr.bf16.mxu1 %v23198_v10 }
 0xc15   : > { %v21925_v42 = vpack.c.bf16 %v16132_v59, %v16131_v23 }
 0xc1b   : > { %21915 = vmatpush3.bf16.xpose.msk.msra.mxu1 %vm27656_vm9, %v21913_v3 }
 0xc1c   : > { %21916 = vmatprep.subr.bf16.mxu1 %v23198_v10 }
 0xc23   : > { %21919 = vmatpush3.bf16.xpose.msk.msra.mxu1 %vm27656_vm9, %v21917_v36 }
 0xc24   : > { %21920 = vmatprep.subr.bf16.mxu1 %v23198_v10 }
 0xc2b   : > { %21923 = vmatpush3.bf16.xpose.msk.msra.mxu1 %vm27656_vm9, %v21921_v44 }
 0xc2c   : > { %21924 = vmatprep.subr.bf16.mxu1 %v23198_v10 }
 0xc33   : > { %21927 = vmatpush3.bf16.xpose.msk.msra.mxu1 %vm27656_vm9, %v21925_v42 }
 0xc3a   : > { %21786 = vmatmul.mubr.msk.f32.vlgmr.msra.gmra.mrb[128].mxu1 %vm6970_vm6, %v16133_v12 }
 0xd0d   : > { %v16261_v46 = vpop.f32.mrb[128].mxu1 }
 0xd0e   : > { %v16262_v10 = vadd.f32 %v16261_v46, %v16143_v4  ;;  %v21787_v28 = vpop.f32.mrb[129].mxu1 }
 0xd10   : > { %v16265_v25 = vsub.f32 0.0, %v16262_v10 }
 0xd12   : > { %v16266_v13 = vmul.f32 1.442695, %v16265_v25 }
 0xd14   : > { %23128 = vpow2.f32 %v16266_v13 }
 0xd1e   : > { %v23129_v26 = vpop.eup %23128 }
 0xd1f   : > { %v16268_v47 = vadd.f32 1.0, %v23129_v26 }
 0xd21   : > { %23130 = vrcp.f32 %v16268_v47 }
 0xd2b   : > { %v23131_v33 = vpop.eup %23130 }
 0xd2c   : > { %16271 = vst [vmem:[%s23313_s28] sm:$0x1] %v23131_v33 }
 0xd2d   : > { %23146 = shalt.err (!%p23143_p4)
}
 0xd2e   : > { %s23147_s22 = scalar_lea.hbm %s27692_s26, 16  ;;  %s23151_s17 = scalar_lea.hbm %s27746_s9, 32 }
 0xd2f   : > { %p23148_p7 = scmp.ne.s32.totalorder %s27692_s26, %s23147_s22  ;;  %p23152_p10 = scmp.lt.u32.totalorder %s27692_s26, %s27746_s9 }
 0xd30   : > { %p23153_p11 = scmp.lt.u32.totalorder %s23151_s17, %s23147_s22  ;;  %p23155_p13 = scmp.lt.u32.totalorder %s23147_s22, %s27692_s26 }
 0xd31   : > { %p23149_p8 = pnand %p23148_p7, %p23294_p5 }
 0xd32   : > { %p23154_p12 = por %p23153_p11, %p23152_p10 }
 0xd33   : > { %p23150_p9 = pneg %p23149_p8 }
 0xd34   : > { %p23156_p0 = por %p23155_p13, %p23154_p12 }
 0xd36   : > { %p23157_p1 = pnand %p23156_p0, %p23150_p9 }
 0xd38   : > { %23160 = shalt.err (!%p23157_p1)
}
 0xd39   : > { %23083 = dma.vmem_to_hbm [thread:$0]  (%p23294_p5), %s27694_s23, 16, %s27692_s26, %s16273_s29  }
 0xd3a PF: > { %p23089_p2 = scmp.ge.s32.totalorder %s23195_s14, 2  ;;  %s16297_s25 = sand.u32 1, %s23183_s11  }
 0xd3b   : > { %s16298_s30 = scalar_lea.sflag [#allocation6], %s16297_s25 }
 0xd3c   : > { %p23086_p3 = pnand %p23089_p2, %p23298_p6 }
 0xd3e   : > { %23178 = dma.done.wait (!%p23086_p3), %s16298_s30, 16  }
 0xd3f   : > { %23180 = vsyncadd (!%p23086_p3), %s16298_s30, 4294967280  ;;  %p21_p4 = scmp.ge.s32.totalorder %s23281_s16, 4   ;;  %s28229_s11 = smov %s23187_s12 }
 0xd40   : > { %s28230_s12 = smov %s23191_s13  ;;  %s28231_s13 = smov %s23292_s19 }
 0xd41   : > { %s28232_s14 = smov %s23281_s16  ;;  %23 = sbr.rel (!%p21_p4) target bundleno = 6 (0x6), region = 413 }
 0xd48   :  { %16302 = vsyncpa [#allocation6], 1 }
 0xd49   :  { %16304 = vsyncpa [#allocation6 + $0x1], 1 }

</bundles_post_ra>
